<compile_context>
chip_gen: v5e
topology: v5e:2x2
jax: 0.10.0
libtpu: 0.0.40
codegen_flags: <defaults>
</compile_context>

<pallas_src>
import numpy as np

import jax
import jax.numpy as jnp
from jax.experimental import pallas as pl
from jax.experimental.pallas import tpu as pltpu


def parse_inputs(inp, lookback, lookahead, y_size, x_size, u_size, s_size):
    sizes = [y_size, x_size, u_size, s_size, y_size, u_size]
    parts, o = [], 0
    for s in sizes:
        parts.append(inp[..., o:o + s])
        o += s
    y_past, x_past, u_past, s_past, y_future, u_future = parts
    if lookback > lookahead:
        y_future = y_future[:, :lookahead, :]
        u_future = u_future[:, :lookahead, :]
    if lookahead > lookback:
        y_past = y_past[:, :lookback, :]
        x_past = x_past[:, :lookback, :]
        u_past = u_past[:, :lookback, :]
        s_past = s_past[:, :lookback, :]
    return y_past, x_past, u_past, s_past, u_future, y_future


def _lstm_cell(gates_x, h, c, whh_t, b):
    """One LSTM cell step; weights/bias already permuted to [i, f, o, g]."""
    f32 = jnp.float32
    H = whh_t.shape[0]
    gates = gates_x + jnp.dot(h, whh_t, preferred_element_type=f32) + b
    ifo = jax.nn.sigmoid(gates[:, :3 * H])      # one EUP push for i, f, o
    g = jnp.tanh(gates[:, 3 * H:])              # one EUP push for g
    i = ifo[:, :H]
    f = ifo[:, H:2 * H]
    o = ifo[:, 2 * H:]
    c_new = f * c + i * g
    h_new = o * jnp.tanh(c_new)
    return h_new, c_new


def _darnn_kernel(
    # batched time-series inputs (tiled along batch)
    inp_ref, inpT_ref, yu_past_ref, u_fut_ref,
    # input (encoder) attention params
    wx_t_ref, wh_ai_ref, wc_ai_ref, w_ai2_ref,
    # temporal (decoder) attention params
    va_t_ref, vc_at_ref, w_at2_ref,
    # fused [vh_at | proj] acting on the decoder top-layer hidden state
    wp_vh_ref,
    # encoder LSTM (2 layers), gate columns pre-permuted to [i, f, o, g]
    e0_wih_ref, e0_whh_ref, e0_b_ref,
    e1_wih_ref, e1_whh_ref, e1_b_ref,
    # decoder LSTM (2 layers); layer-0 input weight split into row blocks
    d0_wyu_ref, d0_wu_ref, d0_wy_ref, d0_wctx_ref, d0_whh_ref, d0_b_ref,
    d1_wih_ref, d1_whh_ref, d1_b_ref,
    # output, laid out (lookahead, batch, y) -> one clean leading-axis store
    out_ref,
):
    f32 = jnp.float32
    B, L, Din = inp_ref.shape
    LA = u_fut_ref.shape[1]
    YU = yu_past_ref.shape[2]
    U = u_fut_ref.shape[2]
    He = e0_whh_ref.shape[0]
    Hd = d0_whh_ref.shape[0]

    inp = inp_ref[...]                   # (B, L, Din)
    inpT = inpT_ref[...]                 # (B, Din, L)

    # ----- loop-invariant input-attention term: one flat 2-D MXU matmul -----
    # zX2[b, d, l] = sum_t inpT[b, d, t] * W1[l, t]
    zX2 = jnp.dot(inpT.reshape(B * Din, L), wx_t_ref[...],
                  preferred_element_type=f32).reshape(B, Din, L)
    # attention row-vectors kept at leading-1 shapes; broadcast in the multiply
    w_ai2_row = w_ai2_ref[...].reshape(1, 1, L)
    w_at2_row = w_at2_ref[...].reshape(1, 1, He)

    wh_ai = wh_ai_ref[...]; wc_ai = wc_ai_ref[...]
    va_t = va_t_ref[...]
    e0_wih = e0_wih_ref[...]; e0_whh = e0_whh_ref[...]; e0_b = e0_b_ref[...]
    e1_wih = e1_wih_ref[...]; e1_whh = e1_whh_ref[...]; e1_b = e1_b_ref[...]

    h0 = jnp.zeros((B, He), f32); c0 = jnp.zeros((B, He), f32)
    h1 = jnp.zeros((B, He), f32); c1 = jnp.zeros((B, He), f32)

    # ---------------- encoder with input attention ----------------
    h_list, ze_list = [], []
    for t in range(L):
        # split [h; c] @ W into two dots: no lane-offset concat on the chain
        hc = (jnp.dot(h1, wh_ai, preferred_element_type=f32)
              + jnp.dot(c1, wc_ai, preferred_element_type=f32))     # (B, L)
        z = jnp.tanh(zX2 + hc[:, None, :])                          # (B, Din, L)
        att = jnp.sum(z * w_ai2_row, axis=2)                        # (B, Din)
        x_t = inp[:, t, :] * att                                    # (B, Din)

        g0 = jnp.dot(x_t, e0_wih, preferred_element_type=f32)
        h0, c0 = _lstm_cell(g0, h0, c0, e0_whh, e0_b)
        g1 = jnp.dot(h0, e1_wih, preferred_element_type=f32)
        h1, c1 = _lstm_cell(g1, h1, c1, e1_whh, e1_b)
        h_list.append(h1)
        # temporal-attention image of this step (loop-invariant in the decoder)
        ze_list.append(jnp.dot(h1, va_t, preferred_element_type=f32))

    # stack along a NEW LEADING axis: cheap concat, no sublane-masked stores
    h_e_app = jnp.stack(h_list, axis=0)                             # (L, B, He)
    zE = jnp.stack(ze_list, axis=0)                                 # (L, B, He)

    vc_at = vc_at_ref[...]
    wp_vh = wp_vh_ref[...]               # (Hd, He + y): [vh_at | proj]
    d0_wy = d0_wy_ref[...]; d0_wctx = d0_wctx_ref[...]
    d0_whh = d0_whh_ref[...]; d0_b = d0_b_ref[...]
    d1_wih = d1_wih_ref[...]; d1_whh = d1_whh_ref[...]; d1_b = d1_b_ref[...]

    # known gate-x contributions, hoisted off the recurrent chain
    gx_past = jnp.dot(yu_past_ref[...].reshape(B * L, YU), d0_wyu_ref[...],
                      preferred_element_type=f32).reshape(B, L, 4 * Hd)
    gu_fut = jnp.dot(u_fut_ref[...].reshape(B * LA, U), d0_wu_ref[...],
                     preferred_element_type=f32).reshape(B, LA, 4 * Hd)

    hd0 = jnp.zeros((B, Hd), f32); cd0 = jnp.zeros((B, Hd), f32)
    hd1 = jnp.zeros((B, Hd), f32); cd1 = jnp.zeros((B, Hd), f32)
    h_att = jnp.zeros((B, He), f32)      # == hd1 @ vh_at for hd1 == 0
    y_last = jnp.zeros((B, wp_vh.shape[1] - He), f32)

    def temporal_context(h_att_in, cd):
        hcd = h_att_in + jnp.dot(cd, vc_at, preferred_element_type=f32)  # (B, He)
        z = jnp.tanh(zE + hcd[None, :, :])                               # (L, B, He)
        att = jnp.sum(z * w_at2_row, axis=2)                             # (L, B)
        # VPU weighted sum over the lookback (leading) axis
        ctx = jnp.sum(att[:, :, None] * h_e_app, axis=0)                 # (B, He)
        return ctx

    # ---------------- decoder warm-up over the lookback window ----------------
    for t in range(L):
        ctx = temporal_context(h_att, cd1)
        g0 = gx_past[:, t, :] + jnp.dot(ctx, d0_wctx, preferred_element_type=f32)
        hd0, cd0 = _lstm_cell(g0, hd0, cd0, d0_whh, d0_b)
        g1 = jnp.dot(hd0, d1_wih, preferred_element_type=f32)
        hd1, cd1 = _lstm_cell(g1, hd1, cd1, d1_whh, d1_b)
        # one fused dot from hd1: next attention h-term AND proj(hd1)
        comb = jnp.dot(hd1, wp_vh, preferred_element_type=f32)     # (B, He + y)
        h_att = comb[:, :He]
        y_last = comb[:, He:]

    # ---------------- autoregressive prediction ----------------
    y_preds = []
    for t in range(LA):
        ctx = temporal_context(h_att, cd1)
        g0 = (gu_fut[:, t, :]
              + jnp.dot(y_last, d0_wy, preferred_element_type=f32)
              + jnp.dot(ctx, d0_wctx, preferred_element_type=f32))
        hd0, cd0 = _lstm_cell(g0, hd0, cd0, d0_whh, d0_b)
        g1 = jnp.dot(hd0, d1_wih, preferred_element_type=f32)
        hd1, cd1 = _lstm_cell(g1, hd1, cd1, d1_whh, d1_b)
        comb = jnp.dot(hd1, wp_vh, preferred_element_type=f32)
        h_att = comb[:, :He]
        y_last = comb[:, He:]
        y_preds.append(y_last)

    # single leading-axis store of all predictions (no per-step masked stores)
    out_ref[...] = jnp.stack(y_preds, axis=0).astype(out_ref.dtype)


def _perm_ifog(H):
    """Column permutation taking PyTorch [i, f, g, o] gate order to [i, f, o, g]."""
    return np.concatenate([np.arange(2 * H), np.arange(3 * H, 4 * H),
                           np.arange(2 * H, 3 * H)])


def _prep_lstm(w_ih, w_hh, b_ih, b_hh, H):
    perm = _perm_ifog(H)
    return (w_ih.T[:, perm], w_hh.T[:, perm], (b_ih + b_hh)[perm][None, :])


def _choose_batch_tile(B, cap=64):
    """Return (batch tile TB, padded batch Bp).

    Whole batch in one block when B <= cap: the 20-step serial recurrence is
    replayed once per block, so extra blocks only pay off when each still has
    a healthy MXU M-dimension.  For large B, pick a multiple-of-8 divisor of B
    (<= cap) so the (lookahead, batch, y) output block stays sublane-aligned;
    pad the batch otherwise.  cap ~32-64 keeps the 8 live LSTM state tiles
    mostly register-resident; sweep 32/64 on real workloads.
    """
    if B <= cap:
        return B, B
    for tb in range(cap, 7, -1):
        if tb % 8 == 0 and B % tb == 0:
            return tb, B
    padded = ((B + cap - 1) // cap) * cap
    return cap, padded


def init_params(key, *, x_size, y_size, u_size, s_size, He, Hd, lookback):
    """Deterministic synthetic parameters with the exact nn.Module shapes."""
    Din = x_size + s_size
    d_in = y_size + u_size + He
    shapes = {
        'e_w_ih_l0': (4 * He, Din), 'e_w_hh_l0': (4 * He, He),
        'e_b_ih_l0': (4 * He,), 'e_b_hh_l0': (4 * He,),
        'e_w_ih_l1': (4 * He, He), 'e_w_hh_l1': (4 * He, He),
        'e_b_ih_l1': (4 * He,), 'e_b_hh_l1': (4 * He,),
        'd_w_ih_l0': (4 * Hd, d_in), 'd_w_hh_l0': (4 * Hd, Hd),
        'd_b_ih_l0': (4 * Hd,), 'd_b_hh_l0': (4 * Hd,),
        'd_w_ih_l1': (4 * Hd, Hd), 'd_w_hh_l1': (4 * Hd, Hd),
        'd_b_ih_l1': (4 * Hd,), 'd_b_hh_l1': (4 * Hd,),
        'attn_inp_w1': (lookback, 2 * He + lookback),
        'attn_inp_w2': (1, lookback),
        'attn_tmp_w1': (He, 2 * Hd + He),
        'attn_tmp_w2': (1, He),
        'proj_w': (y_size, Hd),
    }
    keys = jax.random.split(key, len(shapes))
    params = {}
    for k, (name, shp) in zip(keys, shapes.items()):
        params[name] = 0.2 * jax.random.uniform(k, shp, jnp.float32) - 0.1
    return params


def darnn_forward(x, params, *, x_size, y_size, u_size, s_size,
                  He=20, Hd=20, lookback=8, lookahead=4, batch_tile_cap=64):
    y_past, x_past, u_past, s_past, u_future, _ = parse_inputs(
        x, lookback, lookahead, y_size, x_size, u_size, s_size)

    inp = jnp.concatenate([x_past, s_past], axis=2)        # (B, L, x+s)
    inpT = jnp.transpose(inp, (0, 2, 1))                   # (B, x+s, L)
    yu_past = jnp.concatenate([y_past, u_past], axis=2)    # (B, L, y+u)
    B, L = inp.shape[0], lookback
    assert inp.shape[1] == lookback

    p = params

    # --- attention weights: split the concat-Linear blocks, pre-transpose ---
    W1 = p['attn_inp_w1']                 # (L, L + 2He); cols = [inpT | h | c]
    wx_t = W1[:, :L].T                    # (L, L)
    wh_ai = W1[:, L:L + He].T             # (He, L)
    wc_ai = W1[:, L + He:].T              # (He, L)
    w_ai2 = p['attn_inp_w2']              # (1, L)

    V1 = p['attn_tmp_w1']                 # (He, He + 2Hd); cols = [h_e | h_d | c_d]
    va_t = V1[:, :He].T                   # (He, He)
    vh_at = V1[:, He:He + Hd].T           # (Hd, He)
    vc_at = V1[:, He + Hd:].T             # (Hd, He)
    w_at2 = p['attn_tmp_w2']              # (1, He)

    wp = p['proj_w'].T                    # (Hd, y)
    wp_vh = jnp.concatenate([vh_at, wp], axis=1)            # (Hd, He + y) fused

    # --- LSTM weights: (in, 4H), gate columns reordered to [i, f, o, g] ---
    e0_wih, e0_whh, e0_b = _prep_lstm(p['e_w_ih_l0'], p['e_w_hh_l0'],
                                      p['e_b_ih_l0'], p['e_b_hh_l0'], He)
    e1_wih, e1_whh, e1_b = _prep_lstm(p['e_w_ih_l1'], p['e_w_hh_l1'],
                                      p['e_b_ih_l1'], p['e_b_hh_l1'], He)
    d0_wih, d0_whh, d0_b = _prep_lstm(p['d_w_ih_l0'], p['d_w_hh_l0'],
                                      p['d_b_ih_l0'], p['d_b_hh_l0'], Hd)
    d1_wih, d1_whh, d1_b = _prep_lstm(p['d_w_ih_l1'], p['d_w_hh_l1'],
                                      p['d_b_ih_l1'], p['d_b_hh_l1'], Hd)

    # decoder layer-0 input = [y, u, ctx]; row blocks of the (in, 4Hd) matrix
    d0_wyu = d0_wih[:y_size + u_size]                       # (y+u, 4Hd)  warm-up
    d0_wy = d0_wih[:y_size]                                 # (y, 4Hd)    autoregressive
    d0_wu = d0_wih[y_size:y_size + u_size]                  # (u, 4Hd)
    d0_wctx = d0_wih[y_size + u_size:]                      # (He, 4Hd)

    TB, Bp = _choose_batch_tile(B, batch_tile_cap)
    batched = [inp, inpT, yu_past, u_future]
    if Bp > B:
        batched = [jnp.pad(a, ((0, Bp - B), (0, 0), (0, 0))) for a in batched]
    nblk = Bp // TB

    weights = [wx_t, wh_ai, wc_ai, w_ai2,
               va_t, vc_at, w_at2,
               wp_vh,
               e0_wih, e0_whh, e0_b, e1_wih, e1_whh, e1_b,
               d0_wyu, d0_wu, d0_wy, d0_wctx, d0_whh, d0_b,
               d1_wih, d1_whh, d1_b]
    kernel_inputs = [jnp.asarray(a, jnp.float32) for a in batched + weights]

    in_specs = (
        [pl.BlockSpec((TB,) + tuple(a.shape[1:]), lambda i: (i, 0, 0))
         for a in batched]
        + [pl.BlockSpec(tuple(w.shape), lambda i: (0, 0)) for w in weights]
    )
    # output laid out (lookahead, batch, y): batch on sublanes, single store in
    # the kernel; transposed back to (B, lookahead, y) outside.
    out_spec = pl.BlockSpec((lookahead, TB, y_size), lambda i: (0, i, 0))

    grid_spec = pltpu.PrefetchScalarGridSpec(
        num_scalar_prefetch=0,
        grid=(nblk,),
        in_specs=in_specs,
        out_specs=out_spec,
    )

    out = pl.pallas_call(
        _darnn_kernel,
        out_shape=jax.ShapeDtypeStruct((lookahead, Bp, y_size), jnp.float32),
        grid_spec=grid_spec,
        compiler_params=pltpu.CompilerParams(
            dimension_semantics=("parallel",)),
    )(*kernel_inputs)
    return jnp.transpose(out, (1, 0, 2))[:B]


if __name__ == "__main__":
    x_size, y_size, u_size, s_size = 3, 2, 2, 1
    He = Hd = 20
    lookback, lookahead = 8, 4
    B = 2
    T = lookback  # lookback >= lookahead, so the time dim must equal lookback
    total_feat = y_size + x_size + u_size + s_size + y_size + u_size  # 12

    key = jax.random.PRNGKey(0)
    kx, kp = jax.random.split(key)
    x = jax.random.normal(kx, (B, T, total_feat), dtype=jnp.float32)
    params = init_params(kp, x_size=x_size, y_size=y_size, u_size=u_size,
                         s_size=s_size, He=He, Hd=Hd, lookback=lookback)

    out = darnn_forward(x, params, x_size=x_size, y_size=y_size, u_size=u_size,
                        s_size=s_size, He=He, Hd=Hd,
                        lookback=lookback, lookahead=lookahead)
    out = jax.block_until_ready(out)
    assert out.shape == (B, lookahead, y_size), out.shape
    assert bool(jnp.all(jnp.isfinite(out)))
    print("KERNEL_OK")
</pallas_src>

<mosaic_0001>
module attributes {stable_mosaic.version = 11 : i64} {
  func.func @_darnn_kernel(%arg0: i32, %arg1: memref<2x8x4xf32, #tpu.memory_space<vmem>>, %arg2: memref<2x4x8xf32, #tpu.memory_space<vmem>>, %arg3: memref<2x8x4xf32, #tpu.memory_space<vmem>>, %arg4: memref<2x4x2xf32, #tpu.memory_space<vmem>>, %arg5: memref<8x8xf32, #tpu.memory_space<vmem>>, %arg6: memref<20x8xf32, #tpu.memory_space<vmem>>, %arg7: memref<20x8xf32, #tpu.memory_space<vmem>>, %arg8: memref<1x8xf32, #tpu.memory_space<vmem>>, %arg9: memref<20x20xf32, #tpu.memory_space<vmem>>, %arg10: memref<20x20xf32, #tpu.memory_space<vmem>>, %arg11: memref<1x20xf32, #tpu.memory_space<vmem>>, %arg12: memref<20x22xf32, #tpu.memory_space<vmem>>, %arg13: memref<4x80xf32, #tpu.memory_space<vmem>>, %arg14: memref<20x80xf32, #tpu.memory_space<vmem>>, %arg15: memref<1x80xf32, #tpu.memory_space<vmem>>, %arg16: memref<20x80xf32, #tpu.memory_space<vmem>>, %arg17: memref<20x80xf32, #tpu.memory_space<vmem>>, %arg18: memref<1x80xf32, #tpu.memory_space<vmem>>, %arg19: memref<4x80xf32, #tpu.memory_space<vmem>>, %arg20: memref<2x80xf32, #tpu.memory_space<vmem>>, %arg21: memref<2x80xf32, #tpu.memory_space<vmem>>, %arg22: memref<20x80xf32, #tpu.memory_space<vmem>>, %arg23: memref<20x80xf32, #tpu.memory_space<vmem>>, %arg24: memref<1x80xf32, #tpu.memory_space<vmem>>, %arg25: memref<20x80xf32, #tpu.memory_space<vmem>>, %arg26: memref<20x80xf32, #tpu.memory_space<vmem>>, %arg27: memref<1x80xf32, #tpu.memory_space<vmem>>, %arg28: memref<4x2x2xf32, #tpu.memory_space<vmem>>) attributes {dimension_semantics = [#tpu.dimension_semantics<parallel>], iteration_bounds = array<i64: 1>, scalar_prefetch = 0 : i64, scratch_operands = 0 : i64, tpu.core_type = #tpu.core_type<tc>, window_params = [{transform_indices = @transform_0, window_bounds = array<i64: 2, 8, 4>}, {transform_indices = @transform_1, window_bounds = array<i64: 2, 4, 8>}, {transform_indices = @transform_2, window_bounds = array<i64: 2, 8, 4>}, {transform_indices = @transform_3, window_bounds = array<i64: 2, 4, 2>}, {pipeline_mode = #tpu.pipeline_mode<synchronous>, transform_indices = @transform_4, window_bounds = array<i64: 8, 8>}, {pipeline_mode = #tpu.pipeline_mode<synchronous>, transform_indices = @transform_5, window_bounds = array<i64: 20, 8>}, {pipeline_mode = #tpu.pipeline_mode<synchronous>, transform_indices = @transform_6, window_bounds = array<i64: 20, 8>}, {pipeline_mode = #tpu.pipeline_mode<synchronous>, transform_indices = @transform_7, window_bounds = array<i64: 1, 8>}, {pipeline_mode = #tpu.pipeline_mode<synchronous>, transform_indices = @transform_8, window_bounds = array<i64: 20, 20>}, {pipeline_mode = #tpu.pipeline_mode<synchronous>, transform_indices = @transform_9, window_bounds = array<i64: 20, 20>}, {pipeline_mode = #tpu.pipeline_mode<synchronous>, transform_indices = @transform_10, window_bounds = array<i64: 1, 20>}, {pipeline_mode = #tpu.pipeline_mode<synchronous>, transform_indices = @transform_11, window_bounds = array<i64: 20, 22>}, {pipeline_mode = #tpu.pipeline_mode<synchronous>, transform_indices = @transform_12, window_bounds = array<i64: 4, 80>}, {pipeline_mode = #tpu.pipeline_mode<synchronous>, transform_indices = @transform_13, window_bounds = array<i64: 20, 80>}, {pipeline_mode = #tpu.pipeline_mode<synchronous>, transform_indices = @transform_14, window_bounds = array<i64: 1, 80>}, {pipeline_mode = #tpu.pipeline_mode<synchronous>, transform_indices = @transform_15, window_bounds = array<i64: 20, 80>}, {pipeline_mode = #tpu.pipeline_mode<synchronous>, transform_indices = @transform_16, window_bounds = array<i64: 20, 80>}, {pipeline_mode = #tpu.pipeline_mode<synchronous>, transform_indices = @transform_17, window_bounds = array<i64: 1, 80>}, {pipeline_mode = #tpu.pipeline_mode<synchronous>, transform_indices = @transform_18, window_bounds = array<i64: 4, 80>}, {pipeline_mode = #tpu.pipeline_mode<synchronous>, transform_indices = @transform_19, window_bounds = array<i64: 2, 80>}, {pipeline_mode = #tpu.pipeline_mode<synchronous>, transform_indices = @transform_20, window_bounds = array<i64: 2, 80>}, {pipeline_mode = #tpu.pipeline_mode<synchronous>, transform_indices = @transform_21, window_bounds = array<i64: 20, 80>}, {pipeline_mode = #tpu.pipeline_mode<synchronous>, transform_indices = @transform_22, window_bounds = array<i64: 20, 80>}, {pipeline_mode = #tpu.pipeline_mode<synchronous>, transform_indices = @transform_23, window_bounds = array<i64: 1, 80>}, {pipeline_mode = #tpu.pipeline_mode<synchronous>, transform_indices = @transform_24, window_bounds = array<i64: 20, 80>}, {pipeline_mode = #tpu.pipeline_mode<synchronous>, transform_indices = @transform_25, window_bounds = array<i64: 20, 80>}, {pipeline_mode = #tpu.pipeline_mode<synchronous>, transform_indices = @transform_26, window_bounds = array<i64: 1, 80>}, {transform_indices = @transform_27, window_bounds = array<i64: 4, 2, 2>}]} {
    %c0 = arith.constant 0 : index
    %c0_0 = arith.constant 0 : index
    %c0_1 = arith.constant 0 : index
    %0 = vector.load %arg1[%c0, %c0_0, %c0_1] : memref<2x8x4xf32, #tpu.memory_space<vmem>>, vector<2x8x4xf32>
    %c0_2 = arith.constant 0 : index
    %c0_3 = arith.constant 0 : index
    %c0_4 = arith.constant 0 : index
    %1 = vector.load %arg2[%c0_2, %c0_3, %c0_4] : memref<2x4x8xf32, #tpu.memory_space<vmem>>, vector<2x4x8xf32>
    %2 = vector.shape_cast %1 : vector<2x4x8xf32> to vector<8x8xf32>
    %c0_5 = arith.constant 0 : index
    %c0_6 = arith.constant 0 : index
    %3 = vector.load %arg5[%c0_5, %c0_6] : memref<8x8xf32, #tpu.memory_space<vmem>>, vector<8x8xf32>
    %cst = arith.constant dense<0.000000e+00> : vector<8x8xf32>
    %4 = tpu.matmul %2, %3, %cst {dimension_numbers = #tpu.dot_dimension_numbers<[1], [0], [0], [1], [0, 0, 1, 1], [], []>} : vector<8x8xf32>, vector<8x8xf32>, vector<8x8xf32> -> vector<8x8xf32>
    %5 = vector.shape_cast %4 : vector<8x8xf32> to vector<2x4x8xf32>
    %c0_7 = arith.constant 0 : index
    %c0_8 = arith.constant 0 : index
    %6 = vector.load %arg8[%c0_7, %c0_8] : memref<1x8xf32, #tpu.memory_space<vmem>>, vector<1x8xf32>
    %7 = vector.shape_cast %6 : vector<1x8xf32> to vector<1x1x8xf32>
    %c0_9 = arith.constant 0 : index
    %c0_10 = arith.constant 0 : index
    %8 = vector.load %arg11[%c0_9, %c0_10] : memref<1x20xf32, #tpu.memory_space<vmem>>, vector<1x20xf32>
    %9 = vector.shape_cast %8 : vector<1x20xf32> to vector<1x1x20xf32>
    %c0_11 = arith.constant 0 : index
    %c0_12 = arith.constant 0 : index
    %10 = vector.load %arg6[%c0_11, %c0_12] : memref<20x8xf32, #tpu.memory_space<vmem>>, vector<20x8xf32>
    %c0_13 = arith.constant 0 : index
    %c0_14 = arith.constant 0 : index
    %11 = vector.load %arg7[%c0_13, %c0_14] : memref<20x8xf32, #tpu.memory_space<vmem>>, vector<20x8xf32>
    %c0_15 = arith.constant 0 : index
    %c0_16 = arith.constant 0 : index
    %12 = vector.load %arg9[%c0_15, %c0_16] : memref<20x20xf32, #tpu.memory_space<vmem>>, vector<20x20xf32>
    %c0_17 = arith.constant 0 : index
    %c0_18 = arith.constant 0 : index
    %13 = vector.load %arg13[%c0_17, %c0_18] : memref<4x80xf32, #tpu.memory_space<vmem>>, vector<4x80xf32>
    %c0_19 = arith.constant 0 : index
    %c0_20 = arith.constant 0 : index
    %14 = vector.load %arg14[%c0_19, %c0_20] : memref<20x80xf32, #tpu.memory_space<vmem>>, vector<20x80xf32>
    %c0_21 = arith.constant 0 : index
    %c0_22 = arith.constant 0 : index
    %15 = vector.load %arg15[%c0_21, %c0_22] : memref<1x80xf32, #tpu.memory_space<vmem>>, vector<1x80xf32>
    %c0_23 = arith.constant 0 : index
    %c0_24 = arith.constant 0 : index
    %16 = vector.load %arg16[%c0_23, %c0_24] : memref<20x80xf32, #tpu.memory_space<vmem>>, vector<20x80xf32>
    %c0_25 = arith.constant 0 : index
    %c0_26 = arith.constant 0 : index
    %17 = vector.load %arg17[%c0_25, %c0_26] : memref<20x80xf32, #tpu.memory_space<vmem>>, vector<20x80xf32>
    %c0_27 = arith.constant 0 : index
    %c0_28 = arith.constant 0 : index
    %18 = vector.load %arg18[%c0_27, %c0_28] : memref<1x80xf32, #tpu.memory_space<vmem>>, vector<1x80xf32>
    %cst_29 = arith.constant 0.000000e+00 : f32
    %19 = vector.broadcast %cst_29 : f32 to vector<2x20xf32>
    %cst_30 = arith.constant 0.000000e+00 : f32
    %20 = vector.broadcast %cst_30 : f32 to vector<2x20xf32>
    %cst_31 = arith.constant 0.000000e+00 : f32
    %21 = vector.broadcast %cst_31 : f32 to vector<2x20xf32>
    %cst_32 = arith.constant 0.000000e+00 : f32
    %22 = vector.broadcast %cst_32 : f32 to vector<2x20xf32>
    %cst_33 = arith.constant dense<0.000000e+00> : vector<2x8xf32>
    %23 = tpu.matmul %21, %10, %cst_33 {dimension_numbers = #tpu.dot_dimension_numbers<[1], [0], [0], [1], [0, 0, 1, 1], [], []>} : vector<2x20xf32>, vector<20x8xf32>, vector<2x8xf32> -> vector<2x8xf32>
    %cst_34 = arith.constant dense<0.000000e+00> : vector<2x8xf32>
    %24 = tpu.matmul %22, %11, %cst_34 {dimension_numbers = #tpu.dot_dimension_numbers<[1], [0], [0], [1], [0, 0, 1, 1], [], []>} : vector<2x20xf32>, vector<20x8xf32>, vector<2x8xf32> -> vector<2x8xf32>
    %25 = arith.addf %23, %24 : vector<2x8xf32>
    %26 = vector.shape_cast %25 : vector<2x8xf32> to vector<2x1x8xf32>
    %27 = vector.broadcast %26 : vector<2x1x8xf32> to vector<2x4x8xf32>
    %28 = arith.addf %5, %27 : vector<2x4x8xf32>
    %29 = math.tanh %28 : vector<2x4x8xf32>
    %30 = vector.broadcast %7 : vector<1x1x8xf32> to vector<2x4x8xf32>
    %31 = arith.mulf %29, %30 : vector<2x4x8xf32>
    %cst_35 = arith.constant dense<0.000000e+00> : vector<2x4xf32>
    %32 = vector.multi_reduction <add>, %31, %cst_35 [2] : vector<2x4x8xf32> to vector<2x4xf32>
    %33 = vector.extract_strided_slice %0 {offsets = [0, 0, 0], sizes = [2, 1, 4], strides = [1, 1, 1]} : vector<2x8x4xf32> to vector<2x1x4xf32>
    %34 = vector.shape_cast %33 : vector<2x1x4xf32> to vector<2x4xf32>
    %35 = arith.mulf %34, %32 : vector<2x4xf32>
    %cst_36 = arith.constant dense<0.000000e+00> : vector<2x80xf32>
    %36 = tpu.matmul %35, %13, %cst_36 {dimension_numbers = #tpu.dot_dimension_numbers<[1], [0], [0], [1], [0, 0, 1, 1], [], []>} : vector<2x4xf32>, vector<4x80xf32>, vector<2x80xf32> -> vector<2x80xf32>
    %cst_37 = arith.constant dense<0.000000e+00> : vector<2x80xf32>
    %37 = tpu.matmul %19, %14, %cst_37 {dimension_numbers = #tpu.dot_dimension_numbers<[1], [0], [0], [1], [0, 0, 1, 1], [], []>} : vector<2x20xf32>, vector<20x80xf32>, vector<2x80xf32> -> vector<2x80xf32>
    %38 = arith.addf %36, %37 : vector<2x80xf32>
    %39 = vector.broadcast %15 : vector<1x80xf32> to vector<2x80xf32>
    %40 = arith.addf %38, %39 : vector<2x80xf32>
    %41 = vector.extract_strided_slice %40 {offsets = [0, 0], sizes = [2, 60], strides = [1, 1]} : vector<2x80xf32> to vector<2x60xf32>
    %42 = arith.negf %41 : vector<2x60xf32>
    %43 = math.exp %42 : vector<2x60xf32>
    %cst_38 = arith.constant 1.000000e+00 : f32
    %44 = vector.broadcast %cst_38 : f32 to vector<2x60xf32>
    %45 = arith.addf %44, %43 : vector<2x60xf32>
    %46 = arith.divf %44, %45 : vector<2x60xf32>
    %47 = vector.extract_strided_slice %40 {offsets = [0, 60], sizes = [2, 20], strides = [1, 1]} : vector<2x80xf32> to vector<2x20xf32>
    %48 = math.tanh %47 : vector<2x20xf32>
    %49 = vector.extract_strided_slice %46 {offsets = [0, 0], sizes = [2, 20], strides = [1, 1]} : vector<2x60xf32> to vector<2x20xf32>
    %50 = vector.extract_strided_slice %46 {offsets = [0, 20], sizes = [2, 20], strides = [1, 1]} : vector<2x60xf32> to vector<2x20xf32>
    %51 = vector.extract_strided_slice %46 {offsets = [0, 40], sizes = [2, 20], strides = [1, 1]} : vector<2x60xf32> to vector<2x20xf32>
    %52 = arith.mulf %50, %20 : vector<2x20xf32>
    %53 = arith.mulf %49, %48 : vector<2x20xf32>
    %54 = arith.addf %52, %53 : vector<2x20xf32>
    %55 = math.tanh %54 : vector<2x20xf32>
    %56 = arith.mulf %51, %55 : vector<2x20xf32>
    %cst_39 = arith.constant dense<0.000000e+00> : vector<2x80xf32>
    %57 = tpu.matmul %56, %16, %cst_39 {dimension_numbers = #tpu.dot_dimension_numbers<[1], [0], [0], [1], [0, 0, 1, 1], [], []>} : vector<2x20xf32>, vector<20x80xf32>, vector<2x80xf32> -> vector<2x80xf32>
    %cst_40 = arith.constant dense<0.000000e+00> : vector<2x80xf32>
    %58 = tpu.matmul %21, %17, %cst_40 {dimension_numbers = #tpu.dot_dimension_numbers<[1], [0], [0], [1], [0, 0, 1, 1], [], []>} : vector<2x20xf32>, vector<20x80xf32>, vector<2x80xf32> -> vector<2x80xf32>
    %59 = arith.addf %57, %58 : vector<2x80xf32>
    %60 = vector.broadcast %18 : vector<1x80xf32> to vector<2x80xf32>
    %61 = arith.addf %59, %60 : vector<2x80xf32>
    %62 = vector.extract_strided_slice %61 {offsets = [0, 0], sizes = [2, 60], strides = [1, 1]} : vector<2x80xf32> to vector<2x60xf32>
    %63 = arith.negf %62 : vector<2x60xf32>
    %64 = math.exp %63 : vector<2x60xf32>
    %cst_41 = arith.constant 1.000000e+00 : f32
    %65 = vector.broadcast %cst_41 : f32 to vector<2x60xf32>
    %66 = arith.addf %65, %64 : vector<2x60xf32>
    %67 = arith.divf %65, %66 : vector<2x60xf32>
    %68 = vector.extract_strided_slice %61 {offsets = [0, 60], sizes = [2, 20], strides = [1, 1]} : vector<2x80xf32> to vector<2x20xf32>
    %69 = math.tanh %68 : vector<2x20xf32>
    %70 = vector.extract_strided_slice %67 {offsets = [0, 0], sizes = [2, 20], strides = [1, 1]} : vector<2x60xf32> to vector<2x20xf32>
    %71 = vector.extract_strided_slice %67 {offsets = [0, 20], sizes = [2, 20], strides = [1, 1]} : vector<2x60xf32> to vector<2x20xf32>
    %72 = vector.extract_strided_slice %67 {offsets = [0, 40], sizes = [2, 20], strides = [1, 1]} : vector<2x60xf32> to vector<2x20xf32>
    %73 = arith.mulf %71, %22 : vector<2x20xf32>
    %74 = arith.mulf %70, %69 : vector<2x20xf32>
    %75 = arith.addf %73, %74 : vector<2x20xf32>
    %76 = math.tanh %75 : vector<2x20xf32>
    %77 = arith.mulf %72, %76 : vector<2x20xf32>
    %cst_42 = arith.constant dense<0.000000e+00> : vector<2x20xf32>
    %78 = tpu.matmul %77, %12, %cst_42 {dimension_numbers = #tpu.dot_dimension_numbers<[1], [0], [0], [1], [0, 0, 1, 1], [], []>} : vector<2x20xf32>, vector<20x20xf32>, vector<2x20xf32> -> vector<2x20xf32>
    %cst_43 = arith.constant dense<0.000000e+00> : vector<2x8xf32>
    %79 = tpu.matmul %77, %10, %cst_43 {dimension_numbers = #tpu.dot_dimension_numbers<[1], [0], [0], [1], [0, 0, 1, 1], [], []>} : vector<2x20xf32>, vector<20x8xf32>, vector<2x8xf32> -> vector<2x8xf32>
    %cst_44 = arith.constant dense<0.000000e+00> : vector<2x8xf32>
    %80 = tpu.matmul %75, %11, %cst_44 {dimension_numbers = #tpu.dot_dimension_numbers<[1], [0], [0], [1], [0, 0, 1, 1], [], []>} : vector<2x20xf32>, vector<20x8xf32>, vector<2x8xf32> -> vector<2x8xf32>
    %81 = arith.addf %79, %80 : vector<2x8xf32>
    %82 = vector.shape_cast %81 : vector<2x8xf32> to vector<2x1x8xf32>
    %83 = vector.broadcast %82 : vector<2x1x8xf32> to vector<2x4x8xf32>
    %84 = arith.addf %5, %83 : vector<2x4x8xf32>
    %85 = math.tanh %84 : vector<2x4x8xf32>
    %86 = vector.broadcast %7 : vector<1x1x8xf32> to vector<2x4x8xf32>
    %87 = arith.mulf %85, %86 : vector<2x4x8xf32>
    %cst_45 = arith.constant dense<0.000000e+00> : vector<2x4xf32>
    %88 = vector.multi_reduction <add>, %87, %cst_45 [2] : vector<2x4x8xf32> to vector<2x4xf32>
    %89 = vector.extract_strided_slice %0 {offsets = [0, 1, 0], sizes = [2, 1, 4], strides = [1, 1, 1]} : vector<2x8x4xf32> to vector<2x1x4xf32>
    %90 = vector.shape_cast %89 : vector<2x1x4xf32> to vector<2x4xf32>
    %91 = arith.mulf %90, %88 : vector<2x4xf32>
    %cst_46 = arith.constant dense<0.000000e+00> : vector<2x80xf32>
    %92 = tpu.matmul %91, %13, %cst_46 {dimension_numbers = #tpu.dot_dimension_numbers<[1], [0], [0], [1], [0, 0, 1, 1], [], []>} : vector<2x4xf32>, vector<4x80xf32>, vector<2x80xf32> -> vector<2x80xf32>
    %cst_47 = arith.constant dense<0.000000e+00> : vector<2x80xf32>
    %93 = tpu.matmul %56, %14, %cst_47 {dimension_numbers = #tpu.dot_dimension_numbers<[1], [0], [0], [1], [0, 0, 1, 1], [], []>} : vector<2x20xf32>, vector<20x80xf32>, vector<2x80xf32> -> vector<2x80xf32>
    %94 = arith.addf %92, %93 : vector<2x80xf32>
    %95 = vector.broadcast %15 : vector<1x80xf32> to vector<2x80xf32>
    %96 = arith.addf %94, %95 : vector<2x80xf32>
    %97 = vector.extract_strided_slice %96 {offsets = [0, 0], sizes = [2, 60], strides = [1, 1]} : vector<2x80xf32> to vector<2x60xf32>
    %98 = arith.negf %97 : vector<2x60xf32>
    %99 = math.exp %98 : vector<2x60xf32>
    %cst_48 = arith.constant 1.000000e+00 : f32
    %100 = vector.broadcast %cst_48 : f32 to vector<2x60xf32>
    %101 = arith.addf %100, %99 : vector<2x60xf32>
    %102 = arith.divf %100, %101 : vector<2x60xf32>
    %103 = vector.extract_strided_slice %96 {offsets = [0, 60], sizes = [2, 20], strides = [1, 1]} : vector<2x80xf32> to vector<2x20xf32>
    %104 = math.tanh %103 : vector<2x20xf32>
    %105 = vector.extract_strided_slice %102 {offsets = [0, 0], sizes = [2, 20], strides = [1, 1]} : vector<2x60xf32> to vector<2x20xf32>
    %106 = vector.extract_strided_slice %102 {offsets = [0, 20], sizes = [2, 20], strides = [1, 1]} : vector<2x60xf32> to vector<2x20xf32>
    %107 = vector.extract_strided_slice %102 {offsets = [0, 40], sizes = [2, 20], strides = [1, 1]} : vector<2x60xf32> to vector<2x20xf32>
    %108 = arith.mulf %106, %54 : vector<2x20xf32>
    %109 = arith.mulf %105, %104 : vector<2x20xf32>
    %110 = arith.addf %108, %109 : vector<2x20xf32>
    %111 = math.tanh %110 : vector<2x20xf32>
    %112 = arith.mulf %107, %111 : vector<2x20xf32>
    %cst_49 = arith.constant dense<0.000000e+00> : vector<2x80xf32>
    %113 = tpu.matmul %112, %16, %cst_49 {dimension_numbers = #tpu.dot_dimension_numbers<[1], [0], [0], [1], [0, 0, 1, 1], [], []>} : vector<2x20xf32>, vector<20x80xf32>, vector<2x80xf32> -> vector<2x80xf32>
    %cst_50 = arith.constant dense<0.000000e+00> : vector<2x80xf32>
    %114 = tpu.matmul %77, %17, %cst_50 {dimension_numbers = #tpu.dot_dimension_numbers<[1], [0], [0], [1], [0, 0, 1, 1], [], []>} : vector<2x20xf32>, vector<20x80xf32>, vector<2x80xf32> -> vector<2x80xf32>
    %115 = arith.addf %113, %114 : vector<2x80xf32>
    %116 = vector.broadcast %18 : vector<1x80xf32> to vector<2x80xf32>
    %117 = arith.addf %115, %116 : vector<2x80xf32>
    %118 = vector.extract_strided_slice %117 {offsets = [0, 0], sizes = [2, 60], strides = [1, 1]} : vector<2x80xf32> to vector<2x60xf32>
    %119 = arith.negf %118 : vector<2x60xf32>
    %120 = math.exp %119 : vector<2x60xf32>
    %cst_51 = arith.constant 1.000000e+00 : f32
    %121 = vector.broadcast %cst_51 : f32 to vector<2x60xf32>
    %122 = arith.addf %121, %120 : vector<2x60xf32>
    %123 = arith.divf %121, %122 : vector<2x60xf32>
    %124 = vector.extract_strided_slice %117 {offsets = [0, 60], sizes = [2, 20], strides = [1, 1]} : vector<2x80xf32> to vector<2x20xf32>
    %125 = math.tanh %124 : vector<2x20xf32>
    %126 = vector.extract_strided_slice %123 {offsets = [0, 0], sizes = [2, 20], strides = [1, 1]} : vector<2x60xf32> to vector<2x20xf32>
    %127 = vector.extract_strided_slice %123 {offsets = [0, 20], sizes = [2, 20], strides = [1, 1]} : vector<2x60xf32> to vector<2x20xf32>
    %128 = vector.extract_strided_slice %123 {offsets = [0, 40], sizes = [2, 20], strides = [1, 1]} : vector<2x60xf32> to vector<2x20xf32>
    %129 = arith.mulf %127, %75 : vector<2x20xf32>
    %130 = arith.mulf %126, %125 : vector<2x20xf32>
    %131 = arith.addf %129, %130 : vector<2x20xf32>
    %132 = math.tanh %131 : vector<2x20xf32>
    %133 = arith.mulf %128, %132 : vector<2x20xf32>
    %cst_52 = arith.constant dense<0.000000e+00> : vector<2x20xf32>
    %134 = tpu.matmul %133, %12, %cst_52 {dimension_numbers = #tpu.dot_dimension_numbers<[1], [0], [0], [1], [0, 0, 1, 1], [], []>} : vector<2x20xf32>, vector<20x20xf32>, vector<2x20xf32> -> vector<2x20xf32>
    %cst_53 = arith.constant dense<0.000000e+00> : vector<2x8xf32>
    %135 = tpu.matmul %133, %10, %cst_53 {dimension_numbers = #tpu.dot_dimension_numbers<[1], [0], [0], [1], [0, 0, 1, 1], [], []>} : vector<2x20xf32>, vector<20x8xf32>, vector<2x8xf32> -> vector<2x8xf32>
    %cst_54 = arith.constant dense<0.000000e+00> : vector<2x8xf32>
    %136 = tpu.matmul %131, %11, %cst_54 {dimension_numbers = #tpu.dot_dimension_numbers<[1], [0], [0], [1], [0, 0, 1, 1], [], []>} : vector<2x20xf32>, vector<20x8xf32>, vector<2x8xf32> -> vector<2x8xf32>
    %137 = arith.addf %135, %136 : vector<2x8xf32>
    %138 = vector.shape_cast %137 : vector<2x8xf32> to vector<2x1x8xf32>
    %139 = vector.broadcast %138 : vector<2x1x8xf32> to vector<2x4x8xf32>
    %140 = arith.addf %5, %139 : vector<2x4x8xf32>
    %141 = math.tanh %140 : vector<2x4x8xf32>
    %142 = vector.broadcast %7 : vector<1x1x8xf32> to vector<2x4x8xf32>
    %143 = arith.mulf %141, %142 : vector<2x4x8xf32>
    %cst_55 = arith.constant dense<0.000000e+00> : vector<2x4xf32>
    %144 = vector.multi_reduction <add>, %143, %cst_55 [2] : vector<2x4x8xf32> to vector<2x4xf32>
    %145 = vector.extract_strided_slice %0 {offsets = [0, 2, 0], sizes = [2, 1, 4], strides = [1, 1, 1]} : vector<2x8x4xf32> to vector<2x1x4xf32>
    %146 = vector.shape_cast %145 : vector<2x1x4xf32> to vector<2x4xf32>
    %147 = arith.mulf %146, %144 : vector<2x4xf32>
    %cst_56 = arith.constant dense<0.000000e+00> : vector<2x80xf32>
    %148 = tpu.matmul %147, %13, %cst_56 {dimension_numbers = #tpu.dot_dimension_numbers<[1], [0], [0], [1], [0, 0, 1, 1], [], []>} : vector<2x4xf32>, vector<4x80xf32>, vector<2x80xf32> -> vector<2x80xf32>
    %cst_57 = arith.constant dense<0.000000e+00> : vector<2x80xf32>
    %149 = tpu.matmul %112, %14, %cst_57 {dimension_numbers = #tpu.dot_dimension_numbers<[1], [0], [0], [1], [0, 0, 1, 1], [], []>} : vector<2x20xf32>, vector<20x80xf32>, vector<2x80xf32> -> vector<2x80xf32>
    %150 = arith.addf %148, %149 : vector<2x80xf32>
    %151 = vector.broadcast %15 : vector<1x80xf32> to vector<2x80xf32>
    %152 = arith.addf %150, %151 : vector<2x80xf32>
    %153 = vector.extract_strided_slice %152 {offsets = [0, 0], sizes = [2, 60], strides = [1, 1]} : vector<2x80xf32> to vector<2x60xf32>
    %154 = arith.negf %153 : vector<2x60xf32>
    %155 = math.exp %154 : vector<2x60xf32>
    %cst_58 = arith.constant 1.000000e+00 : f32
    %156 = vector.broadcast %cst_58 : f32 to vector<2x60xf32>
    %157 = arith.addf %156, %155 : vector<2x60xf32>
    %158 = arith.divf %156, %157 : vector<2x60xf32>
    %159 = vector.extract_strided_slice %152 {offsets = [0, 60], sizes = [2, 20], strides = [1, 1]} : vector<2x80xf32> to vector<2x20xf32>
    %160 = math.tanh %159 : vector<2x20xf32>
    %161 = vector.extract_strided_slice %158 {offsets = [0, 0], sizes = [2, 20], strides = [1, 1]} : vector<2x60xf32> to vector<2x20xf32>
    %162 = vector.extract_strided_slice %158 {offsets = [0, 20], sizes = [2, 20], strides = [1, 1]} : vector<2x60xf32> to vector<2x20xf32>
    %163 = vector.extract_strided_slice %158 {offsets = [0, 40], sizes = [2, 20], strides = [1, 1]} : vector<2x60xf32> to vector<2x20xf32>
    %164 = arith.mulf %162, %110 : vector<2x20xf32>
    %165 = arith.mulf %161, %160 : vector<2x20xf32>
    %166 = arith.addf %164, %165 : vector<2x20xf32>
    %167 = math.tanh %166 : vector<2x20xf32>
    %168 = arith.mulf %163, %167 : vector<2x20xf32>
    %cst_59 = arith.constant dense<0.000000e+00> : vector<2x80xf32>
    %169 = tpu.matmul %168, %16, %cst_59 {dimension_numbers = #tpu.dot_dimension_numbers<[1], [0], [0], [1], [0, 0, 1, 1], [], []>} : vector<2x20xf32>, vector<20x80xf32>, vector<2x80xf32> -> vector<2x80xf32>
    %cst_60 = arith.constant dense<0.000000e+00> : vector<2x80xf32>
    %170 = tpu.matmul %133, %17, %cst_60 {dimension_numbers = #tpu.dot_dimension_numbers<[1], [0], [0], [1], [0, 0, 1, 1], [], []>} : vector<2x20xf32>, vector<20x80xf32>, vector<2x80xf32> -> vector<2x80xf32>
    %171 = arith.addf %169, %170 : vector<2x80xf32>
    %172 = vector.broadcast %18 : vector<1x80xf32> to vector<2x80xf32>
    %173 = arith.addf %171, %172 : vector<2x80xf32>
    %174 = vector.extract_strided_slice %173 {offsets = [0, 0], sizes = [2, 60], strides = [1, 1]} : vector<2x80xf32> to vector<2x60xf32>
    %175 = arith.negf %174 : vector<2x60xf32>
    %176 = math.exp %175 : vector<2x60xf32>
    %cst_61 = arith.constant 1.000000e+00 : f32
    %177 = vector.broadcast %cst_61 : f32 to vector<2x60xf32>
    %178 = arith.addf %177, %176 : vector<2x60xf32>
    %179 = arith.divf %177, %178 : vector<2x60xf32>
    %180 = vector.extract_strided_slice %173 {offsets = [0, 60], sizes = [2, 20], strides = [1, 1]} : vector<2x80xf32> to vector<2x20xf32>
    %181 = math.tanh %180 : vector<2x20xf32>
    %182 = vector.extract_strided_slice %179 {offsets = [0, 0], sizes = [2, 20], strides = [1, 1]} : vector<2x60xf32> to vector<2x20xf32>
    %183 = vector.extract_strided_slice %179 {offsets = [0, 20], sizes = [2, 20], strides = [1, 1]} : vector<2x60xf32> to vector<2x20xf32>
    %184 = vector.extract_strided_slice %179 {offsets = [0, 40], sizes = [2, 20], strides = [1, 1]} : vector<2x60xf32> to vector<2x20xf32>
    %185 = arith.mulf %183, %131 : vector<2x20xf32>
    %186 = arith.mulf %182, %181 : vector<2x20xf32>
    %187 = arith.addf %185, %186 : vector<2x20xf32>
    %188 = math.tanh %187 : vector<2x20xf32>
    %189 = arith.mulf %184, %188 : vector<2x20xf32>
    %cst_62 = arith.constant dense<0.000000e+00> : vector<2x20xf32>
    %190 = tpu.matmul %189, %12, %cst_62 {dimension_numbers = #tpu.dot_dimension_numbers<[1], [0], [0], [1], [0, 0, 1, 1], [], []>} : vector<2x20xf32>, vector<20x20xf32>, vector<2x20xf32> -> vector<2x20xf32>
    %cst_63 = arith.constant dense<0.000000e+00> : vector<2x8xf32>
    %191 = tpu.matmul %189, %10, %cst_63 {dimension_numbers = #tpu.dot_dimension_numbers<[1], [0], [0], [1], [0, 0, 1, 1], [], []>} : vector<2x20xf32>, vector<20x8xf32>, vector<2x8xf32> -> vector<2x8xf32>
    %cst_64 = arith.constant dense<0.000000e+00> : vector<2x8xf32>
    %192 = tpu.matmul %187, %11, %cst_64 {dimension_numbers = #tpu.dot_dimension_numbers<[1], [0], [0], [1], [0, 0, 1, 1], [], []>} : vector<2x20xf32>, vector<20x8xf32>, vector<2x8xf32> -> vector<2x8xf32>
    %193 = arith.addf %191, %192 : vector<2x8xf32>
    %194 = vector.shape_cast %193 : vector<2x8xf32> to vector<2x1x8xf32>
    %195 = vector.broadcast %194 : vector<2x1x8xf32> to vector<2x4x8xf32>
    %196 = arith.addf %5, %195 : vector<2x4x8xf32>
    %197 = math.tanh %196 : vector<2x4x8xf32>
    %198 = vector.broadcast %7 : vector<1x1x8xf32> to vector<2x4x8xf32>
    %199 = arith.mulf %197, %198 : vector<2x4x8xf32>
    %cst_65 = arith.constant dense<0.000000e+00> : vector<2x4xf32>
    %200 = vector.multi_reduction <add>, %199, %cst_65 [2] : vector<2x4x8xf32> to vector<2x4xf32>
    %201 = vector.extract_strided_slice %0 {offsets = [0, 3, 0], sizes = [2, 1, 4], strides = [1, 1, 1]} : vector<2x8x4xf32> to vector<2x1x4xf32>
    %202 = vector.shape_cast %201 : vector<2x1x4xf32> to vector<2x4xf32>
    %203 = arith.mulf %202, %200 : vector<2x4xf32>
    %cst_66 = arith.constant dense<0.000000e+00> : vector<2x80xf32>
    %204 = tpu.matmul %203, %13, %cst_66 {dimension_numbers = #tpu.dot_dimension_numbers<[1], [0], [0], [1], [0, 0, 1, 1], [], []>} : vector<2x4xf32>, vector<4x80xf32>, vector<2x80xf32> -> vector<2x80xf32>
    %cst_67 = arith.constant dense<0.000000e+00> : vector<2x80xf32>
    %205 = tpu.matmul %168, %14, %cst_67 {dimension_numbers = #tpu.dot_dimension_numbers<[1], [0], [0], [1], [0, 0, 1, 1], [], []>} : vector<2x20xf32>, vector<20x80xf32>, vector<2x80xf32> -> vector<2x80xf32>
    %206 = arith.addf %204, %205 : vector<2x80xf32>
    %207 = vector.broadcast %15 : vector<1x80xf32> to vector<2x80xf32>
    %208 = arith.addf %206, %207 : vector<2x80xf32>
    %209 = vector.extract_strided_slice %208 {offsets = [0, 0], sizes = [2, 60], strides = [1, 1]} : vector<2x80xf32> to vector<2x60xf32>
    %210 = arith.negf %209 : vector<2x60xf32>
    %211 = math.exp %210 : vector<2x60xf32>
    %cst_68 = arith.constant 1.000000e+00 : f32
    %212 = vector.broadcast %cst_68 : f32 to vector<2x60xf32>
    %213 = arith.addf %212, %211 : vector<2x60xf32>
    %214 = arith.divf %212, %213 : vector<2x60xf32>
    %215 = vector.extract_strided_slice %208 {offsets = [0, 60], sizes = [2, 20], strides = [1, 1]} : vector<2x80xf32> to vector<2x20xf32>
    %216 = math.tanh %215 : vector<2x20xf32>
    %217 = vector.extract_strided_slice %214 {offsets = [0, 0], sizes = [2, 20], strides = [1, 1]} : vector<2x60xf32> to vector<2x20xf32>
    %218 = vector.extract_strided_slice %214 {offsets = [0, 20], sizes = [2, 20], strides = [1, 1]} : vector<2x60xf32> to vector<2x20xf32>
    %219 = vector.extract_strided_slice %214 {offsets = [0, 40], sizes = [2, 20], strides = [1, 1]} : vector<2x60xf32> to vector<2x20xf32>
    %220 = arith.mulf %218, %166 : vector<2x20xf32>
    %221 = arith.mulf %217, %216 : vector<2x20xf32>
    %222 = arith.addf %220, %221 : vector<2x20xf32>
    %223 = math.tanh %222 : vector<2x20xf32>
    %224 = arith.mulf %219, %223 : vector<2x20xf32>
    %cst_69 = arith.constant dense<0.000000e+00> : vector<2x80xf32>
    %225 = tpu.matmul %224, %16, %cst_69 {dimension_numbers = #tpu.dot_dimension_numbers<[1], [0], [0], [1], [0, 0, 1, 1], [], []>} : vector<2x20xf32>, vector<20x80xf32>, vector<2x80xf32> -> vector<2x80xf32>
    %cst_70 = arith.constant dense<0.000000e+00> : vector<2x80xf32>
    %226 = tpu.matmul %189, %17, %cst_70 {dimension_numbers = #tpu.dot_dimension_numbers<[1], [0], [0], [1], [0, 0, 1, 1], [], []>} : vector<2x20xf32>, vector<20x80xf32>, vector<2x80xf32> -> vector<2x80xf32>
    %227 = arith.addf %225, %226 : vector<2x80xf32>
    %228 = vector.broadcast %18 : vector<1x80xf32> to vector<2x80xf32>
    %229 = arith.addf %227, %228 : vector<2x80xf32>
    %230 = vector.extract_strided_slice %229 {offsets = [0, 0], sizes = [2, 60], strides = [1, 1]} : vector<2x80xf32> to vector<2x60xf32>
    %231 = arith.negf %230 : vector<2x60xf32>
    %232 = math.exp %231 : vector<2x60xf32>
    %cst_71 = arith.constant 1.000000e+00 : f32
    %233 = vector.broadcast %cst_71 : f32 to vector<2x60xf32>
    %234 = arith.addf %233, %232 : vector<2x60xf32>
    %235 = arith.divf %233, %234 : vector<2x60xf32>
    %236 = vector.extract_strided_slice %229 {offsets = [0, 60], sizes = [2, 20], strides = [1, 1]} : vector<2x80xf32> to vector<2x20xf32>
    %237 = math.tanh %236 : vector<2x20xf32>
    %238 = vector.extract_strided_slice %235 {offsets = [0, 0], sizes = [2, 20], strides = [1, 1]} : vector<2x60xf32> to vector<2x20xf32>
    %239 = vector.extract_strided_slice %235 {offsets = [0, 20], sizes = [2, 20], strides = [1, 1]} : vector<2x60xf32> to vector<2x20xf32>
    %240 = vector.extract_strided_slice %235 {offsets = [0, 40], sizes = [2, 20], strides = [1, 1]} : vector<2x60xf32> to vector<2x20xf32>
    %241 = arith.mulf %239, %187 : vector<2x20xf32>
    %242 = arith.mulf %238, %237 : vector<2x20xf32>
    %243 = arith.addf %241, %242 : vector<2x20xf32>
    %244 = math.tanh %243 : vector<2x20xf32>
    %245 = arith.mulf %240, %244 : vector<2x20xf32>
    %cst_72 = arith.constant dense<0.000000e+00> : vector<2x20xf32>
    %246 = tpu.matmul %245, %12, %cst_72 {dimension_numbers = #tpu.dot_dimension_numbers<[1], [0], [0], [1], [0, 0, 1, 1], [], []>} : vector<2x20xf32>, vector<20x20xf32>, vector<2x20xf32> -> vector<2x20xf32>
    %cst_73 = arith.constant dense<0.000000e+00> : vector<2x8xf32>
    %247 = tpu.matmul %245, %10, %cst_73 {dimension_numbers = #tpu.dot_dimension_numbers<[1], [0], [0], [1], [0, 0, 1, 1], [], []>} : vector<2x20xf32>, vector<20x8xf32>, vector<2x8xf32> -> vector<2x8xf32>
    %cst_74 = arith.constant dense<0.000000e+00> : vector<2x8xf32>
    %248 = tpu.matmul %243, %11, %cst_74 {dimension_numbers = #tpu.dot_dimension_numbers<[1], [0], [0], [1], [0, 0, 1, 1], [], []>} : vector<2x20xf32>, vector<20x8xf32>, vector<2x8xf32> -> vector<2x8xf32>
    %249 = arith.addf %247, %248 : vector<2x8xf32>
    %250 = vector.shape_cast %249 : vector<2x8xf32> to vector<2x1x8xf32>
    %251 = vector.broadcast %250 : vector<2x1x8xf32> to vector<2x4x8xf32>
    %252 = arith.addf %5, %251 : vector<2x4x8xf32>
    %253 = math.tanh %252 : vector<2x4x8xf32>
    %254 = vector.broadcast %7 : vector<1x1x8xf32> to vector<2x4x8xf32>
    %255 = arith.mulf %253, %254 : vector<2x4x8xf32>
    %cst_75 = arith.constant dense<0.000000e+00> : vector<2x4xf32>
    %256 = vector.multi_reduction <add>, %255, %cst_75 [2] : vector<2x4x8xf32> to vector<2x4xf32>
    %257 = vector.extract_strided_slice %0 {offsets = [0, 4, 0], sizes = [2, 1, 4], strides = [1, 1, 1]} : vector<2x8x4xf32> to vector<2x1x4xf32>
    %258 = vector.shape_cast %257 : vector<2x1x4xf32> to vector<2x4xf32>
    %259 = arith.mulf %258, %256 : vector<2x4xf32>
    %cst_76 = arith.constant dense<0.000000e+00> : vector<2x80xf32>
    %260 = tpu.matmul %259, %13, %cst_76 {dimension_numbers = #tpu.dot_dimension_numbers<[1], [0], [0], [1], [0, 0, 1, 1], [], []>} : vector<2x4xf32>, vector<4x80xf32>, vector<2x80xf32> -> vector<2x80xf32>
    %cst_77 = arith.constant dense<0.000000e+00> : vector<2x80xf32>
    %261 = tpu.matmul %224, %14, %cst_77 {dimension_numbers = #tpu.dot_dimension_numbers<[1], [0], [0], [1], [0, 0, 1, 1], [], []>} : vector<2x20xf32>, vector<20x80xf32>, vector<2x80xf32> -> vector<2x80xf32>
    %262 = arith.addf %260, %261 : vector<2x80xf32>
    %263 = vector.broadcast %15 : vector<1x80xf32> to vector<2x80xf32>
    %264 = arith.addf %262, %263 : vector<2x80xf32>
    %265 = vector.extract_strided_slice %264 {offsets = [0, 0], sizes = [2, 60], strides = [1, 1]} : vector<2x80xf32> to vector<2x60xf32>
    %266 = arith.negf %265 : vector<2x60xf32>
    %267 = math.exp %266 : vector<2x60xf32>
    %cst_78 = arith.constant 1.000000e+00 : f32
    %268 = vector.broadcast %cst_78 : f32 to vector<2x60xf32>
    %269 = arith.addf %268, %267 : vector<2x60xf32>
    %270 = arith.divf %268, %269 : vector<2x60xf32>
    %271 = vector.extract_strided_slice %264 {offsets = [0, 60], sizes = [2, 20], strides = [1, 1]} : vector<2x80xf32> to vector<2x20xf32>
    %272 = math.tanh %271 : vector<2x20xf32>
    %273 = vector.extract_strided_slice %270 {offsets = [0, 0], sizes = [2, 20], strides = [1, 1]} : vector<2x60xf32> to vector<2x20xf32>
    %274 = vector.extract_strided_slice %270 {offsets = [0, 20], sizes = [2, 20], strides = [1, 1]} : vector<2x60xf32> to vector<2x20xf32>
    %275 = vector.extract_strided_slice %270 {offsets = [0, 40], sizes = [2, 20], strides = [1, 1]} : vector<2x60xf32> to vector<2x20xf32>
    %276 = arith.mulf %274, %222 : vector<2x20xf32>
    %277 = arith.mulf %273, %272 : vector<2x20xf32>
    %278 = arith.addf %276, %277 : vector<2x20xf32>
    %279 = math.tanh %278 : vector<2x20xf32>
    %280 = arith.mulf %275, %279 : vector<2x20xf32>
    %cst_79 = arith.constant dense<0.000000e+00> : vector<2x80xf32>
    %281 = tpu.matmul %280, %16, %cst_79 {dimension_numbers = #tpu.dot_dimension_numbers<[1], [0], [0], [1], [0, 0, 1, 1], [], []>} : vector<2x20xf32>, vector<20x80xf32>, vector<2x80xf32> -> vector<2x80xf32>
    %cst_80 = arith.constant dense<0.000000e+00> : vector<2x80xf32>
    %282 = tpu.matmul %245, %17, %cst_80 {dimension_numbers = #tpu.dot_dimension_numbers<[1], [0], [0], [1], [0, 0, 1, 1], [], []>} : vector<2x20xf32>, vector<20x80xf32>, vector<2x80xf32> -> vector<2x80xf32>
    %283 = arith.addf %281, %282 : vector<2x80xf32>
    %284 = vector.broadcast %18 : vector<1x80xf32> to vector<2x80xf32>
    %285 = arith.addf %283, %284 : vector<2x80xf32>
    %286 = vector.extract_strided_slice %285 {offsets = [0, 0], sizes = [2, 60], strides = [1, 1]} : vector<2x80xf32> to vector<2x60xf32>
    %287 = arith.negf %286 : vector<2x60xf32>
    %288 = math.exp %287 : vector<2x60xf32>
    %cst_81 = arith.constant 1.000000e+00 : f32
    %289 = vector.broadcast %cst_81 : f32 to vector<2x60xf32>
    %290 = arith.addf %289, %288 : vector<2x60xf32>
    %291 = arith.divf %289, %290 : vector<2x60xf32>
    %292 = vector.extract_strided_slice %285 {offsets = [0, 60], sizes = [2, 20], strides = [1, 1]} : vector<2x80xf32> to vector<2x20xf32>
    %293 = math.tanh %292 : vector<2x20xf32>
    %294 = vector.extract_strided_slice %291 {offsets = [0, 0], sizes = [2, 20], strides = [1, 1]} : vector<2x60xf32> to vector<2x20xf32>
    %295 = vector.extract_strided_slice %291 {offsets = [0, 20], sizes = [2, 20], strides = [1, 1]} : vector<2x60xf32> to vector<2x20xf32>
    %296 = vector.extract_strided_slice %291 {offsets = [0, 40], sizes = [2, 20], strides = [1, 1]} : vector<2x60xf32> to vector<2x20xf32>
    %297 = arith.mulf %295, %243 : vector<2x20xf32>
    %298 = arith.mulf %294, %293 : vector<2x20xf32>
    %299 = arith.addf %297, %298 : vector<2x20xf32>
    %300 = math.tanh %299 : vector<2x20xf32>
    %301 = arith.mulf %296, %300 : vector<2x20xf32>
    %cst_82 = arith.constant dense<0.000000e+00> : vector<2x20xf32>
    %302 = tpu.matmul %301, %12, %cst_82 {dimension_numbers = #tpu.dot_dimension_numbers<[1], [0], [0], [1], [0, 0, 1, 1], [], []>} : vector<2x20xf32>, vector<20x20xf32>, vector<2x20xf32> -> vector<2x20xf32>
    %cst_83 = arith.constant dense<0.000000e+00> : vector<2x8xf32>
    %303 = tpu.matmul %301, %10, %cst_83 {dimension_numbers = #tpu.dot_dimension_numbers<[1], [0], [0], [1], [0, 0, 1, 1], [], []>} : vector<2x20xf32>, vector<20x8xf32>, vector<2x8xf32> -> vector<2x8xf32>
    %cst_84 = arith.constant dense<0.000000e+00> : vector<2x8xf32>
    %304 = tpu.matmul %299, %11, %cst_84 {dimension_numbers = #tpu.dot_dimension_numbers<[1], [0], [0], [1], [0, 0, 1, 1], [], []>} : vector<2x20xf32>, vector<20x8xf32>, vector<2x8xf32> -> vector<2x8xf32>
    %305 = arith.addf %303, %304 : vector<2x8xf32>
    %306 = vector.shape_cast %305 : vector<2x8xf32> to vector<2x1x8xf32>
    %307 = vector.broadcast %306 : vector<2x1x8xf32> to vector<2x4x8xf32>
    %308 = arith.addf %5, %307 : vector<2x4x8xf32>
    %309 = math.tanh %308 : vector<2x4x8xf32>
    %310 = vector.broadcast %7 : vector<1x1x8xf32> to vector<2x4x8xf32>
    %311 = arith.mulf %309, %310 : vector<2x4x8xf32>
    %cst_85 = arith.constant dense<0.000000e+00> : vector<2x4xf32>
    %312 = vector.multi_reduction <add>, %311, %cst_85 [2] : vector<2x4x8xf32> to vector<2x4xf32>
    %313 = vector.extract_strided_slice %0 {offsets = [0, 5, 0], sizes = [2, 1, 4], strides = [1, 1, 1]} : vector<2x8x4xf32> to vector<2x1x4xf32>
    %314 = vector.shape_cast %313 : vector<2x1x4xf32> to vector<2x4xf32>
    %315 = arith.mulf %314, %312 : vector<2x4xf32>
    %cst_86 = arith.constant dense<0.000000e+00> : vector<2x80xf32>
    %316 = tpu.matmul %315, %13, %cst_86 {dimension_numbers = #tpu.dot_dimension_numbers<[1], [0], [0], [1], [0, 0, 1, 1], [], []>} : vector<2x4xf32>, vector<4x80xf32>, vector<2x80xf32> -> vector<2x80xf32>
    %cst_87 = arith.constant dense<0.000000e+00> : vector<2x80xf32>
    %317 = tpu.matmul %280, %14, %cst_87 {dimension_numbers = #tpu.dot_dimension_numbers<[1], [0], [0], [1], [0, 0, 1, 1], [], []>} : vector<2x20xf32>, vector<20x80xf32>, vector<2x80xf32> -> vector<2x80xf32>
    %318 = arith.addf %316, %317 : vector<2x80xf32>
    %319 = vector.broadcast %15 : vector<1x80xf32> to vector<2x80xf32>
    %320 = arith.addf %318, %319 : vector<2x80xf32>
    %321 = vector.extract_strided_slice %320 {offsets = [0, 0], sizes = [2, 60], strides = [1, 1]} : vector<2x80xf32> to vector<2x60xf32>
    %322 = arith.negf %321 : vector<2x60xf32>
    %323 = math.exp %322 : vector<2x60xf32>
    %cst_88 = arith.constant 1.000000e+00 : f32
    %324 = vector.broadcast %cst_88 : f32 to vector<2x60xf32>
    %325 = arith.addf %324, %323 : vector<2x60xf32>
    %326 = arith.divf %324, %325 : vector<2x60xf32>
    %327 = vector.extract_strided_slice %320 {offsets = [0, 60], sizes = [2, 20], strides = [1, 1]} : vector<2x80xf32> to vector<2x20xf32>
    %328 = math.tanh %327 : vector<2x20xf32>
    %329 = vector.extract_strided_slice %326 {offsets = [0, 0], sizes = [2, 20], strides = [1, 1]} : vector<2x60xf32> to vector<2x20xf32>
    %330 = vector.extract_strided_slice %326 {offsets = [0, 20], sizes = [2, 20], strides = [1, 1]} : vector<2x60xf32> to vector<2x20xf32>
    %331 = vector.extract_strided_slice %326 {offsets = [0, 40], sizes = [2, 20], strides = [1, 1]} : vector<2x60xf32> to vector<2x20xf32>
    %332 = arith.mulf %330, %278 : vector<2x20xf32>
    %333 = arith.mulf %329, %328 : vector<2x20xf32>
    %334 = arith.addf %332, %333 : vector<2x20xf32>
    %335 = math.tanh %334 : vector<2x20xf32>
    %336 = arith.mulf %331, %335 : vector<2x20xf32>
    %cst_89 = arith.constant dense<0.000000e+00> : vector<2x80xf32>
    %337 = tpu.matmul %336, %16, %cst_89 {dimension_numbers = #tpu.dot_dimension_numbers<[1], [0], [0], [1], [0, 0, 1, 1], [], []>} : vector<2x20xf32>, vector<20x80xf32>, vector<2x80xf32> -> vector<2x80xf32>
    %cst_90 = arith.constant dense<0.000000e+00> : vector<2x80xf32>
    %338 = tpu.matmul %301, %17, %cst_90 {dimension_numbers = #tpu.dot_dimension_numbers<[1], [0], [0], [1], [0, 0, 1, 1], [], []>} : vector<2x20xf32>, vector<20x80xf32>, vector<2x80xf32> -> vector<2x80xf32>
    %339 = arith.addf %337, %338 : vector<2x80xf32>
    %340 = vector.broadcast %18 : vector<1x80xf32> to vector<2x80xf32>
    %341 = arith.addf %339, %340 : vector<2x80xf32>
    %342 = vector.extract_strided_slice %341 {offsets = [0, 0], sizes = [2, 60], strides = [1, 1]} : vector<2x80xf32> to vector<2x60xf32>
    %343 = arith.negf %342 : vector<2x60xf32>
    %344 = math.exp %343 : vector<2x60xf32>
    %cst_91 = arith.constant 1.000000e+00 : f32
    %345 = vector.broadcast %cst_91 : f32 to vector<2x60xf32>
    %346 = arith.addf %345, %344 : vector<2x60xf32>
    %347 = arith.divf %345, %346 : vector<2x60xf32>
    %348 = vector.extract_strided_slice %341 {offsets = [0, 60], sizes = [2, 20], strides = [1, 1]} : vector<2x80xf32> to vector<2x20xf32>
    %349 = math.tanh %348 : vector<2x20xf32>
    %350 = vector.extract_strided_slice %347 {offsets = [0, 0], sizes = [2, 20], strides = [1, 1]} : vector<2x60xf32> to vector<2x20xf32>
    %351 = vector.extract_strided_slice %347 {offsets = [0, 20], sizes = [2, 20], strides = [1, 1]} : vector<2x60xf32> to vector<2x20xf32>
    %352 = vector.extract_strided_slice %347 {offsets = [0, 40], sizes = [2, 20], strides = [1, 1]} : vector<2x60xf32> to vector<2x20xf32>
    %353 = arith.mulf %351, %299 : vector<2x20xf32>
    %354 = arith.mulf %350, %349 : vector<2x20xf32>
    %355 = arith.addf %353, %354 : vector<2x20xf32>
    %356 = math.tanh %355 : vector<2x20xf32>
    %357 = arith.mulf %352, %356 : vector<2x20xf32>
    %cst_92 = arith.constant dense<0.000000e+00> : vector<2x20xf32>
    %358 = tpu.matmul %357, %12, %cst_92 {dimension_numbers = #tpu.dot_dimension_numbers<[1], [0], [0], [1], [0, 0, 1, 1], [], []>} : vector<2x20xf32>, vector<20x20xf32>, vector<2x20xf32> -> vector<2x20xf32>
    %cst_93 = arith.constant dense<0.000000e+00> : vector<2x8xf32>
    %359 = tpu.matmul %357, %10, %cst_93 {dimension_numbers = #tpu.dot_dimension_numbers<[1], [0], [0], [1], [0, 0, 1, 1], [], []>} : vector<2x20xf32>, vector<20x8xf32>, vector<2x8xf32> -> vector<2x8xf32>
    %cst_94 = arith.constant dense<0.000000e+00> : vector<2x8xf32>
    %360 = tpu.matmul %355, %11, %cst_94 {dimension_numbers = #tpu.dot_dimension_numbers<[1], [0], [0], [1], [0, 0, 1, 1], [], []>} : vector<2x20xf32>, vector<20x8xf32>, vector<2x8xf32> -> vector<2x8xf32>
    %361 = arith.addf %359, %360 : vector<2x8xf32>
    %362 = vector.shape_cast %361 : vector<2x8xf32> to vector<2x1x8xf32>
    %363 = vector.broadcast %362 : vector<2x1x8xf32> to vector<2x4x8xf32>
    %364 = arith.addf %5, %363 : vector<2x4x8xf32>
    %365 = math.tanh %364 : vector<2x4x8xf32>
    %366 = vector.broadcast %7 : vector<1x1x8xf32> to vector<2x4x8xf32>
    %367 = arith.mulf %365, %366 : vector<2x4x8xf32>
    %cst_95 = arith.constant dense<0.000000e+00> : vector<2x4xf32>
    %368 = vector.multi_reduction <add>, %367, %cst_95 [2] : vector<2x4x8xf32> to vector<2x4xf32>
    %369 = vector.extract_strided_slice %0 {offsets = [0, 6, 0], sizes = [2, 1, 4], strides = [1, 1, 1]} : vector<2x8x4xf32> to vector<2x1x4xf32>
    %370 = vector.shape_cast %369 : vector<2x1x4xf32> to vector<2x4xf32>
    %371 = arith.mulf %370, %368 : vector<2x4xf32>
    %cst_96 = arith.constant dense<0.000000e+00> : vector<2x80xf32>
    %372 = tpu.matmul %371, %13, %cst_96 {dimension_numbers = #tpu.dot_dimension_numbers<[1], [0], [0], [1], [0, 0, 1, 1], [], []>} : vector<2x4xf32>, vector<4x80xf32>, vector<2x80xf32> -> vector<2x80xf32>
    %cst_97 = arith.constant dense<0.000000e+00> : vector<2x80xf32>
    %373 = tpu.matmul %336, %14, %cst_97 {dimension_numbers = #tpu.dot_dimension_numbers<[1], [0], [0], [1], [0, 0, 1, 1], [], []>} : vector<2x20xf32>, vector<20x80xf32>, vector<2x80xf32> -> vector<2x80xf32>
    %374 = arith.addf %372, %373 : vector<2x80xf32>
    %375 = vector.broadcast %15 : vector<1x80xf32> to vector<2x80xf32>
    %376 = arith.addf %374, %375 : vector<2x80xf32>
    %377 = vector.extract_strided_slice %376 {offsets = [0, 0], sizes = [2, 60], strides = [1, 1]} : vector<2x80xf32> to vector<2x60xf32>
    %378 = arith.negf %377 : vector<2x60xf32>
    %379 = math.exp %378 : vector<2x60xf32>
    %cst_98 = arith.constant 1.000000e+00 : f32
    %380 = vector.broadcast %cst_98 : f32 to vector<2x60xf32>
    %381 = arith.addf %380, %379 : vector<2x60xf32>
    %382 = arith.divf %380, %381 : vector<2x60xf32>
    %383 = vector.extract_strided_slice %376 {offsets = [0, 60], sizes = [2, 20], strides = [1, 1]} : vector<2x80xf32> to vector<2x20xf32>
    %384 = math.tanh %383 : vector<2x20xf32>
    %385 = vector.extract_strided_slice %382 {offsets = [0, 0], sizes = [2, 20], strides = [1, 1]} : vector<2x60xf32> to vector<2x20xf32>
    %386 = vector.extract_strided_slice %382 {offsets = [0, 20], sizes = [2, 20], strides = [1, 1]} : vector<2x60xf32> to vector<2x20xf32>
    %387 = vector.extract_strided_slice %382 {offsets = [0, 40], sizes = [2, 20], strides = [1, 1]} : vector<2x60xf32> to vector<2x20xf32>
    %388 = arith.mulf %386, %334 : vector<2x20xf32>
    %389 = arith.mulf %385, %384 : vector<2x20xf32>
    %390 = arith.addf %388, %389 : vector<2x20xf32>
    %391 = math.tanh %390 : vector<2x20xf32>
    %392 = arith.mulf %387, %391 : vector<2x20xf32>
    %cst_99 = arith.constant dense<0.000000e+00> : vector<2x80xf32>
    %393 = tpu.matmul %392, %16, %cst_99 {dimension_numbers = #tpu.dot_dimension_numbers<[1], [0], [0], [1], [0, 0, 1, 1], [], []>} : vector<2x20xf32>, vector<20x80xf32>, vector<2x80xf32> -> vector<2x80xf32>
    %cst_100 = arith.constant dense<0.000000e+00> : vector<2x80xf32>
    %394 = tpu.matmul %357, %17, %cst_100 {dimension_numbers = #tpu.dot_dimension_numbers<[1], [0], [0], [1], [0, 0, 1, 1], [], []>} : vector<2x20xf32>, vector<20x80xf32>, vector<2x80xf32> -> vector<2x80xf32>
    %395 = arith.addf %393, %394 : vector<2x80xf32>
    %396 = vector.broadcast %18 : vector<1x80xf32> to vector<2x80xf32>
    %397 = arith.addf %395, %396 : vector<2x80xf32>
    %398 = vector.extract_strided_slice %397 {offsets = [0, 0], sizes = [2, 60], strides = [1, 1]} : vector<2x80xf32> to vector<2x60xf32>
    %399 = arith.negf %398 : vector<2x60xf32>
    %400 = math.exp %399 : vector<2x60xf32>
    %cst_101 = arith.constant 1.000000e+00 : f32
    %401 = vector.broadcast %cst_101 : f32 to vector<2x60xf32>
    %402 = arith.addf %401, %400 : vector<2x60xf32>
    %403 = arith.divf %401, %402 : vector<2x60xf32>
    %404 = vector.extract_strided_slice %397 {offsets = [0, 60], sizes = [2, 20], strides = [1, 1]} : vector<2x80xf32> to vector<2x20xf32>
    %405 = math.tanh %404 : vector<2x20xf32>
    %406 = vector.extract_strided_slice %403 {offsets = [0, 0], sizes = [2, 20], strides = [1, 1]} : vector<2x60xf32> to vector<2x20xf32>
    %407 = vector.extract_strided_slice %403 {offsets = [0, 20], sizes = [2, 20], strides = [1, 1]} : vector<2x60xf32> to vector<2x20xf32>
    %408 = vector.extract_strided_slice %403 {offsets = [0, 40], sizes = [2, 20], strides = [1, 1]} : vector<2x60xf32> to vector<2x20xf32>
    %409 = arith.mulf %407, %355 : vector<2x20xf32>
    %410 = arith.mulf %406, %405 : vector<2x20xf32>
    %411 = arith.addf %409, %410 : vector<2x20xf32>
    %412 = math.tanh %411 : vector<2x20xf32>
    %413 = arith.mulf %408, %412 : vector<2x20xf32>
    %cst_102 = arith.constant dense<0.000000e+00> : vector<2x20xf32>
    %414 = tpu.matmul %413, %12, %cst_102 {dimension_numbers = #tpu.dot_dimension_numbers<[1], [0], [0], [1], [0, 0, 1, 1], [], []>} : vector<2x20xf32>, vector<20x20xf32>, vector<2x20xf32> -> vector<2x20xf32>
    %cst_103 = arith.constant dense<0.000000e+00> : vector<2x8xf32>
    %415 = tpu.matmul %413, %10, %cst_103 {dimension_numbers = #tpu.dot_dimension_numbers<[1], [0], [0], [1], [0, 0, 1, 1], [], []>} : vector<2x20xf32>, vector<20x8xf32>, vector<2x8xf32> -> vector<2x8xf32>
    %cst_104 = arith.constant dense<0.000000e+00> : vector<2x8xf32>
    %416 = tpu.matmul %411, %11, %cst_104 {dimension_numbers = #tpu.dot_dimension_numbers<[1], [0], [0], [1], [0, 0, 1, 1], [], []>} : vector<2x20xf32>, vector<20x8xf32>, vector<2x8xf32> -> vector<2x8xf32>
    %417 = arith.addf %415, %416 : vector<2x8xf32>
    %418 = vector.shape_cast %417 : vector<2x8xf32> to vector<2x1x8xf32>
    %419 = vector.broadcast %418 : vector<2x1x8xf32> to vector<2x4x8xf32>
    %420 = arith.addf %5, %419 : vector<2x4x8xf32>
    %421 = math.tanh %420 : vector<2x4x8xf32>
    %422 = vector.broadcast %7 : vector<1x1x8xf32> to vector<2x4x8xf32>
    %423 = arith.mulf %421, %422 : vector<2x4x8xf32>
    %cst_105 = arith.constant dense<0.000000e+00> : vector<2x4xf32>
    %424 = vector.multi_reduction <add>, %423, %cst_105 [2] : vector<2x4x8xf32> to vector<2x4xf32>
    %425 = vector.extract_strided_slice %0 {offsets = [0, 7, 0], sizes = [2, 1, 4], strides = [1, 1, 1]} : vector<2x8x4xf32> to vector<2x1x4xf32>
    %426 = vector.shape_cast %425 : vector<2x1x4xf32> to vector<2x4xf32>
    %427 = arith.mulf %426, %424 : vector<2x4xf32>
    %cst_106 = arith.constant dense<0.000000e+00> : vector<2x80xf32>
    %428 = tpu.matmul %427, %13, %cst_106 {dimension_numbers = #tpu.dot_dimension_numbers<[1], [0], [0], [1], [0, 0, 1, 1], [], []>} : vector<2x4xf32>, vector<4x80xf32>, vector<2x80xf32> -> vector<2x80xf32>
    %cst_107 = arith.constant dense<0.000000e+00> : vector<2x80xf32>
    %429 = tpu.matmul %392, %14, %cst_107 {dimension_numbers = #tpu.dot_dimension_numbers<[1], [0], [0], [1], [0, 0, 1, 1], [], []>} : vector<2x20xf32>, vector<20x80xf32>, vector<2x80xf32> -> vector<2x80xf32>
    %430 = arith.addf %428, %429 : vector<2x80xf32>
    %431 = vector.broadcast %15 : vector<1x80xf32> to vector<2x80xf32>
    %432 = arith.addf %430, %431 : vector<2x80xf32>
    %433 = vector.extract_strided_slice %432 {offsets = [0, 0], sizes = [2, 60], strides = [1, 1]} : vector<2x80xf32> to vector<2x60xf32>
    %434 = arith.negf %433 : vector<2x60xf32>
    %435 = math.exp %434 : vector<2x60xf32>
    %cst_108 = arith.constant 1.000000e+00 : f32
    %436 = vector.broadcast %cst_108 : f32 to vector<2x60xf32>
    %437 = arith.addf %436, %435 : vector<2x60xf32>
    %438 = arith.divf %436, %437 : vector<2x60xf32>
    %439 = vector.extract_strided_slice %432 {offsets = [0, 60], sizes = [2, 20], strides = [1, 1]} : vector<2x80xf32> to vector<2x20xf32>
    %440 = math.tanh %439 : vector<2x20xf32>
    %441 = vector.extract_strided_slice %438 {offsets = [0, 0], sizes = [2, 20], strides = [1, 1]} : vector<2x60xf32> to vector<2x20xf32>
    %442 = vector.extract_strided_slice %438 {offsets = [0, 20], sizes = [2, 20], strides = [1, 1]} : vector<2x60xf32> to vector<2x20xf32>
    %443 = vector.extract_strided_slice %438 {offsets = [0, 40], sizes = [2, 20], strides = [1, 1]} : vector<2x60xf32> to vector<2x20xf32>
    %444 = arith.mulf %442, %390 : vector<2x20xf32>
    %445 = arith.mulf %441, %440 : vector<2x20xf32>
    %446 = arith.addf %444, %445 : vector<2x20xf32>
    %447 = math.tanh %446 : vector<2x20xf32>
    %448 = arith.mulf %443, %447 : vector<2x20xf32>
    %cst_109 = arith.constant dense<0.000000e+00> : vector<2x80xf32>
    %449 = tpu.matmul %448, %16, %cst_109 {dimension_numbers = #tpu.dot_dimension_numbers<[1], [0], [0], [1], [0, 0, 1, 1], [], []>} : vector<2x20xf32>, vector<20x80xf32>, vector<2x80xf32> -> vector<2x80xf32>
    %cst_110 = arith.constant dense<0.000000e+00> : vector<2x80xf32>
    %450 = tpu.matmul %413, %17, %cst_110 {dimension_numbers = #tpu.dot_dimension_numbers<[1], [0], [0], [1], [0, 0, 1, 1], [], []>} : vector<2x20xf32>, vector<20x80xf32>, vector<2x80xf32> -> vector<2x80xf32>
    %451 = arith.addf %449, %450 : vector<2x80xf32>
    %452 = vector.broadcast %18 : vector<1x80xf32> to vector<2x80xf32>
    %453 = arith.addf %451, %452 : vector<2x80xf32>
    %454 = vector.extract_strided_slice %453 {offsets = [0, 0], sizes = [2, 60], strides = [1, 1]} : vector<2x80xf32> to vector<2x60xf32>
    %455 = arith.negf %454 : vector<2x60xf32>
    %456 = math.exp %455 : vector<2x60xf32>
    %cst_111 = arith.constant 1.000000e+00 : f32
    %457 = vector.broadcast %cst_111 : f32 to vector<2x60xf32>
    %458 = arith.addf %457, %456 : vector<2x60xf32>
    %459 = arith.divf %457, %458 : vector<2x60xf32>
    %460 = vector.extract_strided_slice %453 {offsets = [0, 60], sizes = [2, 20], strides = [1, 1]} : vector<2x80xf32> to vector<2x20xf32>
    %461 = math.tanh %460 : vector<2x20xf32>
    %462 = vector.extract_strided_slice %459 {offsets = [0, 0], sizes = [2, 20], strides = [1, 1]} : vector<2x60xf32> to vector<2x20xf32>
    %463 = vector.extract_strided_slice %459 {offsets = [0, 20], sizes = [2, 20], strides = [1, 1]} : vector<2x60xf32> to vector<2x20xf32>
    %464 = vector.extract_strided_slice %459 {offsets = [0, 40], sizes = [2, 20], strides = [1, 1]} : vector<2x60xf32> to vector<2x20xf32>
    %465 = arith.mulf %463, %411 : vector<2x20xf32>
    %466 = arith.mulf %462, %461 : vector<2x20xf32>
    %467 = arith.addf %465, %466 : vector<2x20xf32>
    %468 = math.tanh %467 : vector<2x20xf32>
    %469 = arith.mulf %464, %468 : vector<2x20xf32>
    %cst_112 = arith.constant dense<0.000000e+00> : vector<2x20xf32>
    %470 = tpu.matmul %469, %12, %cst_112 {dimension_numbers = #tpu.dot_dimension_numbers<[1], [0], [0], [1], [0, 0, 1, 1], [], []>} : vector<2x20xf32>, vector<20x20xf32>, vector<2x20xf32> -> vector<2x20xf32>
    %471 = vector.shape_cast %77 : vector<2x20xf32> to vector<1x2x20xf32>
    %472 = vector.shape_cast %133 : vector<2x20xf32> to vector<1x2x20xf32>
    %473 = vector.shape_cast %189 : vector<2x20xf32> to vector<1x2x20xf32>
    %474 = vector.shape_cast %245 : vector<2x20xf32> to vector<1x2x20xf32>
    %475 = vector.shape_cast %301 : vector<2x20xf32> to vector<1x2x20xf32>
    %476 = vector.shape_cast %357 : vector<2x20xf32> to vector<1x2x20xf32>
    %477 = vector.shape_cast %413 : vector<2x20xf32> to vector<1x2x20xf32>
    %478 = vector.shape_cast %469 : vector<2x20xf32> to vector<1x2x20xf32>
    %479 = tpu.concatenate %471, %472, %473, %474, %475, %476, %477, %478 in 0 : vector<1x2x20xf32>, vector<1x2x20xf32>, vector<1x2x20xf32>, vector<1x2x20xf32>, vector<1x2x20xf32>, vector<1x2x20xf32>, vector<1x2x20xf32>, vector<1x2x20xf32> -> vector<8x2x20xf32>
    %480 = vector.shape_cast %78 : vector<2x20xf32> to vector<1x2x20xf32>
    %481 = vector.shape_cast %134 : vector<2x20xf32> to vector<1x2x20xf32>
    %482 = vector.shape_cast %190 : vector<2x20xf32> to vector<1x2x20xf32>
    %483 = vector.shape_cast %246 : vector<2x20xf32> to vector<1x2x20xf32>
    %484 = vector.shape_cast %302 : vector<2x20xf32> to vector<1x2x20xf32>
    %485 = vector.shape_cast %358 : vector<2x20xf32> to vector<1x2x20xf32>
    %486 = vector.shape_cast %414 : vector<2x20xf32> to vector<1x2x20xf32>
    %487 = vector.shape_cast %470 : vector<2x20xf32> to vector<1x2x20xf32>
    %488 = tpu.concatenate %480, %481, %482, %483, %484, %485, %486, %487 in 0 : vector<1x2x20xf32>, vector<1x2x20xf32>, vector<1x2x20xf32>, vector<1x2x20xf32>, vector<1x2x20xf32>, vector<1x2x20xf32>, vector<1x2x20xf32>, vector<1x2x20xf32> -> vector<8x2x20xf32>
    %c0_113 = arith.constant 0 : index
    %c0_114 = arith.constant 0 : index
    %489 = vector.load %arg10[%c0_113, %c0_114] : memref<20x20xf32, #tpu.memory_space<vmem>>, vector<20x20xf32>
    %c0_115 = arith.constant 0 : index
    %c0_116 = arith.constant 0 : index
    %490 = vector.load %arg12[%c0_115, %c0_116] : memref<20x22xf32, #tpu.memory_space<vmem>>, vector<20x22xf32>
    %c0_117 = arith.constant 0 : index
    %c0_118 = arith.constant 0 : index
    %491 = vector.load %arg21[%c0_117, %c0_118] : memref<2x80xf32, #tpu.memory_space<vmem>>, vector<2x80xf32>
    %c0_119 = arith.constant 0 : index
    %c0_120 = arith.constant 0 : index
    %492 = vector.load %arg22[%c0_119, %c0_120] : memref<20x80xf32, #tpu.memory_space<vmem>>, vector<20x80xf32>
    %c0_121 = arith.constant 0 : index
    %c0_122 = arith.constant 0 : index
    %493 = vector.load %arg23[%c0_121, %c0_122] : memref<20x80xf32, #tpu.memory_space<vmem>>, vector<20x80xf32>
    %c0_123 = arith.constant 0 : index
    %c0_124 = arith.constant 0 : index
    %494 = vector.load %arg24[%c0_123, %c0_124] : memref<1x80xf32, #tpu.memory_space<vmem>>, vector<1x80xf32>
    %c0_125 = arith.constant 0 : index
    %c0_126 = arith.constant 0 : index
    %495 = vector.load %arg25[%c0_125, %c0_126] : memref<20x80xf32, #tpu.memory_space<vmem>>, vector<20x80xf32>
    %c0_127 = arith.constant 0 : index
    %c0_128 = arith.constant 0 : index
    %496 = vector.load %arg26[%c0_127, %c0_128] : memref<20x80xf32, #tpu.memory_space<vmem>>, vector<20x80xf32>
    %c0_129 = arith.constant 0 : index
    %c0_130 = arith.constant 0 : index
    %497 = vector.load %arg27[%c0_129, %c0_130] : memref<1x80xf32, #tpu.memory_space<vmem>>, vector<1x80xf32>
    %c0_131 = arith.constant 0 : index
    %c0_132 = arith.constant 0 : index
    %c0_133 = arith.constant 0 : index
    %498 = vector.load %arg3[%c0_131, %c0_132, %c0_133] : memref<2x8x4xf32, #tpu.memory_space<vmem>>, vector<2x8x4xf32>
    %499 = vector.shape_cast %498 : vector<2x8x4xf32> to vector<16x4xf32>
    %c0_134 = arith.constant 0 : index
    %c0_135 = arith.constant 0 : index
    %500 = vector.load %arg19[%c0_134, %c0_135] : memref<4x80xf32, #tpu.memory_space<vmem>>, vector<4x80xf32>
    %cst_136 = arith.constant dense<0.000000e+00> : vector<16x80xf32>
    %501 = tpu.matmul %499, %500, %cst_136 {dimension_numbers = #tpu.dot_dimension_numbers<[1], [0], [0], [1], [0, 0, 1, 1], [], []>} : vector<16x4xf32>, vector<4x80xf32>, vector<16x80xf32> -> vector<16x80xf32>
    %502 = vector.shape_cast %501 : vector<16x80xf32> to vector<2x8x80xf32>
    %c0_137 = arith.constant 0 : index
    %c0_138 = arith.constant 0 : index
    %c0_139 = arith.constant 0 : index
    %503 = vector.load %arg4[%c0_137, %c0_138, %c0_139] : memref<2x4x2xf32, #tpu.memory_space<vmem>>, vector<2x4x2xf32>
    %504 = vector.shape_cast %503 : vector<2x4x2xf32> to vector<8x2xf32>
    %c0_140 = arith.constant 0 : index
    %c0_141 = arith.constant 0 : index
    %505 = vector.load %arg20[%c0_140, %c0_141] : memref<2x80xf32, #tpu.memory_space<vmem>>, vector<2x80xf32>
    %cst_142 = arith.constant dense<0.000000e+00> : vector<8x80xf32>
    %506 = tpu.matmul %504, %505, %cst_142 {dimension_numbers = #tpu.dot_dimension_numbers<[1], [0], [0], [1], [0, 0, 1, 1], [], []>} : vector<8x2xf32>, vector<2x80xf32>, vector<8x80xf32> -> vector<8x80xf32>
    %507 = vector.shape_cast %506 : vector<8x80xf32> to vector<2x4x80xf32>
    %cst_143 = arith.constant 0.000000e+00 : f32
    %508 = vector.broadcast %cst_143 : f32 to vector<2x20xf32>
    %cst_144 = arith.constant 0.000000e+00 : f32
    %509 = vector.broadcast %cst_144 : f32 to vector<2x20xf32>
    %cst_145 = arith.constant 0.000000e+00 : f32
    %510 = vector.broadcast %cst_145 : f32 to vector<2x20xf32>
    %cst_146 = arith.constant 0.000000e+00 : f32
    %511 = vector.broadcast %cst_146 : f32 to vector<2x20xf32>
    %cst_147 = arith.constant 0.000000e+00 : f32
    %512 = vector.broadcast %cst_147 : f32 to vector<2x20xf32>
    %cst_148 = arith.constant dense<0.000000e+00> : vector<2x20xf32>
    %513 = tpu.matmul %511, %489, %cst_148 {dimension_numbers = #tpu.dot_dimension_numbers<[1], [0], [0], [1], [0, 0, 1, 1], [], []>} : vector<2x20xf32>, vector<20x20xf32>, vector<2x20xf32> -> vector<2x20xf32>
    %514 = arith.addf %512, %513 : vector<2x20xf32>
    %515 = vector.shape_cast %514 : vector<2x20xf32> to vector<1x2x20xf32>
    %516 = vector.broadcast %515 : vector<1x2x20xf32> to vector<8x2x20xf32>
    %517 = arith.addf %488, %516 : vector<8x2x20xf32>
    %518 = math.tanh %517 : vector<8x2x20xf32>
    %519 = vector.broadcast %9 : vector<1x1x20xf32> to vector<8x2x20xf32>
    %520 = arith.mulf %518, %519 : vector<8x2x20xf32>
    %cst_149 = arith.constant dense<0.000000e+00> : vector<8x2xf32>
    %521 = vector.multi_reduction <add>, %520, %cst_149 [2] : vector<8x2x20xf32> to vector<8x2xf32>
    %522 = vector.shape_cast %521 : vector<8x2xf32> to vector<8x2x1xf32>
    %523 = vector.broadcast %522 : vector<8x2x1xf32> to vector<8x2x20xf32>
    %524 = arith.mulf %523, %479 : vector<8x2x20xf32>
    %cst_150 = arith.constant dense<0.000000e+00> : vector<2x20xf32>
    %525 = vector.multi_reduction <add>, %524, %cst_150 [0] : vector<8x2x20xf32> to vector<2x20xf32>
    %526 = vector.extract_strided_slice %502 {offsets = [0, 0, 0], sizes = [2, 1, 80], strides = [1, 1, 1]} : vector<2x8x80xf32> to vector<2x1x80xf32>
    %527 = vector.shape_cast %526 : vector<2x1x80xf32> to vector<2x80xf32>
    %cst_151 = arith.constant dense<0.000000e+00> : vector<2x80xf32>
    %528 = tpu.matmul %525, %492, %cst_151 {dimension_numbers = #tpu.dot_dimension_numbers<[1], [0], [0], [1], [0, 0, 1, 1], [], []>} : vector<2x20xf32>, vector<20x80xf32>, vector<2x80xf32> -> vector<2x80xf32>
    %529 = arith.addf %527, %528 : vector<2x80xf32>
    %cst_152 = arith.constant dense<0.000000e+00> : vector<2x80xf32>
    %530 = tpu.matmul %508, %493, %cst_152 {dimension_numbers = #tpu.dot_dimension_numbers<[1], [0], [0], [1], [0, 0, 1, 1], [], []>} : vector<2x20xf32>, vector<20x80xf32>, vector<2x80xf32> -> vector<2x80xf32>
    %531 = arith.addf %529, %530 : vector<2x80xf32>
    %532 = vector.broadcast %494 : vector<1x80xf32> to vector<2x80xf32>
    %533 = arith.addf %531, %532 : vector<2x80xf32>
    %534 = vector.extract_strided_slice %533 {offsets = [0, 0], sizes = [2, 60], strides = [1, 1]} : vector<2x80xf32> to vector<2x60xf32>
    %535 = arith.negf %534 : vector<2x60xf32>
    %536 = math.exp %535 : vector<2x60xf32>
    %cst_153 = arith.constant 1.000000e+00 : f32
    %537 = vector.broadcast %cst_153 : f32 to vector<2x60xf32>
    %538 = arith.addf %537, %536 : vector<2x60xf32>
    %539 = arith.divf %537, %538 : vector<2x60xf32>
    %540 = vector.extract_strided_slice %533 {offsets = [0, 60], sizes = [2, 20], strides = [1, 1]} : vector<2x80xf32> to vector<2x20xf32>
    %541 = math.tanh %540 : vector<2x20xf32>
    %542 = vector.extract_strided_slice %539 {offsets = [0, 0], sizes = [2, 20], strides = [1, 1]} : vector<2x60xf32> to vector<2x20xf32>
    %543 = vector.extract_strided_slice %539 {offsets = [0, 20], sizes = [2, 20], strides = [1, 1]} : vector<2x60xf32> to vector<2x20xf32>
    %544 = vector.extract_strided_slice %539 {offsets = [0, 40], sizes = [2, 20], strides = [1, 1]} : vector<2x60xf32> to vector<2x20xf32>
    %545 = arith.mulf %543, %509 : vector<2x20xf32>
    %546 = arith.mulf %542, %541 : vector<2x20xf32>
    %547 = arith.addf %545, %546 : vector<2x20xf32>
    %548 = math.tanh %547 : vector<2x20xf32>
    %549 = arith.mulf %544, %548 : vector<2x20xf32>
    %cst_154 = arith.constant dense<0.000000e+00> : vector<2x80xf32>
    %550 = tpu.matmul %549, %495, %cst_154 {dimension_numbers = #tpu.dot_dimension_numbers<[1], [0], [0], [1], [0, 0, 1, 1], [], []>} : vector<2x20xf32>, vector<20x80xf32>, vector<2x80xf32> -> vector<2x80xf32>
    %cst_155 = arith.constant dense<0.000000e+00> : vector<2x80xf32>
    %551 = tpu.matmul %510, %496, %cst_155 {dimension_numbers = #tpu.dot_dimension_numbers<[1], [0], [0], [1], [0, 0, 1, 1], [], []>} : vector<2x20xf32>, vector<20x80xf32>, vector<2x80xf32> -> vector<2x80xf32>
    %552 = arith.addf %550, %551 : vector<2x80xf32>
    %553 = vector.broadcast %497 : vector<1x80xf32> to vector<2x80xf32>
    %554 = arith.addf %552, %553 : vector<2x80xf32>
    %555 = vector.extract_strided_slice %554 {offsets = [0, 0], sizes = [2, 60], strides = [1, 1]} : vector<2x80xf32> to vector<2x60xf32>
    %556 = arith.negf %555 : vector<2x60xf32>
    %557 = math.exp %556 : vector<2x60xf32>
    %cst_156 = arith.constant 1.000000e+00 : f32
    %558 = vector.broadcast %cst_156 : f32 to vector<2x60xf32>
    %559 = arith.addf %558, %557 : vector<2x60xf32>
    %560 = arith.divf %558, %559 : vector<2x60xf32>
    %561 = vector.extract_strided_slice %554 {offsets = [0, 60], sizes = [2, 20], strides = [1, 1]} : vector<2x80xf32> to vector<2x20xf32>
    %562 = math.tanh %561 : vector<2x20xf32>
    %563 = vector.extract_strided_slice %560 {offsets = [0, 0], sizes = [2, 20], strides = [1, 1]} : vector<2x60xf32> to vector<2x20xf32>
    %564 = vector.extract_strided_slice %560 {offsets = [0, 20], sizes = [2, 20], strides = [1, 1]} : vector<2x60xf32> to vector<2x20xf32>
    %565 = vector.extract_strided_slice %560 {offsets = [0, 40], sizes = [2, 20], strides = [1, 1]} : vector<2x60xf32> to vector<2x20xf32>
    %566 = arith.mulf %564, %511 : vector<2x20xf32>
    %567 = arith.mulf %563, %562 : vector<2x20xf32>
    %568 = arith.addf %566, %567 : vector<2x20xf32>
    %569 = math.tanh %568 : vector<2x20xf32>
    %570 = arith.mulf %565, %569 : vector<2x20xf32>
    %cst_157 = arith.constant dense<0.000000e+00> : vector<2x22xf32>
    %571 = tpu.matmul %570, %490, %cst_157 {dimension_numbers = #tpu.dot_dimension_numbers<[1], [0], [0], [1], [0, 0, 1, 1], [], []>} : vector<2x20xf32>, vector<20x22xf32>, vector<2x22xf32> -> vector<2x22xf32>
    %572 = vector.extract_strided_slice %571 {offsets = [0, 0], sizes = [2, 20], strides = [1, 1]} : vector<2x22xf32> to vector<2x20xf32>
    %cst_158 = arith.constant dense<0.000000e+00> : vector<2x20xf32>
    %573 = tpu.matmul %568, %489, %cst_158 {dimension_numbers = #tpu.dot_dimension_numbers<[1], [0], [0], [1], [0, 0, 1, 1], [], []>} : vector<2x20xf32>, vector<20x20xf32>, vector<2x20xf32> -> vector<2x20xf32>
    %574 = arith.addf %572, %573 : vector<2x20xf32>
    %575 = vector.shape_cast %574 : vector<2x20xf32> to vector<1x2x20xf32>
    %576 = vector.broadcast %575 : vector<1x2x20xf32> to vector<8x2x20xf32>
    %577 = arith.addf %488, %576 : vector<8x2x20xf32>
    %578 = math.tanh %577 : vector<8x2x20xf32>
    %579 = vector.broadcast %9 : vector<1x1x20xf32> to vector<8x2x20xf32>
    %580 = arith.mulf %578, %579 : vector<8x2x20xf32>
    %cst_159 = arith.constant dense<0.000000e+00> : vector<8x2xf32>
    %581 = vector.multi_reduction <add>, %580, %cst_159 [2] : vector<8x2x20xf32> to vector<8x2xf32>
    %582 = vector.shape_cast %581 : vector<8x2xf32> to vector<8x2x1xf32>
    %583 = vector.broadcast %582 : vector<8x2x1xf32> to vector<8x2x20xf32>
    %584 = arith.mulf %583, %479 : vector<8x2x20xf32>
    %cst_160 = arith.constant dense<0.000000e+00> : vector<2x20xf32>
    %585 = vector.multi_reduction <add>, %584, %cst_160 [0] : vector<8x2x20xf32> to vector<2x20xf32>
    %586 = vector.extract_strided_slice %502 {offsets = [0, 1, 0], sizes = [2, 1, 80], strides = [1, 1, 1]} : vector<2x8x80xf32> to vector<2x1x80xf32>
    %587 = vector.shape_cast %586 : vector<2x1x80xf32> to vector<2x80xf32>
    %cst_161 = arith.constant dense<0.000000e+00> : vector<2x80xf32>
    %588 = tpu.matmul %585, %492, %cst_161 {dimension_numbers = #tpu.dot_dimension_numbers<[1], [0], [0], [1], [0, 0, 1, 1], [], []>} : vector<2x20xf32>, vector<20x80xf32>, vector<2x80xf32> -> vector<2x80xf32>
    %589 = arith.addf %587, %588 : vector<2x80xf32>
    %cst_162 = arith.constant dense<0.000000e+00> : vector<2x80xf32>
    %590 = tpu.matmul %549, %493, %cst_162 {dimension_numbers = #tpu.dot_dimension_numbers<[1], [0], [0], [1], [0, 0, 1, 1], [], []>} : vector<2x20xf32>, vector<20x80xf32>, vector<2x80xf32> -> vector<2x80xf32>
    %591 = arith.addf %589, %590 : vector<2x80xf32>
    %592 = vector.broadcast %494 : vector<1x80xf32> to vector<2x80xf32>
    %593 = arith.addf %591, %592 : vector<2x80xf32>
    %594 = vector.extract_strided_slice %593 {offsets = [0, 0], sizes = [2, 60], strides = [1, 1]} : vector<2x80xf32> to vector<2x60xf32>
    %595 = arith.negf %594 : vector<2x60xf32>
    %596 = math.exp %595 : vector<2x60xf32>
    %cst_163 = arith.constant 1.000000e+00 : f32
    %597 = vector.broadcast %cst_163 : f32 to vector<2x60xf32>
    %598 = arith.addf %597, %596 : vector<2x60xf32>
    %599 = arith.divf %597, %598 : vector<2x60xf32>
    %600 = vector.extract_strided_slice %593 {offsets = [0, 60], sizes = [2, 20], strides = [1, 1]} : vector<2x80xf32> to vector<2x20xf32>
    %601 = math.tanh %600 : vector<2x20xf32>
    %602 = vector.extract_strided_slice %599 {offsets = [0, 0], sizes = [2, 20], strides = [1, 1]} : vector<2x60xf32> to vector<2x20xf32>
    %603 = vector.extract_strided_slice %599 {offsets = [0, 20], sizes = [2, 20], strides = [1, 1]} : vector<2x60xf32> to vector<2x20xf32>
    %604 = vector.extract_strided_slice %599 {offsets = [0, 40], sizes = [2, 20], strides = [1, 1]} : vector<2x60xf32> to vector<2x20xf32>
    %605 = arith.mulf %603, %547 : vector<2x20xf32>
    %606 = arith.mulf %602, %601 : vector<2x20xf32>
    %607 = arith.addf %605, %606 : vector<2x20xf32>
    %608 = math.tanh %607 : vector<2x20xf32>
    %609 = arith.mulf %604, %608 : vector<2x20xf32>
    %cst_164 = arith.constant dense<0.000000e+00> : vector<2x80xf32>
    %610 = tpu.matmul %609, %495, %cst_164 {dimension_numbers = #tpu.dot_dimension_numbers<[1], [0], [0], [1], [0, 0, 1, 1], [], []>} : vector<2x20xf32>, vector<20x80xf32>, vector<2x80xf32> -> vector<2x80xf32>
    %cst_165 = arith.constant dense<0.000000e+00> : vector<2x80xf32>
    %611 = tpu.matmul %570, %496, %cst_165 {dimension_numbers = #tpu.dot_dimension_numbers<[1], [0], [0], [1], [0, 0, 1, 1], [], []>} : vector<2x20xf32>, vector<20x80xf32>, vector<2x80xf32> -> vector<2x80xf32>
    %612 = arith.addf %610, %611 : vector<2x80xf32>
    %613 = vector.broadcast %497 : vector<1x80xf32> to vector<2x80xf32>
    %614 = arith.addf %612, %613 : vector<2x80xf32>
    %615 = vector.extract_strided_slice %614 {offsets = [0, 0], sizes = [2, 60], strides = [1, 1]} : vector<2x80xf32> to vector<2x60xf32>
    %616 = arith.negf %615 : vector<2x60xf32>
    %617 = math.exp %616 : vector<2x60xf32>
    %cst_166 = arith.constant 1.000000e+00 : f32
    %618 = vector.broadcast %cst_166 : f32 to vector<2x60xf32>
    %619 = arith.addf %618, %617 : vector<2x60xf32>
    %620 = arith.divf %618, %619 : vector<2x60xf32>
    %621 = vector.extract_strided_slice %614 {offsets = [0, 60], sizes = [2, 20], strides = [1, 1]} : vector<2x80xf32> to vector<2x20xf32>
    %622 = math.tanh %621 : vector<2x20xf32>
    %623 = vector.extract_strided_slice %620 {offsets = [0, 0], sizes = [2, 20], strides = [1, 1]} : vector<2x60xf32> to vector<2x20xf32>
    %624 = vector.extract_strided_slice %620 {offsets = [0, 20], sizes = [2, 20], strides = [1, 1]} : vector<2x60xf32> to vector<2x20xf32>
    %625 = vector.extract_strided_slice %620 {offsets = [0, 40], sizes = [2, 20], strides = [1, 1]} : vector<2x60xf32> to vector<2x20xf32>
    %626 = arith.mulf %624, %568 : vector<2x20xf32>
    %627 = arith.mulf %623, %622 : vector<2x20xf32>
    %628 = arith.addf %626, %627 : vector<2x20xf32>
    %629 = math.tanh %628 : vector<2x20xf32>
    %630 = arith.mulf %625, %629 : vector<2x20xf32>
    %cst_167 = arith.constant dense<0.000000e+00> : vector<2x22xf32>
    %631 = tpu.matmul %630, %490, %cst_167 {dimension_numbers = #tpu.dot_dimension_numbers<[1], [0], [0], [1], [0, 0, 1, 1], [], []>} : vector<2x20xf32>, vector<20x22xf32>, vector<2x22xf32> -> vector<2x22xf32>
    %632 = vector.extract_strided_slice %631 {offsets = [0, 0], sizes = [2, 20], strides = [1, 1]} : vector<2x22xf32> to vector<2x20xf32>
    %cst_168 = arith.constant dense<0.000000e+00> : vector<2x20xf32>
    %633 = tpu.matmul %628, %489, %cst_168 {dimension_numbers = #tpu.dot_dimension_numbers<[1], [0], [0], [1], [0, 0, 1, 1], [], []>} : vector<2x20xf32>, vector<20x20xf32>, vector<2x20xf32> -> vector<2x20xf32>
    %634 = arith.addf %632, %633 : vector<2x20xf32>
    %635 = vector.shape_cast %634 : vector<2x20xf32> to vector<1x2x20xf32>
    %636 = vector.broadcast %635 : vector<1x2x20xf32> to vector<8x2x20xf32>
    %637 = arith.addf %488, %636 : vector<8x2x20xf32>
    %638 = math.tanh %637 : vector<8x2x20xf32>
    %639 = vector.broadcast %9 : vector<1x1x20xf32> to vector<8x2x20xf32>
    %640 = arith.mulf %638, %639 : vector<8x2x20xf32>
    %cst_169 = arith.constant dense<0.000000e+00> : vector<8x2xf32>
    %641 = vector.multi_reduction <add>, %640, %cst_169 [2] : vector<8x2x20xf32> to vector<8x2xf32>
    %642 = vector.shape_cast %641 : vector<8x2xf32> to vector<8x2x1xf32>
    %643 = vector.broadcast %642 : vector<8x2x1xf32> to vector<8x2x20xf32>
    %644 = arith.mulf %643, %479 : vector<8x2x20xf32>
    %cst_170 = arith.constant dense<0.000000e+00> : vector<2x20xf32>
    %645 = vector.multi_reduction <add>, %644, %cst_170 [0] : vector<8x2x20xf32> to vector<2x20xf32>
    %646 = vector.extract_strided_slice %502 {offsets = [0, 2, 0], sizes = [2, 1, 80], strides = [1, 1, 1]} : vector<2x8x80xf32> to vector<2x1x80xf32>
    %647 = vector.shape_cast %646 : vector<2x1x80xf32> to vector<2x80xf32>
    %cst_171 = arith.constant dense<0.000000e+00> : vector<2x80xf32>
    %648 = tpu.matmul %645, %492, %cst_171 {dimension_numbers = #tpu.dot_dimension_numbers<[1], [0], [0], [1], [0, 0, 1, 1], [], []>} : vector<2x20xf32>, vector<20x80xf32>, vector<2x80xf32> -> vector<2x80xf32>
    %649 = arith.addf %647, %648 : vector<2x80xf32>
    %cst_172 = arith.constant dense<0.000000e+00> : vector<2x80xf32>
    %650 = tpu.matmul %609, %493, %cst_172 {dimension_numbers = #tpu.dot_dimension_numbers<[1], [0], [0], [1], [0, 0, 1, 1], [], []>} : vector<2x20xf32>, vector<20x80xf32>, vector<2x80xf32> -> vector<2x80xf32>
    %651 = arith.addf %649, %650 : vector<2x80xf32>
    %652 = vector.broadcast %494 : vector<1x80xf32> to vector<2x80xf32>
    %653 = arith.addf %651, %652 : vector<2x80xf32>
    %654 = vector.extract_strided_slice %653 {offsets = [0, 0], sizes = [2, 60], strides = [1, 1]} : vector<2x80xf32> to vector<2x60xf32>
    %655 = arith.negf %654 : vector<2x60xf32>
    %656 = math.exp %655 : vector<2x60xf32>
    %cst_173 = arith.constant 1.000000e+00 : f32
    %657 = vector.broadcast %cst_173 : f32 to vector<2x60xf32>
    %658 = arith.addf %657, %656 : vector<2x60xf32>
    %659 = arith.divf %657, %658 : vector<2x60xf32>
    %660 = vector.extract_strided_slice %653 {offsets = [0, 60], sizes = [2, 20], strides = [1, 1]} : vector<2x80xf32> to vector<2x20xf32>
    %661 = math.tanh %660 : vector<2x20xf32>
    %662 = vector.extract_strided_slice %659 {offsets = [0, 0], sizes = [2, 20], strides = [1, 1]} : vector<2x60xf32> to vector<2x20xf32>
    %663 = vector.extract_strided_slice %659 {offsets = [0, 20], sizes = [2, 20], strides = [1, 1]} : vector<2x60xf32> to vector<2x20xf32>
    %664 = vector.extract_strided_slice %659 {offsets = [0, 40], sizes = [2, 20], strides = [1, 1]} : vector<2x60xf32> to vector<2x20xf32>
    %665 = arith.mulf %663, %607 : vector<2x20xf32>
    %666 = arith.mulf %662, %661 : vector<2x20xf32>
    %667 = arith.addf %665, %666 : vector<2x20xf32>
    %668 = math.tanh %667 : vector<2x20xf32>
    %669 = arith.mulf %664, %668 : vector<2x20xf32>
    %cst_174 = arith.constant dense<0.000000e+00> : vector<2x80xf32>
    %670 = tpu.matmul %669, %495, %cst_174 {dimension_numbers = #tpu.dot_dimension_numbers<[1], [0], [0], [1], [0, 0, 1, 1], [], []>} : vector<2x20xf32>, vector<20x80xf32>, vector<2x80xf32> -> vector<2x80xf32>
    %cst_175 = arith.constant dense<0.000000e+00> : vector<2x80xf32>
    %671 = tpu.matmul %630, %496, %cst_175 {dimension_numbers = #tpu.dot_dimension_numbers<[1], [0], [0], [1], [0, 0, 1, 1], [], []>} : vector<2x20xf32>, vector<20x80xf32>, vector<2x80xf32> -> vector<2x80xf32>
    %672 = arith.addf %670, %671 : vector<2x80xf32>
    %673 = vector.broadcast %497 : vector<1x80xf32> to vector<2x80xf32>
    %674 = arith.addf %672, %673 : vector<2x80xf32>
    %675 = vector.extract_strided_slice %674 {offsets = [0, 0], sizes = [2, 60], strides = [1, 1]} : vector<2x80xf32> to vector<2x60xf32>
    %676 = arith.negf %675 : vector<2x60xf32>
    %677 = math.exp %676 : vector<2x60xf32>
    %cst_176 = arith.constant 1.000000e+00 : f32
    %678 = vector.broadcast %cst_176 : f32 to vector<2x60xf32>
    %679 = arith.addf %678, %677 : vector<2x60xf32>
    %680 = arith.divf %678, %679 : vector<2x60xf32>
    %681 = vector.extract_strided_slice %674 {offsets = [0, 60], sizes = [2, 20], strides = [1, 1]} : vector<2x80xf32> to vector<2x20xf32>
    %682 = math.tanh %681 : vector<2x20xf32>
    %683 = vector.extract_strided_slice %680 {offsets = [0, 0], sizes = [2, 20], strides = [1, 1]} : vector<2x60xf32> to vector<2x20xf32>
    %684 = vector.extract_strided_slice %680 {offsets = [0, 20], sizes = [2, 20], strides = [1, 1]} : vector<2x60xf32> to vector<2x20xf32>
    %685 = vector.extract_strided_slice %680 {offsets = [0, 40], sizes = [2, 20], strides = [1, 1]} : vector<2x60xf32> to vector<2x20xf32>
    %686 = arith.mulf %684, %628 : vector<2x20xf32>
    %687 = arith.mulf %683, %682 : vector<2x20xf32>
    %688 = arith.addf %686, %687 : vector<2x20xf32>
    %689 = math.tanh %688 : vector<2x20xf32>
    %690 = arith.mulf %685, %689 : vector<2x20xf32>
    %cst_177 = arith.constant dense<0.000000e+00> : vector<2x22xf32>
    %691 = tpu.matmul %690, %490, %cst_177 {dimension_numbers = #tpu.dot_dimension_numbers<[1], [0], [0], [1], [0, 0, 1, 1], [], []>} : vector<2x20xf32>, vector<20x22xf32>, vector<2x22xf32> -> vector<2x22xf32>
    %692 = vector.extract_strided_slice %691 {offsets = [0, 0], sizes = [2, 20], strides = [1, 1]} : vector<2x22xf32> to vector<2x20xf32>
    %cst_178 = arith.constant dense<0.000000e+00> : vector<2x20xf32>
    %693 = tpu.matmul %688, %489, %cst_178 {dimension_numbers = #tpu.dot_dimension_numbers<[1], [0], [0], [1], [0, 0, 1, 1], [], []>} : vector<2x20xf32>, vector<20x20xf32>, vector<2x20xf32> -> vector<2x20xf32>
    %694 = arith.addf %692, %693 : vector<2x20xf32>
    %695 = vector.shape_cast %694 : vector<2x20xf32> to vector<1x2x20xf32>
    %696 = vector.broadcast %695 : vector<1x2x20xf32> to vector<8x2x20xf32>
    %697 = arith.addf %488, %696 : vector<8x2x20xf32>
    %698 = math.tanh %697 : vector<8x2x20xf32>
    %699 = vector.broadcast %9 : vector<1x1x20xf32> to vector<8x2x20xf32>
    %700 = arith.mulf %698, %699 : vector<8x2x20xf32>
    %cst_179 = arith.constant dense<0.000000e+00> : vector<8x2xf32>
    %701 = vector.multi_reduction <add>, %700, %cst_179 [2] : vector<8x2x20xf32> to vector<8x2xf32>
    %702 = vector.shape_cast %701 : vector<8x2xf32> to vector<8x2x1xf32>
    %703 = vector.broadcast %702 : vector<8x2x1xf32> to vector<8x2x20xf32>
    %704 = arith.mulf %703, %479 : vector<8x2x20xf32>
    %cst_180 = arith.constant dense<0.000000e+00> : vector<2x20xf32>
    %705 = vector.multi_reduction <add>, %704, %cst_180 [0] : vector<8x2x20xf32> to vector<2x20xf32>
    %706 = vector.extract_strided_slice %502 {offsets = [0, 3, 0], sizes = [2, 1, 80], strides = [1, 1, 1]} : vector<2x8x80xf32> to vector<2x1x80xf32>
    %707 = vector.shape_cast %706 : vector<2x1x80xf32> to vector<2x80xf32>
    %cst_181 = arith.constant dense<0.000000e+00> : vector<2x80xf32>
    %708 = tpu.matmul %705, %492, %cst_181 {dimension_numbers = #tpu.dot_dimension_numbers<[1], [0], [0], [1], [0, 0, 1, 1], [], []>} : vector<2x20xf32>, vector<20x80xf32>, vector<2x80xf32> -> vector<2x80xf32>
    %709 = arith.addf %707, %708 : vector<2x80xf32>
    %cst_182 = arith.constant dense<0.000000e+00> : vector<2x80xf32>
    %710 = tpu.matmul %669, %493, %cst_182 {dimension_numbers = #tpu.dot_dimension_numbers<[1], [0], [0], [1], [0, 0, 1, 1], [], []>} : vector<2x20xf32>, vector<20x80xf32>, vector<2x80xf32> -> vector<2x80xf32>
    %711 = arith.addf %709, %710 : vector<2x80xf32>
    %712 = vector.broadcast %494 : vector<1x80xf32> to vector<2x80xf32>
    %713 = arith.addf %711, %712 : vector<2x80xf32>
    %714 = vector.extract_strided_slice %713 {offsets = [0, 0], sizes = [2, 60], strides = [1, 1]} : vector<2x80xf32> to vector<2x60xf32>
    %715 = arith.negf %714 : vector<2x60xf32>
    %716 = math.exp %715 : vector<2x60xf32>
    %cst_183 = arith.constant 1.000000e+00 : f32
    %717 = vector.broadcast %cst_183 : f32 to vector<2x60xf32>
    %718 = arith.addf %717, %716 : vector<2x60xf32>
    %719 = arith.divf %717, %718 : vector<2x60xf32>
    %720 = vector.extract_strided_slice %713 {offsets = [0, 60], sizes = [2, 20], strides = [1, 1]} : vector<2x80xf32> to vector<2x20xf32>
    %721 = math.tanh %720 : vector<2x20xf32>
    %722 = vector.extract_strided_slice %719 {offsets = [0, 0], sizes = [2, 20], strides = [1, 1]} : vector<2x60xf32> to vector<2x20xf32>
    %723 = vector.extract_strided_slice %719 {offsets = [0, 20], sizes = [2, 20], strides = [1, 1]} : vector<2x60xf32> to vector<2x20xf32>
    %724 = vector.extract_strided_slice %719 {offsets = [0, 40], sizes = [2, 20], strides = [1, 1]} : vector<2x60xf32> to vector<2x20xf32>
    %725 = arith.mulf %723, %667 : vector<2x20xf32>
    %726 = arith.mulf %722, %721 : vector<2x20xf32>
    %727 = arith.addf %725, %726 : vector<2x20xf32>
    %728 = math.tanh %727 : vector<2x20xf32>
    %729 = arith.mulf %724, %728 : vector<2x20xf32>
    %cst_184 = arith.constant dense<0.000000e+00> : vector<2x80xf32>
    %730 = tpu.matmul %729, %495, %cst_184 {dimension_numbers = #tpu.dot_dimension_numbers<[1], [0], [0], [1], [0, 0, 1, 1], [], []>} : vector<2x20xf32>, vector<20x80xf32>, vector<2x80xf32> -> vector<2x80xf32>
    %cst_185 = arith.constant dense<0.000000e+00> : vector<2x80xf32>
    %731 = tpu.matmul %690, %496, %cst_185 {dimension_numbers = #tpu.dot_dimension_numbers<[1], [0], [0], [1], [0, 0, 1, 1], [], []>} : vector<2x20xf32>, vector<20x80xf32>, vector<2x80xf32> -> vector<2x80xf32>
    %732 = arith.addf %730, %731 : vector<2x80xf32>
    %733 = vector.broadcast %497 : vector<1x80xf32> to vector<2x80xf32>
    %734 = arith.addf %732, %733 : vector<2x80xf32>
    %735 = vector.extract_strided_slice %734 {offsets = [0, 0], sizes = [2, 60], strides = [1, 1]} : vector<2x80xf32> to vector<2x60xf32>
    %736 = arith.negf %735 : vector<2x60xf32>
    %737 = math.exp %736 : vector<2x60xf32>
    %cst_186 = arith.constant 1.000000e+00 : f32
    %738 = vector.broadcast %cst_186 : f32 to vector<2x60xf32>
    %739 = arith.addf %738, %737 : vector<2x60xf32>
    %740 = arith.divf %738, %739 : vector<2x60xf32>
    %741 = vector.extract_strided_slice %734 {offsets = [0, 60], sizes = [2, 20], strides = [1, 1]} : vector<2x80xf32> to vector<2x20xf32>
    %742 = math.tanh %741 : vector<2x20xf32>
    %743 = vector.extract_strided_slice %740 {offsets = [0, 0], sizes = [2, 20], strides = [1, 1]} : vector<2x60xf32> to vector<2x20xf32>
    %744 = vector.extract_strided_slice %740 {offsets = [0, 20], sizes = [2, 20], strides = [1, 1]} : vector<2x60xf32> to vector<2x20xf32>
    %745 = vector.extract_strided_slice %740 {offsets = [0, 40], sizes = [2, 20], strides = [1, 1]} : vector<2x60xf32> to vector<2x20xf32>
    %746 = arith.mulf %744, %688 : vector<2x20xf32>
    %747 = arith.mulf %743, %742 : vector<2x20xf32>
    %748 = arith.addf %746, %747 : vector<2x20xf32>
    %749 = math.tanh %748 : vector<2x20xf32>
    %750 = arith.mulf %745, %749 : vector<2x20xf32>
    %cst_187 = arith.constant dense<0.000000e+00> : vector<2x22xf32>
    %751 = tpu.matmul %750, %490, %cst_187 {dimension_numbers = #tpu.dot_dimension_numbers<[1], [0], [0], [1], [0, 0, 1, 1], [], []>} : vector<2x20xf32>, vector<20x22xf32>, vector<2x22xf32> -> vector<2x22xf32>
    %752 = vector.extract_strided_slice %751 {offsets = [0, 0], sizes = [2, 20], strides = [1, 1]} : vector<2x22xf32> to vector<2x20xf32>
    %cst_188 = arith.constant dense<0.000000e+00> : vector<2x20xf32>
    %753 = tpu.matmul %748, %489, %cst_188 {dimension_numbers = #tpu.dot_dimension_numbers<[1], [0], [0], [1], [0, 0, 1, 1], [], []>} : vector<2x20xf32>, vector<20x20xf32>, vector<2x20xf32> -> vector<2x20xf32>
    %754 = arith.addf %752, %753 : vector<2x20xf32>
    %755 = vector.shape_cast %754 : vector<2x20xf32> to vector<1x2x20xf32>
    %756 = vector.broadcast %755 : vector<1x2x20xf32> to vector<8x2x20xf32>
    %757 = arith.addf %488, %756 : vector<8x2x20xf32>
    %758 = math.tanh %757 : vector<8x2x20xf32>
    %759 = vector.broadcast %9 : vector<1x1x20xf32> to vector<8x2x20xf32>
    %760 = arith.mulf %758, %759 : vector<8x2x20xf32>
    %cst_189 = arith.constant dense<0.000000e+00> : vector<8x2xf32>
    %761 = vector.multi_reduction <add>, %760, %cst_189 [2] : vector<8x2x20xf32> to vector<8x2xf32>
    %762 = vector.shape_cast %761 : vector<8x2xf32> to vector<8x2x1xf32>
    %763 = vector.broadcast %762 : vector<8x2x1xf32> to vector<8x2x20xf32>
    %764 = arith.mulf %763, %479 : vector<8x2x20xf32>
    %cst_190 = arith.constant dense<0.000000e+00> : vector<2x20xf32>
    %765 = vector.multi_reduction <add>, %764, %cst_190 [0] : vector<8x2x20xf32> to vector<2x20xf32>
    %766 = vector.extract_strided_slice %502 {offsets = [0, 4, 0], sizes = [2, 1, 80], strides = [1, 1, 1]} : vector<2x8x80xf32> to vector<2x1x80xf32>
    %767 = vector.shape_cast %766 : vector<2x1x80xf32> to vector<2x80xf32>
    %cst_191 = arith.constant dense<0.000000e+00> : vector<2x80xf32>
    %768 = tpu.matmul %765, %492, %cst_191 {dimension_numbers = #tpu.dot_dimension_numbers<[1], [0], [0], [1], [0, 0, 1, 1], [], []>} : vector<2x20xf32>, vector<20x80xf32>, vector<2x80xf32> -> vector<2x80xf32>
    %769 = arith.addf %767, %768 : vector<2x80xf32>
    %cst_192 = arith.constant dense<0.000000e+00> : vector<2x80xf32>
    %770 = tpu.matmul %729, %493, %cst_192 {dimension_numbers = #tpu.dot_dimension_numbers<[1], [0], [0], [1], [0, 0, 1, 1], [], []>} : vector<2x20xf32>, vector<20x80xf32>, vector<2x80xf32> -> vector<2x80xf32>
    %771 = arith.addf %769, %770 : vector<2x80xf32>
    %772 = vector.broadcast %494 : vector<1x80xf32> to vector<2x80xf32>
    %773 = arith.addf %771, %772 : vector<2x80xf32>
    %774 = vector.extract_strided_slice %773 {offsets = [0, 0], sizes = [2, 60], strides = [1, 1]} : vector<2x80xf32> to vector<2x60xf32>
    %775 = arith.negf %774 : vector<2x60xf32>
    %776 = math.exp %775 : vector<2x60xf32>
    %cst_193 = arith.constant 1.000000e+00 : f32
    %777 = vector.broadcast %cst_193 : f32 to vector<2x60xf32>
    %778 = arith.addf %777, %776 : vector<2x60xf32>
    %779 = arith.divf %777, %778 : vector<2x60xf32>
    %780 = vector.extract_strided_slice %773 {offsets = [0, 60], sizes = [2, 20], strides = [1, 1]} : vector<2x80xf32> to vector<2x20xf32>
    %781 = math.tanh %780 : vector<2x20xf32>
    %782 = vector.extract_strided_slice %779 {offsets = [0, 0], sizes = [2, 20], strides = [1, 1]} : vector<2x60xf32> to vector<2x20xf32>
    %783 = vector.extract_strided_slice %779 {offsets = [0, 20], sizes = [2, 20], strides = [1, 1]} : vector<2x60xf32> to vector<2x20xf32>
    %784 = vector.extract_strided_slice %779 {offsets = [0, 40], sizes = [2, 20], strides = [1, 1]} : vector<2x60xf32> to vector<2x20xf32>
    %785 = arith.mulf %783, %727 : vector<2x20xf32>
    %786 = arith.mulf %782, %781 : vector<2x20xf32>
    %787 = arith.addf %785, %786 : vector<2x20xf32>
    %788 = math.tanh %787 : vector<2x20xf32>
    %789 = arith.mulf %784, %788 : vector<2x20xf32>
    %cst_194 = arith.constant dense<0.000000e+00> : vector<2x80xf32>
    %790 = tpu.matmul %789, %495, %cst_194 {dimension_numbers = #tpu.dot_dimension_numbers<[1], [0], [0], [1], [0, 0, 1, 1], [], []>} : vector<2x20xf32>, vector<20x80xf32>, vector<2x80xf32> -> vector<2x80xf32>
    %cst_195 = arith.constant dense<0.000000e+00> : vector<2x80xf32>
    %791 = tpu.matmul %750, %496, %cst_195 {dimension_numbers = #tpu.dot_dimension_numbers<[1], [0], [0], [1], [0, 0, 1, 1], [], []>} : vector<2x20xf32>, vector<20x80xf32>, vector<2x80xf32> -> vector<2x80xf32>
    %792 = arith.addf %790, %791 : vector<2x80xf32>
    %793 = vector.broadcast %497 : vector<1x80xf32> to vector<2x80xf32>
    %794 = arith.addf %792, %793 : vector<2x80xf32>
    %795 = vector.extract_strided_slice %794 {offsets = [0, 0], sizes = [2, 60], strides = [1, 1]} : vector<2x80xf32> to vector<2x60xf32>
    %796 = arith.negf %795 : vector<2x60xf32>
    %797 = math.exp %796 : vector<2x60xf32>
    %cst_196 = arith.constant 1.000000e+00 : f32
    %798 = vector.broadcast %cst_196 : f32 to vector<2x60xf32>
    %799 = arith.addf %798, %797 : vector<2x60xf32>
    %800 = arith.divf %798, %799 : vector<2x60xf32>
    %801 = vector.extract_strided_slice %794 {offsets = [0, 60], sizes = [2, 20], strides = [1, 1]} : vector<2x80xf32> to vector<2x20xf32>
    %802 = math.tanh %801 : vector<2x20xf32>
    %803 = vector.extract_strided_slice %800 {offsets = [0, 0], sizes = [2, 20], strides = [1, 1]} : vector<2x60xf32> to vector<2x20xf32>
    %804 = vector.extract_strided_slice %800 {offsets = [0, 20], sizes = [2, 20], strides = [1, 1]} : vector<2x60xf32> to vector<2x20xf32>
    %805 = vector.extract_strided_slice %800 {offsets = [0, 40], sizes = [2, 20], strides = [1, 1]} : vector<2x60xf32> to vector<2x20xf32>
    %806 = arith.mulf %804, %748 : vector<2x20xf32>
    %807 = arith.mulf %803, %802 : vector<2x20xf32>
    %808 = arith.addf %806, %807 : vector<2x20xf32>
    %809 = math.tanh %808 : vector<2x20xf32>
    %810 = arith.mulf %805, %809 : vector<2x20xf32>
    %cst_197 = arith.constant dense<0.000000e+00> : vector<2x22xf32>
    %811 = tpu.matmul %810, %490, %cst_197 {dimension_numbers = #tpu.dot_dimension_numbers<[1], [0], [0], [1], [0, 0, 1, 1], [], []>} : vector<2x20xf32>, vector<20x22xf32>, vector<2x22xf32> -> vector<2x22xf32>
    %812 = vector.extract_strided_slice %811 {offsets = [0, 0], sizes = [2, 20], strides = [1, 1]} : vector<2x22xf32> to vector<2x20xf32>
    %cst_198 = arith.constant dense<0.000000e+00> : vector<2x20xf32>
    %813 = tpu.matmul %808, %489, %cst_198 {dimension_numbers = #tpu.dot_dimension_numbers<[1], [0], [0], [1], [0, 0, 1, 1], [], []>} : vector<2x20xf32>, vector<20x20xf32>, vector<2x20xf32> -> vector<2x20xf32>
    %814 = arith.addf %812, %813 : vector<2x20xf32>
    %815 = vector.shape_cast %814 : vector<2x20xf32> to vector<1x2x20xf32>
    %816 = vector.broadcast %815 : vector<1x2x20xf32> to vector<8x2x20xf32>
    %817 = arith.addf %488, %816 : vector<8x2x20xf32>
    %818 = math.tanh %817 : vector<8x2x20xf32>
    %819 = vector.broadcast %9 : vector<1x1x20xf32> to vector<8x2x20xf32>
    %820 = arith.mulf %818, %819 : vector<8x2x20xf32>
    %cst_199 = arith.constant dense<0.000000e+00> : vector<8x2xf32>
    %821 = vector.multi_reduction <add>, %820, %cst_199 [2] : vector<8x2x20xf32> to vector<8x2xf32>
    %822 = vector.shape_cast %821 : vector<8x2xf32> to vector<8x2x1xf32>
    %823 = vector.broadcast %822 : vector<8x2x1xf32> to vector<8x2x20xf32>
    %824 = arith.mulf %823, %479 : vector<8x2x20xf32>
    %cst_200 = arith.constant dense<0.000000e+00> : vector<2x20xf32>
    %825 = vector.multi_reduction <add>, %824, %cst_200 [0] : vector<8x2x20xf32> to vector<2x20xf32>
    %826 = vector.extract_strided_slice %502 {offsets = [0, 5, 0], sizes = [2, 1, 80], strides = [1, 1, 1]} : vector<2x8x80xf32> to vector<2x1x80xf32>
    %827 = vector.shape_cast %826 : vector<2x1x80xf32> to vector<2x80xf32>
    %cst_201 = arith.constant dense<0.000000e+00> : vector<2x80xf32>
    %828 = tpu.matmul %825, %492, %cst_201 {dimension_numbers = #tpu.dot_dimension_numbers<[1], [0], [0], [1], [0, 0, 1, 1], [], []>} : vector<2x20xf32>, vector<20x80xf32>, vector<2x80xf32> -> vector<2x80xf32>
    %829 = arith.addf %827, %828 : vector<2x80xf32>
    %cst_202 = arith.constant dense<0.000000e+00> : vector<2x80xf32>
    %830 = tpu.matmul %789, %493, %cst_202 {dimension_numbers = #tpu.dot_dimension_numbers<[1], [0], [0], [1], [0, 0, 1, 1], [], []>} : vector<2x20xf32>, vector<20x80xf32>, vector<2x80xf32> -> vector<2x80xf32>
    %831 = arith.addf %829, %830 : vector<2x80xf32>
    %832 = vector.broadcast %494 : vector<1x80xf32> to vector<2x80xf32>
    %833 = arith.addf %831, %832 : vector<2x80xf32>
    %834 = vector.extract_strided_slice %833 {offsets = [0, 0], sizes = [2, 60], strides = [1, 1]} : vector<2x80xf32> to vector<2x60xf32>
    %835 = arith.negf %834 : vector<2x60xf32>
    %836 = math.exp %835 : vector<2x60xf32>
    %cst_203 = arith.constant 1.000000e+00 : f32
    %837 = vector.broadcast %cst_203 : f32 to vector<2x60xf32>
    %838 = arith.addf %837, %836 : vector<2x60xf32>
    %839 = arith.divf %837, %838 : vector<2x60xf32>
    %840 = vector.extract_strided_slice %833 {offsets = [0, 60], sizes = [2, 20], strides = [1, 1]} : vector<2x80xf32> to vector<2x20xf32>
    %841 = math.tanh %840 : vector<2x20xf32>
    %842 = vector.extract_strided_slice %839 {offsets = [0, 0], sizes = [2, 20], strides = [1, 1]} : vector<2x60xf32> to vector<2x20xf32>
    %843 = vector.extract_strided_slice %839 {offsets = [0, 20], sizes = [2, 20], strides = [1, 1]} : vector<2x60xf32> to vector<2x20xf32>
    %844 = vector.extract_strided_slice %839 {offsets = [0, 40], sizes = [2, 20], strides = [1, 1]} : vector<2x60xf32> to vector<2x20xf32>
    %845 = arith.mulf %843, %787 : vector<2x20xf32>
    %846 = arith.mulf %842, %841 : vector<2x20xf32>
    %847 = arith.addf %845, %846 : vector<2x20xf32>
    %848 = math.tanh %847 : vector<2x20xf32>
    %849 = arith.mulf %844, %848 : vector<2x20xf32>
    %cst_204 = arith.constant dense<0.000000e+00> : vector<2x80xf32>
    %850 = tpu.matmul %849, %495, %cst_204 {dimension_numbers = #tpu.dot_dimension_numbers<[1], [0], [0], [1], [0, 0, 1, 1], [], []>} : vector<2x20xf32>, vector<20x80xf32>, vector<2x80xf32> -> vector<2x80xf32>
    %cst_205 = arith.constant dense<0.000000e+00> : vector<2x80xf32>
    %851 = tpu.matmul %810, %496, %cst_205 {dimension_numbers = #tpu.dot_dimension_numbers<[1], [0], [0], [1], [0, 0, 1, 1], [], []>} : vector<2x20xf32>, vector<20x80xf32>, vector<2x80xf32> -> vector<2x80xf32>
    %852 = arith.addf %850, %851 : vector<2x80xf32>
    %853 = vector.broadcast %497 : vector<1x80xf32> to vector<2x80xf32>
    %854 = arith.addf %852, %853 : vector<2x80xf32>
    %855 = vector.extract_strided_slice %854 {offsets = [0, 0], sizes = [2, 60], strides = [1, 1]} : vector<2x80xf32> to vector<2x60xf32>
    %856 = arith.negf %855 : vector<2x60xf32>
    %857 = math.exp %856 : vector<2x60xf32>
    %cst_206 = arith.constant 1.000000e+00 : f32
    %858 = vector.broadcast %cst_206 : f32 to vector<2x60xf32>
    %859 = arith.addf %858, %857 : vector<2x60xf32>
    %860 = arith.divf %858, %859 : vector<2x60xf32>
    %861 = vector.extract_strided_slice %854 {offsets = [0, 60], sizes = [2, 20], strides = [1, 1]} : vector<2x80xf32> to vector<2x20xf32>
    %862 = math.tanh %861 : vector<2x20xf32>
    %863 = vector.extract_strided_slice %860 {offsets = [0, 0], sizes = [2, 20], strides = [1, 1]} : vector<2x60xf32> to vector<2x20xf32>
    %864 = vector.extract_strided_slice %860 {offsets = [0, 20], sizes = [2, 20], strides = [1, 1]} : vector<2x60xf32> to vector<2x20xf32>
    %865 = vector.extract_strided_slice %860 {offsets = [0, 40], sizes = [2, 20], strides = [1, 1]} : vector<2x60xf32> to vector<2x20xf32>
    %866 = arith.mulf %864, %808 : vector<2x20xf32>
    %867 = arith.mulf %863, %862 : vector<2x20xf32>
    %868 = arith.addf %866, %867 : vector<2x20xf32>
    %869 = math.tanh %868 : vector<2x20xf32>
    %870 = arith.mulf %865, %869 : vector<2x20xf32>
    %cst_207 = arith.constant dense<0.000000e+00> : vector<2x22xf32>
    %871 = tpu.matmul %870, %490, %cst_207 {dimension_numbers = #tpu.dot_dimension_numbers<[1], [0], [0], [1], [0, 0, 1, 1], [], []>} : vector<2x20xf32>, vector<20x22xf32>, vector<2x22xf32> -> vector<2x22xf32>
    %872 = vector.extract_strided_slice %871 {offsets = [0, 0], sizes = [2, 20], strides = [1, 1]} : vector<2x22xf32> to vector<2x20xf32>
    %cst_208 = arith.constant dense<0.000000e+00> : vector<2x20xf32>
    %873 = tpu.matmul %868, %489, %cst_208 {dimension_numbers = #tpu.dot_dimension_numbers<[1], [0], [0], [1], [0, 0, 1, 1], [], []>} : vector<2x20xf32>, vector<20x20xf32>, vector<2x20xf32> -> vector<2x20xf32>
    %874 = arith.addf %872, %873 : vector<2x20xf32>
    %875 = vector.shape_cast %874 : vector<2x20xf32> to vector<1x2x20xf32>
    %876 = vector.broadcast %875 : vector<1x2x20xf32> to vector<8x2x20xf32>
    %877 = arith.addf %488, %876 : vector<8x2x20xf32>
    %878 = math.tanh %877 : vector<8x2x20xf32>
    %879 = vector.broadcast %9 : vector<1x1x20xf32> to vector<8x2x20xf32>
    %880 = arith.mulf %878, %879 : vector<8x2x20xf32>
    %cst_209 = arith.constant dense<0.000000e+00> : vector<8x2xf32>
    %881 = vector.multi_reduction <add>, %880, %cst_209 [2] : vector<8x2x20xf32> to vector<8x2xf32>
    %882 = vector.shape_cast %881 : vector<8x2xf32> to vector<8x2x1xf32>
    %883 = vector.broadcast %882 : vector<8x2x1xf32> to vector<8x2x20xf32>
    %884 = arith.mulf %883, %479 : vector<8x2x20xf32>
    %cst_210 = arith.constant dense<0.000000e+00> : vector<2x20xf32>
    %885 = vector.multi_reduction <add>, %884, %cst_210 [0] : vector<8x2x20xf32> to vector<2x20xf32>
    %886 = vector.extract_strided_slice %502 {offsets = [0, 6, 0], sizes = [2, 1, 80], strides = [1, 1, 1]} : vector<2x8x80xf32> to vector<2x1x80xf32>
    %887 = vector.shape_cast %886 : vector<2x1x80xf32> to vector<2x80xf32>
    %cst_211 = arith.constant dense<0.000000e+00> : vector<2x80xf32>
    %888 = tpu.matmul %885, %492, %cst_211 {dimension_numbers = #tpu.dot_dimension_numbers<[1], [0], [0], [1], [0, 0, 1, 1], [], []>} : vector<2x20xf32>, vector<20x80xf32>, vector<2x80xf32> -> vector<2x80xf32>
    %889 = arith.addf %887, %888 : vector<2x80xf32>
    %cst_212 = arith.constant dense<0.000000e+00> : vector<2x80xf32>
    %890 = tpu.matmul %849, %493, %cst_212 {dimension_numbers = #tpu.dot_dimension_numbers<[1], [0], [0], [1], [0, 0, 1, 1], [], []>} : vector<2x20xf32>, vector<20x80xf32>, vector<2x80xf32> -> vector<2x80xf32>
    %891 = arith.addf %889, %890 : vector<2x80xf32>
    %892 = vector.broadcast %494 : vector<1x80xf32> to vector<2x80xf32>
    %893 = arith.addf %891, %892 : vector<2x80xf32>
    %894 = vector.extract_strided_slice %893 {offsets = [0, 0], sizes = [2, 60], strides = [1, 1]} : vector<2x80xf32> to vector<2x60xf32>
    %895 = arith.negf %894 : vector<2x60xf32>
    %896 = math.exp %895 : vector<2x60xf32>
    %cst_213 = arith.constant 1.000000e+00 : f32
    %897 = vector.broadcast %cst_213 : f32 to vector<2x60xf32>
    %898 = arith.addf %897, %896 : vector<2x60xf32>
    %899 = arith.divf %897, %898 : vector<2x60xf32>
    %900 = vector.extract_strided_slice %893 {offsets = [0, 60], sizes = [2, 20], strides = [1, 1]} : vector<2x80xf32> to vector<2x20xf32>
    %901 = math.tanh %900 : vector<2x20xf32>
    %902 = vector.extract_strided_slice %899 {offsets = [0, 0], sizes = [2, 20], strides = [1, 1]} : vector<2x60xf32> to vector<2x20xf32>
    %903 = vector.extract_strided_slice %899 {offsets = [0, 20], sizes = [2, 20], strides = [1, 1]} : vector<2x60xf32> to vector<2x20xf32>
    %904 = vector.extract_strided_slice %899 {offsets = [0, 40], sizes = [2, 20], strides = [1, 1]} : vector<2x60xf32> to vector<2x20xf32>
    %905 = arith.mulf %903, %847 : vector<2x20xf32>
    %906 = arith.mulf %902, %901 : vector<2x20xf32>
    %907 = arith.addf %905, %906 : vector<2x20xf32>
    %908 = math.tanh %907 : vector<2x20xf32>
    %909 = arith.mulf %904, %908 : vector<2x20xf32>
    %cst_214 = arith.constant dense<0.000000e+00> : vector<2x80xf32>
    %910 = tpu.matmul %909, %495, %cst_214 {dimension_numbers = #tpu.dot_dimension_numbers<[1], [0], [0], [1], [0, 0, 1, 1], [], []>} : vector<2x20xf32>, vector<20x80xf32>, vector<2x80xf32> -> vector<2x80xf32>
    %cst_215 = arith.constant dense<0.000000e+00> : vector<2x80xf32>
    %911 = tpu.matmul %870, %496, %cst_215 {dimension_numbers = #tpu.dot_dimension_numbers<[1], [0], [0], [1], [0, 0, 1, 1], [], []>} : vector<2x20xf32>, vector<20x80xf32>, vector<2x80xf32> -> vector<2x80xf32>
    %912 = arith.addf %910, %911 : vector<2x80xf32>
    %913 = vector.broadcast %497 : vector<1x80xf32> to vector<2x80xf32>
    %914 = arith.addf %912, %913 : vector<2x80xf32>
    %915 = vector.extract_strided_slice %914 {offsets = [0, 0], sizes = [2, 60], strides = [1, 1]} : vector<2x80xf32> to vector<2x60xf32>
    %916 = arith.negf %915 : vector<2x60xf32>
    %917 = math.exp %916 : vector<2x60xf32>
    %cst_216 = arith.constant 1.000000e+00 : f32
    %918 = vector.broadcast %cst_216 : f32 to vector<2x60xf32>
    %919 = arith.addf %918, %917 : vector<2x60xf32>
    %920 = arith.divf %918, %919 : vector<2x60xf32>
    %921 = vector.extract_strided_slice %914 {offsets = [0, 60], sizes = [2, 20], strides = [1, 1]} : vector<2x80xf32> to vector<2x20xf32>
    %922 = math.tanh %921 : vector<2x20xf32>
    %923 = vector.extract_strided_slice %920 {offsets = [0, 0], sizes = [2, 20], strides = [1, 1]} : vector<2x60xf32> to vector<2x20xf32>
    %924 = vector.extract_strided_slice %920 {offsets = [0, 20], sizes = [2, 20], strides = [1, 1]} : vector<2x60xf32> to vector<2x20xf32>
    %925 = vector.extract_strided_slice %920 {offsets = [0, 40], sizes = [2, 20], strides = [1, 1]} : vector<2x60xf32> to vector<2x20xf32>
    %926 = arith.mulf %924, %868 : vector<2x20xf32>
    %927 = arith.mulf %923, %922 : vector<2x20xf32>
    %928 = arith.addf %926, %927 : vector<2x20xf32>
    %929 = math.tanh %928 : vector<2x20xf32>
    %930 = arith.mulf %925, %929 : vector<2x20xf32>
    %cst_217 = arith.constant dense<0.000000e+00> : vector<2x22xf32>
    %931 = tpu.matmul %930, %490, %cst_217 {dimension_numbers = #tpu.dot_dimension_numbers<[1], [0], [0], [1], [0, 0, 1, 1], [], []>} : vector<2x20xf32>, vector<20x22xf32>, vector<2x22xf32> -> vector<2x22xf32>
    %932 = vector.extract_strided_slice %931 {offsets = [0, 0], sizes = [2, 20], strides = [1, 1]} : vector<2x22xf32> to vector<2x20xf32>
    %cst_218 = arith.constant dense<0.000000e+00> : vector<2x20xf32>
    %933 = tpu.matmul %928, %489, %cst_218 {dimension_numbers = #tpu.dot_dimension_numbers<[1], [0], [0], [1], [0, 0, 1, 1], [], []>} : vector<2x20xf32>, vector<20x20xf32>, vector<2x20xf32> -> vector<2x20xf32>
    %934 = arith.addf %932, %933 : vector<2x20xf32>
    %935 = vector.shape_cast %934 : vector<2x20xf32> to vector<1x2x20xf32>
    %936 = vector.broadcast %935 : vector<1x2x20xf32> to vector<8x2x20xf32>
    %937 = arith.addf %488, %936 : vector<8x2x20xf32>
    %938 = math.tanh %937 : vector<8x2x20xf32>
    %939 = vector.broadcast %9 : vector<1x1x20xf32> to vector<8x2x20xf32>
    %940 = arith.mulf %938, %939 : vector<8x2x20xf32>
    %cst_219 = arith.constant dense<0.000000e+00> : vector<8x2xf32>
    %941 = vector.multi_reduction <add>, %940, %cst_219 [2] : vector<8x2x20xf32> to vector<8x2xf32>
    %942 = vector.shape_cast %941 : vector<8x2xf32> to vector<8x2x1xf32>
    %943 = vector.broadcast %942 : vector<8x2x1xf32> to vector<8x2x20xf32>
    %944 = arith.mulf %943, %479 : vector<8x2x20xf32>
    %cst_220 = arith.constant dense<0.000000e+00> : vector<2x20xf32>
    %945 = vector.multi_reduction <add>, %944, %cst_220 [0] : vector<8x2x20xf32> to vector<2x20xf32>
    %946 = vector.extract_strided_slice %502 {offsets = [0, 7, 0], sizes = [2, 1, 80], strides = [1, 1, 1]} : vector<2x8x80xf32> to vector<2x1x80xf32>
    %947 = vector.shape_cast %946 : vector<2x1x80xf32> to vector<2x80xf32>
    %cst_221 = arith.constant dense<0.000000e+00> : vector<2x80xf32>
    %948 = tpu.matmul %945, %492, %cst_221 {dimension_numbers = #tpu.dot_dimension_numbers<[1], [0], [0], [1], [0, 0, 1, 1], [], []>} : vector<2x20xf32>, vector<20x80xf32>, vector<2x80xf32> -> vector<2x80xf32>
    %949 = arith.addf %947, %948 : vector<2x80xf32>
    %cst_222 = arith.constant dense<0.000000e+00> : vector<2x80xf32>
    %950 = tpu.matmul %909, %493, %cst_222 {dimension_numbers = #tpu.dot_dimension_numbers<[1], [0], [0], [1], [0, 0, 1, 1], [], []>} : vector<2x20xf32>, vector<20x80xf32>, vector<2x80xf32> -> vector<2x80xf32>
    %951 = arith.addf %949, %950 : vector<2x80xf32>
    %952 = vector.broadcast %494 : vector<1x80xf32> to vector<2x80xf32>
    %953 = arith.addf %951, %952 : vector<2x80xf32>
    %954 = vector.extract_strided_slice %953 {offsets = [0, 0], sizes = [2, 60], strides = [1, 1]} : vector<2x80xf32> to vector<2x60xf32>
    %955 = arith.negf %954 : vector<2x60xf32>
    %956 = math.exp %955 : vector<2x60xf32>
    %cst_223 = arith.constant 1.000000e+00 : f32
    %957 = vector.broadcast %cst_223 : f32 to vector<2x60xf32>
    %958 = arith.addf %957, %956 : vector<2x60xf32>
    %959 = arith.divf %957, %958 : vector<2x60xf32>
    %960 = vector.extract_strided_slice %953 {offsets = [0, 60], sizes = [2, 20], strides = [1, 1]} : vector<2x80xf32> to vector<2x20xf32>
    %961 = math.tanh %960 : vector<2x20xf32>
    %962 = vector.extract_strided_slice %959 {offsets = [0, 0], sizes = [2, 20], strides = [1, 1]} : vector<2x60xf32> to vector<2x20xf32>
    %963 = vector.extract_strided_slice %959 {offsets = [0, 20], sizes = [2, 20], strides = [1, 1]} : vector<2x60xf32> to vector<2x20xf32>
    %964 = vector.extract_strided_slice %959 {offsets = [0, 40], sizes = [2, 20], strides = [1, 1]} : vector<2x60xf32> to vector<2x20xf32>
    %965 = arith.mulf %963, %907 : vector<2x20xf32>
    %966 = arith.mulf %962, %961 : vector<2x20xf32>
    %967 = arith.addf %965, %966 : vector<2x20xf32>
    %968 = math.tanh %967 : vector<2x20xf32>
    %969 = arith.mulf %964, %968 : vector<2x20xf32>
    %cst_224 = arith.constant dense<0.000000e+00> : vector<2x80xf32>
    %970 = tpu.matmul %969, %495, %cst_224 {dimension_numbers = #tpu.dot_dimension_numbers<[1], [0], [0], [1], [0, 0, 1, 1], [], []>} : vector<2x20xf32>, vector<20x80xf32>, vector<2x80xf32> -> vector<2x80xf32>
    %cst_225 = arith.constant dense<0.000000e+00> : vector<2x80xf32>
    %971 = tpu.matmul %930, %496, %cst_225 {dimension_numbers = #tpu.dot_dimension_numbers<[1], [0], [0], [1], [0, 0, 1, 1], [], []>} : vector<2x20xf32>, vector<20x80xf32>, vector<2x80xf32> -> vector<2x80xf32>
    %972 = arith.addf %970, %971 : vector<2x80xf32>
    %973 = vector.broadcast %497 : vector<1x80xf32> to vector<2x80xf32>
    %974 = arith.addf %972, %973 : vector<2x80xf32>
    %975 = vector.extract_strided_slice %974 {offsets = [0, 0], sizes = [2, 60], strides = [1, 1]} : vector<2x80xf32> to vector<2x60xf32>
    %976 = arith.negf %975 : vector<2x60xf32>
    %977 = math.exp %976 : vector<2x60xf32>
    %cst_226 = arith.constant 1.000000e+00 : f32
    %978 = vector.broadcast %cst_226 : f32 to vector<2x60xf32>
    %979 = arith.addf %978, %977 : vector<2x60xf32>
    %980 = arith.divf %978, %979 : vector<2x60xf32>
    %981 = vector.extract_strided_slice %974 {offsets = [0, 60], sizes = [2, 20], strides = [1, 1]} : vector<2x80xf32> to vector<2x20xf32>
    %982 = math.tanh %981 : vector<2x20xf32>
    %983 = vector.extract_strided_slice %980 {offsets = [0, 0], sizes = [2, 20], strides = [1, 1]} : vector<2x60xf32> to vector<2x20xf32>
    %984 = vector.extract_strided_slice %980 {offsets = [0, 20], sizes = [2, 20], strides = [1, 1]} : vector<2x60xf32> to vector<2x20xf32>
    %985 = vector.extract_strided_slice %980 {offsets = [0, 40], sizes = [2, 20], strides = [1, 1]} : vector<2x60xf32> to vector<2x20xf32>
    %986 = arith.mulf %984, %928 : vector<2x20xf32>
    %987 = arith.mulf %983, %982 : vector<2x20xf32>
    %988 = arith.addf %986, %987 : vector<2x20xf32>
    %989 = math.tanh %988 : vector<2x20xf32>
    %990 = arith.mulf %985, %989 : vector<2x20xf32>
    %cst_227 = arith.constant dense<0.000000e+00> : vector<2x22xf32>
    %991 = tpu.matmul %990, %490, %cst_227 {dimension_numbers = #tpu.dot_dimension_numbers<[1], [0], [0], [1], [0, 0, 1, 1], [], []>} : vector<2x20xf32>, vector<20x22xf32>, vector<2x22xf32> -> vector<2x22xf32>
    %992 = vector.extract_strided_slice %991 {offsets = [0, 0], sizes = [2, 20], strides = [1, 1]} : vector<2x22xf32> to vector<2x20xf32>
    %993 = vector.extract_strided_slice %991 {offsets = [0, 20], sizes = [2, 2], strides = [1, 1]} : vector<2x22xf32> to vector<2x2xf32>
    %cst_228 = arith.constant dense<0.000000e+00> : vector<2x20xf32>
    %994 = tpu.matmul %988, %489, %cst_228 {dimension_numbers = #tpu.dot_dimension_numbers<[1], [0], [0], [1], [0, 0, 1, 1], [], []>} : vector<2x20xf32>, vector<20x20xf32>, vector<2x20xf32> -> vector<2x20xf32>
    %995 = arith.addf %992, %994 : vector<2x20xf32>
    %996 = vector.shape_cast %995 : vector<2x20xf32> to vector<1x2x20xf32>
    %997 = vector.broadcast %996 : vector<1x2x20xf32> to vector<8x2x20xf32>
    %998 = arith.addf %488, %997 : vector<8x2x20xf32>
    %999 = math.tanh %998 : vector<8x2x20xf32>
    %1000 = vector.broadcast %9 : vector<1x1x20xf32> to vector<8x2x20xf32>
    %1001 = arith.mulf %999, %1000 : vector<8x2x20xf32>
    %cst_229 = arith.constant dense<0.000000e+00> : vector<8x2xf32>
    %1002 = vector.multi_reduction <add>, %1001, %cst_229 [2] : vector<8x2x20xf32> to vector<8x2xf32>
    %1003 = vector.shape_cast %1002 : vector<8x2xf32> to vector<8x2x1xf32>
    %1004 = vector.broadcast %1003 : vector<8x2x1xf32> to vector<8x2x20xf32>
    %1005 = arith.mulf %1004, %479 : vector<8x2x20xf32>
    %cst_230 = arith.constant dense<0.000000e+00> : vector<2x20xf32>
    %1006 = vector.multi_reduction <add>, %1005, %cst_230 [0] : vector<8x2x20xf32> to vector<2x20xf32>
    %1007 = vector.extract_strided_slice %507 {offsets = [0, 0, 0], sizes = [2, 1, 80], strides = [1, 1, 1]} : vector<2x4x80xf32> to vector<2x1x80xf32>
    %1008 = vector.shape_cast %1007 : vector<2x1x80xf32> to vector<2x80xf32>
    %cst_231 = arith.constant dense<0.000000e+00> : vector<2x80xf32>
    %1009 = tpu.matmul %993, %491, %cst_231 {dimension_numbers = #tpu.dot_dimension_numbers<[1], [0], [0], [1], [0, 0, 1, 1], [], []>} : vector<2x2xf32>, vector<2x80xf32>, vector<2x80xf32> -> vector<2x80xf32>
    %1010 = arith.addf %1008, %1009 : vector<2x80xf32>
    %cst_232 = arith.constant dense<0.000000e+00> : vector<2x80xf32>
    %1011 = tpu.matmul %1006, %492, %cst_232 {dimension_numbers = #tpu.dot_dimension_numbers<[1], [0], [0], [1], [0, 0, 1, 1], [], []>} : vector<2x20xf32>, vector<20x80xf32>, vector<2x80xf32> -> vector<2x80xf32>
    %1012 = arith.addf %1010, %1011 : vector<2x80xf32>
    %cst_233 = arith.constant dense<0.000000e+00> : vector<2x80xf32>
    %1013 = tpu.matmul %969, %493, %cst_233 {dimension_numbers = #tpu.dot_dimension_numbers<[1], [0], [0], [1], [0, 0, 1, 1], [], []>} : vector<2x20xf32>, vector<20x80xf32>, vector<2x80xf32> -> vector<2x80xf32>
    %1014 = arith.addf %1012, %1013 : vector<2x80xf32>
    %1015 = vector.broadcast %494 : vector<1x80xf32> to vector<2x80xf32>
    %1016 = arith.addf %1014, %1015 : vector<2x80xf32>
    %1017 = vector.extract_strided_slice %1016 {offsets = [0, 0], sizes = [2, 60], strides = [1, 1]} : vector<2x80xf32> to vector<2x60xf32>
    %1018 = arith.negf %1017 : vector<2x60xf32>
    %1019 = math.exp %1018 : vector<2x60xf32>
    %cst_234 = arith.constant 1.000000e+00 : f32
    %1020 = vector.broadcast %cst_234 : f32 to vector<2x60xf32>
    %1021 = arith.addf %1020, %1019 : vector<2x60xf32>
    %1022 = arith.divf %1020, %1021 : vector<2x60xf32>
    %1023 = vector.extract_strided_slice %1016 {offsets = [0, 60], sizes = [2, 20], strides = [1, 1]} : vector<2x80xf32> to vector<2x20xf32>
    %1024 = math.tanh %1023 : vector<2x20xf32>
    %1025 = vector.extract_strided_slice %1022 {offsets = [0, 0], sizes = [2, 20], strides = [1, 1]} : vector<2x60xf32> to vector<2x20xf32>
    %1026 = vector.extract_strided_slice %1022 {offsets = [0, 20], sizes = [2, 20], strides = [1, 1]} : vector<2x60xf32> to vector<2x20xf32>
    %1027 = vector.extract_strided_slice %1022 {offsets = [0, 40], sizes = [2, 20], strides = [1, 1]} : vector<2x60xf32> to vector<2x20xf32>
    %1028 = arith.mulf %1026, %967 : vector<2x20xf32>
    %1029 = arith.mulf %1025, %1024 : vector<2x20xf32>
    %1030 = arith.addf %1028, %1029 : vector<2x20xf32>
    %1031 = math.tanh %1030 : vector<2x20xf32>
    %1032 = arith.mulf %1027, %1031 : vector<2x20xf32>
    %cst_235 = arith.constant dense<0.000000e+00> : vector<2x80xf32>
    %1033 = tpu.matmul %1032, %495, %cst_235 {dimension_numbers = #tpu.dot_dimension_numbers<[1], [0], [0], [1], [0, 0, 1, 1], [], []>} : vector<2x20xf32>, vector<20x80xf32>, vector<2x80xf32> -> vector<2x80xf32>
    %cst_236 = arith.constant dense<0.000000e+00> : vector<2x80xf32>
    %1034 = tpu.matmul %990, %496, %cst_236 {dimension_numbers = #tpu.dot_dimension_numbers<[1], [0], [0], [1], [0, 0, 1, 1], [], []>} : vector<2x20xf32>, vector<20x80xf32>, vector<2x80xf32> -> vector<2x80xf32>
    %1035 = arith.addf %1033, %1034 : vector<2x80xf32>
    %1036 = vector.broadcast %497 : vector<1x80xf32> to vector<2x80xf32>
    %1037 = arith.addf %1035, %1036 : vector<2x80xf32>
    %1038 = vector.extract_strided_slice %1037 {offsets = [0, 0], sizes = [2, 60], strides = [1, 1]} : vector<2x80xf32> to vector<2x60xf32>
    %1039 = arith.negf %1038 : vector<2x60xf32>
    %1040 = math.exp %1039 : vector<2x60xf32>
    %cst_237 = arith.constant 1.000000e+00 : f32
    %1041 = vector.broadcast %cst_237 : f32 to vector<2x60xf32>
    %1042 = arith.addf %1041, %1040 : vector<2x60xf32>
    %1043 = arith.divf %1041, %1042 : vector<2x60xf32>
    %1044 = vector.extract_strided_slice %1037 {offsets = [0, 60], sizes = [2, 20], strides = [1, 1]} : vector<2x80xf32> to vector<2x20xf32>
    %1045 = math.tanh %1044 : vector<2x20xf32>
    %1046 = vector.extract_strided_slice %1043 {offsets = [0, 0], sizes = [2, 20], strides = [1, 1]} : vector<2x60xf32> to vector<2x20xf32>
    %1047 = vector.extract_strided_slice %1043 {offsets = [0, 20], sizes = [2, 20], strides = [1, 1]} : vector<2x60xf32> to vector<2x20xf32>
    %1048 = vector.extract_strided_slice %1043 {offsets = [0, 40], sizes = [2, 20], strides = [1, 1]} : vector<2x60xf32> to vector<2x20xf32>
    %1049 = arith.mulf %1047, %988 : vector<2x20xf32>
    %1050 = arith.mulf %1046, %1045 : vector<2x20xf32>
    %1051 = arith.addf %1049, %1050 : vector<2x20xf32>
    %1052 = math.tanh %1051 : vector<2x20xf32>
    %1053 = arith.mulf %1048, %1052 : vector<2x20xf32>
    %cst_238 = arith.constant dense<0.000000e+00> : vector<2x22xf32>
    %1054 = tpu.matmul %1053, %490, %cst_238 {dimension_numbers = #tpu.dot_dimension_numbers<[1], [0], [0], [1], [0, 0, 1, 1], [], []>} : vector<2x20xf32>, vector<20x22xf32>, vector<2x22xf32> -> vector<2x22xf32>
    %1055 = vector.extract_strided_slice %1054 {offsets = [0, 0], sizes = [2, 20], strides = [1, 1]} : vector<2x22xf32> to vector<2x20xf32>
    %1056 = vector.extract_strided_slice %1054 {offsets = [0, 20], sizes = [2, 2], strides = [1, 1]} : vector<2x22xf32> to vector<2x2xf32>
    %cst_239 = arith.constant dense<0.000000e+00> : vector<2x20xf32>
    %1057 = tpu.matmul %1051, %489, %cst_239 {dimension_numbers = #tpu.dot_dimension_numbers<[1], [0], [0], [1], [0, 0, 1, 1], [], []>} : vector<2x20xf32>, vector<20x20xf32>, vector<2x20xf32> -> vector<2x20xf32>
    %1058 = arith.addf %1055, %1057 : vector<2x20xf32>
    %1059 = vector.shape_cast %1058 : vector<2x20xf32> to vector<1x2x20xf32>
    %1060 = vector.broadcast %1059 : vector<1x2x20xf32> to vector<8x2x20xf32>
    %1061 = arith.addf %488, %1060 : vector<8x2x20xf32>
    %1062 = math.tanh %1061 : vector<8x2x20xf32>
    %1063 = vector.broadcast %9 : vector<1x1x20xf32> to vector<8x2x20xf32>
    %1064 = arith.mulf %1062, %1063 : vector<8x2x20xf32>
    %cst_240 = arith.constant dense<0.000000e+00> : vector<8x2xf32>
    %1065 = vector.multi_reduction <add>, %1064, %cst_240 [2] : vector<8x2x20xf32> to vector<8x2xf32>
    %1066 = vector.shape_cast %1065 : vector<8x2xf32> to vector<8x2x1xf32>
    %1067 = vector.broadcast %1066 : vector<8x2x1xf32> to vector<8x2x20xf32>
    %1068 = arith.mulf %1067, %479 : vector<8x2x20xf32>
    %cst_241 = arith.constant dense<0.000000e+00> : vector<2x20xf32>
    %1069 = vector.multi_reduction <add>, %1068, %cst_241 [0] : vector<8x2x20xf32> to vector<2x20xf32>
    %1070 = vector.extract_strided_slice %507 {offsets = [0, 1, 0], sizes = [2, 1, 80], strides = [1, 1, 1]} : vector<2x4x80xf32> to vector<2x1x80xf32>
    %1071 = vector.shape_cast %1070 : vector<2x1x80xf32> to vector<2x80xf32>
    %cst_242 = arith.constant dense<0.000000e+00> : vector<2x80xf32>
    %1072 = tpu.matmul %1056, %491, %cst_242 {dimension_numbers = #tpu.dot_dimension_numbers<[1], [0], [0], [1], [0, 0, 1, 1], [], []>} : vector<2x2xf32>, vector<2x80xf32>, vector<2x80xf32> -> vector<2x80xf32>
    %1073 = arith.addf %1071, %1072 : vector<2x80xf32>
    %cst_243 = arith.constant dense<0.000000e+00> : vector<2x80xf32>
    %1074 = tpu.matmul %1069, %492, %cst_243 {dimension_numbers = #tpu.dot_dimension_numbers<[1], [0], [0], [1], [0, 0, 1, 1], [], []>} : vector<2x20xf32>, vector<20x80xf32>, vector<2x80xf32> -> vector<2x80xf32>
    %1075 = arith.addf %1073, %1074 : vector<2x80xf32>
    %cst_244 = arith.constant dense<0.000000e+00> : vector<2x80xf32>
    %1076 = tpu.matmul %1032, %493, %cst_244 {dimension_numbers = #tpu.dot_dimension_numbers<[1], [0], [0], [1], [0, 0, 1, 1], [], []>} : vector<2x20xf32>, vector<20x80xf32>, vector<2x80xf32> -> vector<2x80xf32>
    %1077 = arith.addf %1075, %1076 : vector<2x80xf32>
    %1078 = vector.broadcast %494 : vector<1x80xf32> to vector<2x80xf32>
    %1079 = arith.addf %1077, %1078 : vector<2x80xf32>
    %1080 = vector.extract_strided_slice %1079 {offsets = [0, 0], sizes = [2, 60], strides = [1, 1]} : vector<2x80xf32> to vector<2x60xf32>
    %1081 = arith.negf %1080 : vector<2x60xf32>
    %1082 = math.exp %1081 : vector<2x60xf32>
    %cst_245 = arith.constant 1.000000e+00 : f32
    %1083 = vector.broadcast %cst_245 : f32 to vector<2x60xf32>
    %1084 = arith.addf %1083, %1082 : vector<2x60xf32>
    %1085 = arith.divf %1083, %1084 : vector<2x60xf32>
    %1086 = vector.extract_strided_slice %1079 {offsets = [0, 60], sizes = [2, 20], strides = [1, 1]} : vector<2x80xf32> to vector<2x20xf32>
    %1087 = math.tanh %1086 : vector<2x20xf32>
    %1088 = vector.extract_strided_slice %1085 {offsets = [0, 0], sizes = [2, 20], strides = [1, 1]} : vector<2x60xf32> to vector<2x20xf32>
    %1089 = vector.extract_strided_slice %1085 {offsets = [0, 20], sizes = [2, 20], strides = [1, 1]} : vector<2x60xf32> to vector<2x20xf32>
    %1090 = vector.extract_strided_slice %1085 {offsets = [0, 40], sizes = [2, 20], strides = [1, 1]} : vector<2x60xf32> to vector<2x20xf32>
    %1091 = arith.mulf %1089, %1030 : vector<2x20xf32>
    %1092 = arith.mulf %1088, %1087 : vector<2x20xf32>
    %1093 = arith.addf %1091, %1092 : vector<2x20xf32>
    %1094 = math.tanh %1093 : vector<2x20xf32>
    %1095 = arith.mulf %1090, %1094 : vector<2x20xf32>
    %cst_246 = arith.constant dense<0.000000e+00> : vector<2x80xf32>
    %1096 = tpu.matmul %1095, %495, %cst_246 {dimension_numbers = #tpu.dot_dimension_numbers<[1], [0], [0], [1], [0, 0, 1, 1], [], []>} : vector<2x20xf32>, vector<20x80xf32>, vector<2x80xf32> -> vector<2x80xf32>
    %cst_247 = arith.constant dense<0.000000e+00> : vector<2x80xf32>
    %1097 = tpu.matmul %1053, %496, %cst_247 {dimension_numbers = #tpu.dot_dimension_numbers<[1], [0], [0], [1], [0, 0, 1, 1], [], []>} : vector<2x20xf32>, vector<20x80xf32>, vector<2x80xf32> -> vector<2x80xf32>
    %1098 = arith.addf %1096, %1097 : vector<2x80xf32>
    %1099 = vector.broadcast %497 : vector<1x80xf32> to vector<2x80xf32>
    %1100 = arith.addf %1098, %1099 : vector<2x80xf32>
    %1101 = vector.extract_strided_slice %1100 {offsets = [0, 0], sizes = [2, 60], strides = [1, 1]} : vector<2x80xf32> to vector<2x60xf32>
    %1102 = arith.negf %1101 : vector<2x60xf32>
    %1103 = math.exp %1102 : vector<2x60xf32>
    %cst_248 = arith.constant 1.000000e+00 : f32
    %1104 = vector.broadcast %cst_248 : f32 to vector<2x60xf32>
    %1105 = arith.addf %1104, %1103 : vector<2x60xf32>
    %1106 = arith.divf %1104, %1105 : vector<2x60xf32>
    %1107 = vector.extract_strided_slice %1100 {offsets = [0, 60], sizes = [2, 20], strides = [1, 1]} : vector<2x80xf32> to vector<2x20xf32>
    %1108 = math.tanh %1107 : vector<2x20xf32>
    %1109 = vector.extract_strided_slice %1106 {offsets = [0, 0], sizes = [2, 20], strides = [1, 1]} : vector<2x60xf32> to vector<2x20xf32>
    %1110 = vector.extract_strided_slice %1106 {offsets = [0, 20], sizes = [2, 20], strides = [1, 1]} : vector<2x60xf32> to vector<2x20xf32>
    %1111 = vector.extract_strided_slice %1106 {offsets = [0, 40], sizes = [2, 20], strides = [1, 1]} : vector<2x60xf32> to vector<2x20xf32>
    %1112 = arith.mulf %1110, %1051 : vector<2x20xf32>
    %1113 = arith.mulf %1109, %1108 : vector<2x20xf32>
    %1114 = arith.addf %1112, %1113 : vector<2x20xf32>
    %1115 = math.tanh %1114 : vector<2x20xf32>
    %1116 = arith.mulf %1111, %1115 : vector<2x20xf32>
    %cst_249 = arith.constant dense<0.000000e+00> : vector<2x22xf32>
    %1117 = tpu.matmul %1116, %490, %cst_249 {dimension_numbers = #tpu.dot_dimension_numbers<[1], [0], [0], [1], [0, 0, 1, 1], [], []>} : vector<2x20xf32>, vector<20x22xf32>, vector<2x22xf32> -> vector<2x22xf32>
    %1118 = vector.extract_strided_slice %1117 {offsets = [0, 0], sizes = [2, 20], strides = [1, 1]} : vector<2x22xf32> to vector<2x20xf32>
    %1119 = vector.extract_strided_slice %1117 {offsets = [0, 20], sizes = [2, 2], strides = [1, 1]} : vector<2x22xf32> to vector<2x2xf32>
    %cst_250 = arith.constant dense<0.000000e+00> : vector<2x20xf32>
    %1120 = tpu.matmul %1114, %489, %cst_250 {dimension_numbers = #tpu.dot_dimension_numbers<[1], [0], [0], [1], [0, 0, 1, 1], [], []>} : vector<2x20xf32>, vector<20x20xf32>, vector<2x20xf32> -> vector<2x20xf32>
    %1121 = arith.addf %1118, %1120 : vector<2x20xf32>
    %1122 = vector.shape_cast %1121 : vector<2x20xf32> to vector<1x2x20xf32>
    %1123 = vector.broadcast %1122 : vector<1x2x20xf32> to vector<8x2x20xf32>
    %1124 = arith.addf %488, %1123 : vector<8x2x20xf32>
    %1125 = math.tanh %1124 : vector<8x2x20xf32>
    %1126 = vector.broadcast %9 : vector<1x1x20xf32> to vector<8x2x20xf32>
    %1127 = arith.mulf %1125, %1126 : vector<8x2x20xf32>
    %cst_251 = arith.constant dense<0.000000e+00> : vector<8x2xf32>
    %1128 = vector.multi_reduction <add>, %1127, %cst_251 [2] : vector<8x2x20xf32> to vector<8x2xf32>
    %1129 = vector.shape_cast %1128 : vector<8x2xf32> to vector<8x2x1xf32>
    %1130 = vector.broadcast %1129 : vector<8x2x1xf32> to vector<8x2x20xf32>
    %1131 = arith.mulf %1130, %479 : vector<8x2x20xf32>
    %cst_252 = arith.constant dense<0.000000e+00> : vector<2x20xf32>
    %1132 = vector.multi_reduction <add>, %1131, %cst_252 [0] : vector<8x2x20xf32> to vector<2x20xf32>
    %1133 = vector.extract_strided_slice %507 {offsets = [0, 2, 0], sizes = [2, 1, 80], strides = [1, 1, 1]} : vector<2x4x80xf32> to vector<2x1x80xf32>
    %1134 = vector.shape_cast %1133 : vector<2x1x80xf32> to vector<2x80xf32>
    %cst_253 = arith.constant dense<0.000000e+00> : vector<2x80xf32>
    %1135 = tpu.matmul %1119, %491, %cst_253 {dimension_numbers = #tpu.dot_dimension_numbers<[1], [0], [0], [1], [0, 0, 1, 1], [], []>} : vector<2x2xf32>, vector<2x80xf32>, vector<2x80xf32> -> vector<2x80xf32>
    %1136 = arith.addf %1134, %1135 : vector<2x80xf32>
    %cst_254 = arith.constant dense<0.000000e+00> : vector<2x80xf32>
    %1137 = tpu.matmul %1132, %492, %cst_254 {dimension_numbers = #tpu.dot_dimension_numbers<[1], [0], [0], [1], [0, 0, 1, 1], [], []>} : vector<2x20xf32>, vector<20x80xf32>, vector<2x80xf32> -> vector<2x80xf32>
    %1138 = arith.addf %1136, %1137 : vector<2x80xf32>
    %cst_255 = arith.constant dense<0.000000e+00> : vector<2x80xf32>
    %1139 = tpu.matmul %1095, %493, %cst_255 {dimension_numbers = #tpu.dot_dimension_numbers<[1], [0], [0], [1], [0, 0, 1, 1], [], []>} : vector<2x20xf32>, vector<20x80xf32>, vector<2x80xf32> -> vector<2x80xf32>
    %1140 = arith.addf %1138, %1139 : vector<2x80xf32>
    %1141 = vector.broadcast %494 : vector<1x80xf32> to vector<2x80xf32>
    %1142 = arith.addf %1140, %1141 : vector<2x80xf32>
    %1143 = vector.extract_strided_slice %1142 {offsets = [0, 0], sizes = [2, 60], strides = [1, 1]} : vector<2x80xf32> to vector<2x60xf32>
    %1144 = arith.negf %1143 : vector<2x60xf32>
    %1145 = math.exp %1144 : vector<2x60xf32>
    %cst_256 = arith.constant 1.000000e+00 : f32
    %1146 = vector.broadcast %cst_256 : f32 to vector<2x60xf32>
    %1147 = arith.addf %1146, %1145 : vector<2x60xf32>
    %1148 = arith.divf %1146, %1147 : vector<2x60xf32>
    %1149 = vector.extract_strided_slice %1142 {offsets = [0, 60], sizes = [2, 20], strides = [1, 1]} : vector<2x80xf32> to vector<2x20xf32>
    %1150 = math.tanh %1149 : vector<2x20xf32>
    %1151 = vector.extract_strided_slice %1148 {offsets = [0, 0], sizes = [2, 20], strides = [1, 1]} : vector<2x60xf32> to vector<2x20xf32>
    %1152 = vector.extract_strided_slice %1148 {offsets = [0, 20], sizes = [2, 20], strides = [1, 1]} : vector<2x60xf32> to vector<2x20xf32>
    %1153 = vector.extract_strided_slice %1148 {offsets = [0, 40], sizes = [2, 20], strides = [1, 1]} : vector<2x60xf32> to vector<2x20xf32>
    %1154 = arith.mulf %1152, %1093 : vector<2x20xf32>
    %1155 = arith.mulf %1151, %1150 : vector<2x20xf32>
    %1156 = arith.addf %1154, %1155 : vector<2x20xf32>
    %1157 = math.tanh %1156 : vector<2x20xf32>
    %1158 = arith.mulf %1153, %1157 : vector<2x20xf32>
    %cst_257 = arith.constant dense<0.000000e+00> : vector<2x80xf32>
    %1159 = tpu.matmul %1158, %495, %cst_257 {dimension_numbers = #tpu.dot_dimension_numbers<[1], [0], [0], [1], [0, 0, 1, 1], [], []>} : vector<2x20xf32>, vector<20x80xf32>, vector<2x80xf32> -> vector<2x80xf32>
    %cst_258 = arith.constant dense<0.000000e+00> : vector<2x80xf32>
    %1160 = tpu.matmul %1116, %496, %cst_258 {dimension_numbers = #tpu.dot_dimension_numbers<[1], [0], [0], [1], [0, 0, 1, 1], [], []>} : vector<2x20xf32>, vector<20x80xf32>, vector<2x80xf32> -> vector<2x80xf32>
    %1161 = arith.addf %1159, %1160 : vector<2x80xf32>
    %1162 = vector.broadcast %497 : vector<1x80xf32> to vector<2x80xf32>
    %1163 = arith.addf %1161, %1162 : vector<2x80xf32>
    %1164 = vector.extract_strided_slice %1163 {offsets = [0, 0], sizes = [2, 60], strides = [1, 1]} : vector<2x80xf32> to vector<2x60xf32>
    %1165 = arith.negf %1164 : vector<2x60xf32>
    %1166 = math.exp %1165 : vector<2x60xf32>
    %cst_259 = arith.constant 1.000000e+00 : f32
    %1167 = vector.broadcast %cst_259 : f32 to vector<2x60xf32>
    %1168 = arith.addf %1167, %1166 : vector<2x60xf32>
    %1169 = arith.divf %1167, %1168 : vector<2x60xf32>
    %1170 = vector.extract_strided_slice %1163 {offsets = [0, 60], sizes = [2, 20], strides = [1, 1]} : vector<2x80xf32> to vector<2x20xf32>
    %1171 = math.tanh %1170 : vector<2x20xf32>
    %1172 = vector.extract_strided_slice %1169 {offsets = [0, 0], sizes = [2, 20], strides = [1, 1]} : vector<2x60xf32> to vector<2x20xf32>
    %1173 = vector.extract_strided_slice %1169 {offsets = [0, 20], sizes = [2, 20], strides = [1, 1]} : vector<2x60xf32> to vector<2x20xf32>
    %1174 = vector.extract_strided_slice %1169 {offsets = [0, 40], sizes = [2, 20], strides = [1, 1]} : vector<2x60xf32> to vector<2x20xf32>
    %1175 = arith.mulf %1173, %1114 : vector<2x20xf32>
    %1176 = arith.mulf %1172, %1171 : vector<2x20xf32>
    %1177 = arith.addf %1175, %1176 : vector<2x20xf32>
    %1178 = math.tanh %1177 : vector<2x20xf32>
    %1179 = arith.mulf %1174, %1178 : vector<2x20xf32>
    %cst_260 = arith.constant dense<0.000000e+00> : vector<2x22xf32>
    %1180 = tpu.matmul %1179, %490, %cst_260 {dimension_numbers = #tpu.dot_dimension_numbers<[1], [0], [0], [1], [0, 0, 1, 1], [], []>} : vector<2x20xf32>, vector<20x22xf32>, vector<2x22xf32> -> vector<2x22xf32>
    %1181 = vector.extract_strided_slice %1180 {offsets = [0, 0], sizes = [2, 20], strides = [1, 1]} : vector<2x22xf32> to vector<2x20xf32>
    %1182 = vector.extract_strided_slice %1180 {offsets = [0, 20], sizes = [2, 2], strides = [1, 1]} : vector<2x22xf32> to vector<2x2xf32>
    %cst_261 = arith.constant dense<0.000000e+00> : vector<2x20xf32>
    %1183 = tpu.matmul %1177, %489, %cst_261 {dimension_numbers = #tpu.dot_dimension_numbers<[1], [0], [0], [1], [0, 0, 1, 1], [], []>} : vector<2x20xf32>, vector<20x20xf32>, vector<2x20xf32> -> vector<2x20xf32>
    %1184 = arith.addf %1181, %1183 : vector<2x20xf32>
    %1185 = vector.shape_cast %1184 : vector<2x20xf32> to vector<1x2x20xf32>
    %1186 = vector.broadcast %1185 : vector<1x2x20xf32> to vector<8x2x20xf32>
    %1187 = arith.addf %488, %1186 : vector<8x2x20xf32>
    %1188 = math.tanh %1187 : vector<8x2x20xf32>
    %1189 = vector.broadcast %9 : vector<1x1x20xf32> to vector<8x2x20xf32>
    %1190 = arith.mulf %1188, %1189 : vector<8x2x20xf32>
    %cst_262 = arith.constant dense<0.000000e+00> : vector<8x2xf32>
    %1191 = vector.multi_reduction <add>, %1190, %cst_262 [2] : vector<8x2x20xf32> to vector<8x2xf32>
    %1192 = vector.shape_cast %1191 : vector<8x2xf32> to vector<8x2x1xf32>
    %1193 = vector.broadcast %1192 : vector<8x2x1xf32> to vector<8x2x20xf32>
    %1194 = arith.mulf %1193, %479 : vector<8x2x20xf32>
    %cst_263 = arith.constant dense<0.000000e+00> : vector<2x20xf32>
    %1195 = vector.multi_reduction <add>, %1194, %cst_263 [0] : vector<8x2x20xf32> to vector<2x20xf32>
    %1196 = vector.extract_strided_slice %507 {offsets = [0, 3, 0], sizes = [2, 1, 80], strides = [1, 1, 1]} : vector<2x4x80xf32> to vector<2x1x80xf32>
    %1197 = vector.shape_cast %1196 : vector<2x1x80xf32> to vector<2x80xf32>
    %cst_264 = arith.constant dense<0.000000e+00> : vector<2x80xf32>
    %1198 = tpu.matmul %1182, %491, %cst_264 {dimension_numbers = #tpu.dot_dimension_numbers<[1], [0], [0], [1], [0, 0, 1, 1], [], []>} : vector<2x2xf32>, vector<2x80xf32>, vector<2x80xf32> -> vector<2x80xf32>
    %1199 = arith.addf %1197, %1198 : vector<2x80xf32>
    %cst_265 = arith.constant dense<0.000000e+00> : vector<2x80xf32>
    %1200 = tpu.matmul %1195, %492, %cst_265 {dimension_numbers = #tpu.dot_dimension_numbers<[1], [0], [0], [1], [0, 0, 1, 1], [], []>} : vector<2x20xf32>, vector<20x80xf32>, vector<2x80xf32> -> vector<2x80xf32>
    %1201 = arith.addf %1199, %1200 : vector<2x80xf32>
    %cst_266 = arith.constant dense<0.000000e+00> : vector<2x80xf32>
    %1202 = tpu.matmul %1158, %493, %cst_266 {dimension_numbers = #tpu.dot_dimension_numbers<[1], [0], [0], [1], [0, 0, 1, 1], [], []>} : vector<2x20xf32>, vector<20x80xf32>, vector<2x80xf32> -> vector<2x80xf32>
    %1203 = arith.addf %1201, %1202 : vector<2x80xf32>
    %1204 = vector.broadcast %494 : vector<1x80xf32> to vector<2x80xf32>
    %1205 = arith.addf %1203, %1204 : vector<2x80xf32>
    %1206 = vector.extract_strided_slice %1205 {offsets = [0, 0], sizes = [2, 60], strides = [1, 1]} : vector<2x80xf32> to vector<2x60xf32>
    %1207 = arith.negf %1206 : vector<2x60xf32>
    %1208 = math.exp %1207 : vector<2x60xf32>
    %cst_267 = arith.constant 1.000000e+00 : f32
    %1209 = vector.broadcast %cst_267 : f32 to vector<2x60xf32>
    %1210 = arith.addf %1209, %1208 : vector<2x60xf32>
    %1211 = arith.divf %1209, %1210 : vector<2x60xf32>
    %1212 = vector.extract_strided_slice %1205 {offsets = [0, 60], sizes = [2, 20], strides = [1, 1]} : vector<2x80xf32> to vector<2x20xf32>
    %1213 = math.tanh %1212 : vector<2x20xf32>
    %1214 = vector.extract_strided_slice %1211 {offsets = [0, 0], sizes = [2, 20], strides = [1, 1]} : vector<2x60xf32> to vector<2x20xf32>
    %1215 = vector.extract_strided_slice %1211 {offsets = [0, 20], sizes = [2, 20], strides = [1, 1]} : vector<2x60xf32> to vector<2x20xf32>
    %1216 = vector.extract_strided_slice %1211 {offsets = [0, 40], sizes = [2, 20], strides = [1, 1]} : vector<2x60xf32> to vector<2x20xf32>
    %1217 = arith.mulf %1215, %1156 : vector<2x20xf32>
    %1218 = arith.mulf %1214, %1213 : vector<2x20xf32>
    %1219 = arith.addf %1217, %1218 : vector<2x20xf32>
    %1220 = math.tanh %1219 : vector<2x20xf32>
    %1221 = arith.mulf %1216, %1220 : vector<2x20xf32>
    %cst_268 = arith.constant dense<0.000000e+00> : vector<2x80xf32>
    %1222 = tpu.matmul %1221, %495, %cst_268 {dimension_numbers = #tpu.dot_dimension_numbers<[1], [0], [0], [1], [0, 0, 1, 1], [], []>} : vector<2x20xf32>, vector<20x80xf32>, vector<2x80xf32> -> vector<2x80xf32>
    %cst_269 = arith.constant dense<0.000000e+00> : vector<2x80xf32>
    %1223 = tpu.matmul %1179, %496, %cst_269 {dimension_numbers = #tpu.dot_dimension_numbers<[1], [0], [0], [1], [0, 0, 1, 1], [], []>} : vector<2x20xf32>, vector<20x80xf32>, vector<2x80xf32> -> vector<2x80xf32>
    %1224 = arith.addf %1222, %1223 : vector<2x80xf32>
    %1225 = vector.broadcast %497 : vector<1x80xf32> to vector<2x80xf32>
    %1226 = arith.addf %1224, %1225 : vector<2x80xf32>
    %1227 = vector.extract_strided_slice %1226 {offsets = [0, 0], sizes = [2, 60], strides = [1, 1]} : vector<2x80xf32> to vector<2x60xf32>
    %1228 = arith.negf %1227 : vector<2x60xf32>
    %1229 = math.exp %1228 : vector<2x60xf32>
    %cst_270 = arith.constant 1.000000e+00 : f32
    %1230 = vector.broadcast %cst_270 : f32 to vector<2x60xf32>
    %1231 = arith.addf %1230, %1229 : vector<2x60xf32>
    %1232 = arith.divf %1230, %1231 : vector<2x60xf32>
    %1233 = vector.extract_strided_slice %1226 {offsets = [0, 60], sizes = [2, 20], strides = [1, 1]} : vector<2x80xf32> to vector<2x20xf32>
    %1234 = math.tanh %1233 : vector<2x20xf32>
    %1235 = vector.extract_strided_slice %1232 {offsets = [0, 0], sizes = [2, 20], strides = [1, 1]} : vector<2x60xf32> to vector<2x20xf32>
    %1236 = vector.extract_strided_slice %1232 {offsets = [0, 20], sizes = [2, 20], strides = [1, 1]} : vector<2x60xf32> to vector<2x20xf32>
    %1237 = vector.extract_strided_slice %1232 {offsets = [0, 40], sizes = [2, 20], strides = [1, 1]} : vector<2x60xf32> to vector<2x20xf32>
    %1238 = arith.mulf %1236, %1177 : vector<2x20xf32>
    %1239 = arith.mulf %1235, %1234 : vector<2x20xf32>
    %1240 = arith.addf %1238, %1239 : vector<2x20xf32>
    %1241 = math.tanh %1240 : vector<2x20xf32>
    %1242 = arith.mulf %1237, %1241 : vector<2x20xf32>
    %cst_271 = arith.constant dense<0.000000e+00> : vector<2x22xf32>
    %1243 = tpu.matmul %1242, %490, %cst_271 {dimension_numbers = #tpu.dot_dimension_numbers<[1], [0], [0], [1], [0, 0, 1, 1], [], []>} : vector<2x20xf32>, vector<20x22xf32>, vector<2x22xf32> -> vector<2x22xf32>
    %1244 = vector.extract_strided_slice %1243 {offsets = [0, 20], sizes = [2, 2], strides = [1, 1]} : vector<2x22xf32> to vector<2x2xf32>
    %1245 = vector.shape_cast %1056 : vector<2x2xf32> to vector<1x2x2xf32>
    %1246 = vector.shape_cast %1119 : vector<2x2xf32> to vector<1x2x2xf32>
    %1247 = vector.shape_cast %1182 : vector<2x2xf32> to vector<1x2x2xf32>
    %1248 = vector.shape_cast %1244 : vector<2x2xf32> to vector<1x2x2xf32>
    %1249 = tpu.concatenate %1245, %1246, %1247, %1248 in 0 : vector<1x2x2xf32>, vector<1x2x2xf32>, vector<1x2x2xf32>, vector<1x2x2xf32> -> vector<4x2x2xf32>
    %c0_272 = arith.constant 0 : index
    %c0_273 = arith.constant 0 : index
    %c0_274 = arith.constant 0 : index
    %1250 = vector.load %arg28[%c0_272, %c0_273, %c0_274] : memref<4x2x2xf32, #tpu.memory_space<vmem>>, vector<4x2x2xf32>
    tpu.vector_store %arg28[%c0_272, %c0_273, %c0_274], %1249 {strides = array<i32>} : memref<4x2x2xf32, #tpu.memory_space<vmem>>, vector<4x2x2xf32>,
    return
  }
  func.func @transform_0(%arg0: i32) -> (i32, i32, i32) {
    %c0_i32 = arith.constant 0 : i32
    %c0_i32_0 = arith.constant 0 : i32
    %c0_i32_1 = arith.constant 0 : i32
    return %arg0, %c0_i32, %c0_i32_0 : i32, i32, i32
  }
  func.func @transform_1(%arg0: i32) -> (i32, i32, i32) {
    %c0_i32 = arith.constant 0 : i32
    %c0_i32_0 = arith.constant 0 : i32
    %c0_i32_1 = arith.constant 0 : i32
    return %arg0, %c0_i32, %c0_i32_0 : i32, i32, i32
  }
  func.func @transform_2(%arg0: i32) -> (i32, i32, i32) {
    %c0_i32 = arith.constant 0 : i32
    %c0_i32_0 = arith.constant 0 : i32
    %c0_i32_1 = arith.constant 0 : i32
    return %arg0, %c0_i32, %c0_i32_0 : i32, i32, i32
  }
  func.func @transform_3(%arg0: i32) -> (i32, i32, i32) {
    %c0_i32 = arith.constant 0 : i32
    %c0_i32_0 = arith.constant 0 : i32
    %c0_i32_1 = arith.constant 0 : i32
    return %arg0, %c0_i32, %c0_i32_0 : i32, i32, i32
  }
  func.func @transform_4(%arg0: i32) -> (i32, i32) {
    %c0_i32 = arith.constant 0 : i32
    %c0_i32_0 = arith.constant 0 : i32
    %c0_i32_1 = arith.constant 0 : i32
    return %c0_i32, %c0_i32_0 : i32, i32
  }
  func.func @transform_5(%arg0: i32) -> (i32, i32) {
    %c0_i32 = arith.constant 0 : i32
    %c0_i32_0 = arith.constant 0 : i32
    %c0_i32_1 = arith.constant 0 : i32
    return %c0_i32, %c0_i32_0 : i32, i32
  }
  func.func @transform_6(%arg0: i32) -> (i32, i32) {
    %c0_i32 = arith.constant 0 : i32
    %c0_i32_0 = arith.constant 0 : i32
    %c0_i32_1 = arith.constant 0 : i32
    return %c0_i32, %c0_i32_0 : i32, i32
  }
  func.func @transform_7(%arg0: i32) -> (i32, i32) {
    %c0_i32 = arith.constant 0 : i32
    %c0_i32_0 = arith.constant 0 : i32
    %c0_i32_1 = arith.constant 0 : i32
    return %c0_i32, %c0_i32_0 : i32, i32
  }
  func.func @transform_8(%arg0: i32) -> (i32, i32) {
    %c0_i32 = arith.constant 0 : i32
    %c0_i32_0 = arith.constant 0 : i32
    %c0_i32_1 = arith.constant 0 : i32
    return %c0_i32, %c0_i32_0 : i32, i32
  }
  func.func @transform_9(%arg0: i32) -> (i32, i32) {
    %c0_i32 = arith.constant 0 : i32
    %c0_i32_0 = arith.constant 0 : i32
    %c0_i32_1 = arith.constant 0 : i32
    return %c0_i32, %c0_i32_0 : i32, i32
  }
  func.func @transform_10(%arg0: i32) -> (i32, i32) {
    %c0_i32 = arith.constant 0 : i32
    %c0_i32_0 = arith.constant 0 : i32
    %c0_i32_1 = arith.constant 0 : i32
    return %c0_i32, %c0_i32_0 : i32, i32
  }
  func.func @transform_11(%arg0: i32) -> (i32, i32) {
    %c0_i32 = arith.constant 0 : i32
    %c0_i32_0 = arith.constant 0 : i32
    %c0_i32_1 = arith.constant 0 : i32
    return %c0_i32, %c0_i32_0 : i32, i32
  }
  func.func @transform_12(%arg0: i32) -> (i32, i32) {
    %c0_i32 = arith.constant 0 : i32
    %c0_i32_0 = arith.constant 0 : i32
    %c0_i32_1 = arith.constant 0 : i32
    return %c0_i32, %c0_i32_0 : i32, i32
  }
  func.func @transform_13(%arg0: i32) -> (i32, i32) {
    %c0_i32 = arith.constant 0 : i32
    %c0_i32_0 = arith.constant 0 : i32
    %c0_i32_1 = arith.constant 0 : i32
    return %c0_i32, %c0_i32_0 : i32, i32
  }
  func.func @transform_14(%arg0: i32) -> (i32, i32) {
    %c0_i32 = arith.constant 0 : i32
    %c0_i32_0 = arith.constant 0 : i32
    %c0_i32_1 = arith.constant 0 : i32
    return %c0_i32, %c0_i32_0 : i32, i32
  }
  func.func @transform_15(%arg0: i32) -> (i32, i32) {
    %c0_i32 = arith.constant 0 : i32
    %c0_i32_0 = arith.constant 0 : i32
    %c0_i32_1 = arith.constant 0 : i32
    return %c0_i32, %c0_i32_0 : i32, i32
  }
  func.func @transform_16(%arg0: i32) -> (i32, i32) {
    %c0_i32 = arith.constant 0 : i32
    %c0_i32_0 = arith.constant 0 : i32
    %c0_i32_1 = arith.constant 0 : i32
    return %c0_i32, %c0_i32_0 : i32, i32
  }
  func.func @transform_17(%arg0: i32) -> (i32, i32) {
    %c0_i32 = arith.constant 0 : i32
    %c0_i32_0 = arith.constant 0 : i32
    %c0_i32_1 = arith.constant 0 : i32
    return %c0_i32, %c0_i32_0 : i32, i32
  }
  func.func @transform_18(%arg0: i32) -> (i32, i32) {
    %c0_i32 = arith.constant 0 : i32
    %c0_i32_0 = arith.constant 0 : i32
    %c0_i32_1 = arith.constant 0 : i32
    return %c0_i32, %c0_i32_0 : i32, i32
  }
  func.func @transform_19(%arg0: i32) -> (i32, i32) {
    %c0_i32 = arith.constant 0 : i32
    %c0_i32_0 = arith.constant 0 : i32
    %c0_i32_1 = arith.constant 0 : i32
    return %c0_i32, %c0_i32_0 : i32, i32
  }
  func.func @transform_20(%arg0: i32) -> (i32, i32) {
    %c0_i32 = arith.constant 0 : i32
    %c0_i32_0 = arith.constant 0 : i32
    %c0_i32_1 = arith.constant 0 : i32
    return %c0_i32, %c0_i32_0 : i32, i32
  }
  func.func @transform_21(%arg0: i32) -> (i32, i32) {
    %c0_i32 = arith.constant 0 : i32
    %c0_i32_0 = arith.constant 0 : i32
    %c0_i32_1 = arith.constant 0 : i32
    return %c0_i32, %c0_i32_0 : i32, i32
  }
  func.func @transform_22(%arg0: i32) -> (i32, i32) {
    %c0_i32 = arith.constant 0 : i32
    %c0_i32_0 = arith.constant 0 : i32
    %c0_i32_1 = arith.constant 0 : i32
    return %c0_i32, %c0_i32_0 : i32, i32
  }
  func.func @transform_23(%arg0: i32) -> (i32, i32) {
    %c0_i32 = arith.constant 0 : i32
    %c0_i32_0 = arith.constant 0 : i32
    %c0_i32_1 = arith.constant 0 : i32
    return %c0_i32, %c0_i32_0 : i32, i32
  }
  func.func @transform_24(%arg0: i32) -> (i32, i32) {
    %c0_i32 = arith.constant 0 : i32
    %c0_i32_0 = arith.constant 0 : i32
    %c0_i32_1 = arith.constant 0 : i32
    return %c0_i32, %c0_i32_0 : i32, i32
  }
  func.func @transform_25(%arg0: i32) -> (i32, i32) {
    %c0_i32 = arith.constant 0 : i32
    %c0_i32_0 = arith.constant 0 : i32
    %c0_i32_1 = arith.constant 0 : i32
    return %c0_i32, %c0_i32_0 : i32, i32
  }
  func.func @transform_26(%arg0: i32) -> (i32, i32) {
    %c0_i32 = arith.constant 0 : i32
    %c0_i32_0 = arith.constant 0 : i32
    %c0_i32_1 = arith.constant 0 : i32
    return %c0_i32, %c0_i32_0 : i32, i32
  }
  func.func @transform_27(%arg0: i32) -> (i32, i32, i32) {
    %c0_i32 = arith.constant 0 : i32
    %c0_i32_0 = arith.constant 0 : i32
    %c0_i32_1 = arith.constant 0 : i32
    return %c0_i32, %arg0, %c0_i32_0 : i32, i32, i32
  }
}

</mosaic_0001>

<bundles_post_ra>
// kernel: tpu_custom_call.1
= control target key start
LH: loop header
LB: loop body
LE: loop exit
PB: predicated region body
PF: predicated region fallthrough
CT: control target
= control target key end

     0   :  { %s10876_s0 = inlined_call_operand.vmem [shape: f32[2,8,4], index: 0, kind: input, shape index: {}]   ;;  %s10877_s1 = inlined_call_operand.vmem [shape: f32[2,4,8], index: 1, kind: input, shape index: {}]   ;;  %s10878_s2 = inlined_call_operand.vmem [shape: f32[2,8,4], index: 2, kind: input, shape index: {}]   ;;  %s10879_s3 = inlined_call_operand.vmem [shape: f32[2,4,2], index: 3, kind: input, shape index: {}]   ;;  %s10880_s4 = inlined_call_operand.vmem [shape: f32[8,8], index: 4, kind: input, shape index: {}]   ;;  %s10881_s5 = inlined_call_operand.vmem [shape: f32[20,8], index: 5, kind: input, shape index: {}]   ;;  %s10882_s6 = inlined_call_operand.vmem [shape: f32[20,8], index: 6, kind: input, shape index: {}]   ;;  %s10883_s7 = inlined_call_operand.vmem [shape: f32[1,8], index: 7, kind: input, shape index: {}]   ;;  %s10884_s8 = inlined_call_operand.vmem [shape: f32[20,20], index: 8, kind: input, shape index: {}]   ;;  %s10885_s9 = inlined_call_operand.vmem [shape: f32[20,20], index: 9, kind: input, shape index: {}]   ;;  %s10886_s10 = inlined_call_operand.hbm [shape: f32[1,20], index: 10, kind: input, shape index: {}]   ;;  %s10887_s11 = inlined_call_operand.vmem [shape: f32[20,22], index: 11, kind: input, shape index: {}]   ;;  %s10888_s12 = inlined_call_operand.hbm [shape: f32[4,80], index: 12, kind: input, shape index: {}]   ;;  %s10889_s13 = inlined_call_operand.hbm [shape: f32[20,80], index: 13, kind: input, shape index: {}]   ;;  %s10890_s14 = inlined_call_operand.hbm [shape: f32[1,80], index: 14, kind: input, shape index: {}]   ;;  %s10891_s15 = inlined_call_operand.hbm [shape: f32[20,80], index: 15, kind: input, shape index: {}]   ;;  %s10892_s16 = inlined_call_operand.hbm [shape: f32[20,80], index: 16, kind: input, shape index: {}]   ;;  %s10893_s17 = inlined_call_operand.hbm [shape: f32[1,80], index: 17, kind: input, shape index: {}]   ;;  %s10894_s18 = inlined_call_operand.hbm [shape: f32[4,80], index: 18, kind: input, shape index: {}]   ;;  %s10895_s19 = inlined_call_operand.hbm [shape: f32[2,80], index: 19, kind: input, shape index: {}]   ;;  %s10896_s20 = inlined_call_operand.hbm [shape: f32[2,80], index: 20, kind: input, shape index: {}]   ;;  %s10897_s21 = inlined_call_operand.hbm [shape: f32[20,80], index: 21, kind: input, shape index: {}]   ;;  %s10898_s22 = inlined_call_operand.vmem [shape: f32[20,80], index: 22, kind: input, shape index: {}]   ;;  %s10899_s23 = inlined_call_operand.hbm [shape: f32[1,80], index: 23, kind: input, shape index: {}]   ;;  %s10900_s24 = inlined_call_operand.hbm [shape: f32[20,80], index: 24, kind: input, shape index: {}]   ;;  %s10901_s25 = inlined_call_operand.hbm [shape: f32[20,80], index: 25, kind: input, shape index: {}]   ;;  %s10902_s26 = inlined_call_operand.vmem [shape: f32[1,80], index: 26, kind: input, shape index: {}]   ;;  %s10903_s27 = inlined_call_operand.vmem [shape: f32[4,2,2], index: 27, kind: output, shape index: {}]  }
   0x1   :  { %10914 = sst [smem:[#allocation32_spill]] %s10876_s0 }
   0x2   :  { %10915 = sst [smem:[#allocation33_spill]] %s10877_s1 }
   0x3   :  { %10916 = sst [smem:[#allocation34_spill]] %s10878_s2 }
   0x4   :  { %10917 = sst [smem:[#allocation35_spill]] %s10879_s3 }
   0x5   :  { %10918 = sst [smem:[#allocation36_spill]] %s10880_s4 }
   0x6   :  { %10919 = sst [smem:[#allocation37_spill]] %s10881_s5 }
   0x7   :  { %10920 = sst [smem:[#allocation38_spill]] %s10882_s6 }
   0x8   :  { %10921 = sst [smem:[#allocation39_spill]] %s10883_s7 }
   0x9   :  { %10922 = sst [smem:[#allocation40_spill]] %s10884_s8 }
   0xa   :  { %10923 = sst [smem:[#allocation41_spill]] %s10885_s9 }
   0xb   :  { %10924 = sst [smem:[#allocation42_spill]] %s10886_s10 }
   0xc   :  { %10925 = sst [smem:[#allocation43_spill]] %s10887_s11 }
   0xd   :  { %32 = vsyncpa [#allocation3], 0 }
   0xe   :  { %33 = vsyncpa [#allocation5], 0 }
   0xf   :  { %34 = vsyncpa [#allocation8], 0 }
  0x10   :  { %35 = vsyncpa [#allocation11], 0 }
  0x11   :  { %36 = vsyncpa [#allocation14], 0 }
  0x12   :  { %37 = vsyncpa [#allocation17], 0 }
  0x13   :  { %38 = vsyncpa [#allocation20], 0  ;;  %s78_s8 = sshll.u32 %s10888_s12, 4  ;;  %s79_s8 = int_to_ptr.hbm [resolvable:$true] %s78_s8 }
  0x14   :  { %39 = vsyncpa [#allocation23], 0  ;;  %s8385_s30 = smov [#allocation4]   ;;  %s102_s0 = sshll.u32 %s10890_s14, 4  ;;  %s103_s0 = int_to_ptr.hbm [resolvable:$true] %s102_s0 }
  0x15   :  { %s80_s9 = sshll.u32 %s8385_s30, 4  ;;  %s8386_s10 = smov [#allocation7]   ;;  %s81_s9 = int_to_ptr.vmem [resolvable:$true] %s80_s9 }
  0x16   :  { %83 = dma.hbm_to_vmem [thread:$0]  %s79_s8, 64, %s81_s9, [#allocation5]  }
  0x17   :  { %s104_s29 = sshll.u32 %s8386_s10, 4  ;;  %s125_s11 = sshll.u32 %s10892_s16, 4  ;;  %s105_s29 = int_to_ptr.vmem [resolvable:$true] %s104_s29  ;;  %s126_s11 = int_to_ptr.hbm [resolvable:$true] %s125_s11 }
  0x18   :  { %107 = dma.hbm_to_vmem [thread:$0]  %s103_s0, 16, %s105_s29, [#allocation8]  }
  0x19   :  { %s8387_s12 = smov [#allocation10]   ;;  %s150_s4 = sshll.u32 %s10894_s18, 4  ;;  %s151_s4 = int_to_ptr.hbm [resolvable:$true] %s150_s4 }
  0x1a   :  { %s127_s2 = sshll.u32 %s8387_s12, 4  ;;  %s8388_s30 = smov 128   ;;  %s128_s2 = int_to_ptr.vmem [resolvable:$true] %s127_s2 }
  0x1b   :  { %s8389_s14 = smov 8   ;;  %s8390_s8 = smov [#allocation13]  }
  0x1c   :  { %133 = dma.hbm_to_vmem [thread:$0]  %s126_s11, 384, %s128_s2, [#allocation11], %s8388_s30, %s8388_s30, %s8389_s14  }
  0x1d   :  { %s152_s9 = sshll.u32 %s8390_s8, 4  ;;  %s172_s16 = sshll.u32 %s10896_s20, 4  ;;  %s153_s9 = int_to_ptr.vmem [resolvable:$true] %s152_s9  ;;  %s173_s16 = int_to_ptr.hbm [resolvable:$true] %s172_s16 }
  0x1e   :  { %155 = dma.hbm_to_vmem [thread:$0]  %s151_s4, 64, %s153_s9, [#allocation14]  }
  0x1f   :  { %s198_s18 = sshll.u32 %s10899_s23, 4  ;;  %s8391_s29 = smov [#allocation16]   ;;  %s199_s18 = int_to_ptr.hbm [resolvable:$true] %s198_s18 }
  0x20   :  { %s174_s1 = sshll.u32 %s8391_s29, 4  ;;  %s8392_s6 = smov [#allocation19]   ;;  %s175_s1 = int_to_ptr.vmem [resolvable:$true] %s174_s1 }
  0x21   :  { %177 = dma.hbm_to_vmem [thread:$0]  %s173_s16, 32, %s175_s1, [#allocation17]  }
  0x22   :  { %s200_s11 = sshll.u32 %s8392_s6, 4  ;;  %s10926_s3 = sld [smem:[#allocation42_spill]]  ;;  %s201_s11 = int_to_ptr.vmem [resolvable:$true] %s200_s11 }
  0x23   :  { %203 = dma.hbm_to_vmem [thread:$0]  %s199_s18, 16, %s201_s11, [#allocation20]  }
  0x24   :  { %s88_s8 = sshll.u32 %s10889_s13, 4  ;;  %s8393_s9 = smov [#allocation2]   ;;  %s89_s8 = int_to_ptr.hbm [resolvable:$true] %s88_s8 }
  0x25   :  { %s67_s23 = sshll.u32 %s8393_s9, 4  ;;  %s8394_s5 = smov [#allocation6]   ;;  %s68_s23 = int_to_ptr.vmem [resolvable:$true] %s67_s23 }
  0x26   :  { %s90_s28 = sshll.u32 %s8394_s5, 4  ;;  %s112_s10 = sshll.u32 %s10891_s15, 4  ;;  %s91_s28 = int_to_ptr.vmem [resolvable:$true] %s90_s28  ;;  %s113_s10 = int_to_ptr.hbm [resolvable:$true] %s112_s10 }
  0x27   :  { %96 = dma.hbm_to_vmem [thread:$0]  %s89_s8, 384, %s91_s28, [#allocation5], %s8388_s30, %s8388_s30, %s8389_s14  }
  0x28   :  { %s65_s7 = sshll.u32 %s10926_s3, 4  ;;  %s139_s13 = sshll.u32 %s10893_s17, 4  ;;  %s66_s7 = int_to_ptr.hbm [resolvable:$true] %s65_s7  ;;  %s140_s13 = int_to_ptr.hbm [resolvable:$true] %s139_s13 }
  0x29   :  { %70 = dma.hbm_to_vmem [thread:$0]  %s66_s7, 16, %s68_s23, [#allocation3]  }
  0x2a   :  { %s8395_s1 = smov [#allocation9]   ;;  %s8396_s11 = smov [#allocation12]  }
  0x2b   :  { %s114_s6 = sshll.u32 %s8395_s1, 4  ;;  %s141_s15 = sshll.u32 %s8396_s11, 4  ;;  %s115_s6 = int_to_ptr.vmem [resolvable:$true] %s114_s6  ;;  %s142_s15 = int_to_ptr.vmem [resolvable:$true] %s141_s15 }
  0x2c   :  { %120 = dma.hbm_to_vmem [thread:$0]  %s113_s10, 384, %s115_s6, [#allocation8], %s8388_s30, %s8388_s30, %s8389_s14  }
  0x2d   :  { %s161_s3 = sshll.u32 %s10895_s19, 4  ;;  %s182_s17 = sshll.u32 %s10897_s21, 4  ;;  %s162_s3 = int_to_ptr.hbm [resolvable:$true] %s161_s3  ;;  %s183_s17 = int_to_ptr.hbm [resolvable:$true] %s182_s17 }
  0x2e   :  { %144 = dma.hbm_to_vmem [thread:$0]  %s140_s13, 16, %s142_s15, [#allocation11]  }
  0x2f   :  { %s8397_s4 = smov [#allocation15]   ;;  %s8398_s9 = smov [#allocation18]  }
  0x30   :  { %s163_s8 = sshll.u32 %s8397_s4, 4  ;;  %s184_s23 = sshll.u32 %s8398_s9, 4  ;;  %s164_s8 = int_to_ptr.vmem [resolvable:$true] %s163_s8  ;;  %s185_s23 = int_to_ptr.vmem [resolvable:$true] %s184_s23 }
  0x31   :  { %166 = dma.hbm_to_vmem [thread:$0]  %s162_s3, 32, %s164_s8, [#allocation14]  }
  0x32   :  { %s208_s16 = sshll.u32 %s10900_s24, 4  ;;  %s221_s21 = sshll.u32 %s10901_s25, 4  ;;  %s209_s16 = int_to_ptr.hbm [resolvable:$true] %s208_s16  ;;  %s222_s21 = int_to_ptr.hbm [resolvable:$true] %s221_s21 }
  0x33   :  { %190 = dma.hbm_to_vmem [thread:$0]  %s183_s17, 384, %s185_s23, [#allocation17], %s8388_s30, %s8388_s30, %s8389_s14  }
  0x34   :  { %s8399_s10 = smov [#allocation21]   ;;  %s8400_s29 = smov [#allocation22]  }
  0x35   :  { %s210_s18 = sshll.u32 %s8399_s10, 4  ;;  %s223_s24 = sshll.u32 %s8400_s29, 4  ;;  %s211_s18 = int_to_ptr.vmem [resolvable:$true] %s210_s18  ;;  %s224_s24 = int_to_ptr.vmem [resolvable:$true] %s223_s24 }
  0x36   :  { %216 = dma.hbm_to_vmem [thread:$0]  %s209_s16, 384, %s211_s18, [#allocation20], %s8388_s30, %s8388_s30, %s8389_s14  }
  0x37   :  { %229 = dma.hbm_to_vmem [thread:$0]  %s222_s21, 384, %s224_s24, [#allocation23], %s8388_s30, %s8388_s30, %s8389_s14  }
  0x38   :  { %8369 = dma.done.wait [#allocation3], 16  }
  0x39   :  { %8370 = vsyncadd [#allocation3], 4294967280 }
  0x3a   :  { %8371 = dma.done.wait [#allocation5], 448  }
  0x3b   :  { %8372 = vsyncadd [#allocation5], 4294966848 }
  0x3c   :  { %8373 = dma.done.wait [#allocation8], 400  }
  0x3d   :  { %8374 = vsyncadd [#allocation8], 4294966896 }
  0x3e   :  { %8375 = dma.done.wait [#allocation11], 400  }
  0x3f   :  { %8376 = vsyncadd [#allocation11], 4294966896 }
  0x40   :  { %8377 = dma.done.wait [#allocation14], 96  }
  0x41   :  { %8378 = vsyncadd [#allocation14], 4294967200 }
  0x42   :  { %8379 = dma.done.wait [#allocation17], 416  }
  0x43   :  { %8380 = vsyncadd [#allocation17], 4294966880 }
  0x44   :  { %8381 = dma.done.wait [#allocation20], 400  }
  0x45   :  { %8382 = vsyncadd [#allocation20], 4294966896 }
  0x46   :  { %8383 = dma.done.wait [#allocation23], 384  }
  0x47   :  { %8384 = vsyncadd [#allocation23], 4294966912  ;;  %vm352_vm0 = vcmask 1043456   ;;  %s10927_s30 = sld [smem:[#allocation37_spill]]  ;;  %v8401_v9 = vmov 0.0   ;;  %vm299_vm1 = vcmask 64512   ;;  %v423_v34 = vlaneseq }
  0x48   :  { %s10928_s2 = sld [smem:[#allocation38_spill]]  ;;  %vm414_vm2 = vcmask 60416   ;;  %v8677_v30 = vld [vmem:[#allocation6 + $0x10] sm:$0xf]  ;;  %v8681_v31 = vld [vmem:[#allocation6 + $0x8] sm:$0xff]  ;;  %v8686_v33 = vld [vmem:[#allocation6] sm:$0xff] }
  0x49   :  { %s10929_s4 = sld [smem:[#allocation36_spill]]  ;;  %6967 = vmatpush.msk.msra.mxu3 %vm352_vm0, %v8677_v30  ;;  %v8684_v32 = vld [vmem:[#allocation4] sm:$0xf]  ;;  %v8696_v35 = vand.u32 127, %v423_v34  ;;  %vm457_vm3 = vcmask 1041409   ;;  %vm459_vm4 = vcmask 31744  }
  0x4a   :  { %s10930_s23 = sld [smem:[#allocation33_spill]]  ;;  %v8714_v47 = vld [vmem:[#allocation7] ss:$0 sm:$0xff]  ;;  %s8402_s12 = smov 68   ;;  %vm348_vm9 = vcmask 162816  }
  0x4b   :  { %s10931_s10 = sld [smem:[#allocation35_spill]]  ;;  %448 = vmatpush.msra.mxu3 %v8681_v31  ;;  %s8403_s3 = smov 20  }
  0x4c   :  { %s10932_s13 = sld [smem:[#allocation39_spill]]  ;;  %s8404_s7 = smov 88  }
  0x4d   :  { %v8609_v0 = vld [vmem:[%s10927_s30 + $0x10] sm:$0xf]  ;;  %v8614_v1 = vld [vmem:[%s10927_s30 + $0x8] sm:$0xff]  ;;  %v8621_v2 = vld [vmem:[%s10927_s30] sm:$0xff]  ;;  %449 = vmatpush.msra.mxu3 %v8686_v33  ;;  %s10933_s6 = sld [smem:[#allocation32_spill]]  ;;  %s8405_s20 = smov 108  }
  0x4e   :  { %6966 = vmatpush.msk.msra.mxu2 %vm352_vm0, %v8609_v0  ;;  %v8626_v3 = vld [vmem:[%s10928_s2 + $0x10] sm:$0xf]  ;;  %v8631_v4 = vld [vmem:[%s10928_s2 + $0x8] sm:$0xff]  ;;  %v8648_v8 = vld [vmem:[%s10928_s2] sm:$0xff]  ;;  %450 = vmatmul.f32.vlgmr.msra.gmra.mxu3 %v8401_v9  ;;  %s10934_s8 = sld [smem:[#allocation40_spill]] }
  0x4f   :  { %6965 = vmatpush.msk.msra.mxu1 %vm352_vm0, %v8626_v3  ;;  %v292_v5 = vld [vmem:[%s10929_s4] sm:$0xff]  ;;  %s10935_s0 = sld [smem:[#allocation41_spill]] }
  0x50   :  { %v290_v6 = vld [vmem:[%s10930_s23] sm:$0xf]  ;;  %v291_v7 = vld [vmem:[%s10930_s23 + $0x4] sm:$0xf]  ;;  %393 = vmatpush.msra.mxu2 %v8614_v1  ;;  %317 = vmatpush.msra.mxu0 %v292_v5  ;;  %s10936_s11 = sld [smem:[#allocation34_spill]] }
  0x51   :  { %295 = vst [vmem:[#allocation1] ss:$2 sm:$0xff] %v290_v6  ;;  %370 = vmatpush.msra.mxu1 %v8631_v4  ;;  %v2549_v10 = vld [vmem:[%s10931_s10] sm:$0xf]  ;;  %v2550_v11 = vld [vmem:[%s10931_s10 + $0x4] sm:$0xf] }
  0x52   :  { %297 = vst [vmem:[#allocation1 + $0x1] ss:$2 sm:$0xff] %v291_v7  ;;  %394 = vmatpush.msra.mxu2 %v8621_v2  ;;  %v8671_v23 = vld [vmem:[%s10932_s13] ss:$0 sm:$0xff]  ;;  %6968 = vmatpush.msk.msrb.mxu0 %vm352_vm0, %v8684_v32  ;;  %s10937_s28 = sld [smem:[#allocation43_spill]] }
  0x53   :  { %395 = vmatmul.f32.vlgmr.msra.gmra.mxu2 %v8401_v9  ;;  %371 = vmatpush.msra.mxu1 %v8648_v8  ;;  %v8702_v38 = vld [vmem:[%s10933_s6 + $0x8] sm:$0xff]  ;;  %v8708_v41 = vld [vmem:[%s10933_s6] sm:$0xff] }
  0x54   :  { %372 = vmatmul.f32.vlgmr.msra.gmra.mxu1 %v8401_v9 }
  0x59   :  { %v298_v12 = vld.sshfl [vmem:[#allocation1] sm:$0xff pattern:$0x75316420] }
  0x5a   :  { %6964 = vmatmul.msk.f32.vlgmr.msra.gmra.mxu0 %vm299_vm1, %v298_v12  ;;  %2554 = vst [vmem:[#allocation1] ss:$2 sm:$0xff] %v2549_v10 }
  0x5b   :  { %2556 = vst [vmem:[#allocation1 + $0x1] ss:$2 sm:$0xff] %v2550_v11  ;;  %6977 = vmatpush.msk.msra.mxu0 %vm352_vm0, %v8626_v3 }
  0x5d   :  { %665 = vmatpush.msra.mxu0 %v8631_v4 }
  0x5f   :  { %666 = vmatpush.msra.mxu0 %v8648_v8 }
  0xd1   :  { %v373_v13 = vpop.f32.mrf.mxu1  ;;  %v451_v46 = vpop.f32.mrf.mxu3 }
  0xd6   :  { %v396_v14 = vpop.f32.mrf.mxu2 }
  0xd7   :  { %v8661_v15 = vpop.f32.mrf.mxu0  ;;  %v397_v16 = vadd.f32 %v396_v14, %v373_v13  ;;  %v8723_v14 = vld [vmem:[#allocation9 + $0x10] sm:$0xf] }
  0xd8   :  { %v8664_v18 = vrot.slane %v8661_v15, 4  ;;  %6972 = vmatpush.msk.msrb.mxu2 %vm352_vm0, %v8723_v14 }
  0xd9   :  { %v400_v17 = vrot.slane %v397_v16, 1  ;;  %v401_v19 = vperm.slane %v397_v16, 0  ;;  %v8725_v16 = vld [vmem:[#allocation9 + $0x8] sm:$0xff] }
  0xda   :  { %571 = vmatpush.msrb.mxu2 %v8725_v16 }
  0xdb   :  { %v402_v20 = vperm.slane %v400_v17, 0  ;;  %v405_v22 = vadd.f32 %v401_v19, %v8661_v15  ;;  %v8727_v17 = vld [vmem:[#allocation10 + $0x10] sm:$0xf]  ;;  %v8733_v19 = vld [vmem:[#allocation9] sm:$0xff] }
  0xdc   :  { %6971 = vmatpush.msk.msrb.mxu1 %vm352_vm0, %v8727_v17  ;;  %572 = vmatpush.msrb.mxu2 %v8733_v19 }
  0xdd   :  { %v406_v21 = vadd.f32 %v402_v20, %v8664_v18 }
  0xde   :  { %6981 = vmatpush.msk.msra.mxu2 %vm352_vm0, %v8677_v30 }
  0xdf   :  { %7308 = vtanh.f32 %v406_v21 }
  0xe0   :  { %7310 = vtanh.f32 %v405_v22  ;;  %731 = vmatpush.msra.mxu2 %v8681_v31  ;;  %v8744_v22 = vld [vmem:[#allocation10 + $0x8] sm:$0xff] }
  0xe1   :  { %543 = vmatpush.msrb.mxu1 %v8744_v22 }
  0xe2   :  { %732 = vmatpush.msra.mxu2 %v8686_v33 }
  0xe5   :  { %v7309_v24 = vpop.eup %7308 }
  0xe6   :  { %v413_v25 = vmul.f32 %v7309_v24, %v8671_v23  ;;  %v7311_v27 = vpop.eup %7310  ;;  %v8746_v24 = vld [vmem:[#allocation10] sm:$0xff] }
  0xe7   :  { %v412_v28 = vmul.f32 %v7311_v27, %v8671_v23  ;;  %544 = vmatpush.msrb.mxu1 %v8746_v24  ;;  %v8763_v27 = vld [vmem:[#allocation12] ss:$0 sm:$0xff] }
  0xe8   :  { %v418_v26 = vsel %vm414_vm2, %v413_v25, 0.0  ;;  %545 = vmatmul.f32.vlgmr.msrb.gmra.mxu1 %v8401_v9 }
  0xe9   :  { %419 = vadd.xlane.f32.xlu0 %v418_v26  ;;  %v415_v29 = vsel %vm414_vm2, %v412_v28, 0.0  ;;  %6979 = vmatpush.msk.msra.mxu1 %vm352_vm0, %v8609_v0 }
  0xeb   :  { %685 = vmatpush.msra.mxu1 %v8614_v1 }
  0xed   :  { %686 = vmatpush.msra.mxu1 %v8621_v2 }
  0xef   :  { %6988 = vmatpush.msk.msrb.mxu1 %vm352_vm0, %v8723_v14 }
  0xf1   :  { %416 = vadd.xlane.f32.xlu0 %v415_v29  ;;  %840 = vmatpush.msrb.mxu1 %v8725_v16 }
  0xf3   :  { %841 = vmatpush.msrb.mxu1 %v8733_v19 }
 0x15c   :  { %v420_v36 = vpop.xlane.xlu0 %419 }
 0x15d   :  { %v426_v37 = vperm.slane %v420_v36, %v8696_v35 }
 0x15f   :  { %v430_v39 = vmul.f32 %v426_v37, %v8702_v38 }
 0x161   :  { %v456_v43 = vrot.slane %v430_v39, 7 }
 0x164   :  { %v417_v40 = vpop.xlane.xlu0 %416 }
 0x165   :  { %v425_v42 = vperm.slane %v417_v40, %v8696_v35  ;;  %v546_v26 = vpop.f32.mrf.mxu1 }
 0x167   :  { %v429_v44 = vmul.f32 %v425_v42, %v8708_v41 }
 0x169   :  { %v458_v45 = vsel %vm457_vm3, %v456_v43, %v429_v44 }
 0x16a   :  { %6969 = vmatmul.msk.f32.vlgmr.msrb.gmra.mxu0 %vm459_vm4, %v458_v45 }
 0x16b   :  { %6986 = vmatpush.msk.msrb.mxu0 %vm352_vm0, %v8727_v17 }
 0x16d   :  { %815 = vmatpush.msrb.mxu0 %v8744_v22 }
 0x16f   :  { %816 = vmatpush.msrb.mxu0 %v8746_v24 }
 0x1e7   :  { %v482_v48 = vpop.f32.mrf.mxu0 }
 0x1e8   :  { %v483_v49 = vadd.f32 %v482_v48, %v451_v46 }
 0x1ea   :  { %v488_v50 = vadd.f32 %v8714_v47, %v483_v49 }
 0x1ec   :  { %7312 = vtanh.f32 %v488_v50  ;;  %v6970_v52 = vmul.f32 -1.442695, %v488_v50 }
 0x1ee   :  { %7314 = vpow2.f32 %v6970_v52 }
 0x1f2   :  { %v7313_v51 = vpop.eup %7312 }
 0x1f3   :  { %511 = vrot.lane.b32.xlu1 %v7313_v51, %s8402_s12 }
 0x1f4   :  { %v7315_v53 = vpop.eup %7314 }
 0x1f5   :  { %v492_v54 = vadd.f32 1.0, %v7315_v53 }
 0x1f7   :  { %7316 = vrcp.f32 %v492_v54  ;;  %v504_v60 = vand.u32 2147483648, %v492_v54  ;;  %vm498_vm6 = vweird.f32 %v492_v54  ;;  %v502_v61 = vand.u32 2147483647, %v492_v54 }
 0x1f9   :  { %v505_v63 = vor.u32 1.1754944e-38, %v504_v60  ;;  %vm503_vm8 = vcmp.eq.f32.partialorder %v502_v61, 8.507059e+37  ;;  %v8782_v60 = vld [vmem:[%s10934_s8 + $0x8] sm:$0xff]  ;;  %v8791_v61 = vld [vmem:[%s10934_s8] sm:$0xff] }
 0x1fd   :  { %v7317_v55 = vpop.eup %7316 }
 0x1fe   :  { %v494_v56 = vmul.f32 %v7317_v55, %v492_v54  ;;  %vm499_vm5 = vweird.f32 %v7317_v55 }
 0x1ff   :  { %vm500_vm7 = vmor %vm498_vm6, %vm499_vm5 }
 0x200   :  { %v495_v57 = vsub.f32 1.0, %v494_v56 }
 0x202   :  { %v496_v58 = vmul.f32 %v7317_v55, %v495_v57 }
 0x204   :  { %v497_v59 = vadd.f32 %v7317_v55, %v496_v58 }
 0x206   :  { %v501_v62 = vsel %vm500_vm7, %v7317_v55, %v497_v59  ;;  %v8777_v59 = vld [vmem:[%s10934_s8 + $0x10] sm:$0xf] }
 0x207   :  { %v506_v6 = vsel %vm503_vm8, %v505_v63, %v501_v62  ;;  %6975 = vmatpush.msk.msrb.mxu3 %vm352_vm0, %v8777_v59 }
 0x208   :  { %v509_v10 = vmul.f32 0.0, %v506_v6 }
 0x209   :  { %640 = vmatpush.msrb.mxu3 %v8782_v60 }
 0x20b   :  { %641 = vmatpush.msrb.mxu3 %v8791_v61 }
 0x20d   :  { %6983 = vmatpush.msk.msra.mxu3 %vm352_vm0, %v8684_v32 }
 0x265   :  { %v512_v5 = vpop.permute.xlu1 %511 }
 0x266   :  { %v514_v7 = vmul.f32 %v512_v5, %v506_v6 }
 0x268   :  { %516 = vrot.lane.b32.xlu1 %v514_v7, %s8403_s3 }
 0x2da   :  { %v517_v11 = vpop.permute.xlu1 %516 }
 0x2db   :  { %v8719_v12 = vadd.f32 %v517_v11, %v509_v10 }
 0x2dd   :  { %7318 = vtanh.f32 %v8719_v12 }
 0x2e3   :  { %v7319_v13 = vpop.eup %7318 }
 0x2e4   :  { %522 = vrot.lane.b32.xlu2 %v7319_v13, %s8403_s3 }
 0x33e   :  { %v523_v20 = vpop.permute.xlu2 %522 }
 0x33f   :  { %v525_v21 = vmul.f32 %v523_v20, %v506_v6 }
 0x341   :  { %550 = vrot.lane.b32.xlu2 %v525_v21, %s8404_s7 }
 0x39b   :  { %v551_v25 = vpop.permute.xlu2 %550 }
 0x39c   :  { %6973 = vmatmul.msk.f32.vlgmr.msrb.gmra.mxu2 %vm348_vm9, %v551_v25 }
 0x39d   :  { %6991 = vmatpush.msk.msrb.mxu2 %vm352_vm0, %v8777_v59 }
 0x39f   :  { %903 = vmatpush.msrb.mxu2 %v8782_v60 }
 0x3a1   :  { %904 = vmatpush.msrb.mxu2 %v8791_v61 }
 0x3a4   :  { %6982 = vmatmul.msk.f32.vlgmr.msra.gmra.mxu2 %vm348_vm9, %v551_v25 }
 0x3a5   :  { %6999 = vmatpush.msk.msra.mxu2 %vm352_vm0, %v8684_v32 }
 0x41f   :  { %v574_v28 = vpop.f32.mrf.mxu2 }
 0x420   :  { %v575_v29 = vadd.f32 %v574_v28, %v546_v26 }
 0x422   :  { %v580_v34 = vadd.f32 %v8763_v27, %v575_v29 }
 0x424   :  { %7320 = vtanh.f32 %v580_v34  ;;  %v6974_v37 = vmul.f32 -1.442695, %v580_v34 }
 0x426   :  { %7322 = vpow2.f32 %v6974_v37 }
 0x42a   :  { %v7321_v36 = vpop.eup %7320 }
 0x42b   :  { %603 = vrot.lane.b32.xlu0 %v7321_v36, %s8402_s12 }
 0x42c   :  { %v7323_v39 = vpop.eup %7322 }
 0x42d   :  { %v584_v40 = vadd.f32 1.0, %v7323_v39 }
 0x42f   :  { %7324 = vrcp.f32 %v584_v40  ;;  %v596_v48 = vand.u32 2147483648, %v584_v40  ;;  %vm590_vm11 = vweird.f32 %v584_v40  ;;  %v594_v49 = vand.u32 2147483647, %v584_v40 }
 0x431   :  { %v597_v51 = vor.u32 1.1754944e-38, %v596_v48  ;;  %vm595_vm13 = vcmp.eq.f32.partialorder %v594_v49, 8.507059e+37 }
 0x435   :  { %v7325_v42 = vpop.eup %7324 }
 0x436   :  { %v586_v43 = vmul.f32 %v7325_v42, %v584_v40  ;;  %vm591_vm10 = vweird.f32 %v7325_v42 }
 0x437   :  { %vm592_vm12 = vmor %vm590_vm11, %vm591_vm10 }
 0x438   :  { %v587_v44 = vsub.f32 1.0, %v586_v43 }
 0x43a   :  { %v588_v45 = vmul.f32 %v7325_v42, %v587_v44 }
 0x43c   :  { %v589_v46 = vadd.f32 %v7325_v42, %v588_v45 }
 0x43e   :  { %v593_v50 = vsel %vm592_vm12, %v7325_v42, %v589_v46 }
 0x43f   :  { %v598_v53 = vsel %vm595_vm13, %v597_v51, %v593_v50  ;;  %v734_v51 = vpop.f32.mrf.mxu2 }
 0x440   :  { %v601_v55 = vmul.f32 0.0, %v598_v53 }
 0x49d   :  { %v604_v52 = vpop.permute.xlu0 %603 }
 0x49e   :  { %v606_v54 = vmul.f32 %v604_v52, %v598_v53 }
 0x4a0   :  { %608 = vrot.lane.b32.xlu1 %v606_v54, %s8403_s3 }
 0x512   :  { %v609_v56 = vpop.permute.xlu1 %608 }
 0x513   :  { %v8768_v57 = vadd.f32 %v609_v56, %v601_v55 }
 0x515   :  { %7326 = vtanh.f32 %v8768_v57 }
 0x51b   :  { %v7327_v58 = vpop.eup %7326 }
 0x51c   :  { %614 = vrot.lane.b32.xlu2 %v7327_v58, %s8403_s3 }
 0x524   :  { %647 = vrot.lane.b32.xlu2 %v8768_v57, %s8405_s20 }
 0x576   :  { %v615_v62 = vpop.permute.xlu2 %614 }
 0x577   :  { %v8801_v63 = vmul.f32 %v615_v62, %v598_v53 }
 0x579   :  { %619 = vrot.lane.b32.xlu1 %v8801_v63, %s8404_s7 }
 0x57e   :  { %v648_v5 = vpop.permute.xlu2 %647 }
 0x57f   :  { %6978 = vmatmul.msk.f32.vlgmr.msra.gmra.mxu0 %vm348_vm9, %v648_v5 }
 0x580   :  { %6995 = vmatpush.msk.msra.mxu0 %vm352_vm0, %v8609_v0 }
 0x582   :  { %948 = vmatpush.msra.mxu0 %v8614_v1 }
 0x584   :  { %949 = vmatpush.msra.mxu0 %v8621_v2 }
 0x5eb   :  { %v620_v6 = vpop.permute.xlu1 %619 }
 0x5ec   :  { %6976 = vmatmul.msk.f32.vlgmr.msrb.gmra.mxu3 %vm348_vm9, %v620_v6  ;;  %6980 = vmatmul.msk.f32.vlgmr.msra.gmra.mxu1 %vm348_vm9, %v620_v6 }
 0x5ed   :  { %6987 = vmatmul.msk.f32.vlgmr.msrb.gmra.mxu0 %vm348_vm9, %v620_v6  ;;  %6997 = vmatpush.msk.msra.mxu1 %vm352_vm0, %v8677_v30 }
 0x5ee   :  { %6993 = vmatpush.msk.msrb.mxu3 %vm352_vm0, %v8626_v3  ;;  %7004 = vmatpush.msk.msrb.mxu0 %vm352_vm0, %v8723_v14 }
 0x5ef   :  { %994 = vmatpush.msra.mxu1 %v8681_v31 }
 0x5f0   :  { %928 = vmatpush.msrb.mxu3 %v8631_v4  ;;  %1104 = vmatpush.msrb.mxu0 %v8725_v16 }
 0x5f1   :  { %995 = vmatpush.msra.mxu1 %v8686_v33 }
 0x5f2   :  { %929 = vmatpush.msrb.mxu3 %v8648_v8  ;;  %1105 = vmatpush.msrb.mxu0 %v8733_v19 }
 0x5fc   :  { %v668_v7 = vpop.f32.mrf.mxu0 }
 0x669   :  { %v688_v10 = vpop.f32.mrf.mxu1 }
 0x66a   :  { %v689_v11 = vadd.f32 %v688_v10, %v668_v7 }
 0x66c   :  { %v692_v13 = vrot.slane %v689_v11, 1  ;;  %v693_v20 = vperm.slane %v689_v11, 0 }
 0x66e   :  { %v694_v21 = vperm.slane %v692_v13, 0  ;;  %v697_v25 = vadd.f32 %v693_v20, %v8661_v15 }
 0x66f   :  { %v8841_v50 = vpop.f32.mrf.mxu3 }
 0x670   :  { %v698_v26 = vadd.f32 %v694_v21, %v8664_v18  ;;  %7328 = vtanh.f32 %v697_v25 }
 0x672   :  { %7330 = vtanh.f32 %v698_v26 }
 0x676   :  { %v7329_v28 = vpop.eup %7328 }
 0x677   :  { %v701_v29 = vmul.f32 %v7329_v28, %v8671_v23 }
 0x678   :  { %v7331_v34 = vpop.eup %7330 }
 0x679   :  { %v703_v36 = vsel %vm414_vm2, %v701_v29, 0.0  ;;  %v702_v37 = vmul.f32 %v7331_v34, %v8671_v23 }
 0x67a   :  { %704 = vadd.xlane.f32.xlu1 %v703_v36 }
 0x67b   :  { %v706_v39 = vsel %vm414_vm2, %v702_v37, 0.0 }
 0x67c   :  { %707 = vadd.xlane.f32.xlu2 %v706_v39 }
 0x6ed   :  { %v705_v40 = vpop.xlane.xlu1 %704 }
 0x6ee   :  { %v711_v42 = vperm.slane %v705_v40, %v8696_v35 }
 0x6ef   :  { %v708_v43 = vpop.xlane.xlu2 %707 }
 0x6f0   :  { %v715_v44 = vmul.f32 %v711_v42, %v8708_v41  ;;  %v712_v45 = vperm.slane %v708_v43, %v8696_v35 }
 0x6f2   :  { %v739_v46 = vrot.slane %v715_v44, 1  ;;  %v716_v48 = vmul.f32 %v712_v45, %v8702_v38 }
 0x6f4   :  { %v740_v49 = vsel %vm457_vm3, %v716_v48, %v739_v46 }
 0x6f5   :  { %6984 = vmatmul.msk.f32.vlgmr.msra.gmra.mxu3 %vm459_vm4, %v740_v49 }
 0x6f6   :  { %7002 = vmatpush.msk.msra.mxu3 %vm352_vm0, %v8727_v17 }
 0x6f8   :  { %1079 = vmatpush.msra.mxu3 %v8744_v22 }
 0x6fa   :  { %1080 = vmatpush.msra.mxu3 %v8746_v24 }
 0x778   :  { %v760_v52 = vpop.f32.mrf.mxu3 }
 0x779   :  { %v761_v53 = vadd.f32 %v760_v52, %v734_v51 }
 0x77b   :  { %v763_v54 = vadd.f32 %v8714_v47, %v761_v53 }
 0x77d   :  { %7332 = vtanh.f32 %v763_v54  ;;  %v6985_v56 = vmul.f32 -1.442695, %v763_v54 }
 0x77f   :  { %7334 = vpow2.f32 %v6985_v56 }
 0x783   :  { %v7333_v55 = vpop.eup %7332 }
 0x784   :  { %786 = vrot.lane.b32.xlu0 %v7333_v55, %s8402_s12 }
 0x785   :  { %v7335_v58 = vpop.eup %7334 }
 0x786   :  { %v767_v62 = vadd.f32 1.0, %v7335_v58 }
 0x788   :  { %7336 = vrcp.f32 %v767_v62  ;;  %v779_v13 = vand.u32 2147483648, %v767_v62  ;;  %vm773_vm15 = vweird.f32 %v767_v62  ;;  %v777_v20 = vand.u32 2147483647, %v767_v62 }
 0x78a   :  { %v780_v25 = vor.u32 1.1754944e-38, %v779_v13  ;;  %vm778_vm5 = vcmp.eq.f32.partialorder %v777_v20, 8.507059e+37 }
 0x78e   :  { %v7337_v5 = vpop.eup %7336 }
 0x78f   :  { %v769_v6 = vmul.f32 %v7337_v5, %v767_v62  ;;  %vm774_vm14 = vweird.f32 %v7337_v5 }
 0x790   :  { %vm775_vm1 = vmor %vm773_vm15, %vm774_vm14 }
 0x791   :  { %v770_v7 = vsub.f32 1.0, %v769_v6 }
 0x793   :  { %v771_v10 = vmul.f32 %v7337_v5, %v770_v7 }
 0x795   :  { %v772_v11 = vadd.f32 %v7337_v5, %v771_v10 }
 0x797   :  { %v776_v21 = vsel %vm775_vm1, %v7337_v5, %v772_v11 }
 0x798   :  { %v781_v28 = vsel %vm778_vm5, %v780_v25, %v776_v21 }
 0x799   :  { %v784_v34 = vmul.f32 %v781_v28, %v8719_v12  ;;  %v818_v12 = vpop.f32.mrf.mxu0 }
 0x7f6   :  { %v787_v26 = vpop.permute.xlu0 %786 }
 0x7f7   :  { %v789_v29 = vmul.f32 %v787_v26, %v781_v28 }
 0x7f9   :  { %791 = vrot.lane.b32.xlu0 %v789_v29, %s8403_s3 }
 0x86b   :  { %v792_v36 = vpop.permute.xlu0 %791 }
 0x86c   :  { %v8847_v37 = vadd.f32 %v792_v36, %v784_v34 }
 0x86e   :  { %7338 = vtanh.f32 %v8847_v37 }
 0x874   :  { %v7339_v39 = vpop.eup %7338 }
 0x875   :  { %797 = vrot.lane.b32.xlu0 %v7339_v39, %s8403_s3 }
 0x8e7   :  { %v798_v40 = vpop.permute.xlu0 %797 }
 0x8e8   :  { %v800_v42 = vmul.f32 %v798_v40, %v781_v28 }
 0x8ea   :  { %822 = vrot.lane.b32.xlu0 %v800_v42, %s8404_s7 }
 0x95c   :  { %v823_v43 = vpop.permute.xlu0 %822 }
 0x95d   :  { %6989 = vmatmul.msk.f32.vlgmr.msrb.gmra.mxu1 %vm348_vm9, %v823_v43 }
 0x95e   :  { %7007 = vmatpush.msk.msrb.mxu1 %vm352_vm0, %v8777_v59 }
 0x960   :  { %1167 = vmatpush.msrb.mxu1 %v8782_v60 }
 0x962   :  { %1168 = vmatpush.msrb.mxu1 %v8791_v61 }
 0x965   :  { %6998 = vmatmul.msk.f32.vlgmr.msra.gmra.mxu1 %vm348_vm9, %v823_v43 }
 0x966   :  { %7015 = vmatpush.msk.msra.mxu1 %vm352_vm0, %v8684_v32 }
 0x9da   :  { %v843_v44 = vpop.f32.mrf.mxu1 }
 0x9db   :  { %v844_v45 = vadd.f32 %v843_v44, %v818_v12 }
 0x9dd   :  { %v846_v46 = vadd.f32 %v8763_v27, %v844_v45 }
 0x9df   :  { %7340 = vtanh.f32 %v846_v46  ;;  %v6990_v49 = vmul.f32 -1.442695, %v846_v46 }
 0x9e1   :  { %7342 = vpow2.f32 %v6990_v49 }
 0x9e5   :  { %v7341_v48 = vpop.eup %7340 }
 0x9e6   :  { %869 = vrot.lane.b32.xlu0 %v7341_v48, %s8402_s12 }
 0x9e7   :  { %v7343_v51 = vpop.eup %7342 }
 0x9e8   :  { %v850_v52 = vadd.f32 1.0, %v7343_v51 }
 0x9ea   :  { %7344 = vrcp.f32 %v850_v52  ;;  %v862_v62 = vand.u32 2147483648, %v850_v52  ;;  %vm856_vm7 = vweird.f32 %v850_v52  ;;  %v860_v5 = vand.u32 2147483647, %v850_v52 }
 0x9ec   :  { %v863_v7 = vor.u32 1.1754944e-38, %v862_v62  ;;  %vm861_vm10 = vcmp.eq.f32.partialorder %v860_v5, 8.507059e+37 }
 0x9f0   :  { %v7345_v53 = vpop.eup %7344 }
 0x9f1   :  { %v852_v54 = vmul.f32 %v7345_v53, %v850_v52  ;;  %vm857_vm6 = vweird.f32 %v7345_v53 }
 0x9f2   :  { %vm858_vm8 = vmor %vm856_vm7, %vm857_vm6 }
 0x9f3   :  { %v853_v55 = vsub.f32 1.0, %v852_v54 }
 0x9f5   :  { %v854_v56 = vmul.f32 %v7345_v53, %v853_v55 }
 0x9f7   :  { %v855_v58 = vadd.f32 %v7345_v53, %v854_v56 }
 0x9f9   :  { %v859_v6 = vsel %vm858_vm8, %v7345_v53, %v855_v58 }
 0x9fa   :  { %v864_v11 = vsel %vm861_vm10, %v863_v7, %v859_v6 }
 0x9fb   :  { %v867_v20 = vmul.f32 %v864_v11, %v8768_v57 }
 0xa58   :  { %v870_v10 = vpop.permute.xlu0 %869 }
 0xa59   :  { %v872_v13 = vmul.f32 %v870_v10, %v864_v11 }
 0xa5b   :  { %874 = vrot.lane.b32.xlu2 %v872_v13, %s8403_s3  ;;  %v997_v13 = vpop.f32.mrf.mxu1 }
 0xab5   :  { %v875_v21 = vpop.permute.xlu2 %874 }
 0xab6   :  { %v8864_v25 = vadd.f32 %v875_v21, %v867_v20 }
 0xab8   :  { %7346 = vtanh.f32 %v8864_v25  ;;  %910 = vrot.lane.b32.xlu0 %v8864_v25, %s8405_s20 }
 0xabe   :  { %v7347_v26 = vpop.eup %7346 }
 0xabf   :  { %880 = vrot.lane.b32.xlu1 %v7347_v26, %s8403_s3 }
 0xb2a   :  { %v911_v28 = vpop.permute.xlu0 %910 }
 0xb2b   :  { %6994 = vmatmul.msk.f32.vlgmr.msrb.gmra.mxu3 %vm348_vm9, %v911_v28 }
 0xb2c   :  { %7011 = vmatpush.msk.msrb.mxu3 %vm352_vm0, %v8609_v0 }
 0xb2e   :  { %1212 = vmatpush.msrb.mxu3 %v8614_v1 }
 0xb30   :  { %1213 = vmatpush.msrb.mxu3 %v8621_v2 }
 0xb31   :  { %v881_v57 = vpop.permute.xlu1 %880 }
 0xb32   :  { %v8875_v29 = vmul.f32 %v881_v57, %v864_v11 }
 0xb34   :  { %885 = vrot.lane.b32.xlu0 %v8875_v29, %s8404_s7 }
 0xba6   :  { %v886_v34 = vpop.permute.xlu0 %885 }
 0xba7   :  { %6992 = vmatmul.msk.f32.vlgmr.msrb.gmra.mxu2 %vm348_vm9, %v886_v34  ;;  %6996 = vmatmul.msk.f32.vlgmr.msra.gmra.mxu0 %vm348_vm9, %v886_v34 }
 0xba8   :  { %7003 = vmatmul.msk.f32.vlgmr.msra.gmra.mxu3 %vm348_vm9, %v886_v34  ;;  %7013 = vmatpush.msk.msra.mxu0 %vm352_vm0, %v8677_v30 }
 0xba9   :  { %7009 = vmatpush.msk.msrb.mxu2 %vm352_vm0, %v8626_v3  ;;  %7020 = vmatpush.msk.msra.mxu3 %vm352_vm0, %v8723_v14 }
 0xbaa   :  { %1258 = vmatpush.msra.mxu0 %v8681_v31 }
 0xbab   :  { %1192 = vmatpush.msrb.mxu2 %v8631_v4  ;;  %1368 = vmatpush.msra.mxu3 %v8725_v16 }
 0xbac   :  { %1259 = vmatpush.msra.mxu0 %v8686_v33 }
 0xbad   :  { %1193 = vmatpush.msrb.mxu2 %v8648_v8  ;;  %1369 = vmatpush.msra.mxu3 %v8733_v19 }
 0xbae   :  { %v931_v36 = vpop.f32.mrf.mxu3 }
 0xc24   :  { %v951_v39 = vpop.f32.mrf.mxu0 }
 0xc25   :  { %v952_v40 = vadd.f32 %v951_v39, %v931_v36 }
 0xc27   :  { %v955_v42 = vrot.slane %v952_v40, 1  ;;  %v956_v43 = vperm.slane %v952_v40, 0 }
 0xc29   :  { %v957_v12 = vperm.slane %v955_v42, 0  ;;  %v960_v44 = vadd.f32 %v956_v43, %v8661_v15 }
 0xc2a   :  { %v8910_v11 = vpop.f32.mrf.mxu2 }
 0xc2b   :  { %v961_v45 = vadd.f32 %v957_v12, %v8664_v18  ;;  %7348 = vtanh.f32 %v960_v44 }
 0xc2d   :  { %7350 = vtanh.f32 %v961_v45 }
 0xc31   :  { %v7349_v46 = vpop.eup %7348 }
 0xc32   :  { %v964_v48 = vmul.f32 %v7349_v46, %v8671_v23 }
 0xc33   :  { %v7351_v49 = vpop.eup %7350 }
 0xc34   :  { %v966_v51 = vsel %vm414_vm2, %v964_v48, 0.0  ;;  %v965_v52 = vmul.f32 %v7351_v49, %v8671_v23 }
 0xc35   :  { %967 = vadd.xlane.f32.xlu0 %v966_v51 }
 0xc36   :  { %v969_v53 = vsel %vm414_vm2, %v965_v52, 0.0 }
 0xc37   :  { %970 = vadd.xlane.f32.xlu2 %v969_v53 }
 0xca8   :  { %v968_v54 = vpop.xlane.xlu0 %967 }
 0xca9   :  { %v974_v55 = vperm.slane %v968_v54, %v8696_v35 }
 0xcaa   :  { %v971_v56 = vpop.xlane.xlu2 %970 }
 0xcab   :  { %v978_v58 = vmul.f32 %v974_v55, %v8708_v41  ;;  %v975_v62 = vperm.slane %v971_v56, %v8696_v35 }
 0xcad   :  { %v979_v5 = vmul.f32 %v975_v62, %v8702_v38  ;;  %v1002_v6 = vrot.slane %v978_v58, 2 }
 0xcaf   :  { %v1003_v7 = vrot.slane %v979_v5, 1 }
 0xcb1   :  { %v1004_v10 = vsel %vm457_vm3, %v1003_v7, %v1002_v6 }
 0xcb2   :  { %7000 = vmatmul.msk.f32.vlgmr.msra.gmra.mxu2 %vm459_vm4, %v1004_v10 }
 0xcb3   :  { %7018 = vmatpush.msk.msra.mxu2 %vm352_vm0, %v8727_v17 }
 0xcb5   :  { %1343 = vmatpush.msra.mxu2 %v8744_v22 }
 0xcb7   :  { %1344 = vmatpush.msra.mxu2 %v8746_v24 }
 0xd35   :  { %v1024_v20 = vpop.f32.mrf.mxu2 }
 0xd36   :  { %v1025_v21 = vadd.f32 %v1024_v20, %v997_v13 }
 0xd38   :  { %v1027_v26 = vadd.f32 %v8714_v47, %v1025_v21 }
 0xd3a   :  { %7352 = vtanh.f32 %v1027_v26  ;;  %v7001_v57 = vmul.f32 -1.442695, %v1027_v26 }
 0xd3c   :  { %7354 = vpow2.f32 %v7001_v57 }
 0xd40   :  { %v7353_v28 = vpop.eup %7352 }
 0xd41   :  { %1050 = vrot.lane.b32.xlu1 %v7353_v28, %s8402_s12 }
 0xd42   :  { %v7355_v34 = vpop.eup %7354 }
 0xd43   :  { %v1031_v36 = vadd.f32 1.0, %v7355_v34 }
 0xd45   :  { %7356 = vrcp.f32 %v1031_v36  ;;  %v1043_v44 = vand.u32 2147483648, %v1031_v36  ;;  %vm1037_vm12 = vweird.f32 %v1031_v36  ;;  %v1041_v45 = vand.u32 2147483647, %v1031_v36 }
 0xd47   :  { %v1044_v48 = vor.u32 1.1754944e-38, %v1043_v44  ;;  %vm1042_vm14 = vcmp.eq.f32.partialorder %v1041_v45, 8.507059e+37 }
 0xd4b   :  { %v7357_v39 = vpop.eup %7356 }
 0xd4c   :  { %v1033_v40 = vmul.f32 %v7357_v39, %v1031_v36  ;;  %vm1038_vm11 = vweird.f32 %v7357_v39 }
 0xd4d   :  { %vm1039_vm13 = vmor %vm1037_vm12, %vm1038_vm11 }
 0xd4e   :  { %v1034_v42 = vsub.f32 1.0, %v1033_v40 }
 0xd50   :  { %v1035_v43 = vmul.f32 %v7357_v39, %v1034_v42 }
 0xd52   :  { %v1036_v12 = vadd.f32 %v7357_v39, %v1035_v43 }
 0xd54   :  { %v1040_v46 = vsel %vm1039_vm13, %v7357_v39, %v1036_v12 }
 0xd55   :  { %v1045_v51 = vsel %vm1042_vm14, %v1044_v48, %v1040_v46 }
 0xd56   :  { %v1048_v53 = vmul.f32 %v1045_v51, %v8847_v37  ;;  %v1082_v37 = vpop.f32.mrf.mxu3 }
 0xdb3   :  { %v1051_v49 = vpop.permute.xlu1 %1050 }
 0xdb4   :  { %v1053_v52 = vmul.f32 %v1051_v49, %v1045_v51 }
 0xdb6   :  { %1055 = vrot.lane.b32.xlu1 %v1053_v52, %s8403_s3 }
 0xe28   :  { %v1056_v54 = vpop.permute.xlu1 %1055 }
 0xe29   :  { %v8916_v55 = vadd.f32 %v1056_v54, %v1048_v53 }
 0xe2b   :  { %7358 = vtanh.f32 %v8916_v55 }
 0xe31   :  { %v7359_v56 = vpop.eup %7358 }
 0xe32   :  { %1061 = vrot.lane.b32.xlu1 %v7359_v56, %s8403_s3 }
 0xea4   :  { %v1062_v58 = vpop.permute.xlu1 %1061 }
 0xea5   :  { %v1064_v62 = vmul.f32 %v1062_v58, %v1045_v51 }
 0xea7   :  { %1086 = vrot.lane.b32.xlu1 %v1064_v62, %s8404_s7 }
 0xf19   :  { %v1087_v5 = vpop.permute.xlu1 %1086 }
 0xf1a   :  { %7005 = vmatmul.msk.f32.vlgmr.msrb.gmra.mxu0 %vm348_vm9, %v1087_v5 }
 0xf1b   :  { %7023 = vmatpush.msk.msrb.mxu0 %vm352_vm0, %v8777_v59 }
 0xf1d   :  { %1431 = vmatpush.msrb.mxu0 %v8782_v60 }
 0xf1f   :  { %1432 = vmatpush.msrb.mxu0 %v8791_v61 }
 0xf22   :  { %7014 = vmatmul.msk.f32.vlgmr.msra.gmra.mxu0 %vm348_vm9, %v1087_v5 }
 0xf23   :  { %7031 = vmatpush.msk.msra.mxu0 %vm352_vm0, %v8684_v32 }
 0xf97   :  { %v1107_v6 = vpop.f32.mrf.mxu0 }
 0xf98   :  { %v1108_v7 = vadd.f32 %v1107_v6, %v1082_v37 }
 0xf9a   :  { %v1110_v10 = vadd.f32 %v8763_v27, %v1108_v7 }
 0xf9c   :  { %7360 = vtanh.f32 %v1110_v10  ;;  %v7006_v20 = vmul.f32 -1.442695, %v1110_v10 }
 0xf9e   :  { %7362 = vpow2.f32 %v7006_v20 }
 0xfa2   :  { %v7361_v13 = vpop.eup %7360 }
 0xfa3   :  { %1133 = vrot.lane.b32.xlu1 %v7361_v13, %s8402_s12 }
 0xfa4   :  { %v7363_v21 = vpop.eup %7362 }
 0xfa5   :  { %v1114_v26 = vadd.f32 1.0, %v7363_v21 }
 0xfa7   :  { %7364 = vrcp.f32 %v1114_v26  ;;  %v1126_v40 = vand.u32 2147483648, %v1114_v26  ;;  %vm1120_vm1 = vweird.f32 %v1114_v26  ;;  %v1124_v42 = vand.u32 2147483647, %v1114_v26 }
 0xfa9   :  { %v1127_v12 = vor.u32 1.1754944e-38, %v1126_v40  ;;  %vm1125_vm6 = vcmp.eq.f32.partialorder %v1124_v42, 8.507059e+37 }
 0xfad   :  { %v7365_v28 = vpop.eup %7364 }
 0xfae   :  { %v1116_v57 = vmul.f32 %v7365_v28, %v1114_v26  ;;  %vm1121_vm15 = vweird.f32 %v7365_v28 }
 0xfaf   :  { %vm1122_vm5 = vmor %vm1120_vm1, %vm1121_vm15 }
 0xfb0   :  { %v1117_v34 = vsub.f32 1.0, %v1116_v57 }
 0xfb2   :  { %v1118_v36 = vmul.f32 %v7365_v28, %v1117_v34 }
 0xfb4   :  { %v1119_v39 = vadd.f32 %v7365_v28, %v1118_v36 }
 0xfb6   :  { %v1123_v43 = vsel %vm1122_vm5, %v7365_v28, %v1119_v39 }
 0xfb7   :  { %v1128_v45 = vsel %vm1125_vm6, %v1127_v12, %v1123_v43 }
 0xfb8   :  { %v1131_v48 = vmul.f32 %v1128_v45, %v8864_v25 }
0x1015   :  { %v1134_v44 = vpop.permute.xlu1 %1133 }
0x1016   :  { %v1136_v46 = vmul.f32 %v1134_v44, %v1128_v45 }
0x1018   :  { %1138 = vrot.lane.b32.xlu0 %v1136_v46, %s8403_s3 }
0x108a   :  { %v1139_v49 = vpop.permute.xlu0 %1138 }
0x108b   :  { %v8933_v51 = vadd.f32 %v1139_v49, %v1131_v48 }
0x108d   :  { %7366 = vtanh.f32 %v8933_v51 }
0x1093   :  { %v7367_v52 = vpop.eup %7366 }
0x1094   :  { %1144 = vrot.lane.b32.xlu2 %v7367_v52, %s8403_s3 }
0x10ee   :  { %v1145_v53 = vpop.permute.xlu2 %1144 }
0x10ef   :  { %v8937_v54 = vmul.f32 %v1145_v53, %v1128_v45 }
0x10f1   :  { %1149 = vrot.lane.b32.xlu1 %v8937_v54, %s8404_s7 }
0x10f9   :  { %1174 = vrot.lane.b32.xlu1 %v8933_v51, %s8405_s20 }
0x1163   :  { %v1150_v56 = vpop.permute.xlu1 %1149 }
0x1164   :  { %7008 = vmatmul.msk.f32.vlgmr.msrb.gmra.mxu1 %vm348_vm9, %v1150_v56  ;;  %7012 = vmatmul.msk.f32.vlgmr.msrb.gmra.mxu3 %vm348_vm9, %v1150_v56 }
0x1165   :  { %7029 = vmatpush.msk.msrb.mxu3 %vm352_vm0, %v8677_v30  ;;  %7025 = vmatpush.msk.msrb.mxu1 %vm352_vm0, %v8626_v3 }
0x1167   :  { %1522 = vmatpush.msrb.mxu3 %v8681_v31  ;;  %1456 = vmatpush.msrb.mxu1 %v8631_v4 }
0x1169   :  { %1523 = vmatpush.msrb.mxu3 %v8686_v33  ;;  %1457 = vmatpush.msrb.mxu1 %v8648_v8 }
0x116b   :  { %v1175_v25 = vpop.permute.xlu1 %1174 }
0x116c   :  { %7010 = vmatmul.msk.f32.vlgmr.msrb.gmra.mxu2 %vm348_vm9, %v1175_v25 }
0x116d   :  { %7027 = vmatpush.msk.msrb.mxu2 %vm352_vm0, %v8609_v0 }
0x116f   :  { %1476 = vmatpush.msrb.mxu2 %v8614_v1 }
0x1171   :  { %1477 = vmatpush.msrb.mxu2 %v8621_v2 }
0x1174   :  { %7019 = vmatmul.msk.f32.vlgmr.msra.gmra.mxu2 %vm348_vm9, %v1150_v56 }
0x1175   :  { %7036 = vmatpush.msk.msra.mxu2 %vm352_vm0, %v8723_v14 }
0x1177   :  { %1632 = vmatpush.msra.mxu2 %v8725_v16 }
0x1179   :  { %1633 = vmatpush.msra.mxu2 %v8733_v19 }
0x11e7   :  { %v1215_v3 = vpop.f32.mrf.mxu3 }
0x11ef   :  { %v1195_v4 = vpop.f32.mrf.mxu2 }
0x11f0   :  { %v1216_v8 = vadd.f32 %v1215_v3, %v1195_v4 }
0x11f2   :  { %v1219_v30 = vrot.slane %v1216_v8, 1  ;;  %v1220_v31 = vperm.slane %v1216_v8, 0 }
0x11f4   :  { %v1221_v33 = vperm.slane %v1219_v30, 0  ;;  %v1224_v0 = vadd.f32 %v1220_v31, %v8661_v15 }
0x11f6   :  { %v1225_v1 = vadd.f32 %v1221_v33, %v8664_v18  ;;  %7368 = vtanh.f32 %v1224_v0 }
0x11f8   :  { %7370 = vtanh.f32 %v1225_v1 }
0x11fc   :  { %v7369_v2 = vpop.eup %7368 }
0x11fd   :  { %v1228_v58 = vmul.f32 %v7369_v2, %v8671_v23 }
0x11fe   :  { %v7371_v62 = vpop.eup %7370 }
0x11ff   :  { %v1230_v5 = vsel %vm414_vm2, %v1228_v58, 0.0  ;;  %v1229_v37 = vmul.f32 %v7371_v62, %v8671_v23  ;;  %v8979_v23 = vpop.f32.mrf.mxu1 }
0x1200   :  { %1231 = vadd.xlane.f32.xlu0 %v1230_v5 }
0x1201   :  { %v1233_v6 = vsel %vm414_vm2, %v1229_v37, 0.0 }
0x1202   :  { %1234 = vadd.xlane.f32.xlu1 %v1233_v6 }
0x1273   :  { %v1232_v7 = vpop.xlane.xlu0 %1231 }
0x1274   :  { %v1238_v10 = vperm.slane %v1232_v7, %v8696_v35 }
0x1275   :  { %v1235_v13 = vpop.xlane.xlu1 %1234 }
0x1276   :  { %v1242_v20 = vmul.f32 %v1238_v10, %v8708_v41  ;;  %v1239_v21 = vperm.slane %v1235_v13, %v8696_v35  ;;  %v1261_v41 = vpop.f32.mrf.mxu0 }
0x1278   :  { %v1243_v26 = vmul.f32 %v1239_v21, %v8702_v38  ;;  %v1266_v28 = vrot.slane %v1242_v20, 3 }
0x127a   :  { %v1267_v57 = vrot.slane %v1243_v26, 2 }
0x127c   :  { %v1268_v34 = vsel %vm457_vm3, %v1267_v57, %v1266_v28 }
0x127d   :  { %7016 = vmatmul.msk.f32.vlgmr.msra.gmra.mxu1 %vm459_vm4, %v1268_v34 }
0x127e   :  { %7034 = vmatpush.msk.msra.mxu1 %vm352_vm0, %v8727_v17 }
0x1280   :  { %1607 = vmatpush.msra.mxu1 %v8744_v22 }
0x1282   :  { %1608 = vmatpush.msra.mxu1 %v8746_v24 }
0x12fa   :  { %v1288_v36 = vpop.f32.mrf.mxu1 }
0x12fb   :  { %v1289_v39 = vadd.f32 %v1288_v36, %v1261_v41 }
0x12fd   :  { %v1291_v38 = vadd.f32 %v8714_v47, %v1289_v39 }
0x12ff   :  { %7372 = vtanh.f32 %v1291_v38  ;;  %v7017_v42 = vmul.f32 -1.442695, %v1291_v38 }
0x1301   :  { %7374 = vpow2.f32 %v7017_v42 }
0x1305   :  { %v7373_v40 = vpop.eup %7372 }
0x1306   :  { %1314 = vrot.lane.b32.xlu2 %v7373_v40, %s8402_s12 }
0x1307   :  { %v7375_v43 = vpop.eup %7374 }
0x1308   :  { %v1295_v12 = vadd.f32 1.0, %v7375_v43 }
0x130a   :  { %7376 = vrcp.f32 %v1295_v12  ;;  %v1307_v46 = vand.u32 2147483648, %v1295_v12  ;;  %vm1301_vm8 = vweird.f32 %v1295_v12  ;;  %v1305_v48 = vand.u32 2147483647, %v1295_v12 }
0x130c   :  { %v1308_v49 = vor.u32 1.1754944e-38, %v1307_v46  ;;  %vm1306_vm11 = vcmp.eq.f32.partialorder %v1305_v48, 8.507059e+37  ;;  %v9047_v46 = vld [vmem:[%s10927_s30 + $0x10] sm:$0xf]  ;;  %v9054_v48 = vld [vmem:[%s10927_s30 + $0x8] sm:$0xff] }
0x1310   :  { %v7377_v17 = vpop.eup %7376 }
0x1311   :  { %v1297_v22 = vmul.f32 %v7377_v17, %v1295_v12  ;;  %vm1302_vm7 = vweird.f32 %v7377_v17  ;;  %v9021_v12 = vld [vmem:[%s10928_s2 + $0x10] sm:$0xf] }
0x1312   :  { %vm1303_vm10 = vmor %vm1301_vm8, %vm1302_vm7 }
0x1313   :  { %v1298_v44 = vsub.f32 1.0, %v1297_v22  ;;  %v9031_v22 = vld [vmem:[%s10928_s2 + $0x8] sm:$0xff] }
0x1315   :  { %v1299_v24 = vmul.f32 %v7377_v17, %v1298_v44  ;;  %v9034_v44 = vld [vmem:[#allocation6] sm:$0xff] }
0x1317   :  { %v1300_v45 = vadd.f32 %v7377_v17, %v1299_v24  ;;  %v9040_v24 = vld [vmem:[%s10928_s2] sm:$0xff] }
0x1319   :  { %v1304_v47 = vsel %vm1303_vm10, %v7377_v17, %v1300_v45  ;;  %v9025_v17 = vld [vmem:[#allocation6 + $0x8] sm:$0xff] }
0x131a   :  { %v1309_v53 = vsel %vm1306_vm11, %v1308_v49, %v1304_v47  ;;  %v9060_v47 = vld [vmem:[%s10927_s30] sm:$0xff] }
0x131b   :  { %v1312_v25 = vmul.f32 %v1309_v53, %v8916_v55  ;;  %v1346_v55 = vpop.f32.mrf.mxu2 }
0x1360   :  { %v1315_v52 = vpop.permute.xlu2 %1314 }
0x1361   :  { %v1317_v56 = vmul.f32 %v1315_v52, %v1309_v53 }
0x1363   :  { %1319 = vrot.lane.b32.xlu2 %v1317_v56, %s8403_s3 }
0x13bd   :  { %v1320_v3 = vpop.permute.xlu2 %1319 }
0x13be   :  { %v8985_v4 = vadd.f32 %v1320_v3, %v1312_v25 }
0x13c0   :  { %7378 = vtanh.f32 %v8985_v4 }
0x13c6   :  { %v7379_v8 = vpop.eup %7378 }
0x13c7   :  { %1325 = vrot.lane.b32.xlu2 %v7379_v8, %s8403_s3 }
0x1421   :  { %v1326_v30 = vpop.permute.xlu2 %1325 }
0x1422   :  { %v1328_v31 = vmul.f32 %v1326_v30, %v1309_v53 }
0x1424   :  { %1350 = vrot.lane.b32.xlu2 %v1328_v31, %s8404_s7 }
0x147e   :  { %v1351_v33 = vpop.permute.xlu2 %1350 }
0x147f   :  { %7021 = vmatmul.msk.f32.vlgmr.msra.gmra.mxu3 %vm348_vm9, %v1351_v33 }
0x1480   :  { %7039 = vmatpush.msk.msra.mxu3 %vm352_vm0, %v8777_v59 }
0x1482   :  { %1695 = vmatpush.msra.mxu3 %v8782_v60 }
0x1484   :  { %1696 = vmatpush.msra.mxu3 %v8791_v61 }
0x1487   :  { %7030 = vmatmul.msk.f32.vlgmr.msrb.gmra.mxu3 %vm348_vm9, %v1351_v33 }
0x1488   :  { %7047 = vmatpush.msk.msrb.mxu3 %vm352_vm0, %v8684_v32 }
0x1502   :  { %v1371_v0 = vpop.f32.mrf.mxu3 }
0x1503   :  { %v1372_v1 = vadd.f32 %v1371_v0, %v1346_v55 }
0x1505   :  { %v1374_v2 = vadd.f32 %v8763_v27, %v1372_v1 }
0x1507   :  { %7380 = vtanh.f32 %v1374_v2  ;;  %v7022_v62 = vmul.f32 -1.442695, %v1374_v2 }
0x1509   :  { %7382 = vpow2.f32 %v7022_v62  ;;  %v9083_v62 = vld [vmem:[%s10933_s6] sm:$0xff] }
0x150d   :  { %v7381_v58 = vpop.eup %7380 }
0x150e   :  { %1397 = vrot.lane.b32.xlu2 %v7381_v58, %s8402_s12 }
0x150f   :  { %v7383_v5 = vpop.eup %7382 }
0x1510   :  { %v1378_v37 = vadd.f32 1.0, %v7383_v5 }
0x1512   :  { %7384 = vrcp.f32 %v1378_v37  ;;  %v1390_v32 = vand.u32 2147483648, %v1378_v37  ;;  %vm1384_vm13 = vweird.f32 %v1378_v37  ;;  %v1388_v21 = vand.u32 2147483647, %v1378_v37 }
0x1514   :  { %v1391_v26 = vor.u32 1.1754944e-38, %v1390_v32  ;;  %vm1389_vm15 = vcmp.eq.f32.partialorder %v1388_v21, 8.507059e+37  ;;  %v9095_v32 = vld [vmem:[#allocation10 + $0x10] sm:$0xf]  ;;  %v9099_v21 = vld [vmem:[#allocation10 + $0x8] sm:$0xff] }
0x1518   :  { %v7385_v6 = vpop.eup %7384 }
0x1519   :  { %v1380_v7 = vmul.f32 %v7385_v6, %v1378_v37  ;;  %vm1385_vm12 = vweird.f32 %v7385_v6 }
0x151a   :  { %vm1386_vm14 = vmor %vm1384_vm13, %vm1385_vm12 }
0x151b   :  { %v1381_v10 = vsub.f32 1.0, %v1380_v7 }
0x151d   :  { %v1382_v13 = vmul.f32 %v7385_v6, %v1381_v10 }
0x151f   :  { %v1383_v20 = vadd.f32 %v7385_v6, %v1382_v13 }
0x1521   :  { %v1387_v27 = vsel %vm1386_vm14, %v7385_v6, %v1383_v20  ;;  %v9090_v6 = vld [vmem:[%s10933_s6 + $0x8] sm:$0xff] }
0x1522   :  { %v1392_v57 = vsel %vm1389_vm15, %v1391_v26, %v1387_v27  ;;  %v9102_v27 = vld [vmem:[#allocation10] sm:$0xff] }
0x1523   :  { %v1395_v41 = vmul.f32 %v1392_v57, %v8933_v51  ;;  %v9014_v51 = vld [vmem:[#allocation6 + $0x10] sm:$0xf] }
0x1568   :  { %v1398_v28 = vpop.permute.xlu2 %1397 }
0x1569   :  { %v1400_v34 = vmul.f32 %v1398_v28, %v1392_v57  ;;  %v1525_v28 = vpop.f32.mrf.mxu3 }
0x156b   :  { %1402 = vrot.lane.b32.xlu0 %v1400_v34, %s8403_s3 }
0x15dd   :  { %v1403_v36 = vpop.permute.xlu0 %1402 }
0x15de   :  { %v9002_v39 = vadd.f32 %v1403_v36, %v1395_v41  ;;  %v9107_v41 = vld [vmem:[#allocation7] ss:$0 sm:$0xff] }
0x15e0   :  { %7386 = vtanh.f32 %v9002_v39 }
0x15e6   :  { %v7387_v38 = vpop.eup %7386 }
0x15e7   :  { %1408 = vrot.lane.b32.xlu1 %v7387_v38, %s8403_s3 }
0x1659   :  { %v1409_v40 = vpop.permute.xlu1 %1408 }
0x165a   :  { %v9006_v42 = vmul.f32 %v1409_v40, %v1392_v57 }
0x165c   :  { %1413 = vrot.lane.b32.xlu2 %v9006_v42, %s8404_s7 }
0x1664   :  { %1438 = vrot.lane.b32.xlu2 %v9002_v39, %s8405_s20 }
0x16b6   :  { %v1414_v43 = vpop.permute.xlu2 %1413 }
0x16b7   :  { %7024 = vmatmul.msk.f32.vlgmr.msrb.gmra.mxu0 %vm348_vm9, %v1414_v43  ;;  %7028 = vmatmul.msk.f32.vlgmr.msrb.gmra.mxu2 %vm348_vm9, %v1414_v43 }
0x16b8   :  { %7045 = vmatpush.msk.msrb.mxu2 %vm352_vm0, %v9014_v51  ;;  %7041 = vmatpush.msk.msrb.mxu0 %vm352_vm0, %v9021_v12 }
0x16ba   :  { %1786 = vmatpush.msrb.mxu2 %v9025_v17  ;;  %1720 = vmatpush.msrb.mxu0 %v9031_v22 }
0x16bc   :  { %1787 = vmatpush.msrb.mxu2 %v9034_v44  ;;  %1721 = vmatpush.msrb.mxu0 %v9040_v24 }
0x16be   :  { %v1439_v45 = vpop.permute.xlu2 %1438 }
0x16bf   :  { %7026 = vmatmul.msk.f32.vlgmr.msrb.gmra.mxu1 %vm348_vm9, %v1439_v45 }
0x16c0   :  { %7043 = vmatpush.msk.msrb.mxu1 %vm352_vm0, %v9047_v46 }
0x16c2   :  { %1740 = vmatpush.msrb.mxu1 %v9054_v48 }
0x16c4   :  { %1741 = vmatpush.msrb.mxu1 %v9060_v47 }
0x16c7   :  { %7035 = vmatmul.msk.f32.vlgmr.msra.gmra.mxu1 %vm348_vm9, %v1414_v43 }
0x16c8   :  { %7052 = vmatpush.msk.msra.mxu1 %vm352_vm0, %v8723_v14  ;;  %v9073_v14 = vld [vmem:[%s10932_s13] ss:$0 sm:$0xff] }
0x16ca   :  { %1896 = vmatpush.msra.mxu1 %v8725_v16 }
0x16cc   :  { %1897 = vmatpush.msra.mxu1 %v8733_v19 }
0x1734   :  { %v9105_v26 = vpop.f32.mrf.mxu0 }
0x173a   :  { %v1479_v49 = vpop.f32.mrf.mxu2 }
0x173c   :  { %v1459_v52 = vpop.f32.mrf.mxu1 }
0x173d   :  { %v1480_v53 = vadd.f32 %v1479_v49, %v1459_v52 }
0x173f   :  { %v1483_v56 = vrot.slane %v1480_v53, 1  ;;  %v1484_v25 = vperm.slane %v1480_v53, 0 }
0x1741   :  { %v1485_v3 = vperm.slane %v1483_v56, 0  ;;  %v1488_v8 = vadd.f32 %v1484_v25, %v8661_v15 }
0x1743   :  { %v1489_v30 = vadd.f32 %v1485_v3, %v8664_v18  ;;  %7388 = vtanh.f32 %v1488_v8 }
0x1745   :  { %7390 = vtanh.f32 %v1489_v30 }
0x1749   :  { %v7389_v31 = vpop.eup %7388 }
0x174a   :  { %v1492_v16 = vmul.f32 %v9073_v14, %v7389_v31 }
0x174b   :  { %v7391_v19 = vpop.eup %7390 }
0x174c   :  { %v1494_v33 = vsel %vm414_vm2, %v1492_v16, 0.0  ;;  %v1493_v55 = vmul.f32 %v9073_v14, %v7391_v19 }
0x174d   :  { %1495 = vadd.xlane.f32.xlu0 %v1494_v33 }
0x174e   :  { %v1497_v0 = vsel %vm414_vm2, %v1493_v55, 0.0 }
0x174f   :  { %1498 = vadd.xlane.f32.xlu2 %v1497_v0 }
0x17c0   :  { %v1496_v1 = vpop.xlane.xlu0 %1495 }
0x17c1   :  { %v1502_v2 = vperm.slane %v1496_v1, %v8696_v35 }
0x17c2   :  { %v1499_v58 = vpop.xlane.xlu2 %1498 }
0x17c3   :  { %v1506_v5 = vmul.f32 %v9083_v62, %v1502_v2  ;;  %v1503_v37 = vperm.slane %v1499_v58, %v8696_v35 }
0x17c5   :  { %v1507_v7 = vmul.f32 %v9090_v6, %v1503_v37  ;;  %v1530_v10 = vrot.slane %v1506_v5, 4 }
0x17c7   :  { %v1531_v13 = vrot.slane %v1507_v7, 3  ;;  %v1610_v7 = vpop.f32.mrf.mxu1 }
0x17c9   :  { %v1532_v20 = vsel %vm457_vm3, %v1531_v13, %v1530_v10 }
0x17ca   :  { %7032 = vmatmul.msk.f32.vlgmr.msra.gmra.mxu0 %vm459_vm4, %v1532_v20  ;;  %v9128_v20 = vld [vmem:[#allocation12] ss:$0 sm:$0xff] }
0x17cb   :  { %7050 = vmatpush.msk.msra.mxu0 %vm352_vm0, %v9095_v32 }
0x17cd   :  { %1871 = vmatpush.msra.mxu0 %v9099_v21 }
0x17cf   :  { %1872 = vmatpush.msra.mxu0 %v9102_v27 }
0x1847   :  { %v1552_v57 = vpop.f32.mrf.mxu0 }
0x1848   :  { %v1553_v34 = vadd.f32 %v1552_v57, %v1525_v28 }
0x184a   :  { %v1555_v36 = vadd.f32 %v9107_v41, %v1553_v34 }
0x184c   :  { %7392 = vtanh.f32 %v1555_v36  ;;  %v7033_v40 = vmul.f32 -1.442695, %v1555_v36 }
0x184e   :  { %7394 = vpow2.f32 %v7033_v40 }
0x1852   :  { %v7393_v38 = vpop.eup %7392 }
0x1853   :  { %1578 = vrot.lane.b32.xlu1 %v7393_v38, %s8402_s12 }
0x1854   :  { %v7395_v43 = vpop.eup %7394 }
0x1855   :  { %v1559_v45 = vadd.f32 1.0, %v7395_v43 }
0x1857   :  { %7396 = vrcp.f32 %v1559_v45  ;;  %v1571_v3 = vand.u32 2147483648, %v1559_v45  ;;  %vm1565_vm5 = vweird.f32 %v1559_v45  ;;  %v1569_v8 = vand.u32 2147483647, %v1559_v45 }
0x1859   :  { %v1572_v31 = vor.u32 1.1754944e-38, %v1571_v3  ;;  %vm1570_vm7 = vcmp.eq.f32.partialorder %v1569_v8, 8.507059e+37 }
0x185d   :  { %v7397_v49 = vpop.eup %7396 }
0x185e   :  { %v1561_v52 = vmul.f32 %v7397_v49, %v1559_v45  ;;  %vm1566_vm1 = vweird.f32 %v7397_v49 }
0x185f   :  { %vm1567_vm6 = vmor %vm1565_vm5, %vm1566_vm1 }
0x1860   :  { %v1562_v53 = vsub.f32 1.0, %v1561_v52 }
0x1862   :  { %v1563_v56 = vmul.f32 %v7397_v49, %v1562_v53 }
0x1864   :  { %v1564_v25 = vadd.f32 %v7397_v49, %v1563_v56 }
0x1866   :  { %v1568_v30 = vsel %vm1567_vm6, %v7397_v49, %v1564_v25 }
0x1867   :  { %v1573_v19 = vsel %vm1570_vm7, %v1572_v31, %v1568_v30 }
0x1868   :  { %v1576_v55 = vmul.f32 %v1573_v19, %v8985_v4  ;;  %v9124_v4 = vld [vmem:[#allocation4] sm:$0xf] }
0x18c5   :  { %v1579_v16 = vpop.permute.xlu1 %1578 }
0x18c6   :  { %v1581_v33 = vmul.f32 %v1579_v16, %v1573_v19 }
0x18c8   :  { %1583 = vrot.lane.b32.xlu1 %v1581_v33, %s8403_s3 }
0x193a   :  { %v1584_v0 = vpop.permute.xlu1 %1583 }
0x193b   :  { %v9113_v1 = vadd.f32 %v1584_v0, %v1576_v55  ;;  %v9160_v0 = vld [vmem:[#allocation9 + $0x10] sm:$0xf] }
0x193d   :  { %7398 = vtanh.f32 %v9113_v1 }
0x1943   :  { %v7399_v2 = vpop.eup %7398 }
0x1944   :  { %1589 = vrot.lane.b32.xlu1 %v7399_v2, %s8403_s3  ;;  %v9164_v2 = vld [vmem:[#allocation9 + $0x8] sm:$0xff] }
0x19b6   :  { %v1590_v58 = vpop.permute.xlu1 %1589 }
0x19b7   :  { %v1592_v5 = vmul.f32 %v1590_v58, %v1573_v19  ;;  %v9167_v58 = vld [vmem:[#allocation9] sm:$0xff] }
0x19b9   :  { %1614 = vrot.lane.b32.xlu1 %v1592_v5, %s8404_s7 }
0x1a2b   :  { %v1615_v37 = vpop.permute.xlu1 %1614 }
0x1a2c   :  { %7037 = vmatmul.msk.f32.vlgmr.msra.gmra.mxu2 %vm348_vm9, %v1615_v37 }
0x1a2d   :  { %7055 = vmatpush.msk.msra.mxu2 %vm352_vm0, %v8777_v59 }
0x1a2f   :  { %1959 = vmatpush.msra.mxu2 %v8782_v60 }
0x1a31   :  { %1960 = vmatpush.msra.mxu2 %v8791_v61 }
0x1a34   :  { %7046 = vmatmul.msk.f32.vlgmr.msrb.gmra.mxu2 %vm348_vm9, %v1615_v37 }
0x1a35   :  { %7063 = vmatpush.msk.msrb.mxu2 %vm352_vm0, %v9124_v4 }
0x1aaf   :  { %v1635_v10 = vpop.f32.mrf.mxu2 }
0x1ab0   :  { %v1636_v13 = vadd.f32 %v1635_v10, %v1610_v7 }
0x1ab2   :  { %v1638_v28 = vadd.f32 %v9128_v20, %v1636_v13 }
0x1ab4   :  { %7400 = vtanh.f32 %v1638_v28  ;;  %v7038_v60 = vmul.f32 -1.442695, %v1638_v28 }
0x1ab6   :  { %7402 = vpow2.f32 %v7038_v60 }
0x1aba   :  { %v7401_v59 = vpop.eup %7400 }
0x1abb   :  { %1661 = vrot.lane.b32.xlu1 %v7401_v59, %s8402_s12 }
0x1abc   :  { %v7403_v61 = vpop.eup %7402 }
0x1abd   :  { %v1642_v57 = vadd.f32 1.0, %v7403_v61 }
0x1abf   :  { %7404 = vrcp.f32 %v1642_v57  ;;  %v1654_v45 = vand.u32 2147483648, %v1642_v57  ;;  %vm1648_vm10 = vweird.f32 %v1642_v57  ;;  %v1652_v49 = vand.u32 2147483647, %v1642_v57 }
0x1ac1   :  { %v1655_v53 = vor.u32 1.1754944e-38, %v1654_v45  ;;  %vm1653_vm12 = vcmp.eq.f32.partialorder %v1652_v49, 8.507059e+37 }
0x1ac5   :  { %v7405_v34 = vpop.eup %7404 }
0x1ac6   :  { %v1644_v36 = vmul.f32 %v7405_v34, %v1642_v57  ;;  %vm1649_vm8 = vweird.f32 %v7405_v34 }
0x1ac7   :  { %vm1650_vm11 = vmor %vm1648_vm10, %vm1649_vm8 }
0x1ac8   :  { %v1645_v38 = vsub.f32 1.0, %v1644_v36 }
0x1aca   :  { %v1646_v40 = vmul.f32 %v7405_v34, %v1645_v38 }
0x1acc   :  { %v1647_v43 = vadd.f32 %v7405_v34, %v1646_v40 }
0x1ace   :  { %v1651_v52 = vsel %vm1650_vm11, %v7405_v34, %v1647_v43 }
0x1acf   :  { %v1656_v25 = vsel %vm1653_vm12, %v1655_v53, %v1651_v52 }
0x1ad0   :  { %v1659_v8 = vmul.f32 %v1656_v25, %v9002_v39 }
0x1b2d   :  { %v1662_v56 = vpop.permute.xlu1 %1661 }
0x1b2e   :  { %v1664_v3 = vmul.f32 %v1662_v56, %v1656_v25 }
0x1b30   :  { %1666 = vrot.lane.b32.xlu0 %v1664_v3, %s8403_s3 }
0x1ba2   :  { %v1667_v30 = vpop.permute.xlu0 %1666 }
0x1ba3   :  { %v9134_v31 = vadd.f32 %v1667_v30, %v1659_v8 }
0x1ba5   :  { %7406 = vtanh.f32 %v9134_v31 }
0x1bab   :  { %v7407_v16 = vpop.eup %7406 }
0x1bac   :  { %1672 = vrot.lane.b32.xlu2 %v7407_v16, %s8403_s3  ;;  %v1789_v16 = vpop.f32.mrf.mxu2 }
0x1c06   :  { %v1673_v19 = vpop.permute.xlu2 %1672 }
0x1c07   :  { %v9138_v33 = vmul.f32 %v1673_v19, %v1656_v25 }
0x1c09   :  { %1677 = vrot.lane.b32.xlu1 %v9138_v33, %s8404_s7 }
0x1c11   :  { %1702 = vrot.lane.b32.xlu1 %v9134_v31, %s8405_s20 }
0x1c7b   :  { %v1678_v55 = vpop.permute.xlu1 %1677 }
0x1c7c   :  { %7040 = vmatmul.msk.f32.vlgmr.msra.gmra.mxu3 %vm348_vm9, %v1678_v55  ;;  %7044 = vmatmul.msk.f32.vlgmr.msrb.gmra.mxu1 %vm348_vm9, %v1678_v55 }
0x1c7d   :  { %7061 = vmatpush.msk.msrb.mxu1 %vm352_vm0, %v9014_v51  ;;  %7057 = vmatpush.msk.msra.mxu3 %vm352_vm0, %v9021_v12 }
0x1c7f   :  { %2050 = vmatpush.msrb.mxu1 %v9025_v17  ;;  %1984 = vmatpush.msra.mxu3 %v9031_v22 }
0x1c81   :  { %2051 = vmatpush.msrb.mxu1 %v9034_v44  ;;  %1985 = vmatpush.msra.mxu3 %v9040_v24 }
0x1c83   :  { %v1703_v39 = vpop.permute.xlu1 %1702 }
0x1c84   :  { %7042 = vmatmul.msk.f32.vlgmr.msrb.gmra.mxu0 %vm348_vm9, %v1703_v39 }
0x1c85   :  { %7059 = vmatpush.msk.msrb.mxu0 %vm352_vm0, %v9047_v46 }
0x1c87   :  { %2004 = vmatpush.msrb.mxu0 %v9054_v48 }
0x1c89   :  { %2005 = vmatpush.msrb.mxu0 %v9060_v47 }
0x1c8c   :  { %7051 = vmatmul.msk.f32.vlgmr.msra.gmra.mxu0 %vm348_vm9, %v1678_v55 }
0x1c8d   :  { %7068 = vmatpush.msk.msra.mxu0 %vm352_vm0, %v9160_v0 }
0x1c8f   :  { %2160 = vmatpush.msra.mxu0 %v9164_v2 }
0x1c91   :  { %2161 = vmatpush.msra.mxu0 %v9167_v58 }
0x1cf9   :  { %v1743_v5 = vpop.f32.mrf.mxu1 }
0x1cff   :  { %v9186_v30 = vpop.f32.mrf.mxu3 }
0x1d01   :  { %v1723_v37 = vpop.f32.mrf.mxu0 }
0x1d02   :  { %v1744_v7 = vadd.f32 %v1743_v5, %v1723_v37 }
0x1d04   :  { %v1747_v10 = vrot.slane %v1744_v7, 1  ;;  %v1748_v13 = vperm.slane %v1744_v7, 0 }
0x1d06   :  { %v1749_v28 = vperm.slane %v1747_v10, 0  ;;  %v1752_v59 = vadd.f32 %v1748_v13, %v8661_v15 }
0x1d08   :  { %v1753_v60 = vadd.f32 %v1749_v28, %v8664_v18  ;;  %7408 = vtanh.f32 %v1752_v59 }
0x1d0a   :  { %7410 = vtanh.f32 %v1753_v60 }
0x1d0e   :  { %v7409_v61 = vpop.eup %7408 }
0x1d0f   :  { %v1756_v57 = vmul.f32 %v9073_v14, %v7409_v61 }
0x1d10   :  { %v7411_v34 = vpop.eup %7410 }
0x1d11   :  { %v1758_v36 = vsel %vm414_vm2, %v1756_v57, 0.0  ;;  %v1757_v38 = vmul.f32 %v9073_v14, %v7411_v34 }
0x1d12   :  { %1759 = vadd.xlane.f32.xlu0 %v1758_v36 }
0x1d13   :  { %v1761_v40 = vsel %vm414_vm2, %v1757_v38, 0.0 }
0x1d14   :  { %1762 = vadd.xlane.f32.xlu1 %v1761_v40 }
0x1d85   :  { %v1760_v43 = vpop.xlane.xlu0 %1759 }
0x1d86   :  { %v1766_v45 = vperm.slane %v1760_v43, %v8696_v35 }
0x1d87   :  { %v1763_v49 = vpop.xlane.xlu1 %1762 }
0x1d88   :  { %v1770_v52 = vmul.f32 %v9083_v62, %v1766_v45  ;;  %v1767_v53 = vperm.slane %v1763_v49, %v8696_v35 }
0x1d8a   :  { %v1771_v56 = vmul.f32 %v9090_v6, %v1767_v53  ;;  %v1794_v25 = vrot.slane %v1770_v52, 5 }
0x1d8c   :  { %v1795_v3 = vrot.slane %v1771_v56, 4 }
0x1d8e   :  { %v1796_v8 = vsel %vm457_vm3, %v1795_v3, %v1794_v25 }
0x1d8f   :  { %7048 = vmatmul.msk.f32.vlgmr.msrb.gmra.mxu3 %vm459_vm4, %v1796_v8 }
0x1d90   :  { %7066 = vmatpush.msk.msrb.mxu3 %vm352_vm0, %v9095_v32 }
0x1d92   :  { %2135 = vmatpush.msrb.mxu3 %v9099_v21 }
0x1d94   :  { %2136 = vmatpush.msrb.mxu3 %v9102_v27 }
0x1e12   :  { %v1816_v19 = vpop.f32.mrf.mxu3 }
0x1e13   :  { %v1817_v55 = vadd.f32 %v1816_v19, %v1789_v16  ;;  %v9201_v16 = vld [vmem:[%s10934_s8 + $0x10] sm:$0xf]  ;;  %v9214_v19 = vld [vmem:[%s10934_s8] sm:$0xff] }
0x1e15   :  { %v1819_v39 = vadd.f32 %v9107_v41, %v1817_v55  ;;  %v1874_v55 = vpop.f32.mrf.mxu0 }
0x1e17   :  { %7412 = vtanh.f32 %v1819_v39  ;;  %v7049_v37 = vmul.f32 -1.442695, %v1819_v39 }
0x1e19   :  { %7414 = vpow2.f32 %v7049_v37 }
0x1e1d   :  { %v7413_v5 = vpop.eup %7412 }
0x1e1e   :  { %1842 = vrot.lane.b32.xlu2 %v7413_v5, %s8402_s12 }
0x1e1f   :  { %v7415_v7 = vpop.eup %7414 }
0x1e20   :  { %v1823_v10 = vadd.f32 1.0, %v7415_v7 }
0x1e22   :  { %7416 = vrcp.f32 %v1823_v10  ;;  %v1835_v57 = vand.u32 2147483648, %v1823_v10  ;;  %vm1829_vm14 = vweird.f32 %v1823_v10  ;;  %v1833_v34 = vand.u32 2147483647, %v1823_v10 }
0x1e24   :  { %v1836_v38 = vor.u32 1.1754944e-38, %v1835_v57  ;;  %vm1834_vm1 = vcmp.eq.f32.partialorder %v1833_v34, 8.507059e+37 }
0x1e28   :  { %v7417_v13 = vpop.eup %7416 }
0x1e29   :  { %v1825_v28 = vmul.f32 %v7417_v13, %v1823_v10  ;;  %vm1830_vm13 = vweird.f32 %v7417_v13 }
0x1e2a   :  { %vm1831_vm15 = vmor %vm1829_vm14, %vm1830_vm13 }
0x1e2b   :  { %v1826_v59 = vsub.f32 1.0, %v1825_v28 }
0x1e2d   :  { %v1827_v60 = vmul.f32 %v7417_v13, %v1826_v59 }
0x1e2f   :  { %v1828_v61 = vadd.f32 %v7417_v13, %v1827_v60 }
0x1e31   :  { %v1832_v36 = vsel %vm1831_vm15, %v7417_v13, %v1828_v61 }
0x1e32   :  { %v1837_v43 = vsel %vm1834_vm1, %v1836_v38, %v1832_v36 }
0x1e33   :  { %v1840_v49 = vmul.f32 %v1837_v43, %v9113_v1  ;;  %v9208_v1 = vld [vmem:[%s10934_s8 + $0x8] sm:$0xff] }
0x1e78   :  { %v1843_v40 = vpop.permute.xlu2 %1842 }
0x1e79   :  { %v1845_v45 = vmul.f32 %v1843_v40, %v1837_v43 }
0x1e7b   :  { %1847 = vrot.lane.b32.xlu2 %v1845_v45, %s8403_s3 }
0x1ed5   :  { %v1848_v52 = vpop.permute.xlu2 %1847 }
0x1ed6   :  { %v9192_v53 = vadd.f32 %v1848_v52, %v1840_v49 }
0x1ed8   :  { %7418 = vtanh.f32 %v9192_v53 }
0x1ede   :  { %v7419_v56 = vpop.eup %7418 }
0x1edf   :  { %1853 = vrot.lane.b32.xlu2 %v7419_v56, %s8403_s3 }
0x1f39   :  { %v1854_v25 = vpop.permute.xlu2 %1853 }
0x1f3a   :  { %v1856_v3 = vmul.f32 %v1854_v25, %v1837_v43 }
0x1f3c   :  { %1878 = vrot.lane.b32.xlu2 %v1856_v3, %s8404_s7 }
0x1f96   :  { %v1879_v8 = vpop.permute.xlu2 %1878 }
0x1f97   :  { %7053 = vmatmul.msk.f32.vlgmr.msra.gmra.mxu1 %vm348_vm9, %v1879_v8 }
0x1f98   :  { %7071 = vmatpush.msk.msra.mxu1 %vm352_vm0, %v9201_v16 }
0x1f9a   :  { %2223 = vmatpush.msra.mxu1 %v9208_v1 }
0x1f9c   :  { %2224 = vmatpush.msra.mxu1 %v9214_v19 }
0x1f9f   :  { %7062 = vmatmul.msk.f32.vlgmr.msrb.gmra.mxu1 %vm348_vm9, %v1879_v8 }
0x1fa0   :  { %7079 = vmatpush.msk.msrb.mxu1 %vm352_vm0, %v9124_v4 }
0x2014   :  { %v1899_v39 = vpop.f32.mrf.mxu1 }
0x2015   :  { %v1900_v5 = vadd.f32 %v1899_v39, %v1874_v55 }
0x2017   :  { %v1902_v37 = vadd.f32 %v9128_v20, %v1900_v5 }
0x2019   :  { %7420 = vtanh.f32 %v1902_v37  ;;  %v7054_v10 = vmul.f32 -1.442695, %v1902_v37 }
0x201b   :  { %7422 = vpow2.f32 %v7054_v10 }
0x201f   :  { %v7421_v7 = vpop.eup %7420 }
0x2020   :  { %1925 = vrot.lane.b32.xlu2 %v7421_v7, %s8402_s12 }
0x2021   :  { %v7423_v13 = vpop.eup %7422 }
0x2022   :  { %v1906_v28 = vadd.f32 1.0, %v7423_v13 }
0x2024   :  { %7424 = vrcp.f32 %v1906_v28  ;;  %v1918_v4 = vand.u32 2147483648, %v1906_v28  ;;  %vm1912_vm6 = vweird.f32 %v1906_v28  ;;  %v1916_v36 = vand.u32 2147483647, %v1906_v28 }
0x2026   :  { %v1919_v40 = vor.u32 1.1754944e-38, %v1918_v4  ;;  %vm1917_vm8 = vcmp.eq.f32.partialorder %v1916_v36, 8.507059e+37  ;;  %v2053_v36 = vpop.f32.mrf.mxu1 }
0x202a   :  { %v7425_v59 = vpop.eup %7424 }
0x202b   :  { %v1908_v60 = vmul.f32 %v7425_v59, %v1906_v28  ;;  %vm1913_vm5 = vweird.f32 %v7425_v59 }
0x202c   :  { %vm1914_vm7 = vmor %vm1912_vm6, %vm1913_vm5 }
0x202d   :  { %v1909_v61 = vsub.f32 1.0, %v1908_v60 }
0x202f   :  { %v1910_v57 = vmul.f32 %v7425_v59, %v1909_v61 }
0x2031   :  { %v1911_v34 = vadd.f32 %v7425_v59, %v1910_v57 }
0x2033   :  { %v1915_v38 = vsel %vm1914_vm7, %v7425_v59, %v1911_v34 }
0x2034   :  { %v1920_v45 = vsel %vm1917_vm8, %v1919_v40, %v1915_v38 }
0x2035   :  { %v1923_v52 = vmul.f32 %v1920_v45, %v9134_v31 }
0x207a   :  { %v1926_v43 = vpop.permute.xlu2 %1925 }
0x207b   :  { %v1928_v49 = vmul.f32 %v1926_v43, %v1920_v45 }
0x207d   :  { %1930 = vrot.lane.b32.xlu0 %v1928_v49, %s8403_s3 }
0x20ef   :  { %v1931_v56 = vpop.permute.xlu0 %1930 }
0x20f0   :  { %v9224_v25 = vadd.f32 %v1931_v56, %v1923_v52 }
0x20f2   :  { %7426 = vtanh.f32 %v9224_v25  ;;  %1966 = vrot.lane.b32.xlu2 %v9224_v25, %s8405_s20 }
0x20f8   :  { %v7427_v3 = vpop.eup %7426 }
0x20f9   :  { %1936 = vrot.lane.b32.xlu1 %v7427_v3, %s8403_s3 }
0x214c   :  { %v1967_v8 = vpop.permute.xlu2 %1966 }
0x214d   :  { %7058 = vmatmul.msk.f32.vlgmr.msra.gmra.mxu3 %vm348_vm9, %v1967_v8 }
0x214e   :  { %7075 = vmatpush.msk.msra.mxu3 %vm352_vm0, %v9047_v46 }
0x2150   :  { %2268 = vmatpush.msra.mxu3 %v9054_v48 }
0x2152   :  { %2269 = vmatpush.msra.mxu3 %v9060_v47 }
0x216b   :  { %v1937_v31 = vpop.permute.xlu1 %1936 }
0x216c   :  { %v9235_v55 = vmul.f32 %v1937_v31, %v1920_v45 }
0x216e   :  { %1941 = vrot.lane.b32.xlu2 %v9235_v55, %s8404_s7 }
0x21c8   :  { %v1942_v39 = vpop.permute.xlu2 %1941 }
0x21c9   :  { %7056 = vmatmul.msk.f32.vlgmr.msra.gmra.mxu2 %vm348_vm9, %v1942_v39  ;;  %7060 = vmatmul.msk.f32.vlgmr.msrb.gmra.mxu0 %vm348_vm9, %v1942_v39 }
0x21ca   :  { %7067 = vmatmul.msk.f32.vlgmr.msrb.gmra.mxu3 %vm348_vm9, %v1942_v39  ;;  %7077 = vmatpush.msk.msrb.mxu0 %vm352_vm0, %v9014_v51 }
0x21cb   :  { %7073 = vmatpush.msk.msra.mxu2 %vm352_vm0, %v9021_v12  ;;  %7084 = vmatpush.msk.msrb.mxu3 %vm352_vm0, %v9160_v0 }
0x21cc   :  { %2314 = vmatpush.msrb.mxu0 %v9025_v17 }
0x21cd   :  { %2248 = vmatpush.msra.mxu2 %v9031_v22  ;;  %2424 = vmatpush.msrb.mxu3 %v9164_v2 }
0x21ce   :  { %2315 = vmatpush.msrb.mxu0 %v9034_v44 }
0x21cf   :  { %2249 = vmatpush.msra.mxu2 %v9040_v24  ;;  %2425 = vmatpush.msrb.mxu3 %v9167_v58 }
0x21d0   :  { %v1987_v46 = vpop.f32.mrf.mxu3 }
0x2246   :  { %v2007_v51 = vpop.f32.mrf.mxu0 }
0x2247   :  { %v2008_v48 = vadd.f32 %v2007_v51, %v1987_v46 }
0x2249   :  { %v2011_v47 = vrot.slane %v2008_v48, 1  ;;  %v2012_v12 = vperm.slane %v2008_v48, 0 }
0x224b   :  { %v2013_v5 = vperm.slane %v2011_v47, 0  ;;  %v2016_v0 = vadd.f32 %v2012_v12, %v8661_v15 }
0x224c   :  { %v9270_v4 = vpop.f32.mrf.mxu2 }
0x224d   :  { %v2017_v17 = vadd.f32 %v2013_v5, %v8664_v18  ;;  %7428 = vtanh.f32 %v2016_v0 }
0x224f   :  { %7430 = vtanh.f32 %v2017_v17 }
0x2253   :  { %v7429_v22 = vpop.eup %7428 }
0x2254   :  { %v2020_v2 = vmul.f32 %v9073_v14, %v7429_v22 }
0x2255   :  { %v7431_v44 = vpop.eup %7430 }
0x2256   :  { %v2022_v24 = vsel %vm414_vm2, %v2020_v2, 0.0  ;;  %v2021_v58 = vmul.f32 %v9073_v14, %v7431_v44 }
0x2257   :  { %2023 = vadd.xlane.f32.xlu2 %v2022_v24 }
0x2258   :  { %v2025_v37 = vsel %vm414_vm2, %v2021_v58, 0.0 }
0x2259   :  { %2026 = vadd.xlane.f32.xlu0 %v2025_v37 }
0x22ca   :  { %v2024_v7 = vpop.xlane.xlu2 %2023 }
0x22cb   :  { %v2030_v10 = vperm.slane %v2024_v7, %v8696_v35 }
0x22cc   :  { %v2027_v13 = vpop.xlane.xlu0 %2026 }
0x22cd   :  { %v2034_v28 = vmul.f32 %v9083_v62, %v2030_v10  ;;  %v2031_v59 = vperm.slane %v2027_v13, %v8696_v35 }
0x22cf   :  { %v2035_v60 = vmul.f32 %v9090_v6, %v2031_v59  ;;  %v2058_v61 = vrot.slane %v2034_v28, 6 }
0x22d1   :  { %v2059_v57 = vrot.slane %v2035_v60, 5 }
0x22d3   :  { %v2060_v34 = vsel %vm457_vm3, %v2059_v57, %v2058_v61 }
0x22d4   :  { %7064 = vmatmul.msk.f32.vlgmr.msrb.gmra.mxu2 %vm459_vm4, %v2060_v34 }
0x22d5   :  { %7082 = vmatpush.msk.msrb.mxu2 %vm352_vm0, %v9095_v32 }
0x22d7   :  { %2399 = vmatpush.msrb.mxu2 %v9099_v21 }
0x22d9   :  { %2400 = vmatpush.msrb.mxu2 %v9102_v27 }
0x2357   :  { %v2080_v38 = vpop.f32.mrf.mxu2 }
0x2358   :  { %v2081_v40 = vadd.f32 %v2080_v38, %v2053_v36 }
0x235a   :  { %v2083_v43 = vadd.f32 %v9107_v41, %v2081_v40 }
0x235c   :  { %7432 = vtanh.f32 %v2083_v43  ;;  %v7065_v49 = vmul.f32 -1.442695, %v2083_v43 }
0x235e   :  { %7434 = vpow2.f32 %v7065_v49 }
0x2362   :  { %v7433_v45 = vpop.eup %7432 }
0x2363   :  { %2106 = vrot.lane.b32.xlu1 %v7433_v45, %s8402_s12 }
0x2364   :  { %v7435_v52 = vpop.eup %7434 }
0x2365   :  { %v2087_v56 = vadd.f32 1.0, %v7435_v52 }
0x2367   :  { %7436 = vrcp.f32 %v2087_v56  ;;  %v2099_v31 = vand.u32 2147483648, %v2087_v56  ;;  %vm2093_vm11 = vweird.f32 %v2087_v56  ;;  %v2097_v39 = vand.u32 2147483647, %v2087_v56 }
0x2369   :  { %v2100_v51 = vor.u32 1.1754944e-38, %v2099_v31  ;;  %vm2098_vm13 = vcmp.eq.f32.partialorder %v2097_v39, 8.507059e+37 }
0x236d   :  { %v7437_v32 = vpop.eup %7436 }
0x236e   :  { %v2089_v21 = vmul.f32 %v7437_v32, %v2087_v56  ;;  %vm2094_vm10 = vweird.f32 %v7437_v32 }
0x236f   :  { %vm2095_vm12 = vmor %vm2093_vm11, %vm2094_vm10 }
0x2370   :  { %v2090_v3 = vsub.f32 1.0, %v2089_v21 }
0x2372   :  { %v2091_v27 = vmul.f32 %v7437_v32, %v2090_v3 }
0x2374   :  { %v2092_v8 = vadd.f32 %v7437_v32, %v2091_v27 }
0x2376   :  { %v2096_v46 = vsel %vm2095_vm12, %v7437_v32, %v2092_v8 }
0x2377   :  { %v2101_v47 = vsel %vm2098_vm13, %v2100_v51, %v2096_v46 }
0x2378   :  { %v2104_v5 = vmul.f32 %v2101_v47, %v9192_v53  ;;  %v2138_v53 = vpop.f32.mrf.mxu3 }
0x23d5   :  { %v2107_v48 = vpop.permute.xlu1 %2106 }
0x23d6   :  { %v2109_v12 = vmul.f32 %v2107_v48, %v2101_v47 }
0x23d8   :  { %2111 = vrot.lane.b32.xlu1 %v2109_v12, %s8403_s3 }
0x244a   :  { %v2112_v0 = vpop.permute.xlu1 %2111 }
0x244b   :  { %v9276_v17 = vadd.f32 %v2112_v0, %v2104_v5 }
0x244d   :  { %7438 = vtanh.f32 %v9276_v17 }
0x2453   :  { %v7439_v22 = vpop.eup %7438 }
0x2454   :  { %2117 = vrot.lane.b32.xlu1 %v7439_v22, %s8403_s3 }
0x24c6   :  { %v2118_v2 = vpop.permute.xlu1 %2117 }
0x24c7   :  { %v2120_v44 = vmul.f32 %v2118_v2, %v2101_v47 }
0x24c9   :  { %2142 = vrot.lane.b32.xlu1 %v2120_v44, %s8404_s7 }
0x253b   :  { %v2143_v24 = vpop.permute.xlu1 %2142 }
0x253c   :  { %7069 = vmatmul.msk.f32.vlgmr.msra.gmra.mxu0 %vm348_vm9, %v2143_v24 }
0x253d   :  { %7087 = vmatpush.msk.msra.mxu0 %vm352_vm0, %v9201_v16 }
0x253f   :  { %2487 = vmatpush.msra.mxu0 %v9208_v1 }
0x2541   :  { %2488 = vmatpush.msra.mxu0 %v9214_v19 }
0x2544   :  { %7078 = vmatmul.msk.f32.vlgmr.msrb.gmra.mxu0 %vm348_vm9, %v2143_v24 }
0x25b9   :  { %v2163_v58 = vpop.f32.mrf.mxu0 }
0x25ba   :  { %v2164_v37 = vadd.f32 %v2163_v58, %v2138_v53 }
0x25bc   :  { %v2166_v7 = vadd.f32 %v9128_v20, %v2164_v37 }
0x25be   :  { %7440 = vtanh.f32 %v2166_v7  ;;  %v7070_v13 = vmul.f32 -1.442695, %v2166_v7 }
0x25c0   :  { %7442 = vpow2.f32 %v7070_v13 }
0x25c4   :  { %v7441_v10 = vpop.eup %7440 }
0x25c5   :  { %2189 = vrot.lane.b32.xlu1 %v7441_v10, %s8402_s12 }
0x25c6   :  { %v7443_v28 = vpop.eup %7442 }
0x25c7   :  { %v2170_v59 = vadd.f32 1.0, %v7443_v28 }
0x25c9   :  { %7444 = vrcp.f32 %v2170_v59  ;;  %v2182_v57 = vand.u32 2147483648, %v2170_v59  ;;  %vm2176_vm15 = vweird.f32 %v2170_v59  ;;  %v2180_v34 = vand.u32 2147483647, %v2170_v59 }
0x25cb   :  { %v2183_v38 = vor.u32 1.1754944e-38, %v2182_v57  ;;  %vm2181_vm5 = vcmp.eq.f32.partialorder %v2180_v34, 8.507059e+37 }
0x25cf   :  { %v7445_v16 = vpop.eup %7444 }
0x25d0   :  { %v2172_v1 = vmul.f32 %v7445_v16, %v2170_v59  ;;  %vm2177_vm14 = vweird.f32 %v7445_v16  ;;  %v2317_v59 = vpop.f32.mrf.mxu0 }
0x25d1   :  { %vm2178_vm1 = vmor %vm2176_vm15, %vm2177_vm14  ;;  %vm2638_vm14 = vcmask 156672   ;;  %vm2561_vm15 = vcmask 1041408  }
0x25d2   :  { %v2173_v60 = vsub.f32 1.0, %v2172_v1 }
0x25d4   :  { %v2174_v19 = vmul.f32 %v7445_v16, %v2173_v60 }
0x25d6   :  { %v2175_v61 = vadd.f32 %v7445_v16, %v2174_v19 }
0x25d8   :  { %v2179_v36 = vsel %vm2178_vm1, %v7445_v16, %v2175_v61  ;;  %vm2558_vm1 = vcmask 15360  }
0x25d9   :  { %v2184_v43 = vsel %vm2181_vm5, %v2183_v38, %v2179_v36  ;;  %vm2671_vm5 = vcmask 484672  }
0x25da   :  { %v2187_v49 = vmul.f32 %v2184_v43, %v9224_v25 }
0x2637   :  { %v2190_v40 = vpop.permute.xlu1 %2189 }
0x2638   :  { %v2192_v45 = vmul.f32 %v2190_v40, %v2184_v43 }
0x263a   :  { %2194 = vrot.lane.b32.xlu2 %v2192_v45, %s8403_s3 }
0x2694   :  { %v2195_v52 = vpop.permute.xlu2 %2194 }
0x2695   :  { %v9291_v56 = vadd.f32 %v2195_v52, %v2187_v49 }
0x2697   :  { %7446 = vtanh.f32 %v9291_v56 }
0x269d   :  { %v7447_v32 = vpop.eup %7446 }
0x269e   :  { %2200 = vrot.lane.b32.xlu0 %v7447_v32, %s8403_s3 }
0x2710   :  { %v2201_v21 = vpop.permute.xlu0 %2200 }
0x2711   :  { %v9295_v3 = vmul.f32 %v2201_v21, %v2184_v43 }
0x2713   :  { %2205 = vrot.lane.b32.xlu1 %v9295_v3, %s8404_s7 }
0x271b   :  { %2230 = vrot.lane.b32.xlu1 %v9291_v56, %s8405_s20 }
0x2785   :  { %v2206_v27 = vpop.permute.xlu1 %2205 }
0x2786   :  { %7072 = vmatmul.msk.f32.vlgmr.msra.gmra.mxu1 %vm348_vm9, %v2206_v27  ;;  %7076 = vmatmul.msk.f32.vlgmr.msra.gmra.mxu3 %vm348_vm9, %v2206_v27 }
0x278d   :  { %v2231_v25 = vpop.permute.xlu1 %2230 }
0x278e   :  { %7074 = vmatmul.msk.f32.vlgmr.msra.gmra.mxu2 %vm348_vm9, %v2231_v25 }
0x2796   :  { %7083 = vmatmul.msk.f32.vlgmr.msrb.gmra.mxu2 %vm348_vm9, %v2206_v27 }
0x2809   :  { %v2271_v8 = vpop.f32.mrf.mxu3 }
0x2811   :  { %v2251_v31 = vpop.f32.mrf.mxu2 }
0x2812   :  { %v2272_v39 = vadd.f32 %v2271_v8, %v2251_v31 }
0x2814   :  { %v2275_v46 = vrot.slane %v2272_v39, 1  ;;  %v2276_v51 = vperm.slane %v2272_v39, 0 }
0x2816   :  { %v2277_v48 = vperm.slane %v2275_v46, 0  ;;  %v2280_v47 = vadd.f32 %v2276_v51, %v8661_v15  ;;  %v9328_v46 = vld [vmem:[%s10935_s0 + $0x10] sm:$0xf]  ;;  %v9333_v51 = vld [vmem:[%s10935_s0 + $0x8] sm:$0xff] }
0x2817   :  { %7094 = vmatpush.msk.msra.mxu3 %vm352_vm0, %v9328_v46 }
0x2818   :  { %v2281_v12 = vadd.f32 %v2277_v48, %v8664_v18  ;;  %7448 = vtanh.f32 %v2280_v47 }
0x2819   :  { %2605 = vmatpush.msra.mxu3 %v9333_v51  ;;  %v2402_v47 = vpop.f32.mrf.mxu2 }
0x281a   :  { %7450 = vtanh.f32 %v2281_v12 }
0x281e   :  { %v7449_v5 = vpop.eup %7448 }
0x281f   :  { %v2284_v0 = vmul.f32 %v9073_v14, %v7449_v5 }
0x2820   :  { %v7451_v22 = vpop.eup %7450 }
0x2821   :  { %v2286_v2 = vsel %vm414_vm2, %v2284_v0, 0.0  ;;  %v2285_v44 = vmul.f32 %v9073_v14, %v7451_v22  ;;  %v9317_v14 = vpop.f32.mrf.mxu1 }
0x2822   :  { %2287 = vadd.xlane.f32.xlu1 %v2286_v2 }
0x2823   :  { %v2289_v24 = vsel %vm414_vm2, %v2285_v44, 0.0 }
0x2824   :  { %2290 = vadd.xlane.f32.xlu0 %v2289_v24 }
0x2895   :  { %v2288_v53 = vpop.xlane.xlu1 %2287 }
0x2896   :  { %v2294_v58 = vperm.slane %v2288_v53, %v8696_v35 }
0x2897   :  { %v2291_v15 = vpop.xlane.xlu0 %2290 }
0x2898   :  { %v2298_v18 = vmul.f32 %v9083_v62, %v2294_v58  ;;  %v2295_v37 = vperm.slane %v2291_v15, %v8696_v35 }
0x289a   :  { %v2299_v7 = vmul.f32 %v9090_v6, %v2295_v37  ;;  %v2322_v10 = vrot.slane %v2298_v18, 7 }
0x289c   :  { %v2323_v13 = vrot.slane %v2299_v7, 6 }
0x289e   :  { %v2324_v28 = vsel %vm457_vm3, %v2323_v13, %v2322_v10 }
0x289f   :  { %7080 = vmatmul.msk.f32.vlgmr.msrb.gmra.mxu1 %vm459_vm4, %v2324_v28 }
0x291c   :  { %v2344_v16 = vpop.f32.mrf.mxu1 }
0x291d   :  { %v2345_v1 = vadd.f32 %v2344_v16, %v2317_v59 }
0x291f   :  { %v2347_v60 = vadd.f32 %v9107_v41, %v2345_v1 }
0x2921   :  { %7452 = vtanh.f32 %v2347_v60  ;;  %v7081_v35 = vmul.f32 -1.442695, %v2347_v60 }
0x2923   :  { %7454 = vpow2.f32 %v7081_v35 }
0x2927   :  { %v7453_v19 = vpop.eup %7452 }
0x2928   :  { %2370 = vrot.lane.b32.xlu2 %v7453_v19, %s8402_s12  ;;  %v9350_v19 = vld [vmem:[#allocation2] ss:$0 sm:$0xff] }
0x2929   :  { %v7455_v62 = vpop.eup %7454 }
0x292a   :  { %v2351_v6 = vadd.f32 1.0, %v7455_v62 }
0x292c   :  { %7456 = vrcp.f32 %v2351_v6  ;;  %v2363_v40 = vand.u32 2147483648, %v2351_v6  ;;  %vm2357_vm6 = vweird.f32 %v2351_v6  ;;  %v2361_v43 = vand.u32 2147483647, %v2351_v6 }
0x292e   :  { %v2364_v45 = vor.u32 1.1754944e-38, %v2363_v40  ;;  %vm2362_vm8 = vcmp.eq.f32.partialorder %v2361_v43, 8.507059e+37 }
0x2932   :  { %v7457_v61 = vpop.eup %7456 }
0x2933   :  { %v2353_v57 = vmul.f32 %v7457_v61, %v2351_v6  ;;  %vm2358_vm2 = vweird.f32 %v7457_v61 }
0x2934   :  { %vm2359_vm7 = vmor %vm2357_vm6, %vm2358_vm2 }
0x2935   :  { %v2354_v34 = vsub.f32 1.0, %v2353_v57 }
0x2937   :  { %v2355_v36 = vmul.f32 %v7457_v61, %v2354_v34 }
0x2939   :  { %v2356_v38 = vadd.f32 %v7457_v61, %v2355_v36 }
0x293b   :  { %v2360_v41 = vsel %vm2359_vm7, %v7457_v61, %v2356_v38 }
0x293c   :  { %v2365_v52 = vsel %vm2362_vm8, %v2364_v45, %v2360_v41 }
0x293d   :  { %v2368_v21 = vmul.f32 %v2365_v52, %v9276_v17  ;;  %v9340_v17 = vld [vmem:[%s10935_s0] sm:$0xff] }
0x293e   :  { %2606 = vmatpush.msra.mxu3 %v9340_v17 }
0x2982   :  { %v2371_v49 = vpop.permute.xlu2 %2370 }
0x2983   :  { %v2373_v32 = vmul.f32 %v2371_v49, %v2365_v52 }
0x2985   :  { %2375 = vrot.lane.b32.xlu2 %v2373_v32, %s8403_s3 }
0x29df   :  { %v2376_v27 = vpop.permute.xlu2 %2375 }
0x29e0   :  { %v2378_v25 = vadd.f32 %v2376_v27, %v2368_v21 }
0x29e2   :  { %7458 = vtanh.f32 %v2378_v25 }
0x29e8   :  { %v7459_v8 = vpop.eup %7458 }
0x29e9   :  { %2381 = vrot.lane.b32.xlu2 %v7459_v8, %s8403_s3 }
0x2a43   :  { %v2382_v31 = vpop.permute.xlu2 %2381 }
0x2a44   :  { %v2384_v39 = vmul.f32 %v2382_v31, %v2365_v52 }
0x2a46   :  { %2406 = vrot.lane.b32.xlu2 %v2384_v39, %s8404_s7 }
0x2aa0   :  { %v2407_v48 = vpop.permute.xlu2 %2406 }
0x2aa1   :  { %7085 = vmatmul.msk.f32.vlgmr.msrb.gmra.mxu3 %vm348_vm9, %v2407_v48 }
0x2aa9   :  { %2607 = vmatmul.f32.vlgmr.msra.gmra.mxu3 %v8401_v9 }
0x2b24   :  { %v2427_v12 = vpop.f32.mrf.mxu3 }
0x2b25   :  { %v2428_v5 = vadd.f32 %v2427_v12, %v2402_v47 }
0x2b27   :  { %v2430_v0 = vadd.f32 %v9128_v20, %v2428_v5 }
0x2b29   :  { %7460 = vtanh.f32 %v2430_v0  ;;  %v7086_v2 = vmul.f32 -1.442695, %v2430_v0 }
0x2b2b   :  { %7462 = vpow2.f32 %v7086_v2 }
0x2b2c   :  { %v2608_v1 = vpop.f32.mrf.mxu3 }
0x2b2d   :  { %v2613_v60 = vadd.f32 %v2608_v1, %v8979_v23  ;;  %v2612_v38 = vadd.f32 %v2608_v1, %v8910_v11  ;;  %v2616_v40 = vadd.f32 %v2608_v1, %v9270_v4  ;;  %v2611_v27 = vadd.f32 %v2608_v1, %v8841_v50 }
0x2b2e   :  { %v2614_v25 = vadd.f32 %v2608_v1, %v9105_v26  ;;  %v2615_v39 = vadd.f32 %v2608_v1, %v9186_v30  ;;  %v2617_v5 = vadd.f32 %v2608_v1, %v9317_v14 }
0x2b2f   :  { %v7461_v22 = vpop.eup %7460 }
0x2b30   :  { %2453 = vrot.lane.b32.xlu2 %v7461_v22, %s8402_s12 }
0x2b31   :  { %v7463_v44 = vpop.eup %7462 }
0x2b32   :  { %v2434_v24 = vadd.f32 1.0, %v7463_v44 }
0x2b34   :  { %7464 = vrcp.f32 %v2434_v24  ;;  %v2446_v7 = vand.u32 2147483648, %v2434_v24  ;;  %vm2440_vm11 = vweird.f32 %v2434_v24  ;;  %v2444_v10 = vand.u32 2147483647, %v2434_v24 }
0x2b35   :  { %7466 = vtanh.f32 %v2613_v60  ;;  %v2557_v60 = vld.sshfl [vmem:[#allocation1] sm:$0xff pattern:$0x75316420] }
0x2b36   :  { %v2447_v13 = vor.u32 1.1754944e-38, %v2446_v7  ;;  %vm2445_vm13 = vcmp.eq.f32.partialorder %v2444_v10, 8.507059e+37 }
0x2b3a   :  { %v7465_v53 = vpop.eup %7464 }
0x2b3b   :  { %v2436_v58 = vmul.f32 %v7465_v53, %v2434_v24  ;;  %vm2441_vm10 = vweird.f32 %v7465_v53  ;;  %v7467_v35 = vpop.eup %7466 }
0x2b3c   :  { %vm2442_vm12 = vmor %vm2440_vm11, %vm2441_vm10  ;;  %v2632_v62 = vmul.f32 %v7467_v35, %v9350_v19  ;;  %v9395_v35 = vld [vmem:[%s10898_s22 + $0x8] sm:$0xff] }
0x2b3d   :  { %v2437_v15 = vsub.f32 1.0, %v2436_v58 }
0x2b3e   :  { %v2645_v6 = vsel %vm2638_vm14, %v2632_v62, 0.0  ;;  %v9397_v62 = vld [vmem:[#allocation18 + $0x10] sm:$0xf] }
0x2b3f   :  { %v2438_v18 = vmul.f32 %v7465_v53, %v2437_v15  ;;  %7095 = vmatpush.msk.msrb.mxu0 %vm352_vm0, %v9397_v62 }
0x2b41   :  { %v2439_v37 = vadd.f32 %v7465_v53, %v2438_v18 }
0x2b43   :  { %v2443_v20 = vsel %vm2442_vm12, %v7465_v53, %v2439_v37 }
0x2b44   :  { %v2448_v59 = vsel %vm2445_vm13, %v2447_v13, %v2443_v20 }
0x2b45   :  { %v2451_v61 = vmul.f32 %v2448_v59, %v9291_v56 }
0x2b8a   :  { %v2454_v28 = vpop.permute.xlu2 %2453 }
0x2b8b   :  { %v2456_v16 = vmul.f32 %v2454_v28, %v2448_v59 }
0x2b8d   :  { %2458 = vrot.lane.b32.xlu1 %v2456_v16, %s8403_s3  ;;  %v2516_v16 = vld [vmem:[#allocation13] sm:$0xf] }
0x2b8e   :  { %7089 = vmatpush.msk.msra.mxu1 %vm352_vm0, %v2516_v16 }
0x2bb7   :  { %2646 = vadd.xlane.f32.xlu1 %v2645_v6  ;;  %v2514_v6 = vld [vmem:[%s10936_s11] sm:$0xff] }
0x2bb8   :  { %7090 = vmatmul.msk.f32.vlgmr.msra.gmra.mxu1 %vm459_vm4, %v2514_v6 }
0x2bff   :  { %v2459_v57 = vpop.permute.xlu1 %2458 }
0x2c00   :  { %v2461_v34 = vadd.f32 %v2459_v57, %v2451_v61  ;;  %v9406_v61 = vld [vmem:[#allocation18 + $0x8] sm:$0xff]  ;;  %v9412_v57 = vld [vmem:[%s10898_s22] sm:$0xff] }
0x2c01   :  { %2709 = vmatpush.msrb.mxu0 %v9406_v61 }
0x2c02   :  { %7468 = vtanh.f32 %v2461_v34  ;;  %v9414_v34 = vld [vmem:[#allocation18] sm:$0xff] }
0x2c03   :  { %7470 = vtanh.f32 %v2612_v38  ;;  %2710 = vmatpush.msrb.mxu0 %v9414_v34 }
0x2c04   :  { %7472 = vtanh.f32 %v2616_v40 }
0x2c05   :  { %7474 = vtanh.f32 %v2611_v27 }
0x2c06   :  { %7476 = vtanh.f32 %v2614_v25 }
0x2c07   :  { %7478 = vtanh.f32 %v2615_v39 }
0x2c08   :  { %v7469_v36 = vpop.eup %7468  ;;  %7480 = vtanh.f32 %v2617_v5 }
0x2c09   :  { %2464 = vrot.lane.b32.xlu0 %v7469_v36, %s8403_s3  ;;  %v7471_v43 = vpop.eup %7470 }
0x2c0a   :  { %v2631_v41 = vmul.f32 %v7471_v43, %v9350_v19  ;;  %v7473_v49 = vpop.eup %7472 }
0x2c0b   :  { %v2635_v56 = vmul.f32 %v7473_v49, %v9350_v19  ;;  %v7475_v8 = vpop.eup %7474 }
0x2c0c   :  { %v2642_v45 = vsel %vm2638_vm14, %v2631_v41, 0.0  ;;  %v2630_v31 = vmul.f32 %v7475_v8, %v9350_v19  ;;  %v7477_v47 = vpop.eup %7476 }
0x2c0d   :  { %v2654_v52 = vsel %vm2638_vm14, %v2635_v56, 0.0  ;;  %v2633_v12 = vmul.f32 %v7477_v47, %v9350_v19  ;;  %v7479_v22 = vpop.eup %7478 }
0x2c0e   :  { %v2639_v48 = vsel %vm2638_vm14, %v2630_v31, 0.0  ;;  %v2634_v2 = vmul.f32 %v7479_v22, %v9350_v19  ;;  %v7481_v24 = vpop.eup %7480 }
0x2c0f   :  { %v2648_v0 = vsel %vm2638_vm14, %v2633_v12, 0.0  ;;  %v2636_v53 = vmul.f32 %v7481_v24, %v9350_v19 }
0x2c10   :  { %v2651_v44 = vsel %vm2638_vm14, %v2634_v2, 0.0 }
0x2c11   :  { %v2657_v58 = vsel %vm2638_vm14, %v2636_v53, 0.0 }
0x2c2a   :  { %v2647_v41 = vpop.xlane.xlu1 %2646 }
0x2c2b   :  { %v2665_v49 = vmul.f32 %v2647_v41, %v8937_v54 }
0x2c2d   :  { %v2675_v25 = vsel %vm2671_vm5, %v2665_v49, 0.0 }
0x2c33   :  { %2643 = vadd.xlane.f32.xlu0 %v2642_v45 }
0x2c3b   :  { %2655 = vadd.xlane.f32.xlu0 %v2654_v52 }
0x2c7b   :  { %v2465_v32 = vpop.permute.xlu0 %2464 }
0x2c7c   :  { %v9362_v21 = vmul.f32 %v2465_v32, %v2448_v59  ;;  %v2551_v59 = vld [vmem:[#allocation15] sm:$0x3] }
0x2c7d   :  { %7092 = vmatpush.msk.msra.mxu2 %vm2561_vm15, %v2551_v59 }
0x2c7e   :  { %2469 = vrot.lane.b32.xlu2 %v9362_v21, %s8404_s7  ;;  %7093 = vmatmul.msk.f32.vlgmr.msra.gmra.mxu2 %vm2558_vm1, %v2557_v60 }
0x2ca6   :  { %v2644_v36 = vpop.xlane.xlu0 %2643 }
0x2ca7   :  { %2640 = vadd.xlane.f32.xlu2 %v2639_v48  ;;  %v2664_v43 = vmul.f32 %v2644_v36, %v8875_v29 }
0x2ca9   :  { %v2673_v56 = vsel %vm2671_vm5, %v2664_v43, 0.0 }
0x2cae   :  { %v2656_v31 = vpop.xlane.xlu0 %2655 }
0x2caf   :  { %2649 = vadd.xlane.f32.xlu2 %v2648_v0  ;;  %v2668_v5 = vmul.f32 %v2656_v31, %v9235_v55 }
0x2cb1   :  { %v2681_v2 = vsel %vm2671_vm5, %v2668_v5, 0.0 }
0x2cb7   :  { %2652 = vadd.xlane.f32.xlu2 %v2651_v44 }
0x2cbf   :  { %2658 = vadd.xlane.f32.xlu2 %v2657_v58 }
0x2cd8   :  { %v2470_v15 = vpop.permute.xlu2 %2469 }
0x2cd9   :  { %7088 = vmatmul.msk.f32.vlgmr.msra.gmra.mxu0 %vm348_vm9, %v2470_v15 }
0x2d1a   :  { %v2641_v13 = vpop.xlane.xlu2 %2640 }
0x2d1b   :  { %v2663_v38 = vmul.f32 %v2641_v13, %v8801_v63  ;;  %v9447_v13 = vpop.f32.mrf.mxu2 }
0x2d1d   :  { %v2672_v45 = vsel %vm2671_vm5, %v2663_v38, 0.0 }
0x2d1e   :  { %v2674_v32 = vadd.f32 %v2673_v56, %v2672_v45 }
0x2d20   :  { %v2676_v39 = vadd.f32 %v2675_v25, %v2674_v32 }
0x2d22   :  { %v2650_v28 = vpop.xlane.xlu2 %2649 }
0x2d23   :  { %v2666_v52 = vmul.f32 %v2650_v28, %v9006_v42  ;;  %v9449_v28 = vpop.f32.mrf.mxu1 }
0x2d25   :  { %v2677_v8 = vsel %vm2671_vm5, %v2666_v52, 0.0 }
0x2d26   :  { %v2678_v12 = vadd.f32 %v2677_v8, %v2676_v39 }
0x2d2a   :  { %v2653_v40 = vpop.xlane.xlu2 %2652 }
0x2d2b   :  { %v2667_v27 = vmul.f32 %v2653_v40, %v9138_v33  ;;  %v9454_v40 = vld [vmem:[#allocation19] ss:$0 sm:$0xff] }
0x2d2d   :  { %v2679_v47 = vsel %vm2671_vm5, %v2667_v27, 0.0 }
0x2d2e   :  { %v2680_v22 = vadd.f32 %v2679_v47, %v2678_v12 }
0x2d30   :  { %v2682_v24 = vadd.f32 %v2681_v2, %v2680_v22 }
0x2d32   :  { %v2659_v48 = vpop.xlane.xlu2 %2658 }
0x2d33   :  { %v2669_v0 = vmul.f32 %v2659_v48, %v9295_v3 }
0x2d35   :  { %v2683_v44 = vsel %vm2671_vm5, %v2669_v0, 0.0 }
0x2d36   :  { %v2684_v15 = vadd.f32 %v2683_v44, %v2682_v24 }
0x2d56   :  { %v9379_v18 = vpop.f32.mrf.mxu0 }
0x2d57   :  { %v2618_v37 = vadd.f32 %v2608_v1, %v9379_v18  ;;  %v9389_v1 = vld [vmem:[%s10898_s22 + $0x10] sm:$0xf] }
0x2d58   :  { %7097 = vmatpush.msk.msrb.mxu2 %vm352_vm0, %v9389_v1 }
0x2d59   :  { %7482 = vtanh.f32 %v2618_v37 }
0x2d5a   :  { %2738 = vmatpush.msrb.mxu2 %v9395_v35 }
0x2d5c   :  { %2739 = vmatpush.msrb.mxu2 %v9412_v57 }
0x2d5d   :  { %2740 = vmatmul.f32.vlgmr.msrb.gmra.mxu2 %v8401_v9 }
0x2d5e   :  { %7106 = vmatpush.msk.msra.mxu2 %vm352_vm0, %v9328_v46 }
0x2d5f   :  { %v7483_v7 = vpop.eup %7482 }
0x2d60   :  { %v2637_v10 = vmul.f32 %v7483_v7, %v9350_v19  ;;  %2971 = vmatpush.msra.mxu2 %v9333_v51 }
0x2d62   :  { %v2660_v20 = vsel %vm2638_vm14, %v2637_v10, 0.0  ;;  %2972 = vmatpush.msra.mxu2 %v9340_v17  ;;  %v2515_v10 = vld [vmem:[%s10936_s11 + $0x8] sm:$0xff] }
0x2d63   :  { %2661 = vadd.xlane.f32.xlu1 %v2660_v20  ;;  %7091 = vmatmul.msk.f32.gmra.mxu1 %vm459_vm4, %v2515_v10 }
0x2dd6   :  { %v2662_v53 = vpop.xlane.xlu1 %2661 }
0x2dd7   :  { %v2670_v58 = vmul.f32 %v2662_v53, %v9362_v21 }
0x2dd9   :  { %v2685_v37 = vsel %vm2671_vm5, %v2670_v58, 0.0 }
0x2dda   :  { %v2686_v7 = vadd.f32 %v2685_v37, %v2684_v15 }
0x2ddc   :  { %2688 = vrot.lane.b32.xlu0 %v2686_v7, %s8404_s7 }
0x2de0   :  { %v2741_v59 = vpop.f32.mrf.mxu2  ;;  %v9451_v60 = vpop.f32.mrf.mxu1 }
0x2de1   :  { %v2745_v38 = vrot.slane %v2741_v59, 1 }
0x2e4e   :  { %v2689_v20 = vpop.permute.xlu0 %2688 }
0x2e4f   :  { %7096 = vmatmul.msk.f32.vlgmr.msrb.gmra.mxu0 %vm348_vm9, %v2689_v20 }
0x2ecc   :  { %v2712_v16 = vpop.f32.mrf.mxu0 }
0x2ecd   :  { %v2716_v6 = vrot.slane %v2712_v16, 1  ;;  %v2719_v36 = vadd.f32 %v2712_v16, %v9449_v28 }
0x2ecf   :  { %v2720_v43 = vadd.f32 %v2716_v6, %v9451_v60  ;;  %v2748_v41 = vadd.f32 %v2741_v59, %v2719_v36 }
0x2ed1   :  { %v2749_v45 = vadd.f32 %v2745_v38, %v2720_v43  ;;  %v2753_v49 = vadd.f32 %v9454_v40, %v2748_v41 }
0x2ed3   :  { %v2754_v56 = vadd.f32 %v9454_v40, %v2749_v45  ;;  %7484 = vtanh.f32 %v2753_v49  ;;  %v7098_v31 = vmul.f32 -1.442695, %v2753_v49 }
0x2ed5   :  { %7486 = vtanh.f32 %v2754_v56  ;;  %v7099_v27 = vmul.f32 -1.442695, %v2754_v56 }
0x2ed7   :  { %7488 = vpow2.f32 %v7099_v27 }
0x2ed9   :  { %v7485_v52 = vpop.eup %7484 }
0x2eda   :  { %2799 = vrot.lane.b32.xlu1 %v7485_v52, %s8402_s12 }
0x2edb   :  { %v7487_v32 = vpop.eup %7486 }
0x2edc   :  { %2801 = vrot.lane.b32.xlu2 %v7487_v32, %s8402_s12 }
0x2edd   :  { %v7489_v25 = vpop.eup %7488 }
0x2ede   :  { %v2762_v8 = vadd.f32 1.0, %v7489_v25 }
0x2ee0   :  { %7490 = vrcp.f32 %v2762_v8  ;;  %v2789_v2 = vand.u32 2147483648, %v2762_v8  ;;  %vm2783_vm2 = vweird.f32 %v2762_v8  ;;  %v2787_v44 = vand.u32 2147483647, %v2762_v8 }
0x2ee1   :  { %7492 = vpow2.f32 %v7098_v31 }
0x2ee2   :  { %v2790_v53 = vor.u32 1.1754944e-38, %v2789_v2  ;;  %vm2788_vm7 = vcmp.eq.f32.partialorder %v2787_v44, 8.507059e+37 }
0x2ee6   :  { %v7491_v39 = vpop.eup %7490 }
0x2ee7   :  { %v2779_v48 = vmul.f32 %v7491_v39, %v2762_v8  ;;  %v7493_v12 = vpop.eup %7492  ;;  %vm2784_vm4 = vweird.f32 %v7491_v39 }
0x2ee8   :  { %v2761_v5 = vadd.f32 1.0, %v7493_v12  ;;  %vm2785_vm6 = vmor %vm2783_vm2, %vm2784_vm4  ;;  %v9477_v12 = vld [vmem:[#allocation21 + $0x10] sm:$0xf] }
0x2ee9   :  { %v2780_v47 = vsub.f32 1.0, %v2779_v48  ;;  %v9471_v48 = vld [vmem:[#allocation22 + $0x10] sm:$0xf]  ;;  %7101 = vmatpush.msk.msra.mxu0 %vm352_vm0, %v9477_v12  ;;  %7116 = vmatpush.msk.msrb.mxu2 %vm352_vm0, %v9477_v12 }
0x2eea   :  { %7494 = vrcp.f32 %v2761_v5  ;;  %v2774_v6 = vand.u32 2147483648, %v2761_v5  ;;  %vm2768_vm10 = vweird.f32 %v2761_v5  ;;  %v2772_v36 = vand.u32 2147483647, %v2761_v5  ;;  %7100 = vmatpush.msk.msrb.mxu3 %vm352_vm0, %v9471_v48 }
0x2eeb   :  { %v2781_v0 = vmul.f32 %v7491_v39, %v2780_v47  ;;  %v9473_v47 = vld [vmem:[#allocation22 + $0x8] sm:$0xff] }
0x2eec   :  { %v2775_v43 = vor.u32 1.1754944e-38, %v2774_v6  ;;  %vm2773_vm12 = vcmp.eq.f32.partialorder %v2772_v36, 8.507059e+37  ;;  %2846 = vmatpush.msrb.mxu3 %v9473_v47 }
0x2eed   :  { %v2782_v22 = vadd.f32 %v7491_v39, %v2781_v0  ;;  %v9481_v0 = vld [vmem:[#allocation22] sm:$0xff] }
0x2eee   :  { %2847 = vmatpush.msrb.mxu3 %v9481_v0 }
0x2eef   :  { %v2786_v24 = vsel %vm2785_vm6, %v7491_v39, %v2782_v22  ;;  %v9488_v22 = vld [vmem:[#allocation21] sm:$0xff]  ;;  %2848 = vmatmul.f32.vlgmr.msrb.gmra.mxu3 %v8401_v9 }
0x2ef0   :  { %v7495_v58 = vpop.eup %7494  ;;  %v2791_v37 = vsel %vm2788_vm7, %v2790_v53, %v2786_v24  ;;  %7108 = vmatpush.msk.msra.mxu3 %vm352_vm0, %v9397_v62 }
0x2ef1   :  { %v2764_v10 = vmul.f32 %v7495_v58, %v2761_v5  ;;  %vm2769_vm8 = vweird.f32 %v7495_v58  ;;  %v2796_v27 = vmul.f32 0.0, %v2791_v37  ;;  %v9479_v5 = vld [vmem:[#allocation21 + $0x8] sm:$0xff] }
0x2ef2   :  { %vm2770_vm11 = vmor %vm2768_vm10, %vm2769_vm8  ;;  %2877 = vmatpush.msra.mxu0 %v9479_v5  ;;  %3230 = vmatpush.msrb.mxu2 %v9479_v5 }
0x2ef3   :  { %v2765_v20 = vsub.f32 1.0, %v2764_v10  ;;  %3068 = vmatpush.msra.mxu3 %v9406_v61 }
0x2ef4   :  { %2878 = vmatpush.msra.mxu0 %v9488_v22  ;;  %3231 = vmatpush.msrb.mxu2 %v9488_v22 }
0x2ef5   :  { %v2766_v59 = vmul.f32 %v7495_v58, %v2765_v20  ;;  %3069 = vmatpush.msra.mxu3 %v9414_v34 }
0x2ef6   :  { %7110 = vmatpush.msk.msrb.mxu0 %vm352_vm0, %v9389_v1 }
0x2ef7   :  { %v2767_v16 = vadd.f32 %v7495_v58, %v2766_v59 }
0x2ef8   :  { %3094 = vmatpush.msrb.mxu0 %v9395_v35 }
0x2ef9   :  { %v2771_v38 = vsel %vm2770_vm11, %v7495_v58, %v2767_v16 }
0x2efa   :  { %v2776_v45 = vsel %vm2773_vm12, %v2775_v43, %v2771_v38  ;;  %3095 = vmatpush.msrb.mxu0 %v9412_v57 }
0x2efb   :  { %v2795_v56 = vmul.f32 0.0, %v2776_v45 }
0x2f36   :  { %v2802_v15 = vpop.permute.xlu2 %2801 }
0x2f37   :  { %v2806_v7 = vmul.f32 %v2802_v15, %v2791_v37 }
0x2f39   :  { %2811 = vrot.lane.b32.xlu0 %v2806_v7, %s8403_s3  ;;  %v9519_v7 = vld [vmem:[%s10902_s26] ss:$0 sm:$0xff] }
0x2f4c   :  { %v2800_v41 = vpop.permute.xlu1 %2799 }
0x2f4d   :  { %v2805_v49 = vmul.f32 %v2800_v41, %v2776_v45 }
0x2f4f   :  { %2809 = vrot.lane.b32.xlu2 %v2805_v49, %s8403_s3 }
0x2fa9   :  { %v2810_v52 = vpop.permute.xlu2 %2809 }
0x2faa   :  { %v9463_v32 = vadd.f32 %v2810_v52, %v2795_v56 }
0x2fab   :  { %v2812_v25 = vpop.permute.xlu0 %2811 }
0x2fac   :  { %7496 = vtanh.f32 %v9463_v32  ;;  %v9466_v8 = vadd.f32 %v2812_v25, %v2796_v27 }
0x2fae   :  { %7498 = vtanh.f32 %v9466_v8 }
0x2fb2   :  { %v7497_v31 = vpop.eup %7496 }
0x2fb3   :  { %2821 = vrot.lane.b32.xlu1 %v7497_v31, %s8403_s3 }
0x2fb4   :  { %v7499_v39 = vpop.eup %7498 }
0x2fb5   :  { %2823 = vrot.lane.b32.xlu0 %v7499_v39, %s8403_s3 }
0x3025   :  { %v2822_v2 = vpop.permute.xlu1 %2821 }
0x3026   :  { %v2827_v24 = vmul.f32 %v2822_v2, %v2776_v45 }
0x3027   :  { %v2824_v9 = vpop.permute.xlu0 %2823 }
0x3028   :  { %v2828_v44 = vmul.f32 %v2824_v9, %v2791_v37  ;;  %v2849_v37 = vpop.f32.mrf.mxu3 }
0x302a   :  { %v2854_v53 = vrot.slane %v2828_v44, 7 }
0x302c   :  { %v2855_v58 = vsel %vm457_vm3, %v2854_v53, %v2827_v24  ;;  %v9533_v24 = vld [vmem:[%s10937_s28 + $0x10] sm:$0xf]  ;;  %v9538_v53 = vld [vmem:[%s10937_s28 + $0x8] sm:$0xff] }
0x302d   :  { %2856 = vrot.lane.b32.xlu2 %v2855_v58, %s8404_s7  ;;  %7104 = vmatpush.msk.msrb.mxu1 %vm352_vm0, %v9533_v24  ;;  %v9547_v58 = vld [vmem:[%s10937_s28] sm:$0xff] }
0x302e   :  { %7119 = vmatpush.msk.msrb.mxu3 %vm352_vm0, %v9533_v24 }
0x302f   :  { %2946 = vmatpush.msrb.mxu1 %v9538_v53 }
0x3030   :  { %3293 = vmatpush.msrb.mxu3 %v9538_v53 }
0x3031   :  { %2947 = vmatpush.msrb.mxu1 %v9547_v58 }
0x3032   :  { %3294 = vmatpush.msrb.mxu3 %v9547_v58 }
0x3033   :  { %7114 = vmatpush.msk.msra.mxu1 %vm352_vm0, %v9471_v48 }
0x3035   :  { %3202 = vmatpush.msra.mxu1 %v9473_v47 }
0x3037   :  { %3203 = vmatpush.msra.mxu1 %v9481_v0 }
0x3087   :  { %v2857_v15 = vpop.permute.xlu2 %2856 }
0x3088   :  { %7102 = vmatmul.msk.f32.vlgmr.msra.gmra.mxu0 %vm348_vm9, %v2857_v15 }
0x3089   :  { %7121 = vmatpush.msk.msra.mxu0 %vm352_vm0, %v9328_v46 }
0x308b   :  { %3318 = vmatpush.msra.mxu0 %v9333_v51 }
0x308d   :  { %3319 = vmatpush.msra.mxu0 %v9340_v17 }
0x3090   :  { %7111 = vmatmul.msk.f32.vlgmr.msrb.gmra.mxu0 %vm348_vm9, %v2857_v15 }
0x3091   :  { %7131 = vmatpush.msk.msrb.mxu0 %vm352_vm0, %v9477_v12 }
0x3093   :  { %3580 = vmatpush.msrb.mxu0 %v9479_v5 }
0x3095   :  { %3581 = vmatpush.msrb.mxu0 %v9488_v22 }
0x3105   :  { %v2880_v46 = vpop.f32.mrf.mxu0 }
0x3106   :  { %v2881_v10 = vadd.f32 %v2880_v46, %v2849_v37 }
0x3108   :  { %v2886_v51 = vadd.f32 %v9519_v7, %v2881_v10 }
0x310a   :  { %7500 = vtanh.f32 %v2886_v51  ;;  %v7103_v20 = vmul.f32 -1.442695, %v2886_v51 }
0x310c   :  { %7502 = vpow2.f32 %v7103_v20 }
0x3110   :  { %v7501_v17 = vpop.eup %7500 }
0x3111   :  { %2909 = vrot.lane.b32.xlu0 %v7501_v17, %s8402_s12 }
0x3112   :  { %v7503_v59 = vpop.eup %7502 }
0x3113   :  { %v2890_v16 = vadd.f32 1.0, %v7503_v59 }
0x3115   :  { %7504 = vrcp.f32 %v2890_v16  ;;  %v2902_v45 = vand.u32 2147483648, %v2890_v16  ;;  %vm2896_vm4 = vweird.f32 %v2890_v16  ;;  %v2900_v49 = vand.u32 2147483647, %v2890_v16 }
0x3117   :  { %v2903_v52 = vor.u32 1.1754944e-38, %v2902_v45  ;;  %vm2901_vm6 = vcmp.eq.f32.partialorder %v2900_v49, 8.507059e+37 }
0x311b   :  { %v7505_v6 = vpop.eup %7504 }
0x311c   :  { %v2892_v36 = vmul.f32 %v7505_v6, %v2890_v16  ;;  %vm2897_vm13 = vweird.f32 %v7505_v6 }
0x311d   :  { %vm2898_vm2 = vmor %vm2896_vm4, %vm2897_vm13 }
0x311e   :  { %v2893_v38 = vsub.f32 1.0, %v2892_v36 }
0x3120   :  { %v2894_v43 = vmul.f32 %v7505_v6, %v2893_v38 }
0x3122   :  { %v2895_v41 = vadd.f32 %v7505_v6, %v2894_v43 }
0x3124   :  { %v2899_v56 = vsel %vm2898_vm2, %v7505_v6, %v2895_v41 }
0x3125   :  { %v2904_v25 = vsel %vm2901_vm6, %v2903_v52, %v2899_v56 }
0x3126   :  { %v2907_v39 = vmul.f32 0.0, %v2904_v25 }
0x3183   :  { %v2910_v27 = vpop.permute.xlu0 %2909 }
0x3184   :  { %v2912_v31 = vmul.f32 %v2910_v27, %v2904_v25 }
0x3186   :  { %2914 = vrot.lane.b32.xlu1 %v2912_v31, %s8403_s3 }
0x31f8   :  { %v2915_v2 = vpop.permute.xlu1 %2914 }
0x31f9   :  { %v9524_v9 = vadd.f32 %v2915_v2, %v2907_v39 }
0x31fb   :  { %7506 = vtanh.f32 %v9524_v9  ;;  %2953 = vrot.lane.b32.xlu0 %v9524_v9, %s8405_s20 }
0x3201   :  { %v7507_v44 = vpop.eup %7506 }
0x3202   :  { %2920 = vrot.lane.b32.xlu2 %v7507_v44, %s8403_s3 }
0x325c   :  { %v2921_v15 = vpop.permute.xlu2 %2920 }
0x325d   :  { %v2923_v37 = vmul.f32 %v2921_v15, %v2904_v25 }
0x325f   :  { %2925 = vrot.lane.b32.xlu1 %v2923_v37, %s8404_s7 }
0x326d   :  { %v2954_v46 = vpop.permute.xlu0 %2953 }
0x326e   :  { %7107 = vmatmul.msk.f32.vlgmr.msra.gmra.mxu2 %vm348_vm9, %v2954_v46 }
0x326f   :  { %7125 = vmatpush.msk.msra.mxu2 %vm352_vm0, %v9389_v1 }
0x3271   :  { %3442 = vmatpush.msra.mxu2 %v9395_v35 }
0x3273   :  { %3443 = vmatpush.msra.mxu2 %v9412_v57 }
0x32d1   :  { %v2926_v10 = vpop.permute.xlu1 %2925 }
0x32d2   :  { %7105 = vmatmul.msk.f32.vlgmr.msrb.gmra.mxu1 %vm348_vm9, %v2926_v10 }
0x32d3   :  { %7123 = vmatpush.msk.msrb.mxu1 %vm352_vm0, %v9397_v62 }
0x32d5   :  { %3415 = vmatpush.msrb.mxu1 %v9406_v61 }
0x32d7   :  { %3416 = vmatpush.msrb.mxu1 %v9414_v34 }
0x32da   :  { %7115 = vmatmul.msk.f32.vlgmr.msra.gmra.mxu1 %vm348_vm9, %v2926_v10 }
0x32db   :  { %7134 = vmatpush.msk.msra.mxu1 %vm352_vm0, %v9533_v24 }
0x32dd   :  { %3643 = vmatpush.msra.mxu1 %v9538_v53 }
0x32df   :  { %3644 = vmatpush.msra.mxu1 %v9547_v58 }
0x32f1   :  { %v2974_v51 = vpop.f32.mrf.mxu2 }
0x334f   :  { %v2949_v17 = vpop.f32.mrf.mxu1 }
0x3350   :  { %v2977_v20 = vadd.f32 %v2974_v51, %v2949_v17 }
0x3352   :  { %v2980_v59 = vadd.f32 %v2977_v20, %v8979_v23  ;;  %v2979_v16 = vadd.f32 %v2977_v20, %v8910_v11  ;;  %v2978_v6 = vadd.f32 %v2977_v20, %v8841_v50  ;;  %v2983_v36 = vadd.f32 %v2977_v20, %v9270_v4 }
0x3353   :  { %v2982_v38 = vadd.f32 %v2977_v20, %v9186_v30  ;;  %v2981_v43 = vadd.f32 %v2977_v20, %v9105_v26  ;;  %v2985_v31 = vadd.f32 %v2977_v20, %v9379_v18  ;;  %v2984_v44 = vadd.f32 %v2977_v20, %v9317_v14 }
0x3354   :  { %7508 = vtanh.f32 %v2980_v59 }
0x3355   :  { %7510 = vtanh.f32 %v2979_v16 }
0x3356   :  { %7512 = vtanh.f32 %v2978_v6 }
0x3357   :  { %7514 = vtanh.f32 %v2983_v36 }
0x3358   :  { %7516 = vtanh.f32 %v2982_v38 }
0x3359   :  { %7518 = vtanh.f32 %v2981_v43 }
0x335a   :  { %v7509_v41 = vpop.eup %7508  ;;  %7520 = vtanh.f32 %v2985_v31 }
0x335b   :  { %v7511_v45 = vpop.eup %7510  ;;  %v2996_v49 = vmul.f32 %v7509_v41, %v9350_v19  ;;  %7522 = vtanh.f32 %v2984_v44 }
0x335c   :  { %v7513_v56 = vpop.eup %7512  ;;  %v2995_v52 = vmul.f32 %v7511_v45, %v9350_v19 }
0x335d   :  { %v3008_v27 = vsel %vm2638_vm14, %v2996_v49, 0.0  ;;  %v2994_v25 = vmul.f32 %v7513_v56, %v9350_v19  ;;  %v7515_v39 = vpop.eup %7514 }
0x335e   :  { %3009 = vadd.xlane.f32.xlu1 %v3008_v27  ;;  %v3005_v2 = vsel %vm2638_vm14, %v2995_v52, 0.0  ;;  %v7517_v15 = vpop.eup %7516  ;;  %v2999_v10 = vmul.f32 %v7515_v39, %v9350_v19 }
0x335f   :  { %3006 = vadd.xlane.f32.xlu0 %v3005_v2  ;;  %v3002_v37 = vsel %vm2638_vm14, %v2994_v25, 0.0  ;;  %v7519_v46 = vpop.eup %7518  ;;  %v2998_v51 = vmul.f32 %v7517_v15, %v9350_v19 }
0x3360   :  { %3003 = vadd.xlane.f32.xlu2 %v3002_v37  ;;  %v2997_v17 = vmul.f32 %v7519_v46, %v9350_v19  ;;  %v3017_v59 = vsel %vm2638_vm14, %v2999_v10, 0.0  ;;  %v7521_v20 = vpop.eup %7520 }
0x3361   :  { %v3014_v16 = vsel %vm2638_vm14, %v2998_v51, 0.0  ;;  %v7523_v36 = vpop.eup %7522  ;;  %v3001_v38 = vmul.f32 %v7521_v20, %v9350_v19 }
0x3362   :  { %v3011_v6 = vsel %vm2638_vm14, %v2997_v17, 0.0  ;;  %v3000_v43 = vmul.f32 %v7523_v36, %v9350_v19 }
0x3363   :  { %v3023_v41 = vsel %vm2638_vm14, %v3001_v38, 0.0 }
0x3364   :  { %v3020_v45 = vsel %vm2638_vm14, %v3000_v43, 0.0 }
0x3366   :  { %3018 = vadd.xlane.f32.xlu1 %v3017_v59 }
0x3367   :  { %3015 = vadd.xlane.f32.xlu0 %v3014_v16 }
0x3368   :  { %3012 = vadd.xlane.f32.xlu2 %v3011_v6 }
0x336f   :  { %3024 = vadd.xlane.f32.xlu0 %v3023_v41 }
0x3370   :  { %3021 = vadd.xlane.f32.xlu2 %v3020_v45 }
0x33d1   :  { %v3010_v56 = vpop.xlane.xlu1 %3009 }
0x33d2   :  { %v3007_v49 = vpop.xlane.xlu0 %3006  ;;  %v3028_v2 = vmul.f32 %v3010_v56, %v8937_v54 }
0x33d3   :  { %v3027_v52 = vmul.f32 %v3007_v49, %v8875_v29  ;;  %v3004_v27 = vpop.xlane.xlu2 %3003 }
0x33d4   :  { %v3026_v25 = vmul.f32 %v3004_v27, %v8801_v63  ;;  %v3037_v37 = vsel %vm2671_vm5, %v3028_v2, 0.0  ;;  %v3097_v2 = vpop.f32.mrf.mxu0 }
0x33d5   :  { %v3035_v31 = vsel %vm2671_vm5, %v3027_v52, 0.0 }
0x33d6   :  { %v3034_v39 = vsel %vm2671_vm5, %v3026_v25, 0.0 }
0x33d7   :  { %v3036_v19 = vadd.f32 %v3035_v31, %v3034_v39 }
0x33d9   :  { %v3019_v51 = vpop.xlane.xlu1 %3018  ;;  %v3038_v17 = vadd.f32 %v3037_v37, %v3036_v19  ;;  %v3101_v37 = vrot.slane %v3097_v2, 7 }
0x33da   :  { %v3016_v44 = vpop.xlane.xlu0 %3015  ;;  %v3031_v20 = vmul.f32 %v3019_v51, %v9235_v55 }
0x33db   :  { %v3013_v15 = vpop.xlane.xlu2 %3012  ;;  %v3030_v46 = vmul.f32 %v3016_v44, %v9138_v33 }
0x33dc   :  { %v3029_v10 = vmul.f32 %v3013_v15, %v9006_v42  ;;  %v3043_v41 = vsel %vm2671_vm5, %v3031_v20, 0.0 }
0x33dd   :  { %v3041_v6 = vsel %vm2671_vm5, %v3030_v46, 0.0 }
0x33de   :  { %v3039_v59 = vsel %vm2671_vm5, %v3029_v10, 0.0 }
0x33df   :  { %v3040_v16 = vadd.f32 %v3039_v59, %v3038_v17 }
0x33e1   :  { %v3042_v36 = vadd.f32 %v3041_v6, %v3040_v16 }
0x33e2   :  { %v3025_v38 = vpop.xlane.xlu0 %3024 }
0x33e3   :  { %v3022_v43 = vpop.xlane.xlu2 %3021  ;;  %v3033_v45 = vmul.f32 %v3025_v38, %v9362_v21  ;;  %v3044_v56 = vadd.f32 %v3043_v41, %v3042_v36 }
0x33e4   :  { %v3032_v49 = vmul.f32 %v3022_v43, %v9295_v3 }
0x33e5   :  { %v3047_v25 = vsel %vm2671_vm5, %v3033_v45, 0.0 }
0x33e6   :  { %v3045_v52 = vsel %vm2671_vm5, %v3032_v49, 0.0 }
0x33e7   :  { %v3046_v27 = vadd.f32 %v3045_v52, %v3044_v56 }
0x33e9   :  { %v3048_v31 = vadd.f32 %v3047_v25, %v3046_v27 }
0x33eb   :  { %3050 = vrot.lane.b32.xlu1 %v3048_v31, %s8404_s7 }
0x345d   :  { %v3051_v39 = vpop.permute.xlu1 %3050 }
0x345e   :  { %7109 = vmatmul.msk.f32.vlgmr.msra.gmra.mxu3 %vm348_vm9, %v3051_v39 }
0x345f   :  { %7129 = vmatpush.msk.msra.mxu3 %vm352_vm0, %v9471_v48 }
0x3461   :  { %3551 = vmatpush.msra.mxu3 %v9473_v47 }
0x3463   :  { %3552 = vmatpush.msra.mxu3 %v9481_v0 }
0x34e1   :  { %v3071_v19 = vpop.f32.mrf.mxu3 }
0x34e2   :  { %v3075_v44 = vrot.slane %v3071_v19, 7  ;;  %v3079_v15 = vadd.f32 %v3071_v19, %v9451_v60 }
0x34e4   :  { %v3078_v46 = vadd.f32 %v3075_v44, %v9449_v28  ;;  %v3105_v10 = vadd.f32 %v3097_v2, %v3079_v15 }
0x34e6   :  { %v3104_v51 = vadd.f32 %v3101_v37, %v3078_v46  ;;  %v3107_v17 = vadd.f32 %v9454_v40, %v3105_v10 }
0x34e8   :  { %v3106_v59 = vadd.f32 %v9454_v40, %v3104_v51  ;;  %7524 = vtanh.f32 %v3107_v17  ;;  %v7113_v43 = vmul.f32 -1.442695, %v3107_v17 }
0x34ea   :  { %7526 = vtanh.f32 %v3106_v59  ;;  %v7112_v6 = vmul.f32 -1.442695, %v3106_v59 }
0x34ec   :  { %7528 = vpow2.f32 %v7112_v6 }
0x34ee   :  { %v7525_v16 = vpop.eup %7524 }
0x34ef   :  { %3160 = vrot.lane.b32.xlu0 %v7525_v16, %s8402_s12 }
0x34f0   :  { %v7527_v20 = vpop.eup %7526 }
0x34f1   :  { %3158 = vrot.lane.b32.xlu2 %v7527_v20, %s8402_s12 }
0x34f2   :  { %v7529_v36 = vpop.eup %7528 }
0x34f3   :  { %v3114_v38 = vadd.f32 1.0, %v7529_v36 }
0x34f5   :  { %7530 = vrcp.f32 %v3114_v38  ;;  %v3127_v31 = vand.u32 2147483648, %v3114_v38  ;;  %vm3121_vm8 = vweird.f32 %v3114_v38  ;;  %v3125_v39 = vand.u32 2147483647, %v3114_v38 }
0x34f6   :  { %7532 = vpow2.f32 %v7113_v43 }
0x34f7   :  { %v3128_v19 = vor.u32 1.1754944e-38, %v3127_v31  ;;  %vm3126_vm11 = vcmp.eq.f32.partialorder %v3125_v39, 8.507059e+37 }
0x34fb   :  { %v7531_v41 = vpop.eup %7530 }
0x34fc   :  { %v3117_v45 = vmul.f32 %v7531_v41, %v3114_v38  ;;  %v7533_v56 = vpop.eup %7532  ;;  %vm3122_vm7 = vweird.f32 %v7531_v41 }
0x34fd   :  { %v3115_v52 = vadd.f32 1.0, %v7533_v56  ;;  %vm3123_vm10 = vmor %vm3121_vm8, %vm3122_vm7 }
0x34fe   :  { %v3118_v49 = vsub.f32 1.0, %v3117_v45  ;;  %v3150_v45 = vrot.slane %v9463_v32, 7 }
0x34ff   :  { %7534 = vrcp.f32 %v3115_v52  ;;  %v3142_v16 = vand.u32 2147483648, %v3115_v52  ;;  %vm3136_vm13 = vweird.f32 %v3115_v52  ;;  %v3140_v20 = vand.u32 2147483647, %v3115_v52 }
0x3500   :  { %v3119_v27 = vmul.f32 %v7531_v41, %v3118_v49 }
0x3501   :  { %v3143_v36 = vor.u32 1.1754944e-38, %v3142_v16  ;;  %vm3141_vm2 = vcmp.eq.f32.partialorder %v3140_v20, 8.507059e+37  ;;  %v3205_v16 = vpop.f32.mrf.mxu1 }
0x3502   :  { %v3120_v25 = vadd.f32 %v7531_v41, %v3119_v27 }
0x3504   :  { %v3124_v2 = vsel %vm3123_vm10, %v7531_v41, %v3120_v25 }
0x3505   :  { %v7535_v44 = vpop.eup %7534  ;;  %v3129_v37 = vsel %vm3126_vm11, %v3128_v19, %v3124_v2 }
0x3506   :  { %v3132_v10 = vmul.f32 %v7535_v44, %v3115_v52  ;;  %vm3137_vm12 = vweird.f32 %v7535_v44  ;;  %v3154_v49 = vmul.f32 %v3150_v45, %v3129_v37  ;;  %v3151_v52 = vrot.slane %v9466_v8, 7  ;;  %v9643_v8 = vld [vmem:[%s10935_s0 + $0x10] sm:$0xf] }
0x3507   :  { %vm3138_vm4 = vmor %vm3136_vm13, %vm3137_vm12 }
0x3508   :  { %v3133_v51 = vsub.f32 1.0, %v3132_v10 }
0x350a   :  { %v3134_v17 = vmul.f32 %v7535_v44, %v3133_v51 }
0x350c   :  { %v3135_v59 = vadd.f32 %v7535_v44, %v3134_v17 }
0x350e   :  { %v3139_v6 = vsel %vm3138_vm4, %v7535_v44, %v3135_v59  ;;  %v9656_v59 = vld [vmem:[%s10935_s0] sm:$0xff] }
0x350f   :  { %v3144_v43 = vsel %vm3141_vm2, %v3143_v36, %v3139_v6 }
0x3510   :  { %v3155_v31 = vmul.f32 %v3151_v52, %v3144_v43 }
0x354b   :  { %v3159_v15 = vpop.permute.xlu2 %3158 }
0x354c   :  { %v3164_v46 = vmul.f32 %v3159_v15, %v3129_v37 }
0x354e   :  { %3168 = vrot.lane.b32.xlu1 %v3164_v46, %s8403_s3 }
0x3561   :  { %v3161_v38 = vpop.permute.xlu0 %3160 }
0x3562   :  { %v3165_v41 = vmul.f32 %v3161_v38, %v3144_v43 }
0x3564   :  { %3170 = vrot.lane.b32.xlu0 %v3165_v41, %s8403_s3 }
0x35c0   :  { %v3169_v56 = vpop.permute.xlu1 %3168 }
0x35c1   :  { %v9628_v27 = vadd.f32 %v3169_v56, %v3154_v49 }
0x35c3   :  { %7536 = vtanh.f32 %v9628_v27 }
0x35c9   :  { %v7537_v25 = vpop.eup %7536 }
0x35ca   :  { %3180 = vrot.lane.b32.xlu2 %v7537_v25, %s8403_s3 }
0x35d6   :  { %v3171_v39 = vpop.permute.xlu0 %3170 }
0x35d7   :  { %v9633_v2 = vadd.f32 %v3171_v39, %v3155_v31 }
0x35d9   :  { %7538 = vtanh.f32 %v9633_v2 }
0x35df   :  { %v7539_v19 = vpop.eup %7538 }
0x35e0   :  { %3182 = vrot.lane.b32.xlu1 %v7539_v19, %s8403_s3 }
0x3624   :  { %v3181_v32 = vpop.permute.xlu2 %3180 }
0x3625   :  { %v3186_v44 = vmul.f32 %v3181_v32, %v3129_v37  ;;  %v9650_v37 = vld [vmem:[%s10935_s0 + $0x8] sm:$0xff] }
0x3627   :  { %v3210_v46 = vrot.slane %v3186_v44, 1 }
0x3652   :  { %v3183_v15 = vpop.permute.xlu1 %3182 }
0x3653   :  { %v3187_v10 = vmul.f32 %v3183_v15, %v3144_v43 }
0x3655   :  { %v3211_v51 = vsel %vm457_vm3, %v3187_v10, %v3210_v46 }
0x3656   :  { %3212 = vrot.lane.b32.xlu0 %v3211_v51, %s8404_s7 }
0x36c8   :  { %v3213_v17 = vpop.permute.xlu0 %3212 }
0x36c9   :  { %7117 = vmatmul.msk.f32.vlgmr.msrb.gmra.mxu2 %vm348_vm9, %v3213_v17 }
0x36ca   :  { %7136 = vmatpush.msk.msrb.mxu2 %vm352_vm0, %v9643_v8 }
0x36cc   :  { %3668 = vmatpush.msrb.mxu2 %v9650_v37 }
0x36ce   :  { %3669 = vmatpush.msrb.mxu2 %v9656_v59 }
0x36d1   :  { %7126 = vmatmul.msk.f32.vlgmr.msra.gmra.mxu2 %vm348_vm9, %v3213_v17 }
0x36d2   :  { %7146 = vmatpush.msk.msra.mxu2 %vm352_vm0, %v9477_v12 }
0x36d4   :  { %3930 = vmatpush.msra.mxu2 %v9479_v5 }
0x36d6   :  { %3931 = vmatpush.msra.mxu2 %v9488_v22 }
0x374c   :  { %v3233_v20 = vpop.f32.mrf.mxu2 }
0x374d   :  { %v3234_v6 = vadd.f32 %v3233_v20, %v3205_v16 }
0x374f   :  { %v3236_v36 = vadd.f32 %v9519_v7, %v3234_v6 }
0x3751   :  { %7540 = vtanh.f32 %v3236_v36  ;;  %v7118_v43 = vmul.f32 -1.442695, %v3236_v36 }
0x3753   :  { %7542 = vpow2.f32 %v7118_v43 }
0x3757   :  { %v7541_v38 = vpop.eup %7540 }
0x3758   :  { %3259 = vrot.lane.b32.xlu2 %v7541_v38, %s8402_s12 }
0x3759   :  { %v7543_v41 = vpop.eup %7542 }
0x375a   :  { %v3240_v45 = vadd.f32 1.0, %v7543_v41 }
0x375c   :  { %7544 = vrcp.f32 %v3240_v45  ;;  %v3252_v39 = vand.u32 2147483648, %v3240_v45  ;;  %vm3246_vm7 = vweird.f32 %v3240_v45  ;;  %v3250_v19 = vand.u32 2147483647, %v3240_v45 }
0x375e   :  { %v3253_v44 = vor.u32 1.1754944e-38, %v3252_v39  ;;  %vm3251_vm10 = vcmp.eq.f32.partialorder %v3250_v19, 8.507059e+37 }
0x3762   :  { %v7545_v49 = vpop.eup %7544 }
0x3763   :  { %v3242_v56 = vmul.f32 %v7545_v49, %v3240_v45  ;;  %vm3247_vm6 = vweird.f32 %v7545_v49 }
0x3764   :  { %vm3248_vm8 = vmor %vm3246_vm7, %vm3247_vm6 }
0x3765   :  { %v3243_v25 = vsub.f32 1.0, %v3242_v56 }
0x3767   :  { %v3244_v52 = vmul.f32 %v7545_v49, %v3243_v25  ;;  %v9696_v25 = vld [vmem:[#allocation2] ss:$0 sm:$0xff] }
0x3769   :  { %v3245_v31 = vadd.f32 %v7545_v49, %v3244_v52 }
0x376b   :  { %v3249_v32 = vsel %vm3248_vm8, %v7545_v49, %v3245_v31 }
0x376c   :  { %v3254_v46 = vsel %vm3251_vm10, %v3253_v44, %v3249_v32 }
0x376d   :  { %v3257_v51 = vmul.f32 %v3254_v46, %v9524_v9 }
0x37b2   :  { %v3260_v15 = vpop.permute.xlu2 %3259 }
0x37b3   :  { %v3262_v10 = vmul.f32 %v3260_v15, %v3254_v46 }
0x37b5   :  { %3264 = vrot.lane.b32.xlu1 %v3262_v10, %s8403_s3 }
0x3827   :  { %v3265_v17 = vpop.permute.xlu1 %3264 }
0x3828   :  { %v9668_v16 = vadd.f32 %v3265_v17, %v3257_v51 }
0x382a   :  { %7546 = vtanh.f32 %v9668_v16  ;;  %3300 = vrot.lane.b32.xlu1 %v9668_v16, %s8405_s20 }
0x3830   :  { %v7547_v20 = vpop.eup %7546 }
0x3831   :  { %3270 = vrot.lane.b32.xlu0 %v7547_v20, %s8403_s3 }
0x389c   :  { %v3301_v6 = vpop.permute.xlu1 %3300 }
0x389d   :  { %7122 = vmatmul.msk.f32.vlgmr.msra.gmra.mxu0 %vm348_vm9, %v3301_v6 }
0x389e   :  { %7140 = vmatpush.msk.msra.mxu0 %vm352_vm0, %v9389_v1 }
0x38a0   :  { %3792 = vmatpush.msra.mxu0 %v9395_v35 }
0x38a2   :  { %3793 = vmatpush.msra.mxu0 %v9412_v57 }
0x38a3   :  { %v3271_v9 = vpop.permute.xlu0 %3270 }
0x38a4   :  { %v3273_v36 = vmul.f32 %v3271_v9, %v3254_v46 }
0x38a6   :  { %3275 = vrot.lane.b32.xlu2 %v3273_v36, %s8404_s7 }
0x3900   :  { %v3276_v38 = vpop.permute.xlu2 %3275 }
0x3901   :  { %7120 = vmatmul.msk.f32.vlgmr.msrb.gmra.mxu3 %vm348_vm9, %v3276_v38 }
0x3902   :  { %7138 = vmatpush.msk.msrb.mxu3 %vm352_vm0, %v9397_v62 }
0x3904   :  { %3765 = vmatpush.msrb.mxu3 %v9406_v61 }
0x3906   :  { %3766 = vmatpush.msrb.mxu3 %v9414_v34 }
0x3909   :  { %7130 = vmatmul.msk.f32.vlgmr.msra.gmra.mxu3 %vm348_vm9, %v3276_v38 }
0x390a   :  { %7149 = vmatpush.msk.msra.mxu3 %vm352_vm0, %v9533_v24 }
0x390c   :  { %3993 = vmatpush.msra.mxu3 %v9538_v53 }
0x390e   :  { %3994 = vmatpush.msra.mxu3 %v9547_v58 }
0x391a   :  { %v3321_v1 = vpop.f32.mrf.mxu0 }
0x3984   :  { %v3296_v35 = vpop.f32.mrf.mxu3 }
0x3985   :  { %v3324_v57 = vadd.f32 %v3321_v1, %v3296_v35 }
0x3987   :  { %v3327_v43 = vadd.f32 %v3324_v57, %v8979_v23  ;;  %v3326_v62 = vadd.f32 %v3324_v57, %v8910_v11  ;;  %v3325_v61 = vadd.f32 %v3324_v57, %v8841_v50  ;;  %v3330_v34 = vadd.f32 %v3324_v57, %v9270_v4 }
0x3988   :  { %v3329_v41 = vadd.f32 %v3324_v57, %v9186_v30  ;;  %v3328_v45 = vadd.f32 %v3324_v57, %v9105_v26  ;;  %v3332_v44 = vadd.f32 %v3324_v57, %v9379_v18  ;;  %v3331_v10 = vadd.f32 %v3324_v57, %v9317_v14 }
0x3989   :  { %7548 = vtanh.f32 %v3327_v43 }
0x398a   :  { %7550 = vtanh.f32 %v3326_v62 }
0x398b   :  { %7552 = vtanh.f32 %v3325_v61 }
0x398c   :  { %7554 = vtanh.f32 %v3330_v34 }
0x398d   :  { %7556 = vtanh.f32 %v3329_v41 }
0x398e   :  { %7558 = vtanh.f32 %v3328_v45 }
0x398f   :  { %v7549_v49 = vpop.eup %7548  ;;  %7560 = vtanh.f32 %v3332_v44 }
0x3990   :  { %v7551_v56 = vpop.eup %7550  ;;  %v3343_v52 = vmul.f32 %v9696_v25, %v7549_v49  ;;  %7562 = vtanh.f32 %v3331_v10 }
0x3991   :  { %v7553_v31 = vpop.eup %7552  ;;  %v3342_v39 = vmul.f32 %v9696_v25, %v7551_v56 }
0x3992   :  { %v3355_v19 = vsel %vm2638_vm14, %v3343_v52, 0.0  ;;  %v3341_v32 = vmul.f32 %v9696_v25, %v7553_v31  ;;  %v7555_v15 = vpop.eup %7554 }
0x3993   :  { %3356 = vadd.xlane.f32.xlu1 %v3355_v19  ;;  %v3352_v46 = vsel %vm2638_vm14, %v3342_v39, 0.0  ;;  %v7557_v51 = vpop.eup %7556  ;;  %v3346_v6 = vmul.f32 %v9696_v25, %v7555_v15 }
0x3994   :  { %3353 = vadd.xlane.f32.xlu2 %v3352_v46  ;;  %v3349_v17 = vsel %vm2638_vm14, %v3341_v32, 0.0  ;;  %v7559_v20 = vpop.eup %7558  ;;  %v3345_v9 = vmul.f32 %v9696_v25, %v7557_v51 }
0x3995   :  { %3350 = vadd.xlane.f32.xlu0 %v3349_v17  ;;  %v3344_v36 = vmul.f32 %v9696_v25, %v7559_v20  ;;  %v3364_v38 = vsel %vm2638_vm14, %v3346_v6, 0.0  ;;  %v7561_v35 = vpop.eup %7560 }
0x3996   :  { %v3361_v1 = vsel %vm2638_vm14, %v3345_v9, 0.0  ;;  %v7563_v43 = vpop.eup %7562  ;;  %v3348_v62 = vmul.f32 %v9696_v25, %v7561_v35 }
0x3997   :  { %v3358_v57 = vsel %vm2638_vm14, %v3344_v36, 0.0  ;;  %v3347_v61 = vmul.f32 %v9696_v25, %v7563_v43 }
0x3998   :  { %v3370_v34 = vsel %vm2638_vm14, %v3348_v62, 0.0 }
0x3999   :  { %v3367_v41 = vsel %vm2638_vm14, %v3347_v61, 0.0 }
0x399b   :  { %3365 = vadd.xlane.f32.xlu1 %v3364_v38 }
0x399c   :  { %3362 = vadd.xlane.f32.xlu2 %v3361_v1 }
0x399d   :  { %3359 = vadd.xlane.f32.xlu0 %v3358_v57 }
0x39a4   :  { %3371 = vadd.xlane.f32.xlu2 %v3370_v34 }
0x39a5   :  { %3368 = vadd.xlane.f32.xlu0 %v3367_v41 }
0x3a06   :  { %v3357_v49 = vpop.xlane.xlu1 %3356 }
0x3a07   :  { %v3354_v45 = vpop.xlane.xlu2 %3353  ;;  %v3375_v32 = vmul.f32 %v3357_v49, %v8937_v54 }
0x3a08   :  { %v3374_v56 = vmul.f32 %v3354_v45, %v8875_v29  ;;  %v3351_v52 = vpop.xlane.xlu0 %3350 }
0x3a09   :  { %v3373_v31 = vmul.f32 %v3351_v52, %v8801_v63  ;;  %v3384_v10 = vsel %vm2671_vm5, %v3375_v32, 0.0 }
0x3a0a   :  { %v3382_v39 = vsel %vm2671_vm5, %v3374_v56, 0.0 }
0x3a0b   :  { %v3381_v19 = vsel %vm2671_vm5, %v3373_v31, 0.0 }
0x3a0c   :  { %v3383_v44 = vadd.f32 %v3382_v39, %v3381_v19  ;;  %v3445_v39 = vpop.f32.mrf.mxu2 }
0x3a0e   :  { %v3366_v20 = vpop.xlane.xlu1 %3365  ;;  %v3385_v6 = vadd.f32 %v3384_v10, %v3383_v44 }
0x3a0f   :  { %v3363_v15 = vpop.xlane.xlu2 %3362  ;;  %v3378_v38 = vmul.f32 %v3366_v20, %v9235_v55 }
0x3a10   :  { %v3360_v46 = vpop.xlane.xlu0 %3359  ;;  %v3377_v51 = vmul.f32 %v3363_v15, %v9138_v33  ;;  %v3449_v15 = vrot.slane %v3445_v39, 6 }
0x3a11   :  { %v3376_v17 = vmul.f32 %v3360_v46, %v9006_v42  ;;  %v3390_v62 = vsel %vm2671_vm5, %v3378_v38, 0.0  ;;  %v3450_v46 = vrot.slane %v3445_v39, 7 }
0x3a12   :  { %v3388_v1 = vsel %vm2671_vm5, %v3377_v51, 0.0 }
0x3a13   :  { %v3386_v9 = vsel %vm2671_vm5, %v3376_v17, 0.0 }
0x3a14   :  { %v3387_v36 = vadd.f32 %v3386_v9, %v3385_v6 }
0x3a16   :  { %v3389_v35 = vadd.f32 %v3388_v1, %v3387_v36 }
0x3a17   :  { %v3372_v57 = vpop.xlane.xlu2 %3371 }
0x3a18   :  { %v3369_v43 = vpop.xlane.xlu0 %3368  ;;  %v3380_v61 = vmul.f32 %v3372_v57, %v9362_v21  ;;  %v3391_v41 = vadd.f32 %v3390_v62, %v3389_v35 }
0x3a19   :  { %v3379_v34 = vmul.f32 %v3369_v43, %v9295_v3 }
0x3a1a   :  { %v3394_v56 = vsel %vm2671_vm5, %v3380_v61, 0.0 }
0x3a1b   :  { %v3392_v45 = vsel %vm2671_vm5, %v3379_v34, 0.0 }
0x3a1c   :  { %v3393_v49 = vadd.f32 %v3392_v45, %v3391_v41 }
0x3a1e   :  { %v3395_v52 = vadd.f32 %v3394_v56, %v3393_v49 }
0x3a20   :  { %3397 = vrot.lane.b32.xlu1 %v3395_v52, %s8404_s7 }
0x3a92   :  { %v3398_v31 = vpop.permute.xlu1 %3397 }
0x3a93   :  { %7124 = vmatmul.msk.f32.vlgmr.msrb.gmra.mxu1 %vm348_vm9, %v3398_v31 }
0x3a94   :  { %7144 = vmatpush.msk.msrb.mxu1 %vm352_vm0, %v9471_v48 }
0x3a96   :  { %3901 = vmatpush.msrb.mxu1 %v9473_v47 }
0x3a98   :  { %3902 = vmatpush.msrb.mxu1 %v9481_v0 }
0x3b10   :  { %v3418_v19 = vpop.f32.mrf.mxu1 }
0x3b11   :  { %v3422_v32 = vrot.slane %v3418_v19, 6  ;;  %v3423_v44 = vrot.slane %v3418_v19, 7 }
0x3b13   :  { %v3426_v10 = vadd.f32 %v3422_v32, %v9449_v28  ;;  %v3427_v51 = vadd.f32 %v3423_v44, %v9451_v60 }
0x3b15   :  { %v3453_v17 = vadd.f32 %v3449_v15, %v3426_v10  ;;  %v3454_v20 = vadd.f32 %v3450_v46, %v3427_v51 }
0x3b17   :  { %v3455_v6 = vadd.f32 %v9454_v40, %v3453_v17  ;;  %v3456_v48 = vadd.f32 %v9454_v40, %v3454_v20 }
0x3b19   :  { %7564 = vtanh.f32 %v3455_v6  ;;  %v7128_v9 = vmul.f32 -1.442695, %v3456_v48  ;;  %v7127_v35 = vmul.f32 -1.442695, %v3455_v6 }
0x3b1a   :  { %7566 = vtanh.f32 %v3456_v48 }
0x3b1b   :  { %7568 = vpow2.f32 %v7128_v9 }
0x3b1f   :  { %v7565_v47 = vpop.eup %7564 }
0x3b20   :  { %v7567_v0 = vpop.eup %7566  ;;  %3507 = vrot.lane.b32.xlu0 %v7565_v47, %s8402_s12 }
0x3b21   :  { %3509 = vrot.lane.b32.xlu2 %v7567_v0, %s8402_s12  ;;  %v7569_v36 = vpop.eup %7568  ;;  %v3500_v0 = vrot.slane %v9633_v2, 7 }
0x3b22   :  { %v3464_v38 = vadd.f32 1.0, %v7569_v36 }
0x3b24   :  { %7570 = vrcp.f32 %v3464_v38  ;;  %v3491_v41 = vand.u32 2147483648, %v3464_v38  ;;  %vm3485_vm12 = vweird.f32 %v3464_v38  ;;  %v3489_v45 = vand.u32 2147483647, %v3464_v38 }
0x3b25   :  { %7572 = vpow2.f32 %v7127_v35  ;;  %v3499_v35 = vrot.slane %v9628_v27, 7 }
0x3b26   :  { %v3492_v56 = vor.u32 1.1754944e-38, %v3491_v41  ;;  %vm3490_vm4 = vcmp.eq.f32.partialorder %v3489_v45, 8.507059e+37 }
0x3b2a   :  { %v7571_v1 = vpop.eup %7570 }
0x3b2b   :  { %v3481_v57 = vmul.f32 %v7571_v1, %v3464_v38  ;;  %v7573_v62 = vpop.eup %7572  ;;  %vm3486_vm11 = vweird.f32 %v7571_v1 }
0x3b2c   :  { %v3463_v61 = vadd.f32 1.0, %v7573_v62  ;;  %vm3487_vm13 = vmor %vm3485_vm12, %vm3486_vm11 }
0x3b2d   :  { %v3482_v43 = vsub.f32 1.0, %v3481_v57 }
0x3b2e   :  { %7574 = vrcp.f32 %v3463_v61  ;;  %v3476_v10 = vand.u32 2147483648, %v3463_v61  ;;  %vm3470_vm6 = vweird.f32 %v3463_v61  ;;  %v3474_v51 = vand.u32 2147483647, %v3463_v61 }
0x3b2f   :  { %v3483_v40 = vmul.f32 %v7571_v1, %v3482_v43 }
0x3b30   :  { %v3477_v20 = vor.u32 1.1754944e-38, %v3476_v10  ;;  %vm3475_vm8 = vcmp.eq.f32.partialorder %v3474_v51, 8.507059e+37 }
0x3b31   :  { %v3484_v34 = vadd.f32 %v7571_v1, %v3483_v40 }
0x3b33   :  { %v3488_v49 = vsel %vm3487_vm13, %v7571_v1, %v3484_v34 }
0x3b34   :  { %v3493_v31 = vsel %vm3490_vm4, %v3492_v56, %v3488_v49  ;;  %v7575_v39 = vpop.eup %7574 }
0x3b35   :  { %v3466_v32 = vmul.f32 %v7575_v39, %v3463_v61  ;;  %vm3471_vm2 = vweird.f32 %v7575_v39  ;;  %v3504_v9 = vmul.f32 %v3500_v0, %v3493_v31 }
0x3b36   :  { %vm3472_vm7 = vmor %vm3470_vm6, %vm3471_vm2 }
0x3b37   :  { %v3467_v44 = vsub.f32 1.0, %v3466_v32 }
0x3b39   :  { %v3468_v15 = vmul.f32 %v7575_v39, %v3467_v44 }
0x3b3b   :  { %v3469_v46 = vadd.f32 %v7575_v39, %v3468_v15 }
0x3b3d   :  { %v3473_v17 = vsel %vm3472_vm7, %v7575_v39, %v3469_v46 }
0x3b3e   :  { %v3478_v48 = vsel %vm3475_vm8, %v3477_v20, %v3473_v17 }
0x3b3f   :  { %v3503_v57 = vmul.f32 %v3499_v35, %v3478_v48 }
0x3b7b   :  { %v3510_v52 = vpop.permute.xlu2 %3509 }
0x3b7c   :  { %v3514_v19 = vmul.f32 %v3510_v52, %v3493_v31  ;;  %v3554_v52 = vpop.f32.mrf.mxu3 }
0x3b7e   :  { %3519 = vrot.lane.b32.xlu1 %v3514_v19, %s8403_s3 }
0x3b92   :  { %v3508_v6 = vpop.permute.xlu0 %3507 }
0x3b93   :  { %v3513_v47 = vmul.f32 %v3508_v6, %v3478_v48 }
0x3b95   :  { %3517 = vrot.lane.b32.xlu0 %v3513_v47, %s8403_s3 }
0x3bf0   :  { %v3520_v36 = vpop.permute.xlu1 %3519 }
0x3bf1   :  { %v9747_v38 = vadd.f32 %v3520_v36, %v3504_v9 }
0x3bf3   :  { %7576 = vtanh.f32 %v9747_v38 }
0x3bf9   :  { %v7577_v1 = vpop.eup %7576 }
0x3bfa   :  { %3531 = vrot.lane.b32.xlu0 %v7577_v1, %s8403_s3 }
0x3c07   :  { %v3518_v43 = vpop.permute.xlu0 %3517 }
0x3c08   :  { %v9752_v62 = vadd.f32 %v3518_v43, %v3503_v57  ;;  %v9782_v43 = vld [vmem:[%s10898_s22 + $0x10] sm:$0xf] }
0x3c0a   :  { %7578 = vtanh.f32 %v9752_v62 }
0x3c10   :  { %v7579_v40 = vpop.eup %7578 }
0x3c11   :  { %3529 = vrot.lane.b32.xlu2 %v7579_v40, %s8403_s3  ;;  %v9795_v40 = vld [vmem:[%s10898_s22] sm:$0xff] }
0x3c6b   :  { %v3530_v2 = vpop.permute.xlu2 %3529 }
0x3c6c   :  { %v3532_v61 = vpop.permute.xlu0 %3531  ;;  %v3535_v34 = vmul.f32 %v3530_v2, %v3478_v48 }
0x3c6d   :  { %v3536_v41 = vmul.f32 %v3532_v61, %v3493_v31 }
0x3c6e   :  { %v3559_v45 = vrot.slane %v3535_v34, 2 }
0x3c6f   :  { %v3560_v49 = vrot.slane %v3536_v41, 1  ;;  %v9800_v41 = vld [vmem:[#allocation18 + $0x10] sm:$0xf] }
0x3c71   :  { %v3561_v56 = vsel %vm457_vm3, %v3560_v49, %v3559_v45  ;;  %v9804_v45 = vld [vmem:[#allocation18 + $0x8] sm:$0xff]  ;;  %v9807_v49 = vld [vmem:[#allocation18] sm:$0xff] }
0x3c72   :  { %3562 = vrot.lane.b32.xlu1 %v3561_v56, %s8404_s7 }
0x3ce4   :  { %v3563_v27 = vpop.permute.xlu1 %3562 }
0x3ce5   :  { %7132 = vmatmul.msk.f32.vlgmr.msrb.gmra.mxu0 %vm348_vm9, %v3563_v27 }
0x3ce6   :  { %7151 = vmatpush.msk.msrb.mxu0 %vm352_vm0, %v9643_v8 }
0x3ce8   :  { %4018 = vmatpush.msrb.mxu0 %v9650_v37 }
0x3cea   :  { %4019 = vmatpush.msrb.mxu0 %v9656_v59 }
0x3ced   :  { %7141 = vmatmul.msk.f32.vlgmr.msra.gmra.mxu0 %vm348_vm9, %v3563_v27 }
0x3cee   :  { %7161 = vmatpush.msk.msra.mxu0 %vm352_vm0, %v9477_v12 }
0x3cf0   :  { %4280 = vmatpush.msra.mxu0 %v9479_v5 }
0x3cf2   :  { %4281 = vmatpush.msra.mxu0 %v9488_v22 }
0x3d62   :  { %v3583_v31 = vpop.f32.mrf.mxu0 }
0x3d63   :  { %v3584_v39 = vadd.f32 %v3583_v31, %v3554_v52 }
0x3d65   :  { %v3586_v19 = vadd.f32 %v9519_v7, %v3584_v39 }
0x3d67   :  { %7580 = vtanh.f32 %v3586_v19  ;;  %v7133_v44 = vmul.f32 -1.442695, %v3586_v19 }
0x3d69   :  { %7582 = vpow2.f32 %v7133_v44 }
0x3d6d   :  { %v7581_v32 = vpop.eup %7580 }
0x3d6e   :  { %3609 = vrot.lane.b32.xlu2 %v7581_v32, %s8402_s12 }
0x3d6f   :  { %v7583_v15 = vpop.eup %7582 }
0x3d70   :  { %v3590_v46 = vadd.f32 1.0, %v7583_v15 }
0x3d72   :  { %7584 = vrcp.f32 %v3590_v46  ;;  %v3602_v22 = vand.u32 2147483648, %v3590_v46  ;;  %vm3596_vm11 = vweird.f32 %v3590_v46  ;;  %v3600_v20 = vand.u32 2147483647, %v3590_v46 }
0x3d74   :  { %v3603_v6 = vor.u32 1.1754944e-38, %v3602_v22  ;;  %vm3601_vm13 = vcmp.eq.f32.partialorder %v3600_v20, 8.507059e+37 }
0x3d78   :  { %v7585_v10 = vpop.eup %7584 }
0x3d79   :  { %v3592_v12 = vmul.f32 %v7585_v10, %v3590_v46  ;;  %vm3597_vm10 = vweird.f32 %v7585_v10 }
0x3d7a   :  { %vm3598_vm12 = vmor %vm3596_vm11, %vm3597_vm10 }
0x3d7b   :  { %v3593_v51 = vsub.f32 1.0, %v3592_v12 }
0x3d7d   :  { %v3594_v5 = vmul.f32 %v7585_v10, %v3593_v51 }
0x3d7f   :  { %v3595_v17 = vadd.f32 %v7585_v10, %v3594_v5 }
0x3d81   :  { %v3599_v7 = vsel %vm3598_vm12, %v7585_v10, %v3595_v17 }
0x3d82   :  { %v3604_v47 = vsel %vm3601_vm13, %v3603_v6, %v3599_v7 }
0x3d83   :  { %v3607_v9 = vmul.f32 %v3604_v47, %v9668_v16  ;;  %v9789_v16 = vld [vmem:[%s10898_s22 + $0x8] sm:$0xff] }
0x3dc8   :  { %v3610_v48 = vpop.permute.xlu2 %3609 }
0x3dc9   :  { %v3612_v0 = vmul.f32 %v3610_v48, %v3604_v47 }
0x3dcb   :  { %3614 = vrot.lane.b32.xlu0 %v3612_v0, %s8403_s3 }
0x3e3d   :  { %v3615_v36 = vpop.permute.xlu0 %3614 }
0x3e3e   :  { %v9772_v1 = vadd.f32 %v3615_v36, %v3607_v9 }
0x3e40   :  { %7586 = vtanh.f32 %v9772_v1  ;;  %3650 = vrot.lane.b32.xlu2 %v9772_v1, %s8405_s20 }
0x3e46   :  { %v7587_v35 = vpop.eup %7586 }
0x3e47   :  { %3620 = vrot.lane.b32.xlu1 %v7587_v35, %s8403_s3 }
0x3e9a   :  { %v3651_v57 = vpop.permute.xlu2 %3650 }
0x3e9b   :  { %7137 = vmatmul.msk.f32.vlgmr.msrb.gmra.mxu2 %vm348_vm9, %v3651_v57 }
0x3e9c   :  { %7155 = vmatpush.msk.msrb.mxu2 %vm352_vm0, %v9782_v43 }
0x3e9e   :  { %4142 = vmatpush.msrb.mxu2 %v9789_v16 }
0x3ea0   :  { %4143 = vmatpush.msrb.mxu2 %v9795_v40 }
0x3eb9   :  { %v3621_v2 = vpop.permute.xlu1 %3620 }
0x3eba   :  { %v3623_v61 = vmul.f32 %v3621_v2, %v3604_v47 }
0x3ebc   :  { %3625 = vrot.lane.b32.xlu0 %v3623_v61, %s8404_s7 }
0x3f1e   :  { %v3671_v56 = vpop.f32.mrf.mxu2 }
0x3f2e   :  { %v3626_v34 = vpop.permute.xlu0 %3625 }
0x3f2f   :  { %7135 = vmatmul.msk.f32.vlgmr.msra.gmra.mxu1 %vm348_vm9, %v3626_v34 }
0x3f30   :  { %7153 = vmatpush.msk.msra.mxu1 %vm352_vm0, %v9800_v41 }
0x3f32   :  { %4115 = vmatpush.msra.mxu1 %v9804_v45 }
0x3f34   :  { %4116 = vmatpush.msra.mxu1 %v9807_v49 }
0x3f37   :  { %7145 = vmatmul.msk.f32.vlgmr.msrb.gmra.mxu1 %vm348_vm9, %v3626_v34 }
0x3f38   :  { %7164 = vmatpush.msk.msrb.mxu1 %vm352_vm0, %v9533_v24 }
0x3f3a   :  { %4343 = vmatpush.msrb.mxu1 %v9538_v53 }
0x3f3c   :  { %4344 = vmatpush.msrb.mxu1 %v9547_v58 }
0x3fac   :  { %v3646_v27 = vpop.f32.mrf.mxu1 }
0x3fad   :  { %v3674_v52 = vadd.f32 %v3671_v56, %v3646_v27 }
0x3faf   :  { %v3677_v31 = vadd.f32 %v3674_v52, %v8979_v23  ;;  %v3676_v39 = vadd.f32 %v3674_v52, %v8910_v11  ;;  %v3675_v19 = vadd.f32 %v3674_v52, %v8841_v50  ;;  %v3680_v32 = vadd.f32 %v3674_v52, %v9270_v4 }
0x3fb0   :  { %v3679_v44 = vadd.f32 %v3674_v52, %v9186_v30  ;;  %v3678_v24 = vadd.f32 %v3674_v52, %v9105_v26  ;;  %v3682_v5 = vadd.f32 %v3674_v52, %v9379_v18  ;;  %v3681_v20 = vadd.f32 %v3674_v52, %v9317_v14 }
0x3fb1   :  { %7588 = vtanh.f32 %v3677_v31 }
0x3fb2   :  { %7590 = vtanh.f32 %v3676_v39 }
0x3fb3   :  { %7592 = vtanh.f32 %v3675_v19 }
0x3fb4   :  { %7594 = vtanh.f32 %v3680_v32 }
0x3fb5   :  { %7596 = vtanh.f32 %v3679_v44 }
0x3fb6   :  { %7598 = vtanh.f32 %v3678_v24 }
0x3fb7   :  { %v7589_v53 = vpop.eup %7588  ;;  %7600 = vtanh.f32 %v3682_v5 }
0x3fb8   :  { %v7591_v58 = vpop.eup %7590  ;;  %v3693_v15 = vmul.f32 %v9696_v25, %v7589_v53  ;;  %7602 = vtanh.f32 %v3681_v20 }
0x3fb9   :  { %v7593_v46 = vpop.eup %7592  ;;  %v3692_v10 = vmul.f32 %v9696_v25, %v7591_v58 }
0x3fba   :  { %v3705_v12 = vsel %vm2638_vm14, %v3693_v15, 0.0  ;;  %v3691_v51 = vmul.f32 %v9696_v25, %v7593_v46  ;;  %v7595_v17 = vpop.eup %7594 }
0x3fbb   :  { %3706 = vadd.xlane.f32.xlu0 %v3705_v12  ;;  %v3702_v22 = vsel %vm2638_vm14, %v3692_v10, 0.0  ;;  %v7597_v7 = vpop.eup %7596  ;;  %v3696_v47 = vmul.f32 %v9696_v25, %v7595_v17 }
0x3fbc   :  { %3703 = vadd.xlane.f32.xlu2 %v3702_v22  ;;  %v3699_v6 = vsel %vm2638_vm14, %v3691_v51, 0.0  ;;  %v7599_v48 = vpop.eup %7598  ;;  %v3695_v0 = vmul.f32 %v9696_v25, %v7597_v7 }
0x3fbd   :  { %3700 = vadd.xlane.f32.xlu1 %v3699_v6  ;;  %v3694_v9 = vmul.f32 %v9696_v25, %v7599_v48  ;;  %v3714_v36 = vsel %vm2638_vm14, %v3696_v47, 0.0  ;;  %v7601_v57 = vpop.eup %7600 }
0x3fbe   :  { %v3711_v35 = vsel %vm2638_vm14, %v3695_v0, 0.0  ;;  %v7603_v61 = vpop.eup %7602  ;;  %v3698_v34 = vmul.f32 %v9696_v25, %v7601_v57 }
0x3fbf   :  { %v3708_v2 = vsel %vm2638_vm14, %v3694_v9, 0.0  ;;  %v3697_v56 = vmul.f32 %v9696_v25, %v7603_v61 }
0x3fc0   :  { %v3720_v27 = vsel %vm2638_vm14, %v3698_v34, 0.0 }
0x3fc1   :  { %v3717_v52 = vsel %vm2638_vm14, %v3697_v56, 0.0 }
0x3fc3   :  { %3715 = vadd.xlane.f32.xlu0 %v3714_v36 }
0x3fc4   :  { %3712 = vadd.xlane.f32.xlu2 %v3711_v35 }
0x3fc5   :  { %3709 = vadd.xlane.f32.xlu1 %v3708_v2 }
0x3fcc   :  { %3721 = vadd.xlane.f32.xlu2 %v3720_v27 }
0x3fcd   :  { %3718 = vadd.xlane.f32.xlu1 %v3717_v52 }
0x402e   :  { %v3707_v39 = vpop.xlane.xlu0 %3706 }
0x402f   :  { %v3704_v31 = vpop.xlane.xlu2 %3703  ;;  %v3725_v58 = vmul.f32 %v3707_v39, %v8937_v54  ;;  %v9861_v39 = vld [vmem:[#allocation22 + $0x8] sm:$0xff] }
0x4030   :  { %v3724_v19 = vmul.f32 %v3704_v31, %v8875_v29  ;;  %v3701_v32 = vpop.xlane.xlu1 %3700  ;;  %v9857_v31 = vld [vmem:[#allocation22 + $0x10] sm:$0xf] }
0x4031   :  { %v3723_v44 = vmul.f32 %v3701_v32, %v8801_v63  ;;  %v3734_v12 = vsel %vm2671_vm5, %v3725_v58, 0.0  ;;  %v3795_v32 = vpop.f32.mrf.mxu0 }
0x4032   :  { %v3732_v24 = vsel %vm2671_vm5, %v3724_v19, 0.0  ;;  %v9864_v19 = vld [vmem:[#allocation22] sm:$0xff]  ;;  %v3799_v58 = vrot.slane %v3795_v32, 5 }
0x4033   :  { %v3731_v53 = vsel %vm2671_vm5, %v3723_v44, 0.0 }
0x4034   :  { %v3733_v15 = vadd.f32 %v3732_v24, %v3731_v53 }
0x4036   :  { %v3716_v17 = vpop.xlane.xlu0 %3715  ;;  %v3735_v22 = vadd.f32 %v3734_v12, %v3733_v15  ;;  %v3800_v15 = vrot.slane %v3795_v32, 6 }
0x4037   :  { %v3713_v46 = vpop.xlane.xlu2 %3712  ;;  %v3728_v6 = vmul.f32 %v3716_v17, %v9235_v55 }
0x4038   :  { %v3710_v10 = vpop.xlane.xlu1 %3709  ;;  %v3727_v51 = vmul.f32 %v3713_v46, %v9138_v33 }
0x4039   :  { %v3726_v5 = vmul.f32 %v3710_v10, %v9006_v42  ;;  %v3740_v36 = vsel %vm2671_vm5, %v3728_v6, 0.0 }
0x403a   :  { %v3738_v48 = vsel %vm2671_vm5, %v3727_v51, 0.0 }
0x403b   :  { %v3736_v20 = vsel %vm2671_vm5, %v3726_v5, 0.0  ;;  %v9869_v5 = vld [vmem:[#allocation19] ss:$0 sm:$0xff] }
0x403c   :  { %v3737_v7 = vadd.f32 %v3736_v20, %v3735_v22 }
0x403e   :  { %v3739_v47 = vadd.f32 %v3738_v48, %v3737_v7 }
0x403f   :  { %v3722_v0 = vpop.xlane.xlu2 %3721 }
0x4040   :  { %v3719_v9 = vpop.xlane.xlu1 %3718  ;;  %v3730_v35 = vmul.f32 %v3722_v0, %v9362_v21  ;;  %v3741_v2 = vadd.f32 %v3740_v36, %v3739_v47 }
0x4041   :  { %v3729_v57 = vmul.f32 %v3719_v9, %v9295_v3 }
0x4042   :  { %v3744_v56 = vsel %vm2671_vm5, %v3730_v35, 0.0 }
0x4043   :  { %v3742_v61 = vsel %vm2671_vm5, %v3729_v57, 0.0 }
0x4044   :  { %v3743_v34 = vadd.f32 %v3742_v61, %v3741_v2 }
0x4046   :  { %v3745_v27 = vadd.f32 %v3744_v56, %v3743_v34 }
0x4048   :  { %3747 = vrot.lane.b32.xlu0 %v3745_v27, %s8404_s7 }
0x40ba   :  { %v3748_v52 = vpop.permute.xlu0 %3747 }
0x40bb   :  { %7139 = vmatmul.msk.f32.vlgmr.msrb.gmra.mxu3 %vm348_vm9, %v3748_v52 }
0x40bc   :  { %7159 = vmatpush.msk.msrb.mxu3 %vm352_vm0, %v9857_v31 }
0x40be   :  { %4251 = vmatpush.msrb.mxu3 %v9861_v39 }
0x40c0   :  { %4252 = vmatpush.msrb.mxu3 %v9864_v19 }
0x413e   :  { %v3768_v44 = vpop.f32.mrf.mxu3 }
0x413f   :  { %v3772_v24 = vrot.slane %v3768_v44, 5  ;;  %v3773_v53 = vrot.slane %v3768_v44, 6 }
0x4141   :  { %v3776_v46 = vadd.f32 %v3772_v24, %v9449_v28  ;;  %v3777_v10 = vadd.f32 %v3773_v53, %v9451_v60 }
0x4143   :  { %v3803_v12 = vadd.f32 %v3799_v58, %v3776_v46  ;;  %v3804_v51 = vadd.f32 %v3800_v15, %v3777_v10 }
0x4145   :  { %v3805_v17 = vadd.f32 %v9869_v5, %v3803_v12  ;;  %v3806_v22 = vadd.f32 %v9869_v5, %v3804_v51 }
0x4147   :  { %7604 = vtanh.f32 %v3805_v17  ;;  %v7142_v6 = vmul.f32 -1.442695, %v3805_v17  ;;  %v7143_v48 = vmul.f32 -1.442695, %v3806_v22 }
0x4148   :  { %7606 = vtanh.f32 %v3806_v22 }
0x4149   :  { %7608 = vpow2.f32 %v7142_v6 }
0x414a   :  { %7610 = vpow2.f32 %v7143_v48 }
0x414d   :  { %v7605_v20 = vpop.eup %7604 }
0x414e   :  { %v7607_v7 = vpop.eup %7606  ;;  %3857 = vrot.lane.b32.xlu1 %v7605_v20, %s8402_s12 }
0x414f   :  { %3859 = vrot.lane.b32.xlu2 %v7607_v7, %s8402_s12  ;;  %v7609_v47 = vpop.eup %7608 }
0x4150   :  { %v3813_v0 = vadd.f32 1.0, %v7609_v47  ;;  %v7611_v9 = vpop.eup %7610  ;;  %v3849_v47 = vrot.slane %v9752_v62, 7 }
0x4151   :  { %v3814_v36 = vadd.f32 1.0, %v7611_v9 }
0x4152   :  { %7612 = vrcp.f32 %v3813_v0  ;;  %v3826_v32 = vand.u32 2147483648, %v3813_v0  ;;  %vm3820_vm2 = vweird.f32 %v3813_v0  ;;  %v3824_v44 = vand.u32 2147483647, %v3813_v0 }
0x4153   :  { %7614 = vrcp.f32 %v3814_v36  ;;  %v3841_v51 = vand.u32 2147483648, %v3814_v36  ;;  %vm3835_vm10 = vweird.f32 %v3814_v36  ;;  %v3839_v17 = vand.u32 2147483647, %v3814_v36 }
0x4154   :  { %v3827_v58 = vor.u32 1.1754944e-38, %v3826_v32  ;;  %vm3825_vm7 = vcmp.eq.f32.partialorder %v3824_v44, 8.507059e+37 }
0x4155   :  { %v3842_v7 = vor.u32 1.1754944e-38, %v3841_v51  ;;  %vm3840_vm12 = vcmp.eq.f32.partialorder %v3839_v17, 8.507059e+37 }
0x4158   :  { %v7613_v35 = vpop.eup %7612 }
0x4159   :  { %v3816_v57 = vmul.f32 %v7613_v35, %v3813_v0  ;;  %v7615_v61 = vpop.eup %7614  ;;  %vm3821_vm4 = vweird.f32 %v7613_v35 }
0x415a   :  { %v3831_v34 = vmul.f32 %v7615_v61, %v3814_v36  ;;  %vm3822_vm6 = vmor %vm3820_vm2, %vm3821_vm4  ;;  %vm3836_vm8 = vweird.f32 %v7615_v61  ;;  %v3850_v36 = vrot.slane %v9747_v38, 7 }
0x415b   :  { %v3817_v2 = vsub.f32 1.0, %v3816_v57  ;;  %vm3837_vm11 = vmor %vm3835_vm10, %vm3836_vm8 }
0x415c   :  { %v3832_v27 = vsub.f32 1.0, %v3831_v34 }
0x415d   :  { %v3818_v56 = vmul.f32 %v7613_v35, %v3817_v2 }
0x415e   :  { %v3833_v24 = vmul.f32 %v7615_v61, %v3832_v27 }
0x415f   :  { %v3819_v52 = vadd.f32 %v7613_v35, %v3818_v56 }
0x4160   :  { %v3834_v10 = vadd.f32 %v7615_v61, %v3833_v24 }
0x4161   :  { %v3823_v53 = vsel %vm3822_vm6, %v7613_v35, %v3819_v52 }
0x4162   :  { %v3828_v46 = vsel %vm3825_vm7, %v3827_v58, %v3823_v53  ;;  %v3838_v22 = vsel %vm3837_vm11, %v7615_v61, %v3834_v10  ;;  %v9895_v58 = vld [vmem:[#allocation21 + $0x10] sm:$0xf] }
0x4163   :  { %v3843_v6 = vsel %vm3840_vm12, %v3842_v7, %v3838_v22  ;;  %v3853_v0 = vmul.f32 %v3849_v47, %v3828_v46 }
0x4164   :  { %v3854_v57 = vmul.f32 %v3850_v36, %v3843_v6 }
0x41a9   :  { %v3860_v20 = vpop.permute.xlu2 %3859 }
0x41aa   :  { %v3864_v48 = vmul.f32 %v3860_v20, %v3843_v6 }
0x41c0   :  { %v3858_v15 = vpop.permute.xlu1 %3857 }
0x41c1   :  { %v3863_v12 = vmul.f32 %v3858_v15, %v3828_v46  ;;  %v9899_v15 = vld [vmem:[#allocation21 + $0x8] sm:$0xff] }
0x41c3   :  { %3867 = vrot.lane.b32.xlu0 %v3863_v12, %s8403_s3 }
0x41cb   :  { %3869 = vrot.lane.b32.xlu0 %v3864_v48, %s8403_s3 }
0x4235   :  { %v3868_v9 = vpop.permute.xlu0 %3867 }
0x4236   :  { %v9878_v35 = vadd.f32 %v3868_v9, %v3853_v0 }
0x4238   :  { %7616 = vtanh.f32 %v9878_v35 }
0x423d   :  { %v3870_v2 = vpop.permute.xlu0 %3869 }
0x423e   :  { %v7617_v61 = vpop.eup %7616  ;;  %v9882_v34 = vadd.f32 %v3870_v2, %v3854_v57 }
0x423f   :  { %3879 = vrot.lane.b32.xlu1 %v7617_v61, %s8403_s3 }
0x4240   :  { %7618 = vtanh.f32 %v9882_v34 }
0x4246   :  { %v7619_v56 = vpop.eup %7618 }
0x4247   :  { %3881 = vrot.lane.b32.xlu2 %v7619_v56, %s8403_s3 }
0x42a1   :  { %v3882_v62 = vpop.permute.xlu2 %3881 }
0x42a2   :  { %v3886_v27 = vmul.f32 %v3882_v62, %v3843_v6 }
0x42a4   :  { %v3910_v44 = vrot.slane %v3886_v27, 2 }
0x42b1   :  { %v3880_v52 = vpop.permute.xlu1 %3879 }
0x42b2   :  { %v3885_v32 = vmul.f32 %v3880_v52, %v3828_v46  ;;  %v9902_v46 = vld [vmem:[#allocation21] sm:$0xff] }
0x42b4   :  { %v3909_v24 = vrot.slane %v3885_v32, 3 }
0x42b6   :  { %v3911_v38 = vsel %vm457_vm3, %v3910_v44, %v3909_v24 }
0x42b7   :  { %3912 = vrot.lane.b32.xlu0 %v3911_v38, %s8404_s7 }
0x4329   :  { %v3913_v53 = vpop.permute.xlu0 %3912 }
0x432a   :  { %7147 = vmatmul.msk.f32.vlgmr.msra.gmra.mxu2 %vm348_vm9, %v3913_v53 }
0x432b   :  { %7166 = vmatpush.msk.msra.mxu2 %vm352_vm0, %v9643_v8  ;;  %v3904_v8 = vpop.f32.mrf.mxu1 }
0x432d   :  { %4368 = vmatpush.msra.mxu2 %v9650_v37 }
0x432f   :  { %4369 = vmatpush.msra.mxu2 %v9656_v59  ;;  %v9908_v59 = vld [vmem:[%s10902_s26] ss:$0 sm:$0xff] }
0x4332   :  { %7156 = vmatmul.msk.f32.vlgmr.msrb.gmra.mxu2 %vm348_vm9, %v3913_v53 }
0x4333   :  { %7176 = vmatpush.msk.msrb.mxu2 %vm352_vm0, %v9895_v58 }
0x4335   :  { %4630 = vmatpush.msrb.mxu2 %v9899_v15 }
0x4337   :  { %4631 = vmatpush.msrb.mxu2 %v9902_v46 }
0x43ad   :  { %v3933_v10 = vpop.f32.mrf.mxu2 }
0x43ae   :  { %v3934_v37 = vadd.f32 %v3933_v10, %v3904_v8  ;;  %v9935_v8 = vld [vmem:[%s10937_s28 + $0x10] sm:$0xf]  ;;  %v9942_v10 = vld [vmem:[%s10937_s28 + $0x8] sm:$0xff] }
0x43b0   :  { %v3936_v12 = vadd.f32 %v9908_v59, %v3934_v37  ;;  %v9948_v37 = vld [vmem:[%s10937_s28] sm:$0xff] }
0x43b2   :  { %7620 = vtanh.f32 %v3936_v12  ;;  %v7148_v17 = vmul.f32 -1.442695, %v3936_v12 }
0x43b4   :  { %7622 = vpow2.f32 %v7148_v17 }
0x43b8   :  { %v7621_v51 = vpop.eup %7620 }
0x43b9   :  { %3959 = vrot.lane.b32.xlu1 %v7621_v51, %s8402_s12 }
0x43ba   :  { %v7623_v22 = vpop.eup %7622 }
0x43bb   :  { %v3940_v20 = vadd.f32 1.0, %v7623_v22 }
0x43bd   :  { %7624 = vrcp.f32 %v3940_v20  ;;  %v3952_v9 = vand.u32 2147483648, %v3940_v20  ;;  %vm3946_vm4 = vweird.f32 %v3940_v20  ;;  %v3950_v36 = vand.u32 2147483647, %v3940_v20 }
0x43bf   :  { %v3953_v2 = vor.u32 1.1754944e-38, %v3952_v9  ;;  %vm3951_vm6 = vcmp.eq.f32.partialorder %v3950_v36, 8.507059e+37 }
0x43c3   :  { %v7625_v7 = vpop.eup %7624 }
0x43c4   :  { %v3942_v6 = vmul.f32 %v7625_v7, %v3940_v20  ;;  %vm3947_vm13 = vweird.f32 %v7625_v7 }
0x43c5   :  { %vm3948_vm2 = vmor %vm3946_vm4, %vm3947_vm13 }
0x43c6   :  { %v3943_v48 = vsub.f32 1.0, %v3942_v6 }
0x43c8   :  { %v3944_v47 = vmul.f32 %v7625_v7, %v3943_v48 }
0x43ca   :  { %v3945_v0 = vadd.f32 %v7625_v7, %v3944_v47 }
0x43cc   :  { %v3949_v57 = vsel %vm3948_vm2, %v7625_v7, %v3945_v0 }
0x43cd   :  { %v3954_v56 = vsel %vm3951_vm6, %v3953_v2, %v3949_v57 }
0x43ce   :  { %v3957_v27 = vmul.f32 %v3954_v56, %v9772_v1 }
0x442b   :  { %v3960_v61 = vpop.permute.xlu1 %3959 }
0x442c   :  { %v3962_v62 = vmul.f32 %v3960_v61, %v3954_v56 }
0x442e   :  { %3964 = vrot.lane.b32.xlu2 %v3962_v62, %s8403_s3 }
0x4488   :  { %v3965_v52 = vpop.permute.xlu2 %3964 }
0x4489   :  { %v9914_v32 = vadd.f32 %v3965_v52, %v3957_v27 }
0x448b   :  { %7626 = vtanh.f32 %v9914_v32  ;;  %4000 = vrot.lane.b32.xlu2 %v9914_v32, %s8405_s20 }
0x4491   :  { %v7627_v44 = vpop.eup %7626 }
0x4492   :  { %3970 = vrot.lane.b32.xlu0 %v7627_v44, %s8403_s3 }
0x44e5   :  { %v4001_v24 = vpop.permute.xlu2 %4000 }
0x44e6   :  { %7152 = vmatmul.msk.f32.vlgmr.msrb.gmra.mxu0 %vm348_vm9, %v4001_v24 }
0x44e7   :  { %7170 = vmatpush.msk.msrb.mxu0 %vm352_vm0, %v9782_v43 }
0x44e9   :  { %4492 = vmatpush.msrb.mxu0 %v9789_v16 }
0x44eb   :  { %4493 = vmatpush.msrb.mxu0 %v9795_v40 }
0x4504   :  { %v3971_v1 = vpop.permute.xlu0 %3970 }
0x4505   :  { %v3973_v38 = vmul.f32 %v3971_v1, %v3954_v56 }
0x4507   :  { %3975 = vrot.lane.b32.xlu1 %v3973_v38, %s8404_s7 }
0x4563   :  { %v4021_v12 = vpop.f32.mrf.mxu0 }
0x4579   :  { %v3976_v53 = vpop.permute.xlu1 %3975 }
0x457a   :  { %7150 = vmatmul.msk.f32.vlgmr.msra.gmra.mxu3 %vm348_vm9, %v3976_v53 }
0x457b   :  { %7168 = vmatpush.msk.msra.mxu3 %vm352_vm0, %v9800_v41 }
0x457d   :  { %4465 = vmatpush.msra.mxu3 %v9804_v45 }
0x457f   :  { %4466 = vmatpush.msra.mxu3 %v9807_v49 }
0x4582   :  { %7160 = vmatmul.msk.f32.vlgmr.msrb.gmra.mxu3 %vm348_vm9, %v3976_v53 }
0x4583   :  { %7179 = vmatpush.msk.msrb.mxu3 %vm352_vm0, %v9935_v8 }
0x4585   :  { %4693 = vmatpush.msrb.mxu3 %v9942_v10 }
0x4587   :  { %4694 = vmatpush.msrb.mxu3 %v9948_v37 }
0x45fd   :  { %v3996_v51 = vpop.f32.mrf.mxu3 }
0x45fe   :  { %v4024_v17 = vadd.f32 %v4021_v12, %v3996_v51 }
0x4600   :  { %v4027_v22 = vadd.f32 %v4024_v17, %v8979_v23  ;;  %v4026_v20 = vadd.f32 %v4024_v17, %v8910_v11  ;;  %v4025_v7 = vadd.f32 %v4024_v17, %v8841_v50  ;;  %v4028_v6 = vadd.f32 %v4024_v17, %v9105_v26 }
0x4601   :  { %v4030_v48 = vadd.f32 %v4024_v17, %v9270_v4  ;;  %v4029_v47 = vadd.f32 %v4024_v17, %v9186_v30  ;;  %v4031_v61 = vadd.f32 %v4024_v17, %v9317_v14  ;;  %v4032_v44 = vadd.f32 %v4024_v17, %v9379_v18 }
0x4602   :  { %7628 = vtanh.f32 %v4027_v22 }
0x4603   :  { %7630 = vtanh.f32 %v4026_v20 }
0x4604   :  { %7632 = vtanh.f32 %v4025_v7 }
0x4605   :  { %7634 = vtanh.f32 %v4028_v6 }
0x4606   :  { %7636 = vtanh.f32 %v4030_v48 }
0x4607   :  { %7638 = vtanh.f32 %v4029_v47 }
0x4608   :  { %v7629_v0 = vpop.eup %7628  ;;  %7640 = vtanh.f32 %v4031_v61 }
0x4609   :  { %v7631_v9 = vpop.eup %7630  ;;  %v4043_v36 = vmul.f32 %v9696_v25, %v7629_v0  ;;  %7642 = vtanh.f32 %v4032_v44 }
0x460a   :  { %v7633_v57 = vpop.eup %7632  ;;  %v4042_v2 = vmul.f32 %v9696_v25, %v7631_v9 }
0x460b   :  { %v4055_v56 = vsel %vm2638_vm14, %v4043_v36, 0.0  ;;  %v4041_v62 = vmul.f32 %v9696_v25, %v7633_v57  ;;  %v7635_v27 = vpop.eup %7634 }
0x460c   :  { %4056 = vadd.xlane.f32.xlu2 %v4055_v56  ;;  %v4052_v52 = vsel %vm2638_vm14, %v4042_v2, 0.0  ;;  %v7637_v24 = vpop.eup %7636  ;;  %v4044_v53 = vmul.f32 %v9696_v25, %v7635_v27 }
0x460d   :  { %4053 = vadd.xlane.f32.xlu1 %v4052_v52  ;;  %v4049_v1 = vsel %vm2638_vm14, %v4041_v62, 0.0  ;;  %v7639_v38 = vpop.eup %7638  ;;  %v4046_v12 = vmul.f32 %v9696_v25, %v7637_v24 }
0x460e   :  { %4050 = vadd.xlane.f32.xlu0 %v4049_v1  ;;  %v4045_v51 = vmul.f32 %v9696_v25, %v7639_v38  ;;  %v4058_v22 = vsel %vm2638_vm14, %v4044_v53, 0.0  ;;  %v7641_v20 = vpop.eup %7640 }
0x460f   :  { %v4064_v17 = vsel %vm2638_vm14, %v4046_v12, 0.0  ;;  %v7643_v6 = vpop.eup %7642  ;;  %v4047_v48 = vmul.f32 %v9696_v25, %v7641_v20 }
0x4610   :  { %v4061_v7 = vsel %vm2638_vm14, %v4045_v51, 0.0  ;;  %v4048_v47 = vmul.f32 %v9696_v25, %v7643_v6 }
0x4611   :  { %v4067_v0 = vsel %vm2638_vm14, %v4047_v48, 0.0 }
0x4612   :  { %v4070_v9 = vsel %vm2638_vm14, %v4048_v47, 0.0 }
0x4614   :  { %4059 = vadd.xlane.f32.xlu2 %v4058_v22 }
0x4615   :  { %4065 = vadd.xlane.f32.xlu1 %v4064_v17 }
0x4616   :  { %4062 = vadd.xlane.f32.xlu0 %v4061_v7 }
0x461c   :  { %4068 = vadd.xlane.f32.xlu2 %v4067_v0 }
0x461e   :  { %4071 = vadd.xlane.f32.xlu0 %v4070_v9 }
0x467f   :  { %v4057_v36 = vpop.xlane.xlu2 %4056 }
0x4680   :  { %v4054_v57 = vpop.xlane.xlu1 %4053  ;;  %v4075_v27 = vmul.f32 %v4057_v36, %v8937_v54 }
0x4681   :  { %v4074_v2 = vmul.f32 %v4054_v57, %v8875_v29  ;;  %v4051_v61 = vpop.xlane.xlu0 %4050 }
0x4682   :  { %v4073_v56 = vmul.f32 %v4051_v61, %v8801_v63  ;;  %v4084_v24 = vsel %vm2671_vm5, %v4075_v27, 0.0 }
0x4683   :  { %v4082_v62 = vsel %vm2671_vm5, %v4074_v2, 0.0 }
0x4684   :  { %v4081_v52 = vsel %vm2671_vm5, %v4073_v56, 0.0 }
0x4685   :  { %v4083_v25 = vadd.f32 %v4082_v62, %v4081_v52  ;;  %v4145_v52 = vpop.f32.mrf.mxu2 }
0x4687   :  { %v4060_v44 = vpop.xlane.xlu2 %4059  ;;  %v4085_v38 = vadd.f32 %v4084_v24, %v4083_v25 }
0x4688   :  { %v4076_v1 = vmul.f32 %v4060_v44, %v9006_v42  ;;  %v4066_v53 = vpop.xlane.xlu1 %4065 }
0x4689   :  { %v4063_v12 = vpop.xlane.xlu0 %4062  ;;  %v4078_v17 = vmul.f32 %v4066_v53, %v9235_v55 }
0x468a   :  { %v4086_v51 = vsel %vm2671_vm5, %v4076_v1, 0.0  ;;  %v4077_v22 = vmul.f32 %v4063_v12, %v9138_v33  ;;  %v4149_v1 = vrot.slane %v4145_v52, 4 }
0x468b   :  { %v4087_v20 = vadd.f32 %v4086_v51, %v4085_v38  ;;  %v4090_v47 = vsel %vm2671_vm5, %v4078_v17, 0.0  ;;  %v4150_v38 = vrot.slane %v4145_v52, 5 }
0x468c   :  { %v4088_v7 = vsel %vm2671_vm5, %v4077_v22, 0.0 }
0x468d   :  { %v4089_v6 = vadd.f32 %v4088_v7, %v4087_v20 }
0x468f   :  { %v4069_v48 = vpop.xlane.xlu2 %4068  ;;  %v4091_v9 = vadd.f32 %v4090_v47, %v4089_v6 }
0x4690   :  { %v4079_v0 = vmul.f32 %v4069_v48, %v9295_v3 }
0x4691   :  { %v4072_v36 = vpop.xlane.xlu0 %4071 }
0x4692   :  { %v4092_v57 = vsel %vm2671_vm5, %v4079_v0, 0.0  ;;  %v4080_v2 = vmul.f32 %v4072_v36, %v9362_v21 }
0x4693   :  { %v4093_v61 = vadd.f32 %v4092_v57, %v4091_v9 }
0x4694   :  { %v4094_v56 = vsel %vm2671_vm5, %v4080_v2, 0.0 }
0x4695   :  { %v4095_v62 = vadd.f32 %v4094_v56, %v4093_v61 }
0x4697   :  { %4097 = vrot.lane.b32.xlu1 %v4095_v62, %s8404_s7 }
0x4709   :  { %v4098_v27 = vpop.permute.xlu1 %4097 }
0x470a   :  { %7154 = vmatmul.msk.f32.vlgmr.msra.gmra.mxu1 %vm348_vm9, %v4098_v27 }
0x470b   :  { %7174 = vmatpush.msk.msra.mxu1 %vm352_vm0, %v9857_v31 }
0x470d   :  { %4601 = vmatpush.msra.mxu1 %v9861_v39 }
0x470f   :  { %4602 = vmatpush.msra.mxu1 %v9864_v19 }
0x4787   :  { %v4118_v25 = vpop.f32.mrf.mxu1 }
0x4788   :  { %v4122_v44 = vrot.slane %v4118_v25, 4  ;;  %v4123_v24 = vrot.slane %v4118_v25, 5 }
0x478a   :  { %v4126_v53 = vadd.f32 %v4122_v44, %v9449_v28  ;;  %v4127_v12 = vadd.f32 %v4123_v24, %v9451_v60 }
0x478c   :  { %v4153_v51 = vadd.f32 %v4149_v1, %v4126_v53  ;;  %v4154_v22 = vadd.f32 %v4150_v38, %v4127_v12 }
0x478e   :  { %v4155_v20 = vadd.f32 %v9869_v5, %v4153_v51  ;;  %v4156_v17 = vadd.f32 %v9869_v5, %v4154_v22 }
0x4790   :  { %7644 = vtanh.f32 %v4155_v20  ;;  %v7157_v48 = vmul.f32 -1.442695, %v4155_v20  ;;  %v7158_v36 = vmul.f32 -1.442695, %v4156_v17 }
0x4791   :  { %7646 = vtanh.f32 %v4156_v17 }
0x4792   :  { %7648 = vpow2.f32 %v7157_v48 }
0x4796   :  { %v7645_v7 = vpop.eup %7644 }
0x4797   :  { %v7647_v6 = vpop.eup %7646  ;;  %4207 = vrot.lane.b32.xlu2 %v7645_v7, %s8402_s12 }
0x4798   :  { %4209 = vrot.lane.b32.xlu0 %v7647_v6, %s8402_s12  ;;  %v7649_v47 = vpop.eup %7648 }
0x4799   :  { %v4163_v0 = vadd.f32 1.0, %v7649_v47 }
0x479b   :  { %7650 = vrcp.f32 %v4163_v0  ;;  %v4176_v52 = vand.u32 2147483648, %v4163_v0  ;;  %vm4170_vm8 = vweird.f32 %v4163_v0  ;;  %v4174_v25 = vand.u32 2147483647, %v4163_v0 }
0x479c   :  { %7652 = vpow2.f32 %v7158_v36 }
0x479d   :  { %v4177_v24 = vor.u32 1.1754944e-38, %v4176_v52  ;;  %vm4175_vm11 = vcmp.eq.f32.partialorder %v4174_v25, 8.507059e+37 }
0x47a1   :  { %v7651_v9 = vpop.eup %7650 }
0x47a2   :  { %v4166_v57 = vmul.f32 %v7651_v9, %v4163_v0  ;;  %v7653_v56 = vpop.eup %7652  ;;  %vm4171_vm7 = vweird.f32 %v7651_v9 }
0x47a3   :  { %v4164_v62 = vadd.f32 1.0, %v7653_v56  ;;  %vm4172_vm10 = vmor %vm4170_vm8, %vm4171_vm7 }
0x47a4   :  { %v4167_v2 = vsub.f32 1.0, %v4166_v57  ;;  %v4199_v57 = vrot.slane %v9878_v35, 7 }
0x47a5   :  { %7654 = vrcp.f32 %v4164_v62  ;;  %v4191_v7 = vand.u32 2147483648, %v4164_v62  ;;  %vm4185_vm13 = vweird.f32 %v4164_v62  ;;  %v4189_v6 = vand.u32 2147483647, %v4164_v62 }
0x47a6   :  { %v4168_v61 = vmul.f32 %v7651_v9, %v4167_v2 }
0x47a7   :  { %v4192_v47 = vor.u32 1.1754944e-38, %v4191_v7  ;;  %vm4190_vm2 = vcmp.eq.f32.partialorder %v4189_v6, 8.507059e+37  ;;  %v10034_v7 = vld [vmem:[%s10935_s0] sm:$0xff]  ;;  %v4254_v6 = vpop.f32.mrf.mxu3 }
0x47a8   :  { %v4169_v27 = vadd.f32 %v7651_v9, %v4168_v61 }
0x47aa   :  { %v4173_v44 = vsel %vm4172_vm10, %v7651_v9, %v4169_v27 }
0x47ab   :  { %v4178_v38 = vsel %vm4175_vm11, %v4177_v24, %v4173_v44  ;;  %v7655_v12 = vpop.eup %7654 }
0x47ac   :  { %v4181_v51 = vmul.f32 %v7655_v12, %v4164_v62  ;;  %vm4186_vm12 = vweird.f32 %v7655_v12  ;;  %v4203_v2 = vmul.f32 %v4199_v57, %v4178_v38  ;;  %v4200_v62 = vrot.slane %v9882_v34, 7 }
0x47ad   :  { %vm4187_vm4 = vmor %vm4185_vm13, %vm4186_vm12 }
0x47ae   :  { %v4182_v22 = vsub.f32 1.0, %v4181_v51 }
0x47b0   :  { %v4183_v20 = vmul.f32 %v7655_v12, %v4182_v22 }
0x47b2   :  { %v4184_v17 = vadd.f32 %v7655_v12, %v4183_v20 }
0x47b4   :  { %v4188_v48 = vsel %vm4187_vm4, %v7655_v12, %v4184_v17  ;;  %v10021_v17 = vld [vmem:[%s10935_s0 + $0x10] sm:$0xf] }
0x47b5   :  { %v4193_v9 = vsel %vm4190_vm2, %v4192_v47, %v4188_v48 }
0x47b6   :  { %v4204_v52 = vmul.f32 %v4200_v62, %v4193_v9 }
0x47f1   :  { %v4208_v1 = vpop.permute.xlu2 %4207 }
0x47f2   :  { %v4213_v53 = vmul.f32 %v4208_v1, %v4178_v38 }
0x47f4   :  { %4217 = vrot.lane.b32.xlu1 %v4213_v53, %s8403_s3 }
0x480a   :  { %v4210_v0 = vpop.permute.xlu0 %4209 }
0x480b   :  { %v4214_v36 = vmul.f32 %v4210_v0, %v4193_v9 }
0x480d   :  { %4219 = vrot.lane.b32.xlu0 %v4214_v36, %s8403_s3 }
0x4866   :  { %v4218_v61 = vpop.permute.xlu1 %4217 }
0x4867   :  { %v10006_v56 = vadd.f32 %v4218_v61, %v4203_v2 }
0x4869   :  { %7656 = vtanh.f32 %v10006_v56 }
0x486f   :  { %v7657_v27 = vpop.eup %7656 }
0x4870   :  { %4229 = vrot.lane.b32.xlu2 %v7657_v27, %s8403_s3 }
0x487f   :  { %v4220_v25 = vpop.permute.xlu0 %4219 }
0x4880   :  { %v10011_v44 = vadd.f32 %v4220_v25, %v4204_v52 }
0x4882   :  { %7658 = vtanh.f32 %v10011_v44 }
0x4888   :  { %v7659_v24 = vpop.eup %7658 }
0x4889   :  { %4231 = vrot.lane.b32.xlu1 %v7659_v24, %s8403_s3 }
0x48ca   :  { %v4230_v35 = vpop.permute.xlu2 %4229 }
0x48cb   :  { %v4235_v1 = vmul.f32 %v4230_v35, %v4178_v38  ;;  %v10028_v38 = vld [vmem:[%s10935_s0 + $0x8] sm:$0xff] }
0x48cd   :  { %v4259_v51 = vrot.slane %v4235_v1, 4 }
0x48fb   :  { %v4232_v53 = vpop.permute.xlu1 %4231 }
0x48fc   :  { %v4236_v12 = vmul.f32 %v4232_v53, %v4193_v9 }
0x48fe   :  { %v4260_v22 = vrot.slane %v4236_v12, 3 }
0x4900   :  { %v4261_v20 = vsel %vm457_vm3, %v4260_v22, %v4259_v51 }
0x4901   :  { %4262 = vrot.lane.b32.xlu0 %v4261_v20, %s8404_s7 }
0x4973   :  { %v4263_v34 = vpop.permute.xlu0 %4262 }
0x4974   :  { %7162 = vmatmul.msk.f32.vlgmr.msra.gmra.mxu0 %vm348_vm9, %v4263_v34 }
0x4975   :  { %7181 = vmatpush.msk.msra.mxu0 %vm352_vm0, %v10021_v17 }
0x4977   :  { %4718 = vmatpush.msra.mxu0 %v10028_v38 }
0x4979   :  { %4719 = vmatpush.msra.mxu0 %v10034_v7 }
0x497c   :  { %7171 = vmatmul.msk.f32.vlgmr.msrb.gmra.mxu0 %vm348_vm9, %v4263_v34 }
0x497d   :  { %7191 = vmatpush.msk.msrb.mxu0 %vm352_vm0, %v9895_v58 }
0x497f   :  { %4980 = vmatpush.msrb.mxu0 %v9899_v15 }
0x4981   :  { %4981 = vmatpush.msrb.mxu0 %v9902_v46 }
0x49f1   :  { %v4283_v48 = vpop.f32.mrf.mxu0 }
0x49f2   :  { %v4284_v47 = vadd.f32 %v4283_v48, %v4254_v6 }
0x49f4   :  { %v4286_v0 = vadd.f32 %v9908_v59, %v4284_v47 }
0x49f6   :  { %7660 = vtanh.f32 %v4286_v0  ;;  %v7163_v36 = vmul.f32 -1.442695, %v4286_v0 }
0x49f8   :  { %7662 = vpow2.f32 %v7163_v36 }
0x49fc   :  { %v7661_v9 = vpop.eup %7660 }
0x49fd   :  { %4309 = vrot.lane.b32.xlu2 %v7661_v9, %s8402_s12 }
0x49fe   :  { %v7663_v57 = vpop.eup %7662 }
0x49ff   :  { %v4290_v2 = vadd.f32 1.0, %v7663_v57 }
0x4a01   :  { %7664 = vrcp.f32 %v4290_v2  ;;  %v4302_v24 = vand.u32 2147483648, %v4290_v2  ;;  %vm4296_vm7 = vweird.f32 %v4290_v2  ;;  %v4300_v35 = vand.u32 2147483647, %v4290_v2 }
0x4a03   :  { %v4303_v53 = vor.u32 1.1754944e-38, %v4302_v24  ;;  %vm4301_vm10 = vcmp.eq.f32.partialorder %v4300_v35, 8.507059e+37 }
0x4a07   :  { %v7665_v61 = vpop.eup %7664 }
0x4a08   :  { %v4292_v27 = vmul.f32 %v7665_v61, %v4290_v2  ;;  %vm4297_vm6 = vweird.f32 %v7665_v61 }
0x4a09   :  { %vm4298_vm8 = vmor %vm4296_vm7, %vm4297_vm6 }
0x4a0a   :  { %v4293_v62 = vsub.f32 1.0, %v4292_v27 }
0x4a0c   :  { %v4294_v52 = vmul.f32 %v7665_v61, %v4293_v62  ;;  %v10074_v62 = vld [vmem:[#allocation2] ss:$0 sm:$0xff] }
0x4a0e   :  { %v4295_v25 = vadd.f32 %v7665_v61, %v4294_v52 }
0x4a10   :  { %v4299_v1 = vsel %vm4298_vm8, %v7665_v61, %v4295_v25 }
0x4a11   :  { %v4304_v51 = vsel %vm4301_vm10, %v4303_v53, %v4299_v1 }
0x4a12   :  { %v4307_v20 = vmul.f32 %v4304_v51, %v9914_v32 }
0x4a57   :  { %v4310_v12 = vpop.permute.xlu2 %4309 }
0x4a58   :  { %v4312_v22 = vmul.f32 %v4310_v12, %v4304_v51 }
0x4a5a   :  { %4314 = vrot.lane.b32.xlu1 %v4312_v22, %s8403_s3 }
0x4acc   :  { %v4315_v34 = vpop.permute.xlu1 %4314 }
0x4acd   :  { %v10046_v6 = vadd.f32 %v4315_v34, %v4307_v20 }
0x4acf   :  { %7666 = vtanh.f32 %v10046_v6  ;;  %4350 = vrot.lane.b32.xlu2 %v10046_v6, %s8405_s20 }
0x4ad5   :  { %v7667_v48 = vpop.eup %7666 }
0x4ad6   :  { %4320 = vrot.lane.b32.xlu0 %v7667_v48, %s8403_s3 }
0x4b29   :  { %v4351_v47 = vpop.permute.xlu2 %4350 }
0x4b2a   :  { %7167 = vmatmul.msk.f32.vlgmr.msra.gmra.mxu2 %vm348_vm9, %v4351_v47 }
0x4b2b   :  { %7185 = vmatpush.msk.msra.mxu2 %vm352_vm0, %v9782_v43 }
0x4b2d   :  { %4842 = vmatpush.msra.mxu2 %v9789_v16 }
0x4b2f   :  { %4843 = vmatpush.msra.mxu2 %v9795_v40 }
0x4b48   :  { %v4321_v32 = vpop.permute.xlu0 %4320 }
0x4b49   :  { %v4323_v0 = vmul.f32 %v4321_v32, %v4304_v51 }
0x4b4b   :  { %4325 = vrot.lane.b32.xlu1 %v4323_v0, %s8404_s7 }
0x4bad   :  { %v4371_v43 = vpop.f32.mrf.mxu2 }
0x4bbd   :  { %v4326_v9 = vpop.permute.xlu1 %4325 }
0x4bbe   :  { %7165 = vmatmul.msk.f32.vlgmr.msrb.gmra.mxu1 %vm348_vm9, %v4326_v9 }
0x4bbf   :  { %7183 = vmatpush.msk.msrb.mxu1 %vm352_vm0, %v9800_v41 }
0x4bc1   :  { %4815 = vmatpush.msrb.mxu1 %v9804_v45 }
0x4bc3   :  { %4816 = vmatpush.msrb.mxu1 %v9807_v49 }
0x4bc6   :  { %7175 = vmatmul.msk.f32.vlgmr.msra.gmra.mxu1 %vm348_vm9, %v4326_v9 }
0x4bc7   :  { %7194 = vmatpush.msk.msra.mxu1 %vm352_vm0, %v9935_v8 }
0x4bc9   :  { %5043 = vmatpush.msra.mxu1 %v9942_v10 }
0x4bcb   :  { %5044 = vmatpush.msra.mxu1 %v9948_v37 }
0x4c3b   :  { %v4346_v16 = vpop.f32.mrf.mxu1 }
0x4c3c   :  { %v4374_v40 = vadd.f32 %v4371_v43, %v4346_v16 }
0x4c3e   :  { %v4377_v36 = vadd.f32 %v4374_v40, %v8979_v23  ;;  %v4376_v41 = vadd.f32 %v4374_v40, %v8910_v11  ;;  %v4375_v45 = vadd.f32 %v4374_v40, %v8841_v50  ;;  %v4380_v49 = vadd.f32 %v4374_v40, %v9270_v4 }
0x4c3f   :  { %v4379_v57 = vadd.f32 %v4374_v40, %v9186_v30  ;;  %v4378_v2 = vadd.f32 %v4374_v40, %v9105_v26  ;;  %v4382_v53 = vadd.f32 %v4374_v40, %v9379_v18  ;;  %v4381_v22 = vadd.f32 %v4374_v40, %v9317_v14 }
0x4c40   :  { %7668 = vtanh.f32 %v4377_v36 }
0x4c41   :  { %7670 = vtanh.f32 %v4376_v41 }
0x4c42   :  { %7672 = vtanh.f32 %v4375_v45 }
0x4c43   :  { %7674 = vtanh.f32 %v4380_v49 }
0x4c44   :  { %7676 = vtanh.f32 %v4379_v57 }
0x4c45   :  { %7678 = vtanh.f32 %v4378_v2 }
0x4c46   :  { %v7669_v61 = vpop.eup %7668  ;;  %7680 = vtanh.f32 %v4382_v53 }
0x4c47   :  { %v7671_v27 = vpop.eup %7670  ;;  %v4393_v52 = vmul.f32 %v10074_v62, %v7669_v61  ;;  %7682 = vtanh.f32 %v4381_v22 }
0x4c48   :  { %v7673_v25 = vpop.eup %7672  ;;  %v4392_v24 = vmul.f32 %v10074_v62, %v7671_v27 }
0x4c49   :  { %v4405_v35 = vsel %vm2638_vm14, %v4393_v52, 0.0  ;;  %v4391_v1 = vmul.f32 %v10074_v62, %v7673_v25  ;;  %v7675_v12 = vpop.eup %7674 }
0x4c4a   :  { %4406 = vadd.xlane.f32.xlu1 %v4405_v35  ;;  %v4402_v51 = vsel %vm2638_vm14, %v4392_v24, 0.0  ;;  %v7677_v20 = vpop.eup %7676  ;;  %v4396_v47 = vmul.f32 %v10074_v62, %v7675_v12 }
0x4c4b   :  { %4403 = vadd.xlane.f32.xlu2 %v4402_v51  ;;  %v4399_v34 = vsel %vm2638_vm14, %v4391_v1, 0.0  ;;  %v7679_v48 = vpop.eup %7678  ;;  %v4395_v32 = vmul.f32 %v10074_v62, %v7677_v20 }
0x4c4c   :  { %4400 = vadd.xlane.f32.xlu0 %v4399_v34  ;;  %v4394_v0 = vmul.f32 %v10074_v62, %v7679_v48  ;;  %v4414_v9 = vsel %vm2638_vm14, %v4396_v47, 0.0  ;;  %v7681_v16 = vpop.eup %7680 }
0x4c4d   :  { %v4411_v43 = vsel %vm2638_vm14, %v4395_v32, 0.0  ;;  %v7683_v36 = vpop.eup %7682  ;;  %v4398_v41 = vmul.f32 %v10074_v62, %v7681_v16 }
0x4c4e   :  { %v4408_v40 = vsel %vm2638_vm14, %v4394_v0, 0.0  ;;  %v4397_v45 = vmul.f32 %v10074_v62, %v7683_v36 }
0x4c4f   :  { %v4420_v49 = vsel %vm2638_vm14, %v4398_v41, 0.0 }
0x4c50   :  { %v4417_v57 = vsel %vm2638_vm14, %v4397_v45, 0.0 }
0x4c52   :  { %4415 = vadd.xlane.f32.xlu1 %v4414_v9 }
0x4c53   :  { %4412 = vadd.xlane.f32.xlu2 %v4411_v43 }
0x4c54   :  { %4409 = vadd.xlane.f32.xlu0 %v4408_v40 }
0x4c5b   :  { %4421 = vadd.xlane.f32.xlu2 %v4420_v49 }
0x4c5c   :  { %4418 = vadd.xlane.f32.xlu0 %v4417_v57 }
0x4cbd   :  { %v4407_v61 = vpop.xlane.xlu1 %4406 }
0x4cbe   :  { %v4404_v2 = vpop.xlane.xlu2 %4403  ;;  %v4425_v1 = vmul.f32 %v4407_v61, %v8937_v54 }
0x4cbf   :  { %v4424_v27 = vmul.f32 %v4404_v2, %v8875_v29  ;;  %v4401_v52 = vpop.xlane.xlu0 %4400 }
0x4cc0   :  { %v4423_v25 = vmul.f32 %v4401_v52, %v8801_v63  ;;  %v4434_v22 = vsel %vm2671_vm5, %v4425_v1, 0.0 }
0x4cc1   :  { %v4432_v24 = vsel %vm2671_vm5, %v4424_v27, 0.0 }
0x4cc2   :  { %v4431_v35 = vsel %vm2671_vm5, %v4423_v25, 0.0 }
0x4cc3   :  { %v4433_v53 = vadd.f32 %v4432_v24, %v4431_v35  ;;  %v4495_v24 = vpop.f32.mrf.mxu0 }
0x4cc5   :  { %v4416_v48 = vpop.xlane.xlu1 %4415  ;;  %v4435_v47 = vadd.f32 %v4434_v22, %v4433_v53 }
0x4cc6   :  { %v4413_v12 = vpop.xlane.xlu2 %4412  ;;  %v4428_v9 = vmul.f32 %v4416_v48, %v9235_v55 }
0x4cc7   :  { %v4410_v51 = vpop.xlane.xlu0 %4409  ;;  %v4427_v20 = vmul.f32 %v4413_v12, %v9138_v33  ;;  %v4499_v12 = vrot.slane %v4495_v24, 3 }
0x4cc8   :  { %v4426_v34 = vmul.f32 %v4410_v51, %v9006_v42  ;;  %v4440_v41 = vsel %vm2671_vm5, %v4428_v9, 0.0  ;;  %v4500_v51 = vrot.slane %v4495_v24, 4 }
0x4cc9   :  { %v4438_v43 = vsel %vm2671_vm5, %v4427_v20, 0.0 }
0x4cca   :  { %v4436_v32 = vsel %vm2671_vm5, %v4426_v34, 0.0 }
0x4ccb   :  { %v4437_v0 = vadd.f32 %v4436_v32, %v4435_v47 }
0x4ccd   :  { %v4439_v16 = vadd.f32 %v4438_v43, %v4437_v0 }
0x4cce   :  { %v4422_v40 = vpop.xlane.xlu2 %4421 }
0x4ccf   :  { %v4419_v36 = vpop.xlane.xlu0 %4418  ;;  %v4430_v45 = vmul.f32 %v4422_v40, %v9362_v21  ;;  %v4441_v57 = vadd.f32 %v4440_v41, %v4439_v16 }
0x4cd0   :  { %v4429_v49 = vmul.f32 %v4419_v36, %v9295_v3 }
0x4cd1   :  { %v4444_v27 = vsel %vm2671_vm5, %v4430_v45, 0.0 }
0x4cd2   :  { %v4442_v2 = vsel %vm2671_vm5, %v4429_v49, 0.0 }
0x4cd3   :  { %v4443_v61 = vadd.f32 %v4442_v2, %v4441_v57 }
0x4cd5   :  { %v4445_v52 = vadd.f32 %v4444_v27, %v4443_v61 }
0x4cd7   :  { %4447 = vrot.lane.b32.xlu1 %v4445_v52, %s8404_s7 }
0x4d49   :  { %v4448_v25 = vpop.permute.xlu1 %4447 }
0x4d4a   :  { %7169 = vmatmul.msk.f32.vlgmr.msra.gmra.mxu3 %vm348_vm9, %v4448_v25 }
0x4d4b   :  { %7189 = vmatpush.msk.msra.mxu3 %vm352_vm0, %v9857_v31 }
0x4d4d   :  { %4951 = vmatpush.msra.mxu3 %v9861_v39 }
0x4d4f   :  { %4952 = vmatpush.msra.mxu3 %v9864_v19 }
0x4dcd   :  { %v4468_v35 = vpop.f32.mrf.mxu3 }
0x4dce   :  { %v4472_v1 = vrot.slane %v4468_v35, 3  ;;  %v4473_v53 = vrot.slane %v4468_v35, 4 }
0x4dd0   :  { %v4476_v22 = vadd.f32 %v4472_v1, %v9449_v28  ;;  %v4477_v20 = vadd.f32 %v4473_v53, %v9451_v60 }
0x4dd2   :  { %v4503_v34 = vadd.f32 %v4499_v12, %v4476_v22  ;;  %v4504_v48 = vadd.f32 %v4500_v51, %v4477_v20 }
0x4dd4   :  { %v4505_v47 = vadd.f32 %v9869_v5, %v4503_v34  ;;  %v4506_v31 = vadd.f32 %v9869_v5, %v4504_v48 }
0x4dd6   :  { %7684 = vtanh.f32 %v4505_v47  ;;  %v7173_v32 = vmul.f32 -1.442695, %v4506_v31  ;;  %v7172_v16 = vmul.f32 -1.442695, %v4505_v47 }
0x4dd7   :  { %7686 = vtanh.f32 %v4506_v31 }
0x4dd8   :  { %7688 = vpow2.f32 %v7173_v32 }
0x4ddc   :  { %v7685_v39 = vpop.eup %7684 }
0x4ddd   :  { %v7687_v19 = vpop.eup %7686  ;;  %4557 = vrot.lane.b32.xlu0 %v7685_v39, %s8402_s12 }
0x4dde   :  { %4559 = vrot.lane.b32.xlu2 %v7687_v19, %s8402_s12  ;;  %v7689_v0 = vpop.eup %7688  ;;  %v4550_v19 = vrot.slane %v10011_v44, 7 }
0x4ddf   :  { %v4514_v9 = vadd.f32 1.0, %v7689_v0 }
0x4de1   :  { %7690 = vrcp.f32 %v4514_v9  ;;  %v4541_v57 = vand.u32 2147483648, %v4514_v9  ;;  %vm4535_vm12 = vweird.f32 %v4514_v9  ;;  %v4539_v2 = vand.u32 2147483647, %v4514_v9 }
0x4de2   :  { %7692 = vpow2.f32 %v7172_v16  ;;  %v4549_v16 = vrot.slane %v10006_v56, 7 }
0x4de3   :  { %v4542_v27 = vor.u32 1.1754944e-38, %v4541_v57  ;;  %vm4540_vm4 = vcmp.eq.f32.partialorder %v4539_v2, 8.507059e+37 }
0x4de7   :  { %v7691_v43 = vpop.eup %7690 }
0x4de8   :  { %v4531_v40 = vmul.f32 %v7691_v43, %v4514_v9  ;;  %v7693_v41 = vpop.eup %7692  ;;  %vm4536_vm11 = vweird.f32 %v7691_v43 }
0x4de9   :  { %v4513_v45 = vadd.f32 1.0, %v7693_v41  ;;  %vm4537_vm13 = vmor %vm4535_vm12, %vm4536_vm11 }
0x4dea   :  { %v4532_v36 = vsub.f32 1.0, %v4531_v40 }
0x4deb   :  { %7694 = vrcp.f32 %v4513_v45  ;;  %v4526_v22 = vand.u32 2147483648, %v4513_v45  ;;  %vm4520_vm6 = vweird.f32 %v4513_v45  ;;  %v4524_v20 = vand.u32 2147483647, %v4513_v45 }
0x4dec   :  { %v4533_v5 = vmul.f32 %v7691_v43, %v4532_v36 }
0x4ded   :  { %v4527_v48 = vor.u32 1.1754944e-38, %v4526_v22  ;;  %vm4525_vm8 = vcmp.eq.f32.partialorder %v4524_v20, 8.507059e+37 }
0x4dee   :  { %v4534_v49 = vadd.f32 %v7691_v43, %v4533_v5 }
0x4df0   :  { %v4538_v61 = vsel %vm4537_vm13, %v7691_v43, %v4534_v49 }
0x4df1   :  { %v4543_v25 = vsel %vm4540_vm4, %v4542_v27, %v4538_v61  ;;  %v7695_v24 = vpop.eup %7694 }
0x4df2   :  { %v4516_v1 = vmul.f32 %v7695_v24, %v4513_v45  ;;  %vm4521_vm2 = vweird.f32 %v7695_v24  ;;  %v4554_v32 = vmul.f32 %v4550_v19, %v4543_v25 }
0x4df3   :  { %vm4522_vm7 = vmor %vm4520_vm6, %vm4521_vm2 }
0x4df4   :  { %v4517_v53 = vsub.f32 1.0, %v4516_v1 }
0x4df6   :  { %v4518_v12 = vmul.f32 %v7695_v24, %v4517_v53 }
0x4df8   :  { %v4519_v51 = vadd.f32 %v7695_v24, %v4518_v12 }
0x4dfa   :  { %v4523_v34 = vsel %vm4522_vm7, %v7695_v24, %v4519_v51 }
0x4dfb   :  { %v4528_v31 = vsel %vm4525_vm8, %v4527_v48, %v4523_v34 }
0x4dfc   :  { %v4553_v40 = vmul.f32 %v4549_v16, %v4528_v31 }
0x4e38   :  { %v4560_v52 = vpop.permute.xlu2 %4559 }
0x4e39   :  { %v4564_v35 = vmul.f32 %v4560_v52, %v4543_v25  ;;  %v4604_v52 = vpop.f32.mrf.mxu1 }
0x4e3b   :  { %4569 = vrot.lane.b32.xlu1 %v4564_v35, %s8403_s3 }
0x4e4f   :  { %v4558_v47 = vpop.permute.xlu0 %4557 }
0x4e50   :  { %v4563_v39 = vmul.f32 %v4558_v47, %v4528_v31 }
0x4e52   :  { %4567 = vrot.lane.b32.xlu0 %v4563_v39, %s8403_s3 }
0x4ead   :  { %v4570_v0 = vpop.permute.xlu1 %4569 }
0x4eae   :  { %v10125_v9 = vadd.f32 %v4570_v0, %v4554_v32 }
0x4eb0   :  { %7696 = vtanh.f32 %v10125_v9 }
0x4eb6   :  { %v7697_v43 = vpop.eup %7696 }
0x4eb7   :  { %4581 = vrot.lane.b32.xlu0 %v7697_v43, %s8403_s3 }
0x4ec4   :  { %v4568_v36 = vpop.permute.xlu0 %4567 }
0x4ec5   :  { %v10130_v41 = vadd.f32 %v4568_v36, %v4553_v40  ;;  %v10160_v36 = vld [vmem:[%s10898_s22 + $0x10] sm:$0xf] }
0x4ec7   :  { %7698 = vtanh.f32 %v10130_v41 }
0x4ecd   :  { %v7699_v5 = vpop.eup %7698 }
0x4ece   :  { %4579 = vrot.lane.b32.xlu2 %v7699_v5, %s8403_s3  ;;  %v10173_v5 = vld [vmem:[%s10898_s22] sm:$0xff] }
0x4f28   :  { %v4580_v44 = vpop.permute.xlu2 %4579 }
0x4f29   :  { %v4582_v45 = vpop.permute.xlu0 %4581  ;;  %v4585_v49 = vmul.f32 %v4580_v44, %v4528_v31 }
0x4f2a   :  { %v4586_v57 = vmul.f32 %v4582_v45, %v4543_v25 }
0x4f2b   :  { %v4609_v2 = vrot.slane %v4585_v49, 5 }
0x4f2c   :  { %v4610_v61 = vrot.slane %v4586_v57, 4  ;;  %v10178_v57 = vld [vmem:[#allocation18 + $0x10] sm:$0xf] }
0x4f2e   :  { %v4611_v27 = vsel %vm457_vm3, %v4610_v61, %v4609_v2  ;;  %v10182_v2 = vld [vmem:[#allocation18 + $0x8] sm:$0xff]  ;;  %v10185_v61 = vld [vmem:[#allocation18] sm:$0xff] }
0x4f2f   :  { %4612 = vrot.lane.b32.xlu1 %v4611_v27, %s8404_s7 }
0x4fa1   :  { %v4613_v56 = vpop.permute.xlu1 %4612 }
0x4fa2   :  { %7177 = vmatmul.msk.f32.vlgmr.msrb.gmra.mxu2 %vm348_vm9, %v4613_v56 }
0x4fa3   :  { %7196 = vmatpush.msk.msrb.mxu2 %vm352_vm0, %v10021_v17 }
0x4fa5   :  { %5068 = vmatpush.msrb.mxu2 %v10028_v38 }
0x4fa7   :  { %5069 = vmatpush.msrb.mxu2 %v10034_v7 }
0x4faa   :  { %7186 = vmatmul.msk.f32.vlgmr.msra.gmra.mxu2 %vm348_vm9, %v4613_v56 }
0x4fab   :  { %7206 = vmatpush.msk.msra.mxu2 %vm352_vm0, %v9895_v58 }
0x4fad   :  { %5330 = vmatpush.msra.mxu2 %v9899_v15 }
0x4faf   :  { %5331 = vmatpush.msra.mxu2 %v9902_v46 }
0x5025   :  { %v4633_v25 = vpop.f32.mrf.mxu2 }
0x5026   :  { %v4634_v24 = vadd.f32 %v4633_v25, %v4604_v52 }
0x5028   :  { %v4636_v35 = vadd.f32 %v9908_v59, %v4634_v24 }
0x502a   :  { %7700 = vtanh.f32 %v4636_v35  ;;  %v7178_v53 = vmul.f32 -1.442695, %v4636_v35 }
0x502c   :  { %7702 = vpow2.f32 %v7178_v53 }
0x5030   :  { %v7701_v1 = vpop.eup %7700 }
0x5031   :  { %4659 = vrot.lane.b32.xlu2 %v7701_v1, %s8402_s12 }
0x5032   :  { %v7703_v12 = vpop.eup %7702 }
0x5033   :  { %v4640_v51 = vadd.f32 1.0, %v7703_v12 }
0x5035   :  { %7704 = vrcp.f32 %v4640_v51  ;;  %v4652_v46 = vand.u32 2147483648, %v4640_v51  ;;  %vm4646_vm11 = vweird.f32 %v4640_v51  ;;  %v4650_v48 = vand.u32 2147483647, %v4640_v51 }
0x5037   :  { %v4653_v47 = vor.u32 1.1754944e-38, %v4652_v46  ;;  %vm4651_vm13 = vcmp.eq.f32.partialorder %v4650_v48, 8.507059e+37 }
0x503b   :  { %v7705_v22 = vpop.eup %7704 }
0x503c   :  { %v4642_v58 = vmul.f32 %v7705_v22, %v4640_v51  ;;  %vm4647_vm10 = vweird.f32 %v7705_v22 }
0x503d   :  { %vm4648_vm12 = vmor %vm4646_vm11, %vm4647_vm10 }
0x503e   :  { %v4643_v20 = vsub.f32 1.0, %v4642_v58 }
0x5040   :  { %v4644_v15 = vmul.f32 %v7705_v22, %v4643_v20 }
0x5042   :  { %v4645_v34 = vadd.f32 %v7705_v22, %v4644_v15 }
0x5044   :  { %v4649_v59 = vsel %vm4648_vm12, %v7705_v22, %v4645_v34 }
0x5045   :  { %v4654_v39 = vsel %vm4651_vm13, %v4653_v47, %v4649_v59 }
0x5046   :  { %v4657_v32 = vmul.f32 %v4654_v39, %v10046_v6  ;;  %v10167_v6 = vld [vmem:[%s10898_s22 + $0x8] sm:$0xff] }
0x508b   :  { %v4660_v31 = vpop.permute.xlu2 %4659 }
0x508c   :  { %v4662_v19 = vmul.f32 %v4660_v31, %v4654_v39 }
0x508e   :  { %4664 = vrot.lane.b32.xlu0 %v4662_v19, %s8403_s3 }
0x5100   :  { %v4665_v0 = vpop.permute.xlu0 %4664 }
0x5101   :  { %v10150_v43 = vadd.f32 %v4665_v0, %v4657_v32 }
0x5103   :  { %7706 = vtanh.f32 %v10150_v43  ;;  %4700 = vrot.lane.b32.xlu0 %v10150_v43, %s8405_s20 }
0x5109   :  { %v7707_v16 = vpop.eup %7706 }
0x510a   :  { %4670 = vrot.lane.b32.xlu1 %v7707_v16, %s8403_s3 }
0x5175   :  { %v4701_v40 = vpop.permute.xlu0 %4700 }
0x5176   :  { %7182 = vmatmul.msk.f32.vlgmr.msra.gmra.mxu0 %vm348_vm9, %v4701_v40 }
0x5177   :  { %7200 = vmatpush.msk.msra.mxu0 %vm352_vm0, %v10160_v36 }
0x5179   :  { %5192 = vmatpush.msra.mxu0 %v10167_v6 }
0x517b   :  { %5193 = vmatpush.msra.mxu0 %v10173_v5 }
0x517c   :  { %v4671_v44 = vpop.permute.xlu1 %4670 }
0x517d   :  { %v4673_v45 = vmul.f32 %v4671_v44, %v4654_v39 }
0x517f   :  { %4675 = vrot.lane.b32.xlu2 %v4673_v45, %s8404_s7 }
0x51d9   :  { %v4676_v49 = vpop.permute.xlu2 %4675 }
0x51da   :  { %7180 = vmatmul.msk.f32.vlgmr.msrb.gmra.mxu3 %vm348_vm9, %v4676_v49 }
0x51db   :  { %7198 = vmatpush.msk.msrb.mxu3 %vm352_vm0, %v10178_v57 }
0x51dd   :  { %5165 = vmatpush.msrb.mxu3 %v10182_v2 }
0x51df   :  { %5166 = vmatpush.msrb.mxu3 %v10185_v61 }
0x51e2   :  { %7190 = vmatmul.msk.f32.vlgmr.msra.gmra.mxu3 %vm348_vm9, %v4676_v49 }
0x51e3   :  { %7209 = vmatpush.msk.msra.mxu3 %vm352_vm0, %v9935_v8 }
0x51e5   :  { %5393 = vmatpush.msra.mxu3 %v9942_v10 }
0x51e7   :  { %5394 = vmatpush.msra.mxu3 %v9948_v37 }
0x51f3   :  { %v4721_v27 = vpop.f32.mrf.mxu0 }
0x525d   :  { %v4696_v56 = vpop.f32.mrf.mxu3 }
0x525e   :  { %v4724_v52 = vadd.f32 %v4721_v27, %v4696_v56 }
0x5260   :  { %v4727_v25 = vadd.f32 %v4724_v52, %v8979_v23  ;;  %v4726_v24 = vadd.f32 %v4724_v52, %v8910_v11  ;;  %v4725_v35 = vadd.f32 %v4724_v52, %v8841_v50  ;;  %v4730_v1 = vadd.f32 %v4724_v52, %v9270_v4 }
0x5261   :  { %v4729_v53 = vadd.f32 %v4724_v52, %v9186_v30  ;;  %v4728_v8 = vadd.f32 %v4724_v52, %v9105_v26  ;;  %v4732_v15 = vadd.f32 %v4724_v52, %v9379_v18  ;;  %v4731_v48 = vadd.f32 %v4724_v52, %v9317_v14 }
0x5262   :  { %7708 = vtanh.f32 %v4727_v25 }
0x5263   :  { %7710 = vtanh.f32 %v4726_v24 }
0x5264   :  { %7712 = vtanh.f32 %v4725_v35 }
0x5265   :  { %7714 = vtanh.f32 %v4730_v1 }
0x5266   :  { %7716 = vtanh.f32 %v4729_v53 }
0x5267   :  { %7718 = vtanh.f32 %v4728_v8 }
0x5268   :  { %v7709_v10 = vpop.eup %7708  ;;  %7720 = vtanh.f32 %v4732_v15 }
0x5269   :  { %v7711_v37 = vpop.eup %7710  ;;  %v4743_v12 = vmul.f32 %v10074_v62, %v7709_v10  ;;  %7722 = vtanh.f32 %v4731_v48 }
0x526a   :  { %v7713_v51 = vpop.eup %7712  ;;  %v4742_v22 = vmul.f32 %v10074_v62, %v7711_v37 }
0x526b   :  { %v4755_v58 = vsel %vm2638_vm14, %v4743_v12, 0.0  ;;  %v4741_v20 = vmul.f32 %v10074_v62, %v7713_v51  ;;  %v7715_v34 = vpop.eup %7714 }
0x526c   :  { %4756 = vadd.xlane.f32.xlu0 %v4755_v58  ;;  %v4752_v46 = vsel %vm2638_vm14, %v4742_v22, 0.0  ;;  %v7717_v59 = vpop.eup %7716  ;;  %v4746_v39 = vmul.f32 %v10074_v62, %v7715_v34 }
0x526d   :  { %4753 = vadd.xlane.f32.xlu2 %v4752_v46  ;;  %v4749_v47 = vsel %vm2638_vm14, %v4741_v20, 0.0  ;;  %v7719_v31 = vpop.eup %7718  ;;  %v4745_v19 = vmul.f32 %v10074_v62, %v7717_v59 }
0x526e   :  { %4750 = vadd.xlane.f32.xlu1 %v4749_v47  ;;  %v4744_v32 = vmul.f32 %v10074_v62, %v7719_v31  ;;  %v4764_v0 = vsel %vm2638_vm14, %v4746_v39, 0.0  ;;  %v7721_v40 = vpop.eup %7720 }
0x526f   :  { %v4761_v16 = vsel %vm2638_vm14, %v4745_v19, 0.0  ;;  %v7723_v45 = vpop.eup %7722  ;;  %v4748_v49 = vmul.f32 %v10074_v62, %v7721_v40 }
0x5270   :  { %v4758_v44 = vsel %vm2638_vm14, %v4744_v32, 0.0  ;;  %v4747_v27 = vmul.f32 %v10074_v62, %v7723_v45 }
0x5271   :  { %v4770_v56 = vsel %vm2638_vm14, %v4748_v49, 0.0 }
0x5272   :  { %v4767_v52 = vsel %vm2638_vm14, %v4747_v27, 0.0 }
0x5274   :  { %4765 = vadd.xlane.f32.xlu0 %v4764_v0 }
0x5275   :  { %4762 = vadd.xlane.f32.xlu2 %v4761_v16 }
0x5276   :  { %4759 = vadd.xlane.f32.xlu1 %v4758_v44 }
0x527d   :  { %4771 = vadd.xlane.f32.xlu2 %v4770_v56 }
0x527e   :  { %4768 = vadd.xlane.f32.xlu1 %v4767_v52 }
0x52df   :  { %v4757_v24 = vpop.xlane.xlu0 %4756 }
0x52e0   :  { %v4754_v25 = vpop.xlane.xlu2 %4753  ;;  %v4775_v37 = vmul.f32 %v4757_v24, %v8937_v54  ;;  %v10239_v24 = vld [vmem:[#allocation22 + $0x8] sm:$0xff] }
0x52e1   :  { %v4774_v35 = vmul.f32 %v4754_v25, %v8875_v29  ;;  %v4751_v1 = vpop.xlane.xlu1 %4750  ;;  %v10235_v25 = vld [vmem:[#allocation22 + $0x10] sm:$0xf] }
0x52e2   :  { %v4773_v53 = vmul.f32 %v4751_v1, %v8801_v63  ;;  %v4784_v58 = vsel %vm2671_vm5, %v4775_v37, 0.0  ;;  %v4845_v1 = vpop.f32.mrf.mxu2 }
0x52e3   :  { %v4782_v8 = vsel %vm2671_vm5, %v4774_v35, 0.0  ;;  %v10242_v35 = vld [vmem:[#allocation22] sm:$0xff]  ;;  %v4849_v37 = vrot.slane %v4845_v1, 2 }
0x52e4   :  { %v4781_v10 = vsel %vm2671_vm5, %v4773_v53, 0.0 }
0x52e5   :  { %v4783_v12 = vadd.f32 %v4782_v8, %v4781_v10 }
0x52e7   :  { %v4766_v34 = vpop.xlane.xlu0 %4765  ;;  %v4785_v46 = vadd.f32 %v4784_v58, %v4783_v12  ;;  %v4850_v12 = vrot.slane %v4845_v1, 3 }
0x52e8   :  { %v4763_v51 = vpop.xlane.xlu2 %4762  ;;  %v4778_v47 = vmul.f32 %v4766_v34, %v9235_v55 }
0x52e9   :  { %v4760_v22 = vpop.xlane.xlu1 %4759  ;;  %v4777_v20 = vmul.f32 %v4763_v51, %v9138_v33 }
0x52ea   :  { %v4776_v15 = vmul.f32 %v4760_v22, %v9006_v42  ;;  %v4790_v0 = vsel %vm2671_vm5, %v4778_v47, 0.0 }
0x52eb   :  { %v4788_v31 = vsel %vm2671_vm5, %v4777_v20, 0.0 }
0x52ec   :  { %v4786_v48 = vsel %vm2671_vm5, %v4776_v15, 0.0  ;;  %v10247_v15 = vld [vmem:[#allocation19] ss:$0 sm:$0xff] }
0x52ed   :  { %v4787_v59 = vadd.f32 %v4786_v48, %v4785_v46 }
0x52ef   :  { %v4789_v39 = vadd.f32 %v4788_v31, %v4787_v59 }
0x52f0   :  { %v4772_v19 = vpop.xlane.xlu2 %4771 }
0x52f1   :  { %v4769_v32 = vpop.xlane.xlu1 %4768  ;;  %v4780_v16 = vmul.f32 %v4772_v19, %v9362_v21  ;;  %v4791_v44 = vadd.f32 %v4790_v0, %v4789_v39 }
0x52f2   :  { %v4779_v40 = vmul.f32 %v4769_v32, %v9295_v3 }
0x52f3   :  { %v4794_v27 = vsel %vm2671_vm5, %v4780_v16, 0.0 }
0x52f4   :  { %v4792_v45 = vsel %vm2671_vm5, %v4779_v40, 0.0 }
0x52f5   :  { %v4793_v49 = vadd.f32 %v4792_v45, %v4791_v44 }
0x52f7   :  { %v4795_v56 = vadd.f32 %v4794_v27, %v4793_v49 }
0x52f9   :  { %4797 = vrot.lane.b32.xlu0 %v4795_v56, %s8404_s7 }
0x536b   :  { %v4798_v52 = vpop.permute.xlu0 %4797 }
0x536c   :  { %7184 = vmatmul.msk.f32.vlgmr.msrb.gmra.mxu1 %vm348_vm9, %v4798_v52 }
0x536d   :  { %7204 = vmatpush.msk.msrb.mxu1 %vm352_vm0, %v10235_v25 }
0x536f   :  { %5301 = vmatpush.msrb.mxu1 %v10239_v24 }
0x5371   :  { %5302 = vmatpush.msrb.mxu1 %v10242_v35 }
0x53e9   :  { %v4818_v53 = vpop.f32.mrf.mxu1 }
0x53ea   :  { %v4822_v8 = vrot.slane %v4818_v53, 2  ;;  %v4823_v10 = vrot.slane %v4818_v53, 3 }
0x53ec   :  { %v4826_v51 = vadd.f32 %v4822_v8, %v9449_v28  ;;  %v4827_v22 = vadd.f32 %v4823_v10, %v9451_v60 }
0x53ee   :  { %v4853_v58 = vadd.f32 %v4849_v37, %v4826_v51  ;;  %v4854_v20 = vadd.f32 %v4850_v12, %v4827_v22 }
0x53f0   :  { %v4855_v34 = vadd.f32 %v10247_v15, %v4853_v58  ;;  %v4856_v46 = vadd.f32 %v10247_v15, %v4854_v20 }
0x53f2   :  { %7724 = vtanh.f32 %v4855_v34  ;;  %v7188_v47 = vmul.f32 -1.442695, %v4856_v46  ;;  %v7187_v32 = vmul.f32 -1.442695, %v4855_v34 }
0x53f3   :  { %7726 = vtanh.f32 %v4856_v46 }
0x53f4   :  { %7728 = vpow2.f32 %v7188_v47 }
0x53f8   :  { %v7725_v48 = vpop.eup %7724 }
0x53f9   :  { %v7727_v59 = vpop.eup %7726  ;;  %4907 = vrot.lane.b32.xlu1 %v7725_v48, %s8402_s12 }
0x53fa   :  { %4909 = vrot.lane.b32.xlu2 %v7727_v59, %s8402_s12  ;;  %v7729_v31 = vpop.eup %7728 }
0x53fb   :  { %v4864_v39 = vadd.f32 1.0, %v7729_v31 }
0x53fd   :  { %7730 = vrcp.f32 %v4864_v39  ;;  %v4891_v27 = vand.u32 2147483648, %v4864_v39  ;;  %vm4885_vm2 = vweird.f32 %v4864_v39  ;;  %v4889_v56 = vand.u32 2147483647, %v4864_v39 }
0x53fe   :  { %7732 = vpow2.f32 %v7187_v32 }
0x53ff   :  { %v4892_v1 = vor.u32 1.1754944e-38, %v4891_v27  ;;  %vm4890_vm7 = vcmp.eq.f32.partialorder %v4889_v56, 8.507059e+37 }
0x5403   :  { %v7731_v19 = vpop.eup %7730 }
0x5404   :  { %v4881_v0 = vmul.f32 %v7731_v19, %v4864_v39  ;;  %v7733_v40 = vpop.eup %7732  ;;  %vm4886_vm4 = vweird.f32 %v7731_v19  ;;  %v4900_v39 = vrot.slane %v10125_v9, 7 }
0x5405   :  { %v4863_v45 = vadd.f32 1.0, %v7733_v40  ;;  %vm4887_vm6 = vmor %vm4885_vm2, %vm4886_vm4  ;;  %v4899_v40 = vrot.slane %v10130_v41, 7 }
0x5406   :  { %v4882_v16 = vsub.f32 1.0, %v4881_v0 }
0x5407   :  { %7734 = vrcp.f32 %v4863_v45  ;;  %v4876_v20 = vand.u32 2147483648, %v4863_v45  ;;  %vm4870_vm10 = vweird.f32 %v4863_v45  ;;  %v4874_v34 = vand.u32 2147483647, %v4863_v45 }
0x5408   :  { %v4883_v44 = vmul.f32 %v7731_v19, %v4882_v16 }
0x5409   :  { %v4877_v48 = vor.u32 1.1754944e-38, %v4876_v20  ;;  %vm4875_vm12 = vcmp.eq.f32.partialorder %v4874_v34, 8.507059e+37 }
0x540a   :  { %v4884_v49 = vadd.f32 %v7731_v19, %v4883_v44 }
0x540c   :  { %v4888_v52 = vsel %vm4887_vm6, %v7731_v19, %v4884_v49 }
0x540d   :  { %v4893_v8 = vsel %vm4890_vm7, %v4892_v1, %v4888_v52  ;;  %v7735_v10 = vpop.eup %7734 }
0x540e   :  { %v4866_v12 = vmul.f32 %v7735_v10, %v4863_v45  ;;  %vm4871_vm8 = vweird.f32 %v7735_v10  ;;  %v4904_v19 = vmul.f32 %v4900_v39, %v4893_v8 }
0x540f   :  { %vm4872_vm11 = vmor %vm4870_vm10, %vm4871_vm8 }
0x5410   :  { %v4867_v51 = vsub.f32 1.0, %v4866_v12 }
0x5412   :  { %v4868_v22 = vmul.f32 %v7735_v10, %v4867_v51 }
0x5414   :  { %v4869_v58 = vadd.f32 %v7735_v10, %v4868_v22 }
0x5416   :  { %v4873_v46 = vsel %vm4872_vm11, %v7735_v10, %v4869_v58 }
0x5417   :  { %v4878_v47 = vsel %vm4875_vm12, %v4877_v48, %v4873_v46 }
0x5418   :  { %v4903_v44 = vmul.f32 %v4899_v40, %v4878_v47 }
0x5454   :  { %v4910_v53 = vpop.permute.xlu2 %4909 }
0x5455   :  { %v4914_v37 = vmul.f32 %v4910_v53, %v4893_v8 }
0x5457   :  { %4919 = vrot.lane.b32.xlu1 %v4914_v37, %s8403_s3 }
0x546b   :  { %v4908_v59 = vpop.permute.xlu1 %4907 }
0x546c   :  { %v4913_v31 = vmul.f32 %v4908_v59, %v4878_v47 }
0x546e   :  { %4917 = vrot.lane.b32.xlu0 %v4913_v31, %s8403_s3 }
0x54c9   :  { %v4920_v32 = vpop.permute.xlu1 %4919 }
0x54ca   :  { %v10256_v0 = vadd.f32 %v4920_v32, %v4904_v19 }
0x54cc   :  { %7736 = vtanh.f32 %v10256_v0 }
0x54d2   :  { %v7737_v16 = vpop.eup %7736 }
0x54d3   :  { %4931 = vrot.lane.b32.xlu2 %v7737_v16, %s8403_s3 }
0x54e0   :  { %v4918_v45 = vpop.permute.xlu0 %4917 }
0x54e1   :  { %v10261_v49 = vadd.f32 %v4918_v45, %v4903_v44 }
0x54e3   :  { %7738 = vtanh.f32 %v10261_v49 }
0x54e9   :  { %v7739_v27 = vpop.eup %7738 }
0x54ea   :  { %4929 = vrot.lane.b32.xlu0 %v7739_v27, %s8403_s3 }
0x552d   :  { %v4932_v9 = vpop.permute.xlu2 %4931 }
0x552e   :  { %v4936_v56 = vmul.f32 %v4932_v9, %v4893_v8  ;;  %v4954_v8 = vpop.f32.mrf.mxu3 }
0x5530   :  { %v4960_v53 = vrot.slane %v4936_v56, 5 }
0x555c   :  { %v4930_v52 = vpop.permute.xlu0 %4929 }
0x555d   :  { %v4935_v1 = vmul.f32 %v4930_v52, %v4878_v47 }
0x555f   :  { %v4959_v10 = vrot.slane %v4935_v1, 6 }
0x5561   :  { %v4961_v37 = vsel %vm457_vm3, %v4960_v53, %v4959_v10 }
0x5562   :  { %4962 = vrot.lane.b32.xlu1 %v4961_v37, %s8404_s7 }
0x55d4   :  { %v4963_v41 = vpop.permute.xlu1 %4962 }
0x55d5   :  { %7192 = vmatmul.msk.f32.vlgmr.msrb.gmra.mxu0 %vm348_vm9, %v4963_v41 }
0x55d6   :  { %7211 = vmatpush.msk.msrb.mxu0 %vm352_vm0, %v10021_v17  ;;  %v10280_v17 = vld [vmem:[%s10902_s26] ss:$0 sm:$0xff] }
0x55d8   :  { %5418 = vmatpush.msrb.mxu0 %v10028_v38 }
0x55da   :  { %5419 = vmatpush.msrb.mxu0 %v10034_v7 }
0x55dd   :  { %7201 = vmatmul.msk.f32.vlgmr.msra.gmra.mxu0 %vm348_vm9, %v4963_v41 }
0x55de   :  { %7223 = vmatpush.msk.msra.mxu0 %vm352_vm0, %v10235_v25 }
0x55e0   :  { %5693 = vmatpush.msra.mxu0 %v10239_v24 }
0x55e2   :  { %5694 = vmatpush.msra.mxu0 %v10242_v35 }
0x5652   :  { %v4983_v12 = vpop.f32.mrf.mxu0 }
0x5653   :  { %v4984_v51 = vadd.f32 %v4983_v12, %v4954_v8 }
0x5655   :  { %v4986_v38 = vadd.f32 %v10280_v17, %v4984_v51 }
0x5657   :  { %7740 = vtanh.f32 %v4986_v38  ;;  %v7193_v22 = vmul.f32 -1.442695, %v4986_v38 }
0x5659   :  { %7742 = vpow2.f32 %v7193_v22 }
0x565d   :  { %v7741_v7 = vpop.eup %7740 }
0x565e   :  { %5009 = vrot.lane.b32.xlu0 %v7741_v7, %s8402_s12 }
0x565f   :  { %v7743_v58 = vpop.eup %7742 }
0x5660   :  { %v4990_v20 = vadd.f32 1.0, %v7743_v58 }
0x5662   :  { %7744 = vrcp.f32 %v4990_v20  ;;  %v5002_v31 = vand.u32 2147483648, %v4990_v20  ;;  %vm4996_vm4 = vweird.f32 %v4990_v20  ;;  %v5000_v39 = vand.u32 2147483647, %v4990_v20 }
0x5664   :  { %v5003_v32 = vor.u32 1.1754944e-38, %v5002_v31  ;;  %vm5001_vm6 = vcmp.eq.f32.partialorder %v5000_v39, 8.507059e+37 }
0x5668   :  { %v7745_v34 = vpop.eup %7744 }
0x5669   :  { %v4992_v46 = vmul.f32 %v7745_v34, %v4990_v20  ;;  %vm4997_vm13 = vweird.f32 %v7745_v34 }
0x566a   :  { %vm4998_vm2 = vmor %vm4996_vm4, %vm4997_vm13 }
0x566b   :  { %v4993_v48 = vsub.f32 1.0, %v4992_v46 }
0x566d   :  { %v4994_v59 = vmul.f32 %v7745_v34, %v4993_v48 }
0x566f   :  { %v4995_v47 = vadd.f32 %v7745_v34, %v4994_v59 }
0x5671   :  { %v4999_v19 = vsel %vm4998_vm2, %v7745_v34, %v4995_v47 }
0x5672   :  { %v5004_v40 = vsel %vm5001_vm6, %v5003_v32, %v4999_v19 }
0x5673   :  { %v5007_v45 = vmul.f32 %v5004_v40, %v10150_v43 }
0x56d0   :  { %v5010_v16 = vpop.permute.xlu0 %5009 }
0x56d1   :  { %v5012_v44 = vmul.f32 %v5010_v16, %v5004_v40 }
0x56d3   :  { %5014 = vrot.lane.b32.xlu2 %v5012_v44, %s8403_s3 }
0x572d   :  { %v5015_v27 = vpop.permute.xlu2 %5014 }
0x572e   :  { %v10286_v9 = vadd.f32 %v5015_v27, %v5007_v45 }
0x5730   :  { %7746 = vtanh.f32 %v10286_v9  ;;  %5050 = vrot.lane.b32.xlu0 %v10286_v9, %s8405_s20 }
0x5736   :  { %v7747_v56 = vpop.eup %7746 }
0x5737   :  { %5020 = vrot.lane.b32.xlu1 %v7747_v56, %s8403_s3 }
0x57a2   :  { %v5051_v52 = vpop.permute.xlu0 %5050 }
0x57a3   :  { %7197 = vmatmul.msk.f32.vlgmr.msrb.gmra.mxu2 %vm348_vm9, %v5051_v52 }
0x57a4   :  { %7215 = vmatpush.msk.msrb.mxu2 %vm352_vm0, %v10178_v57 }
0x57a6   :  { %5549 = vmatpush.msrb.mxu2 %v10182_v2 }
0x57a8   :  { %5550 = vmatpush.msrb.mxu2 %v10185_v61 }
0x57a9   :  { %v5021_v43 = vpop.permute.xlu1 %5020 }
0x57aa   :  { %v5023_v1 = vmul.f32 %v5021_v43, %v5004_v40 }
0x57ac   :  { %5025 = vrot.lane.b32.xlu2 %v5023_v1, %s8404_s7 }
0x5806   :  { %v5026_v53 = vpop.permute.xlu2 %5025 }
0x5807   :  { %7195 = vmatmul.msk.f32.vlgmr.msra.gmra.mxu1 %vm348_vm9, %v5026_v53 }
0x580f   :  { %7205 = vmatmul.msk.f32.vlgmr.msrb.gmra.mxu1 %vm348_vm9, %v5026_v53 }
0x5826   :  { %v5071_v10 = vpop.f32.mrf.mxu2 }
0x5884   :  { %v5046_v37 = vpop.f32.mrf.mxu1 }
0x5885   :  { %v5074_v41 = vadd.f32 %v5071_v10, %v5046_v37 }
0x5887   :  { %v5077_v8 = vadd.f32 %v5074_v41, %v8979_v23  ;;  %v5076_v57 = vadd.f32 %v5074_v41, %v8910_v11  ;;  %v5075_v2 = vadd.f32 %v5074_v41, %v8841_v50  ;;  %v5080_v61 = vadd.f32 %v5074_v41, %v9270_v4 }
0x5888   :  { %v5079_v12 = vadd.f32 %v5074_v41, %v9186_v30  ;;  %v5078_v51 = vadd.f32 %v5074_v41, %v9105_v26  ;;  %v5082_v48 = vadd.f32 %v5074_v41, %v9379_v18  ;;  %v5081_v31 = vadd.f32 %v5074_v41, %v9317_v14 }
0x5889   :  { %7748 = vtanh.f32 %v5077_v8 }
0x588a   :  { %7750 = vtanh.f32 %v5076_v57 }
0x588b   :  { %7752 = vtanh.f32 %v5075_v2 }
0x588c   :  { %7754 = vtanh.f32 %v5080_v61 }
0x588d   :  { %7756 = vtanh.f32 %v5079_v12 }
0x588e   :  { %7758 = vtanh.f32 %v5078_v51 }
0x588f   :  { %v7749_v38 = vpop.eup %7748  ;;  %7760 = vtanh.f32 %v5082_v48 }
0x5890   :  { %v7751_v7 = vpop.eup %7750  ;;  %v5093_v22 = vmul.f32 %v10074_v62, %v7749_v38  ;;  %7762 = vtanh.f32 %v5081_v31 }
0x5891   :  { %v7753_v58 = vpop.eup %7752  ;;  %v5092_v20 = vmul.f32 %v10074_v62, %v7751_v7 }
0x5892   :  { %v5105_v34 = vsel %vm2638_vm14, %v5093_v22, 0.0  ;;  %v5091_v46 = vmul.f32 %v10074_v62, %v7753_v58  ;;  %v7755_v59 = vpop.eup %7754 }
0x5893   :  { %5106 = vadd.xlane.f32.xlu2 %v5105_v34  ;;  %v5102_v47 = vsel %vm2638_vm14, %v5092_v20, 0.0  ;;  %v7757_v39 = vpop.eup %7756  ;;  %v5096_v16 = vmul.f32 %v10074_v62, %v7755_v59 }
0x5894   :  { %5103 = vadd.xlane.f32.xlu0 %v5102_v47  ;;  %v5099_v19 = vsel %vm2638_vm14, %v5091_v46, 0.0  ;;  %v7759_v32 = vpop.eup %7758  ;;  %v5095_v40 = vmul.f32 %v10074_v62, %v7757_v39 }
0x5895   :  { %5100 = vadd.xlane.f32.xlu1 %v5099_v19  ;;  %v5094_v44 = vmul.f32 %v10074_v62, %v7759_v32  ;;  %v5114_v45 = vsel %vm2638_vm14, %v5096_v16, 0.0  ;;  %v7761_v56 = vpop.eup %7760 }
0x5896   :  { %v5111_v27 = vsel %vm2638_vm14, %v5095_v40, 0.0  ;;  %v7763_v43 = vpop.eup %7762  ;;  %v5098_v1 = vmul.f32 %v10074_v62, %v7761_v56 }
0x5897   :  { %v5108_v52 = vsel %vm2638_vm14, %v5094_v44, 0.0  ;;  %v5097_v53 = vmul.f32 %v10074_v62, %v7763_v43 }
0x5898   :  { %v5120_v10 = vsel %vm2638_vm14, %v5098_v1, 0.0 }
0x5899   :  { %v5117_v37 = vsel %vm2638_vm14, %v5097_v53, 0.0 }
0x589b   :  { %5115 = vadd.xlane.f32.xlu2 %v5114_v45 }
0x589c   :  { %5112 = vadd.xlane.f32.xlu0 %v5111_v27 }
0x589d   :  { %5109 = vadd.xlane.f32.xlu1 %v5108_v52 }
0x58a4   :  { %5121 = vadd.xlane.f32.xlu0 %v5120_v10  ;;  %v5195_v10 = vpop.f32.mrf.mxu0 }
0x58a5   :  { %5118 = vadd.xlane.f32.xlu1 %v5117_v37 }
0x5906   :  { %v5107_v8 = vpop.xlane.xlu2 %5106 }
0x5907   :  { %v5104_v41 = vpop.xlane.xlu0 %5103  ;;  %v5125_v38 = vmul.f32 %v5107_v8, %v8937_v54 }
0x5908   :  { %v5124_v57 = vmul.f32 %v5104_v41, %v8875_v29  ;;  %v5101_v2 = vpop.xlane.xlu1 %5100 }
0x5909   :  { %v5123_v61 = vmul.f32 %v5101_v2, %v8801_v63  ;;  %v5134_v58 = vsel %vm2671_vm5, %v5125_v38, 0.0  ;;  %v5200_v2 = vrot.slane %v5195_v10, 2 }
0x590a   :  { %v5132_v12 = vsel %vm2671_vm5, %v5124_v57, 0.0  ;;  %v5199_v57 = vrot.slane %v5195_v10, 1 }
0x590b   :  { %v5131_v51 = vsel %vm2671_vm5, %v5123_v61, 0.0 }
0x590c   :  { %v5133_v62 = vadd.f32 %v5132_v12, %v5131_v51 }
0x590e   :  { %v5116_v46 = vpop.xlane.xlu2 %5115  ;;  %v5135_v48 = vadd.f32 %v5134_v58, %v5133_v62 }
0x590f   :  { %v5113_v7 = vpop.xlane.xlu0 %5112  ;;  %v5128_v31 = vmul.f32 %v5116_v46, %v9235_v55 }
0x5910   :  { %v5110_v22 = vpop.xlane.xlu1 %5109  ;;  %v5127_v20 = vmul.f32 %v5113_v7, %v9138_v33 }
0x5911   :  { %v5126_v34 = vmul.f32 %v5110_v22, %v9006_v42  ;;  %v5140_v40 = vsel %vm2671_vm5, %v5128_v31, 0.0 }
0x5912   :  { %v5138_v39 = vsel %vm2671_vm5, %v5127_v20, 0.0 }
0x5913   :  { %v5136_v59 = vsel %vm2671_vm5, %v5126_v34, 0.0 }
0x5914   :  { %v5137_v47 = vadd.f32 %v5136_v59, %v5135_v48 }
0x5916   :  { %v5139_v19 = vadd.f32 %v5138_v39, %v5137_v47 }
0x5917   :  { %v5122_v32 = vpop.xlane.xlu0 %5121 }
0x5918   :  { %v5119_v16 = vpop.xlane.xlu1 %5118  ;;  %v5130_v44 = vmul.f32 %v5122_v32, %v9362_v21  ;;  %v5141_v27 = vadd.f32 %v5140_v40, %v5139_v19 }
0x5919   :  { %v5129_v45 = vmul.f32 %v5119_v16, %v9295_v3 }
0x591a   :  { %v5144_v43 = vsel %vm2671_vm5, %v5130_v44, 0.0 }
0x591b   :  { %v5142_v56 = vsel %vm2671_vm5, %v5129_v45, 0.0 }
0x591c   :  { %v5143_v52 = vadd.f32 %v5142_v56, %v5141_v27 }
0x591e   :  { %v5145_v1 = vadd.f32 %v5144_v43, %v5143_v52 }
0x5920   :  { %5147 = vrot.lane.b32.xlu2 %v5145_v1, %s8404_s7 }
0x597a   :  { %v5148_v53 = vpop.permute.xlu2 %5147 }
0x597b   :  { %7199 = vmatmul.msk.f32.vlgmr.msrb.gmra.mxu3 %vm348_vm9, %v5148_v53 }
0x597c   :  { %7217 = vmatpush.msk.msrb.mxu3 %vm352_vm0, %v10160_v36 }
0x597e   :  { %5575 = vmatpush.msrb.mxu3 %v10167_v6 }
0x5980   :  { %5576 = vmatpush.msrb.mxu3 %v10173_v5 }
0x59fe   :  { %v5168_v37 = vpop.f32.mrf.mxu3 }
0x59ff   :  { %v5172_v41 = vrot.slane %v5168_v37, 1  ;;  %v5173_v8 = vrot.slane %v5168_v37, 2 }
0x5a01   :  { %v5176_v61 = vadd.f32 %v5172_v41, %v9449_v28  ;;  %v5177_v12 = vadd.f32 %v5173_v8, %v9451_v60 }
0x5a03   :  { %v5203_v51 = vadd.f32 %v5199_v57, %v5176_v61  ;;  %v5204_v38 = vadd.f32 %v5200_v2, %v5177_v12  ;;  %v5249_v2 = vrot.slane %v10261_v49, 7 }
0x5a05   :  { %v5205_v62 = vadd.f32 %v10247_v15, %v5203_v51  ;;  %v5206_v36 = vadd.f32 %v10247_v15, %v5204_v38 }
0x5a07   :  { %7764 = vtanh.f32 %v5205_v62  ;;  %v7202_v7 = vmul.f32 -1.442695, %v5205_v62  ;;  %v7203_v22 = vmul.f32 -1.442695, %v5206_v36  ;;  %v5250_v62 = vrot.slane %v10256_v0, 7 }
0x5a08   :  { %7766 = vtanh.f32 %v5206_v36  ;;  %v10364_v0 = vld [vmem:[%s10937_s28 + $0x10] sm:$0xf] }
0x5a09   :  { %7768 = vpow2.f32 %v7202_v7 }
0x5a0a   :  { %7770 = vpow2.f32 %v7203_v22 }
0x5a0d   :  { %v7765_v6 = vpop.eup %7764 }
0x5a0e   :  { %v7767_v5 = vpop.eup %7766  ;;  %5257 = vrot.lane.b32.xlu1 %v7765_v6, %s8402_s12 }
0x5a0f   :  { %5259 = vrot.lane.b32.xlu0 %v7767_v5, %s8402_s12  ;;  %v7769_v28 = vpop.eup %7768 }
0x5a10   :  { %v7771_v60 = vpop.eup %7770  ;;  %v5213_v58 = vadd.f32 1.0, %v7769_v28 }
0x5a11   :  { %v5214_v20 = vadd.f32 1.0, %v7771_v60 }
0x5a12   :  { %7772 = vrcp.f32 %v5213_v58  ;;  %v5226_v40 = vand.u32 2147483648, %v5213_v58  ;;  %vm5220_vm10 = vweird.f32 %v5213_v58  ;;  %v5224_v45 = vand.u32 2147483647, %v5213_v58 }
0x5a13   :  { %7774 = vrcp.f32 %v5214_v20  ;;  %v5241_v44 = vand.u32 2147483648, %v5214_v20  ;;  %vm5235_vm11 = vweird.f32 %v5214_v20  ;;  %v5239_v27 = vand.u32 2147483647, %v5214_v20 }
0x5a14   :  { %v5227_v43 = vor.u32 1.1754944e-38, %v5226_v40  ;;  %vm5225_vm4 = vcmp.eq.f32.partialorder %v5224_v45, 8.507059e+37 }
0x5a15   :  { %v5242_v1 = vor.u32 1.1754944e-38, %v5241_v44  ;;  %vm5240_vm2 = vcmp.eq.f32.partialorder %v5239_v27, 8.507059e+37 }
0x5a18   :  { %v7773_v34 = vpop.eup %7772 }
0x5a19   :  { %v7775_v46 = vpop.eup %7774  ;;  %v5216_v48 = vmul.f32 %v7773_v34, %v5213_v58  ;;  %vm5221_vm7 = vweird.f32 %v7773_v34 }
0x5a1a   :  { %v5231_v59 = vmul.f32 %v7775_v46, %v5214_v20  ;;  %vm5236_vm8 = vweird.f32 %v7775_v46  ;;  %vm5222_vm12 = vmor %vm5220_vm10, %vm5221_vm7 }
0x5a1b   :  { %v5217_v47 = vsub.f32 1.0, %v5216_v48  ;;  %vm5237_vm13 = vmor %vm5235_vm11, %vm5236_vm8  ;;  %v10371_v48 = vld [vmem:[%s10937_s28 + $0x8] sm:$0xff] }
0x5a1c   :  { %v5232_v31 = vsub.f32 1.0, %v5231_v59  ;;  %v10377_v59 = vld [vmem:[%s10937_s28] sm:$0xff] }
0x5a1d   :  { %v5218_v39 = vmul.f32 %v7773_v34, %v5217_v47  ;;  %v5304_v47 = vpop.f32.mrf.mxu1 }
0x5a1e   :  { %v5233_v19 = vmul.f32 %v7775_v46, %v5232_v31 }
0x5a1f   :  { %v5219_v32 = vadd.f32 %v7773_v34, %v5218_v39 }
0x5a20   :  { %v5234_v16 = vadd.f32 %v7775_v46, %v5233_v19 }
0x5a21   :  { %v5223_v56 = vsel %vm5222_vm12, %v7773_v34, %v5219_v32 }
0x5a22   :  { %v5238_v52 = vsel %vm5237_vm13, %v7775_v46, %v5234_v16  ;;  %v5228_v10 = vsel %vm5225_vm4, %v5227_v43, %v5223_v56 }
0x5a23   :  { %v5243_v41 = vsel %vm5240_vm2, %v5242_v1, %v5238_v52  ;;  %v5253_v61 = vmul.f32 %v5249_v2, %v5228_v10 }
0x5a24   :  { %v5254_v36 = vmul.f32 %v5250_v62, %v5243_v41 }
0x5a80   :  { %v5258_v53 = vpop.permute.xlu1 %5257 }
0x5a81   :  { %v5260_v37 = vpop.permute.xlu0 %5259  ;;  %v5263_v8 = vmul.f32 %v5258_v53, %v5228_v10 }
0x5a82   :  { %v5264_v57 = vmul.f32 %v5260_v37, %v5243_v41 }
0x5a83   :  { %5267 = vrot.lane.b32.xlu2 %v5263_v8, %s8403_s3 }
0x5a84   :  { %5269 = vrot.lane.b32.xlu0 %v5264_v57, %s8403_s3 }
0x5add   :  { %v5268_v12 = vpop.permute.xlu2 %5267 }
0x5ade   :  { %v5273_v51 = vadd.f32 %v5268_v12, %v5253_v61 }
0x5ae0   :  { %7776 = vtanh.f32 %v5273_v51  ;;  %5633 = vst.sshfl [vmem:[#allocation1] sm:$0xff pattern:$0x75316420] %v5273_v51 }
0x5ae6   :  { %v7777_v38 = vpop.eup %7776 }
0x5ae7   :  { %5279 = vrot.lane.b32.xlu1 %v7777_v38, %s8403_s3 }
0x5af6   :  { %v5270_v6 = vpop.permute.xlu0 %5269 }
0x5af7   :  { %v5274_v5 = vadd.f32 %v5270_v6, %v5254_v36 }
0x5af9   :  { %7778 = vtanh.f32 %v5274_v5  ;;  %5636 = vst.sshfl [vmem:[#allocation1 + $0x10] sm:$0xff pattern:$0x75316420] %v5274_v5  ;;  %v10404_v5 = vld [vmem:[%s10935_s0 + $0x8] sm:$0xff] }
0x5aff   :  { %v7779_v7 = vpop.eup %7778 }
0x5b00   :  { %5281 = vrot.lane.b32.xlu2 %v7779_v7, %s8403_s3  ;;  %v10410_v7 = vld [vmem:[%s10935_s0] sm:$0xff] }
0x5b59   :  { %v5280_v22 = vpop.permute.xlu1 %5279 }
0x5b5a   :  { %v5282_v49 = vpop.permute.xlu2 %5281  ;;  %v5285_v28 = vmul.f32 %v5280_v22, %v5228_v10 }
0x5b5b   :  { %v5286_v60 = vmul.f32 %v5282_v49, %v5243_v41 }
0x5b5c   :  { %v5309_v58 = vrot.slane %v5285_v28, 7 }
0x5b5d   :  { %v5310_v20 = vrot.slane %v5286_v60, 6 }
0x5b5f   :  { %v5311_v34 = vsel %vm457_vm3, %v5310_v20, %v5309_v58 }
0x5b60   :  { %5312 = vrot.lane.b32.xlu0 %v5311_v34, %s8404_s7 }
0x5bd2   :  { %v5313_v46 = vpop.permute.xlu0 %5312 }
0x5bd3   :  { %7207 = vmatmul.msk.f32.vlgmr.msra.gmra.mxu2 %vm348_vm9, %v5313_v46 }
0x5bd4   :  { %7228 = vmatpush.msk.msra.mxu2 %vm352_vm0, %v10364_v0 }
0x5bd6   :  { %5785 = vmatpush.msra.mxu2 %v10371_v48 }
0x5bd8   :  { %5786 = vmatpush.msra.mxu2 %v10377_v59 }
0x5c56   :  { %v5333_v31 = vpop.f32.mrf.mxu2 }
0x5c57   :  { %v5334_v39 = vadd.f32 %v5333_v31, %v5304_v47  ;;  %v10424_v47 = vld [vmem:[#allocation2] ss:$0 sm:$0xff] }
0x5c59   :  { %v5336_v19 = vadd.f32 %v10280_v17, %v5334_v39 }
0x5c5b   :  { %7780 = vtanh.f32 %v5336_v19  ;;  %v7208_v16 = vmul.f32 -1.442695, %v5336_v19 }
0x5c5d   :  { %7782 = vpow2.f32 %v7208_v16 }
0x5c61   :  { %v7781_v32 = vpop.eup %7780 }
0x5c62   :  { %5359 = vrot.lane.b32.xlu1 %v7781_v32, %s8402_s12 }
0x5c63   :  { %v7783_v40 = vpop.eup %7782 }
0x5c64   :  { %v5340_v44 = vadd.f32 1.0, %v7783_v40 }
0x5c66   :  { %7784 = vrcp.f32 %v5340_v44  ;;  %v5352_v1 = vand.u32 2147483648, %v5340_v44  ;;  %vm5346_vm7 = vweird.f32 %v5340_v44  ;;  %v5350_v53 = vand.u32 2147483647, %v5340_v44 }
0x5c68   :  { %v5353_v37 = vor.u32 1.1754944e-38, %v5352_v1  ;;  %vm5351_vm10 = vcmp.eq.f32.partialorder %v5350_v53, 8.507059e+37 }
0x5c6c   :  { %v7785_v45 = vpop.eup %7784 }
0x5c6d   :  { %v5342_v27 = vmul.f32 %v7785_v45, %v5340_v44  ;;  %vm5347_vm6 = vweird.f32 %v7785_v45 }
0x5c6e   :  { %vm5348_vm8 = vmor %vm5346_vm7, %vm5347_vm6 }
0x5c6f   :  { %v5343_v56 = vsub.f32 1.0, %v5342_v27 }
0x5c71   :  { %v5344_v52 = vmul.f32 %v7785_v45, %v5343_v56 }
0x5c73   :  { %v5345_v43 = vadd.f32 %v7785_v45, %v5344_v52 }
0x5c75   :  { %v5349_v10 = vsel %vm5348_vm8, %v7785_v45, %v5345_v43 }
0x5c76   :  { %v5354_v8 = vsel %vm5351_vm10, %v5353_v37, %v5349_v10 }
0x5c77   :  { %v5357_v2 = vmul.f32 %v5354_v8, %v10286_v9  ;;  %v10397_v9 = vld [vmem:[%s10935_s0 + $0x10] sm:$0xf] }
0x5cd4   :  { %v5360_v41 = vpop.permute.xlu1 %5359 }
0x5cd5   :  { %v5362_v57 = vmul.f32 %v5360_v41, %v5354_v8 }
0x5cd7   :  { %5364 = vrot.lane.b32.xlu2 %v5362_v57, %s8403_s3 }
0x5d31   :  { %v5365_v61 = vpop.permute.xlu2 %5364 }
0x5d32   :  { %v10384_v12 = vadd.f32 %v5365_v61, %v5357_v2 }
0x5d34   :  { %7786 = vtanh.f32 %v10384_v12  ;;  %5400 = vrot.lane.b32.xlu2 %v10384_v12, %s8405_s20 }
0x5d3a   :  { %v7787_v51 = vpop.eup %7786 }
0x5d3b   :  { %5370 = vrot.lane.b32.xlu0 %v7787_v51, %s8403_s3 }
0x5d8e   :  { %v5401_v38 = vpop.permute.xlu2 %5400 }
0x5d8f   :  { %7212 = vmatmul.msk.f32.vlgmr.msrb.gmra.mxu0 %vm348_vm9, %v5401_v38 }
0x5dad   :  { %v5371_v62 = vpop.permute.xlu0 %5370 }
0x5dae   :  { %v5373_v36 = vmul.f32 %v5371_v62, %v5354_v8 }
0x5db0   :  { %5375 = vrot.lane.b32.xlu1 %v5373_v36, %s8404_s7  ;;  %v10445_v36 = vld [vmem:[#allocation16] sm:$0x3] }
0x5db1   :  { %7213 = vmatpush.msk.msra.mxu1 %vm2561_vm15, %v10445_v36  ;;  %7232 = vmatpush.msk.msrb.mxu0 %vm2561_vm15, %v10445_v36 }
0x5e0c   :  { %v5421_v22 = vpop.f32.mrf.mxu0 }
0x5e22   :  { %v5376_v6 = vpop.permute.xlu1 %5375 }
0x5e23   :  { %7210 = vmatmul.msk.f32.vlgmr.msra.gmra.mxu3 %vm348_vm9, %v5376_v6  ;;  %7224 = vmatmul.msk.f32.vlgmr.msra.gmra.mxu0 %vm348_vm9, %v5376_v6  ;;  %v10451_v6 = vld [vmem:[#allocation21 + $0x10] sm:$0xf] }
0x5e24   :  { %7230 = vmatpush.msk.msra.mxu3 %vm352_vm0, %v10397_v9  ;;  %7225 = vmatpush.msk.msrb.mxu1 %vm352_vm0, %v10451_v6 }
0x5e25   :  { %7242 = vmatpush.msk.msra.mxu0 %vm352_vm0, %v10451_v6 }
0x5e26   :  { %5810 = vmatpush.msra.mxu3 %v10404_v5 }
0x5e28   :  { %5811 = vmatpush.msra.mxu3 %v10410_v7 }
0x5e2b   :  { %7218 = vmatmul.msk.f32.vlgmr.msrb.gmra.mxu3 %vm348_vm9, %v5313_v46 }
0x5e2c   :  { %7240 = vmatpush.msk.msrb.mxu3 %vm352_vm0, %v10235_v25 }
0x5e2e   :  { %6074 = vmatpush.msrb.mxu3 %v10239_v24 }
0x5e30   :  { %6075 = vmatpush.msrb.mxu3 %v10242_v35 }
0x5ea6   :  { %v5396_v49 = vpop.f32.mrf.mxu3 }
0x5ea7   :  { %v5424_v28 = vadd.f32 %v5421_v22, %v5396_v49  ;;  %v10457_v22 = vld [vmem:[#allocation21 + $0x8] sm:$0xff] }
0x5ea8   :  { %5722 = vmatpush.msrb.mxu1 %v10457_v22  ;;  %6103 = vmatpush.msra.mxu0 %v10457_v22 }
0x5ea9   :  { %v5427_v60 = vadd.f32 %v5424_v28, %v8979_v23  ;;  %v5426_v58 = vadd.f32 %v5424_v28, %v8910_v11  ;;  %v5425_v20 = vadd.f32 %v5424_v28, %v8841_v50  ;;  %v5429_v34 = vadd.f32 %v5424_v28, %v9186_v30 }
0x5eaa   :  { %v5430_v46 = vadd.f32 %v5424_v28, %v9270_v4  ;;  %v5428_v25 = vadd.f32 %v5424_v28, %v9105_v26  ;;  %v5432_v32 = vadd.f32 %v5424_v28, %v9379_v18  ;;  %v5431_v27 = vadd.f32 %v5424_v28, %v9317_v14  ;;  %v10461_v28 = vld [vmem:[#allocation21] sm:$0xff] }
0x5eab   :  { %7788 = vtanh.f32 %v5427_v60  ;;  %5723 = vmatpush.msrb.mxu1 %v10461_v28  ;;  %6104 = vmatpush.msra.mxu0 %v10461_v28 }
0x5eac   :  { %7790 = vtanh.f32 %v5426_v58 }
0x5ead   :  { %7792 = vtanh.f32 %v5425_v20 }
0x5eae   :  { %7794 = vtanh.f32 %v5429_v34 }
0x5eaf   :  { %7796 = vtanh.f32 %v5430_v46 }
0x5eb0   :  { %7798 = vtanh.f32 %v5428_v25 }
0x5eb1   :  { %v7789_v24 = vpop.eup %7788  ;;  %7800 = vtanh.f32 %v5432_v32 }
0x5eb2   :  { %v7791_v35 = vpop.eup %7790  ;;  %v5443_v31 = vmul.f32 %v10424_v47, %v7789_v24  ;;  %7802 = vtanh.f32 %v5431_v27 }
0x5eb3   :  { %v7793_v39 = vpop.eup %7792  ;;  %v5442_v19 = vmul.f32 %v10424_v47, %v7791_v35 }
0x5eb4   :  { %v5455_v16 = vsel %vm2638_vm14, %v5443_v31, 0.0  ;;  %v5441_v40 = vmul.f32 %v10424_v47, %v7793_v39  ;;  %v7795_v44 = vpop.eup %7794 }
0x5eb5   :  { %5456 = vadd.xlane.f32.xlu2 %v5455_v16  ;;  %v5452_v45 = vsel %vm2638_vm14, %v5442_v19, 0.0  ;;  %v7797_v56 = vpop.eup %7796  ;;  %v5445_v1 = vmul.f32 %v10424_v47, %v7795_v44 }
0x5eb6   :  { %5453 = vadd.xlane.f32.xlu1 %v5452_v45  ;;  %v5449_v52 = vsel %vm2638_vm14, %v5441_v40, 0.0  ;;  %v7799_v43 = vpop.eup %7798  ;;  %v5446_v53 = vmul.f32 %v10424_v47, %v7797_v56 }
0x5eb7   :  { %5450 = vadd.xlane.f32.xlu0 %v5449_v52  ;;  %v5444_v10 = vmul.f32 %v10424_v47, %v7799_v43  ;;  %v5461_v37 = vsel %vm2638_vm14, %v5445_v1, 0.0  ;;  %v7801_v41 = vpop.eup %7800 }
0x5eb8   :  { %v5464_v8 = vsel %vm2638_vm14, %v5446_v53, 0.0  ;;  %v7803_v2 = vpop.eup %7802  ;;  %v5448_v61 = vmul.f32 %v10424_v47, %v7801_v41 }
0x5eb9   :  { %v5458_v57 = vsel %vm2638_vm14, %v5444_v10, 0.0  ;;  %v5447_v51 = vmul.f32 %v10424_v47, %v7803_v2 }
0x5eba   :  { %v5470_v38 = vsel %vm2638_vm14, %v5448_v61, 0.0 }
0x5ebb   :  { %v5467_v62 = vsel %vm2638_vm14, %v5447_v51, 0.0 }
0x5ebd   :  { %5462 = vadd.xlane.f32.xlu2 %v5461_v37 }
0x5ebe   :  { %5465 = vadd.xlane.f32.xlu1 %v5464_v8 }
0x5ebf   :  { %5459 = vadd.xlane.f32.xlu0 %v5458_v57 }
0x5ec5   :  { %5471 = vadd.xlane.f32.xlu2 %v5470_v38 }
0x5ec7   :  { %5468 = vadd.xlane.f32.xlu0 %v5467_v62  ;;  %v10483_v62 = vld [vmem:[#allocation18 + $0x10] sm:$0xf] }
0x5edb   :  { %5497 = vrot.lane.b32.xlu0 %v5396_v49, %s8405_s20 }
0x5f28   :  { %v5457_v49 = vpop.xlane.xlu2 %5456 }
0x5f29   :  { %v5454_v60 = vpop.xlane.xlu1 %5453  ;;  %v5475_v24 = vmul.f32 %v5457_v49, %v8937_v54  ;;  %v10487_v49 = vld [vmem:[#allocation18 + $0x8] sm:$0xff] }
0x5f2a   :  { %v5474_v58 = vmul.f32 %v5454_v60, %v8875_v29  ;;  %v5451_v20 = vpop.xlane.xlu0 %5450  ;;  %v10490_v60 = vld [vmem:[#allocation18] sm:$0xff] }
0x5f2b   :  { %v5473_v34 = vmul.f32 %v5451_v20, %v8801_v63  ;;  %v5484_v19 = vsel %vm2671_vm5, %v5475_v24, 0.0  ;;  %v10497_v20 = vld [vmem:[%s10898_s22 + $0x10] sm:$0xf] }
0x5f2c   :  { %v5482_v46 = vsel %vm2671_vm5, %v5474_v58, 0.0 }
0x5f2d   :  { %v5481_v25 = vsel %vm2671_vm5, %v5473_v34, 0.0  ;;  %v10504_v34 = vld [vmem:[%s10898_s22 + $0x8] sm:$0xff] }
0x5f2e   :  { %v5483_v35 = vadd.f32 %v5482_v46, %v5481_v25  ;;  %v10510_v46 = vld [vmem:[%s10898_s22] sm:$0xff] }
0x5f30   :  { %v5463_v31 = vpop.xlane.xlu2 %5462  ;;  %v5485_v44 = vadd.f32 %v5484_v19, %v5483_v35  ;;  %v10514_v35 = vrot.slane %v9447_v13, 4 }
0x5f31   :  { %v5477_v32 = vmul.f32 %v5463_v31, %v9138_v33  ;;  %v5466_v40 = vpop.xlane.xlu1 %5465 }
0x5f32   :  { %v5460_v39 = vpop.xlane.xlu0 %5459  ;;  %v5478_v52 = vmul.f32 %v5466_v40, %v9235_v55 }
0x5f33   :  { %v5476_v16 = vmul.f32 %v5460_v39, %v9006_v42  ;;  %v5488_v56 = vsel %vm2671_vm5, %v5477_v32, 0.0  ;;  %v5578_v39 = vpop.f32.mrf.mxu3 }
0x5f34   :  { %v5490_v10 = vsel %vm2671_vm5, %v5478_v52, 0.0 }
0x5f35   :  { %v5486_v45 = vsel %vm2671_vm5, %v5476_v16, 0.0 }
0x5f36   :  { %v5487_v27 = vadd.f32 %v5486_v45, %v5485_v44  ;;  %v5582_v44 = vrot.slane %v5578_v39, 1 }
0x5f38   :  { %v5489_v43 = vadd.f32 %v5488_v56, %v5487_v27  ;;  %v5472_v1 = vpop.xlane.xlu2 %5471  ;;  %v5587_v56 = vrot.slane %v10247_v15, 1 }
0x5f39   :  { %v5480_v37 = vmul.f32 %v5472_v1, %v9362_v21 }
0x5f3a   :  { %v5469_v53 = vpop.xlane.xlu0 %5468  ;;  %v5491_v8 = vadd.f32 %v5490_v10, %v5489_v43 }
0x5f3b   :  { %v5479_v41 = vmul.f32 %v5469_v53, %v9295_v3  ;;  %v5494_v61 = vsel %vm2671_vm5, %v5480_v37, 0.0 }
0x5f3d   :  { %v5492_v57 = vsel %vm2671_vm5, %v5479_v41, 0.0 }
0x5f3e   :  { %v5493_v2 = vadd.f32 %v5492_v57, %v5491_v8 }
0x5f40   :  { %v5495_v51 = vadd.f32 %v5494_v61, %v5493_v2 }
0x5f42   :  { %5531 = vrot.lane.b32.xlu1 %v5495_v51, %s8404_s7 }
0x5f4d   :  { %v5498_v38 = vpop.permute.xlu0 %5497 }
0x5f4e   :  { %7214 = vmatmul.msk.f32.vlgmr.msra.gmra.mxu1 %vm2558_vm1, %v5498_v38 }
0x5f4f   :  { %7234 = vmatpush.msk.msra.mxu1 %vm352_vm0, %v10483_v62 }
0x5f51   :  { %5938 = vmatpush.msra.mxu1 %v10487_v49 }
0x5f53   :  { %5939 = vmatpush.msra.mxu1 %v10490_v60 }
0x5fb4   :  { %v5532_v58 = vpop.permute.xlu1 %5531 }
0x5fb5   :  { %7216 = vmatmul.msk.f32.vlgmr.msrb.gmra.mxu2 %vm348_vm9, %v5532_v58 }
0x5fb6   :  { %7236 = vmatpush.msk.msrb.mxu2 %vm352_vm0, %v10497_v20 }
0x5fb8   :  { %5964 = vmatpush.msrb.mxu2 %v10504_v34 }
0x5fba   :  { %5965 = vmatpush.msrb.mxu2 %v10510_v46 }
0x5fcb   :  { %v5521_v25 = vpop.f32.mrf.mxu1 }
0x5fcc   :  { %v5525_v24 = vrot.slane %v5521_v25, 1  ;;  %v5528_v31 = vadd.f32 %v5521_v25, %v9447_v13 }
0x5fce   :  { %v5529_v32 = vadd.f32 %v5525_v24, %v10514_v35 }
0x6038   :  { %v5552_v19 = vpop.f32.mrf.mxu2 }
0x6039   :  { %v5556_v16 = vrot.slane %v5552_v19, 1  ;;  %v5559_v40 = vadd.f32 %v5552_v19, %v5528_v31 }
0x603b   :  { %v5560_v45 = vadd.f32 %v5556_v16, %v5529_v32  ;;  %v5585_v27 = vadd.f32 %v5578_v39, %v5559_v40 }
0x603d   :  { %v5586_v52 = vadd.f32 %v5582_v44, %v5560_v45  ;;  %v5589_v43 = vadd.f32 %v10247_v15, %v5585_v27 }
0x603f   :  { %v5590_v1 = vadd.f32 %v5587_v56, %v5586_v52  ;;  %7804 = vtanh.f32 %v5589_v43  ;;  %v7219_v37 = vmul.f32 -1.442695, %v5589_v43 }
0x6041   :  { %7806 = vtanh.f32 %v5590_v1  ;;  %v7220_v61 = vmul.f32 -1.442695, %v5590_v1 }
0x6042   :  { %7808 = vpow2.f32 %v7219_v37 }
0x6045   :  { %v7805_v53 = vpop.eup %7804 }
0x6046   :  { %5649 = vrot.lane.b32.xlu2 %v7805_v53, %s8402_s12 }
0x6047   :  { %v7807_v10 = vpop.eup %7806 }
0x6048   :  { %5651 = vrot.lane.b32.xlu0 %v7807_v10, %s8402_s12  ;;  %v7809_v41 = vpop.eup %7808 }
0x6049   :  { %v5597_v8 = vadd.f32 1.0, %v7809_v41 }
0x604b   :  { %7810 = vrcp.f32 %v5597_v8  ;;  %v5610_v25 = vand.u32 2147483648, %v5597_v8  ;;  %vm5604_vm12 = vweird.f32 %v5597_v8  ;;  %v5608_v31 = vand.u32 2147483647, %v5597_v8 }
0x604c   :  { %7812 = vpow2.f32 %v7220_v61  ;;  %v5638_v61 = vld [vmem:[#allocation1 + $0x11] ss:$2 sm:$0xff] }
0x604d   :  { %v5611_v19 = vor.u32 1.1754944e-38, %v5610_v25  ;;  %vm5609_vm4 = vcmp.eq.f32.partialorder %v5608_v31, 8.507059e+37 }
0x6051   :  { %v7811_v57 = vpop.eup %7810 }
0x6052   :  { %v5600_v2 = vmul.f32 %v7811_v57, %v5597_v8  ;;  %v7813_v38 = vpop.eup %7812  ;;  %vm5605_vm11 = vweird.f32 %v7811_v57 }
0x6053   :  { %v5598_v24 = vadd.f32 1.0, %v7813_v38  ;;  %vm5606_vm13 = vmor %vm5604_vm12, %vm5605_vm11  ;;  %v7222_v38 = vrot.slane %v5638_v61, 11 }
0x6054   :  { %v5601_v51 = vsub.f32 1.0, %v5600_v2 }
0x6055   :  { %7814 = vrcp.f32 %v5598_v24  ;;  %v5625_v43 = vand.u32 2147483648, %v5598_v24  ;;  %vm5619_vm6 = vweird.f32 %v5598_v24  ;;  %v5623_v1 = vand.u32 2147483647, %v5598_v24 }
0x6056   :  { %v5602_v15 = vmul.f32 %v7811_v57, %v5601_v51 }
0x6057   :  { %v5626_v10 = vor.u32 1.1754944e-38, %v5625_v43  ;;  %vm5624_vm8 = vcmp.eq.f32.partialorder %v5623_v1, 8.507059e+37  ;;  %v5696_v1 = vpop.f32.mrf.mxu0 }
0x6058   :  { %v5603_v58 = vadd.f32 %v7811_v57, %v5602_v15 }
0x605a   :  { %v5607_v39 = vsel %vm5606_vm13, %v7811_v57, %v5603_v58  ;;  %v5635_v57 = vld [vmem:[#allocation1 + $0x1] ss:$2 sm:$0xff] }
0x605b   :  { %v5612_v16 = vsel %vm5609_vm4, %v5611_v19, %v5607_v39  ;;  %v7815_v44 = vpop.eup %7814  ;;  %v7221_v2 = vrot.slane %v5635_v57, 11  ;;  %vm6947_vm4 = vcmask 9216  }
0x605c   :  { %v5615_v45 = vmul.f32 %v7815_v44, %v5598_v24  ;;  %vm5620_vm2 = vweird.f32 %v7815_v44 }
0x605d   :  { %vm5621_vm7 = vmor %vm5619_vm6, %vm5620_vm2  ;;  %v5645_v51 = vmul.f32 %v7221_v2, %v5612_v16 }
0x605e   :  { %v5616_v27 = vsub.f32 1.0, %v5615_v45 }
0x6060   :  { %v5617_v56 = vmul.f32 %v7815_v44, %v5616_v27 }
0x6062   :  { %v5618_v52 = vadd.f32 %v7815_v44, %v5617_v56 }
0x6064   :  { %v5622_v53 = vsel %vm5621_vm7, %v7815_v44, %v5618_v52 }
0x6065   :  { %v5627_v41 = vsel %vm5624_vm8, %v5626_v10, %v5622_v53 }
0x6066   :  { %v5646_v25 = vmul.f32 %v7222_v38, %v5627_v41 }
0x60a0   :  { %v5650_v32 = vpop.permute.xlu2 %5649 }
0x60a1   :  { %v5655_v40 = vmul.f32 %v5650_v32, %v5612_v16 }
0x60a3   :  { %5659 = vrot.lane.b32.xlu1 %v5655_v40, %s8403_s3 }
0x60ba   :  { %v5652_v37 = vpop.permute.xlu0 %5651 }
0x60bb   :  { %v5656_v8 = vmul.f32 %v5652_v37, %v5627_v41 }
0x60bd   :  { %5661 = vrot.lane.b32.xlu2 %v5656_v8, %s8403_s3 }
0x6115   :  { %v5660_v15 = vpop.permute.xlu1 %5659 }
0x6116   :  { %v10524_v58 = vadd.f32 %v5660_v15, %v5645_v51 }
0x6117   :  { %v5662_v24 = vpop.permute.xlu2 %5661 }
0x6118   :  { %7816 = vtanh.f32 %v10524_v58  ;;  %v10527_v31 = vadd.f32 %v5662_v24, %v5646_v25 }
0x611a   :  { %7818 = vtanh.f32 %v10527_v31 }
0x611e   :  { %v7817_v39 = vpop.eup %7816 }
0x611f   :  { %5671 = vrot.lane.b32.xlu0 %v7817_v39, %s8403_s3 }
0x6120   :  { %v7819_v19 = vpop.eup %7818 }
0x6121   :  { %5673 = vrot.lane.b32.xlu1 %v7819_v19, %s8403_s3 }
0x6191   :  { %v5672_v32 = vpop.permute.xlu0 %5671 }
0x6192   :  { %v5677_v40 = vmul.f32 %v5672_v32, %v5612_v16 }
0x6193   :  { %v5674_v44 = vpop.permute.xlu1 %5673 }
0x6194   :  { %v5678_v45 = vmul.f32 %v5674_v44, %v5627_v41  ;;  %v5701_v27 = vperm.slane %v5677_v40, 0 }
0x6196   :  { %v5702_v56 = vperm.slane %v5678_v45, 0 }
0x6198   :  { %v5703_v52 = vsel %vm457_vm3, %v5702_v56, %v5701_v27 }
0x6199   :  { %5704 = vrot.lane.b32.xlu2 %v5703_v52, %s8404_s7 }
0x61f3   :  { %v5705_v43 = vpop.permute.xlu2 %5704 }
0x61f4   :  { %7226 = vmatmul.msk.f32.vlgmr.msrb.gmra.mxu1 %vm348_vm9, %v5705_v43 }
0x61f5   :  { %7245 = vmatpush.msk.msrb.mxu1 %vm352_vm0, %v10364_v0 }
0x61f7   :  { %6166 = vmatpush.msrb.mxu1 %v10371_v48 }
0x61f9   :  { %6167 = vmatpush.msrb.mxu1 %v10377_v59 }
0x6271   :  { %v5725_v16 = vpop.f32.mrf.mxu1 }
0x6272   :  { %v5726_v53 = vadd.f32 %v5725_v16, %v5696_v1 }
0x6274   :  { %v5728_v10 = vadd.f32 %v10280_v17, %v5726_v53  ;;  %v10564_v53 = vld [vmem:[#allocation22 + $0x10] sm:$0xf] }
0x6276   :  { %7820 = vtanh.f32 %v5728_v10  ;;  %v7227_v41 = vmul.f32 -1.442695, %v5728_v10  ;;  %v10568_v10 = vld [vmem:[#allocation22 + $0x8] sm:$0xff] }
0x6278   :  { %7822 = vpow2.f32 %v7227_v41 }
0x627c   :  { %v7821_v37 = vpop.eup %7820 }
0x627d   :  { %5751 = vrot.lane.b32.xlu0 %v7821_v37, %s8402_s12  ;;  %v10571_v37 = vld [vmem:[#allocation22] sm:$0xff] }
0x627e   :  { %v7823_v8 = vpop.eup %7822 }
0x627f   :  { %v5732_v57 = vadd.f32 1.0, %v7823_v8 }
0x6281   :  { %7824 = vrcp.f32 %v5732_v57  ;;  %v5744_v25 = vand.u32 2147483648, %v5732_v57  ;;  %vm5738_vm11 = vweird.f32 %v5732_v57  ;;  %v5742_v24 = vand.u32 2147483647, %v5732_v57 }
0x6283   :  { %v5745_v39 = vor.u32 1.1754944e-38, %v5744_v25  ;;  %vm5743_vm13 = vcmp.eq.f32.partialorder %v5742_v24, 8.507059e+37 }
0x6287   :  { %v7825_v2 = vpop.eup %7824 }
0x6288   :  { %v5734_v61 = vmul.f32 %v7825_v2, %v5732_v57  ;;  %vm5739_vm10 = vweird.f32 %v7825_v2 }
0x6289   :  { %vm5740_vm12 = vmor %vm5738_vm11, %vm5739_vm10 }
0x628a   :  { %v5735_v51 = vsub.f32 1.0, %v5734_v61 }
0x628c   :  { %v5736_v15 = vmul.f32 %v7825_v2, %v5735_v51 }
0x628e   :  { %v5737_v38 = vadd.f32 %v7825_v2, %v5736_v15 }
0x6290   :  { %v5741_v17 = vsel %vm5740_vm12, %v7825_v2, %v5737_v38 }
0x6291   :  { %v5746_v32 = vsel %vm5743_vm13, %v5745_v39, %v5741_v17 }
0x6292   :  { %v5749_v44 = vmul.f32 %v5746_v32, %v10384_v12 }
0x62ef   :  { %v5752_v19 = vpop.permute.xlu0 %5751 }
0x62f0   :  { %v5754_v40 = vmul.f32 %v5752_v19, %v5746_v32 }
0x62f2   :  { %5756 = vrot.lane.b32.xlu1 %v5754_v40, %s8403_s3 }
0x6364   :  { %v5757_v45 = vpop.permute.xlu1 %5756 }
0x6365   :  { %v10543_v27 = vadd.f32 %v5757_v45, %v5749_v44 }
0x6367   :  { %7826 = vtanh.f32 %v10543_v27  ;;  %5792 = vrot.lane.b32.xlu1 %v10543_v27, %s8405_s20 }
0x636d   :  { %v7827_v56 = vpop.eup %7826 }
0x636e   :  { %5762 = vrot.lane.b32.xlu2 %v7827_v56, %s8403_s3 }
0x63c8   :  { %v5763_v52 = vpop.permute.xlu2 %5762 }
0x63c9   :  { %v5765_v1 = vmul.f32 %v5763_v52, %v5746_v32 }
0x63cb   :  { %5767 = vrot.lane.b32.xlu0 %v5765_v1, %s8404_s7 }
0x63d9   :  { %v5793_v16 = vpop.permute.xlu1 %5792 }
0x63da   :  { %7231 = vmatmul.msk.f32.vlgmr.msra.gmra.mxu3 %vm348_vm9, %v5793_v16 }
0x63db   :  { %7249 = vmatpush.msk.msra.mxu3 %vm2561_vm15, %v10445_v36 }
0x643d   :  { %v5768_v12 = vpop.permute.xlu0 %5767 }
0x643e   :  { %7229 = vmatmul.msk.f32.vlgmr.msra.gmra.mxu2 %vm348_vm9, %v5768_v12  ;;  %7241 = vmatmul.msk.f32.vlgmr.msrb.gmra.mxu3 %vm348_vm9, %v5768_v12 }
0x643f   :  { %7247 = vmatpush.msk.msra.mxu2 %vm352_vm0, %v10397_v9  ;;  %7259 = vmatpush.msk.msrb.mxu3 %vm352_vm0, %v10451_v6 }
0x6441   :  { %6191 = vmatpush.msra.mxu2 %v10404_v5  ;;  %6487 = vmatpush.msrb.mxu3 %v10457_v22 }
0x6443   :  { %6192 = vmatpush.msra.mxu2 %v10410_v7  ;;  %6488 = vmatpush.msrb.mxu3 %v10461_v28 }
0x6446   :  { %7237 = vmatmul.msk.f32.vlgmr.msrb.gmra.mxu2 %vm348_vm9, %v5705_v43 }
0x6447   :  { %7257 = vmatpush.msk.msrb.mxu2 %vm352_vm0, %v10564_v53 }
0x6449   :  { %6458 = vmatpush.msrb.mxu2 %v10568_v10 }
0x644b   :  { %6459 = vmatpush.msrb.mxu2 %v10571_v37 }
0x645d   :  { %v5813_v41 = vpop.f32.mrf.mxu3 }
0x64c1   :  { %v5788_v8 = vpop.f32.mrf.mxu2 }
0x64c2   :  { %v5816_v57 = vadd.f32 %v5813_v41, %v5788_v8 }
0x64c4   :  { %v5819_v2 = vadd.f32 %v5816_v57, %v8979_v23  ;;  %v5818_v43 = vadd.f32 %v5816_v57, %v8910_v11  ;;  %v5817_v61 = vadd.f32 %v5816_v57, %v8841_v50  ;;  %v5822_v51 = vadd.f32 %v5816_v57, %v9270_v4 }
0x64c5   :  { %v5821_v15 = vadd.f32 %v5816_v57, %v9186_v30  ;;  %v5820_v38 = vadd.f32 %v5816_v57, %v9105_v26  ;;  %v5824_v44 = vadd.f32 %v5816_v57, %v9379_v18  ;;  %v5823_v52 = vadd.f32 %v5816_v57, %v9317_v14 }
0x64c6   :  { %7828 = vtanh.f32 %v5819_v2 }
0x64c7   :  { %7830 = vtanh.f32 %v5818_v43 }
0x64c8   :  { %7832 = vtanh.f32 %v5817_v61 }
0x64c9   :  { %7834 = vtanh.f32 %v5822_v51 }
0x64ca   :  { %7836 = vtanh.f32 %v5821_v15 }
0x64cb   :  { %7838 = vtanh.f32 %v5820_v38 }
0x64cc   :  { %v7829_v25 = vpop.eup %7828  ;;  %7840 = vtanh.f32 %v5824_v44 }
0x64cd   :  { %v7831_v24 = vpop.eup %7830  ;;  %v5835_v17 = vmul.f32 %v10424_v47, %v7829_v25  ;;  %7842 = vtanh.f32 %v5823_v52 }
0x64ce   :  { %v7833_v39 = vpop.eup %7832  ;;  %v5834_v19 = vmul.f32 %v10424_v47, %v7831_v24 }
0x64cf   :  { %v5847_v32 = vsel %vm2638_vm14, %v5835_v17, 0.0  ;;  %v5833_v40 = vmul.f32 %v10424_v47, %v7833_v39  ;;  %v7835_v45 = vpop.eup %7834 }
0x64d0   :  { %5848 = vadd.xlane.f32.xlu1 %v5847_v32  ;;  %v5844_v56 = vsel %vm2638_vm14, %v5834_v19, 0.0  ;;  %v7837_v1 = vpop.eup %7836  ;;  %v5838_v41 = vmul.f32 %v10424_v47, %v7835_v45 }
0x64d1   :  { %5845 = vadd.xlane.f32.xlu0 %v5844_v56  ;;  %v5841_v16 = vsel %vm2638_vm14, %v5833_v40, 0.0  ;;  %v7839_v12 = vpop.eup %7838  ;;  %v5837_v2 = vmul.f32 %v10424_v47, %v7837_v1 }
0x64d2   :  { %5842 = vadd.xlane.f32.xlu2 %v5841_v16  ;;  %v5836_v43 = vmul.f32 %v10424_v47, %v7839_v12  ;;  %v5856_v61 = vsel %vm2638_vm14, %v5838_v41, 0.0  ;;  %v7841_v57 = vpop.eup %7840 }
0x64d3   :  { %v5853_v51 = vsel %vm2638_vm14, %v5837_v2, 0.0  ;;  %v7843_v38 = vpop.eup %7842  ;;  %v5840_v25 = vmul.f32 %v10424_v47, %v7841_v57 }
0x64d4   :  { %v5850_v15 = vsel %vm2638_vm14, %v5836_v43, 0.0  ;;  %v5839_v24 = vmul.f32 %v10424_v47, %v7843_v38 }
0x64d5   :  { %v5862_v17 = vsel %vm2638_vm14, %v5840_v25, 0.0 }
0x64d6   :  { %v5859_v39 = vsel %vm2638_vm14, %v5839_v24, 0.0 }
0x64d8   :  { %5857 = vadd.xlane.f32.xlu1 %v5856_v61 }
0x64d9   :  { %5854 = vadd.xlane.f32.xlu0 %v5853_v51 }
0x64da   :  { %5851 = vadd.xlane.f32.xlu2 %v5850_v15 }
0x64e1   :  { %5863 = vadd.xlane.f32.xlu0 %v5862_v17 }
0x64e2   :  { %5860 = vadd.xlane.f32.xlu2 %v5859_v39 }
0x64f1   :  { %5889 = vrot.lane.b32.xlu1 %v5788_v8, %s8405_s20 }
0x6543   :  { %v5849_v32 = vpop.xlane.xlu1 %5848 }
0x6544   :  { %v5846_v19 = vpop.xlane.xlu0 %5845  ;;  %v5867_v1 = vmul.f32 %v5849_v32, %v8937_v54 }
0x6545   :  { %v5866_v40 = vmul.f32 %v5846_v19, %v8875_v29  ;;  %v5843_v44 = vpop.xlane.xlu2 %5842 }
0x6546   :  { %v5865_v45 = vmul.f32 %v5843_v44, %v8801_v63  ;;  %v5876_v2 = vsel %vm2671_vm5, %v5867_v1, 0.0 }
0x6547   :  { %v5874_v56 = vsel %vm2671_vm5, %v5866_v40, 0.0 }
0x6548   :  { %v5873_v52 = vsel %vm2671_vm5, %v5865_v45, 0.0 }
0x6549   :  { %v5875_v16 = vadd.f32 %v5874_v56, %v5873_v52 }
0x654b   :  { %v5858_v61 = vpop.xlane.xlu1 %5857  ;;  %v5877_v51 = vadd.f32 %v5876_v2, %v5875_v16 }
0x654c   :  { %v5855_v12 = vpop.xlane.xlu0 %5854  ;;  %v5870_v38 = vmul.f32 %v5858_v61, %v9235_v55 }
0x654d   :  { %v5852_v41 = vpop.xlane.xlu2 %5851  ;;  %v5869_v8 = vmul.f32 %v5855_v12, %v9138_v33 }
0x654e   :  { %v5868_v43 = vmul.f32 %v5852_v41, %v9006_v42  ;;  %v5882_v19 = vsel %vm2671_vm5, %v5870_v38, 0.0 }
0x654f   :  { %v5880_v25 = vsel %vm2671_vm5, %v5869_v8, 0.0 }
0x6550   :  { %v5878_v57 = vsel %vm2671_vm5, %v5868_v43, 0.0  ;;  %v5967_v43 = vpop.f32.mrf.mxu2 }
0x6551   :  { %v5879_v15 = vadd.f32 %v5878_v57, %v5877_v51  ;;  %v5971_v38 = vrot.slane %v5967_v43, 7 }
0x6553   :  { %v5881_v24 = vadd.f32 %v5880_v25, %v5879_v15 }
0x6554   :  { %v5864_v17 = vpop.xlane.xlu0 %5863 }
0x6555   :  { %v5861_v39 = vpop.xlane.xlu2 %5860  ;;  %v5872_v32 = vmul.f32 %v5864_v17, %v9362_v21  ;;  %v5883_v44 = vadd.f32 %v5882_v19, %v5881_v24  ;;  %v10632_v17 = vld [vmem:[#allocation19] ss:$0 sm:$0xff] }
0x6556   :  { %v5871_v40 = vmul.f32 %v5861_v39, %v9295_v3  ;;  %v5976_v39 = vrot.slane %v10632_v17, 7 }
0x6557   :  { %v5886_v52 = vsel %vm2671_vm5, %v5872_v32, 0.0 }
0x6558   :  { %v5884_v45 = vsel %vm2671_vm5, %v5871_v40, 0.0 }
0x6559   :  { %v5885_v56 = vadd.f32 %v5884_v45, %v5883_v44 }
0x655b   :  { %v5887_v1 = vadd.f32 %v5886_v52, %v5885_v56 }
0x655d   :  { %5920 = vrot.lane.b32.xlu2 %v5887_v1, %s8404_s7 }
0x6563   :  { %v5890_v16 = vpop.permute.xlu1 %5889 }
0x6564   :  { %6948 = vst.msk [vmem:[%s10903_s27] sm:$0x3] %vm6947_vm4, %v5890_v16  ;;  %7233 = vmatmul.msk.f32.vlgmr.msrb.gmra.mxu0 %vm2558_vm1, %v5890_v16 }
0x6565   :  { %7251 = vmatpush.msk.msrb.mxu0 %vm352_vm0, %v10483_v62 }
0x6567   :  { %6320 = vmatpush.msrb.mxu0 %v10487_v49 }
0x6569   :  { %6321 = vmatpush.msrb.mxu0 %v10490_v60 }
0x65b7   :  { %v5921_v12 = vpop.permute.xlu2 %5920 }
0x65b8   :  { %7235 = vmatmul.msk.f32.vlgmr.msra.gmra.mxu1 %vm348_vm9, %v5921_v12 }
0x65b9   :  { %7253 = vmatpush.msk.msra.mxu1 %vm352_vm0, %v10497_v20 }
0x65bb   :  { %6347 = vmatpush.msra.mxu1 %v10504_v34 }
0x65bd   :  { %6348 = vmatpush.msra.mxu1 %v10510_v46 }
0x65e1   :  { %v5910_v41 = vpop.f32.mrf.mxu0 }
0x65e2   :  { %v5914_v2 = vrot.slane %v5910_v41, 7  ;;  %v5918_v8 = vadd.f32 %v5910_v41, %v10514_v35 }
0x65e4   :  { %v5917_v51 = vadd.f32 %v5914_v2, %v9447_v13 }
0x6635   :  { %v5941_v61 = vpop.f32.mrf.mxu1 }
0x6636   :  { %v5945_v57 = vrot.slane %v5941_v61, 7  ;;  %v5949_v15 = vadd.f32 %v5941_v61, %v5918_v8 }
0x6638   :  { %v5948_v25 = vadd.f32 %v5945_v57, %v5917_v51  ;;  %v5975_v24 = vadd.f32 %v5967_v43, %v5949_v15 }
0x663a   :  { %v5974_v19 = vadd.f32 %v5971_v38, %v5948_v25  ;;  %v5979_v32 = vadd.f32 %v10632_v17, %v5975_v24 }
0x663c   :  { %v5978_v40 = vadd.f32 %v5976_v39, %v5974_v19  ;;  %7844 = vtanh.f32 %v5979_v32  ;;  %v7239_v56 = vmul.f32 -1.442695, %v5979_v32 }
0x663e   :  { %7846 = vtanh.f32 %v5978_v40  ;;  %v7238_v52 = vmul.f32 -1.442695, %v5978_v40 }
0x663f   :  { %7848 = vpow2.f32 %v7239_v56 }
0x6640   :  { %7850 = vpow2.f32 %v7238_v52 }
0x6642   :  { %v7845_v44 = vpop.eup %7844 }
0x6643   :  { %6032 = vrot.lane.b32.xlu1 %v7845_v44, %s8402_s12 }
0x6644   :  { %v7847_v45 = vpop.eup %7846 }
0x6645   :  { %6030 = vrot.lane.b32.xlu0 %v7847_v45, %s8402_s12  ;;  %v7849_v1 = vpop.eup %7848 }
0x6646   :  { %v7851_v16 = vpop.eup %7850  ;;  %v5987_v12 = vadd.f32 1.0, %v7849_v1 }
0x6647   :  { %v5986_v41 = vadd.f32 1.0, %v7851_v16 }
0x6648   :  { %7852 = vrcp.f32 %v5987_v12  ;;  %v6014_v24 = vand.u32 2147483648, %v5987_v12  ;;  %vm6008_vm6 = vweird.f32 %v5987_v12  ;;  %v6012_v19 = vand.u32 2147483647, %v5987_v12 }
0x6649   :  { %7854 = vrcp.f32 %v5986_v41  ;;  %v5999_v44 = vand.u32 2147483648, %v5986_v41  ;;  %vm5993_vm10 = vweird.f32 %v5986_v41  ;;  %v5997_v56 = vand.u32 2147483647, %v5986_v41 }
0x664a   :  { %v6015_v45 = vor.u32 1.1754944e-38, %v6014_v24  ;;  %vm6013_vm11 = vcmp.eq.f32.partialorder %v6012_v19, 8.507059e+37 }
0x664b   :  { %vm5998_vm13 = vcmp.eq.f32.partialorder %v5997_v56, 8.507059e+37 }
0x664e   :  { %v7853_v2 = vpop.eup %7852 }
0x664f   :  { %v7855_v8 = vpop.eup %7854  ;;  %v6004_v43 = vmul.f32 %v7853_v2, %v5987_v12  ;;  %vm6009_vm2 = vweird.f32 %v7853_v2 }
0x6650   :  { %v5989_v61 = vmul.f32 %v7855_v8, %v5986_v41  ;;  %vm6010_vm7 = vmor %vm6008_vm6, %vm6009_vm2  ;;  %vm5994_vm8 = vweird.f32 %v7855_v8 }
0x6651   :  { %v6005_v51 = vsub.f32 1.0, %v6004_v43  ;;  %vm5995_vm12 = vmor %vm5993_vm10, %vm5994_vm8 }
0x6652   :  { %v5990_v57 = vsub.f32 1.0, %v5989_v61  ;;  %v6000_v61 = vor.u32 1.1754944e-38, %v5999_v44 }
0x6653   :  { %v6006_v15 = vmul.f32 %v7853_v2, %v6005_v51 }
0x6654   :  { %v5991_v38 = vmul.f32 %v7855_v8, %v5990_v57 }
0x6655   :  { %v6007_v25 = vadd.f32 %v7853_v2, %v6006_v15 }
0x6656   :  { %v5992_v32 = vadd.f32 %v7855_v8, %v5991_v38 }
0x6657   :  { %v6011_v40 = vsel %vm6010_vm7, %v7853_v2, %v6007_v25  ;;  %v6023_v2 = vrot.slane %v10527_v31, 7 }
0x6658   :  { %v6016_v1 = vsel %vm6013_vm11, %v6015_v45, %v6011_v40  ;;  %v5996_v16 = vsel %vm5995_vm12, %v7855_v8, %v5992_v32  ;;  %v6022_v8 = vrot.slane %v10524_v58, 7 }
0x6659   :  { %v6001_v57 = vsel %vm5998_vm13, %v6000_v61, %v5996_v16  ;;  %v6027_v15 = vmul.f32 %v6023_v2, %v6016_v1  ;;  %v6077_v61 = vpop.f32.mrf.mxu3 }
0x665a   :  { %v6026_v24 = vmul.f32 %v6022_v8, %v6001_v57 }
0x66b5   :  { %v6033_v52 = vpop.permute.xlu1 %6032 }
0x66b6   :  { %v6037_v43 = vmul.f32 %v6033_v52, %v6016_v1 }
0x66b7   :  { %v6031_v51 = vpop.permute.xlu0 %6030 }
0x66b8   :  { %6042 = vrot.lane.b32.xlu2 %v6037_v43, %s8403_s3  ;;  %v6036_v12 = vmul.f32 %v6031_v51, %v6001_v57 }
0x66ba   :  { %6040 = vrot.lane.b32.xlu0 %v6036_v12, %s8403_s3 }
0x6712   :  { %v6043_v38 = vpop.permute.xlu2 %6042 }
0x6713   :  { %v10643_v41 = vadd.f32 %v6043_v38, %v6027_v15 }
0x6715   :  { %7856 = vtanh.f32 %v10643_v41 }
0x671b   :  { %v7857_v25 = vpop.eup %7856 }
0x671c   :  { %6054 = vrot.lane.b32.xlu0 %v7857_v25, %s8403_s3 }
0x672c   :  { %v6041_v19 = vpop.permute.xlu0 %6040 }
0x672d   :  { %v10648_v32 = vadd.f32 %v6041_v19, %v6026_v24 }
0x672f   :  { %7858 = vtanh.f32 %v10648_v32 }
0x6735   :  { %v7859_v40 = vpop.eup %7858 }
0x6736   :  { %6052 = vrot.lane.b32.xlu1 %v7859_v40, %s8403_s3 }
0x678e   :  { %v6055_v31 = vpop.permute.xlu0 %6054 }
0x678f   :  { %v6059_v44 = vmul.f32 %v6055_v31, %v6016_v1 }
0x6791   :  { %v6083_v52 = vperm.slane %v6059_v44, 1 }
0x67a8   :  { %v6053_v45 = vpop.permute.xlu1 %6052 }
0x67a9   :  { %v6058_v56 = vmul.f32 %v6053_v45, %v6001_v57  ;;  %v10662_v57 = vld [vmem:[%s10902_s26] ss:$0 sm:$0xff] }
0x67ab   :  { %v6082_v16 = vperm.slane %v6058_v56, 1 }
0x67ad   :  { %v6084_v43 = vsel %vm457_vm3, %v6083_v52, %v6082_v16 }
0x67ae   :  { %6085 = vrot.lane.b32.xlu2 %v6084_v43, %s8404_s7 }
0x6808   :  { %v6086_v58 = vpop.permute.xlu2 %6085 }
0x6809   :  { %7243 = vmatmul.msk.f32.vlgmr.msra.gmra.mxu0 %vm348_vm9, %v6086_v58 }
0x680a   :  { %7262 = vmatpush.msk.msra.mxu0 %vm352_vm0, %v10364_v0 }
0x680c   :  { %6550 = vmatpush.msra.mxu0 %v10371_v48 }
0x680e   :  { %6551 = vmatpush.msra.mxu0 %v10377_v59 }
0x6886   :  { %v6106_v1 = vpop.f32.mrf.mxu0 }
0x6887   :  { %v6107_v51 = vadd.f32 %v6106_v1, %v6077_v61 }
0x6889   :  { %v6109_v12 = vadd.f32 %v10662_v57, %v6107_v51 }
0x688b   :  { %7860 = vtanh.f32 %v6109_v12  ;;  %v7244_v15 = vmul.f32 -1.442695, %v6109_v12 }
0x688d   :  { %7862 = vpow2.f32 %v7244_v15 }
0x6891   :  { %v7861_v2 = vpop.eup %7860 }
0x6892   :  { %6132 = vrot.lane.b32.xlu1 %v7861_v2, %s8402_s12 }
0x6893   :  { %v7863_v0 = vpop.eup %7862 }
0x6894   :  { %v6113_v48 = vadd.f32 1.0, %v7863_v0 }
0x6896   :  { %7864 = vrcp.f32 %v6113_v48  ;;  %v6125_v19 = vand.u32 2147483648, %v6113_v48  ;;  %vm6119_vm6 = vweird.f32 %v6113_v48  ;;  %v6123_v40 = vand.u32 2147483647, %v6113_v48 }
0x6898   :  { %v6126_v44 = vor.u32 1.1754944e-38, %v6125_v19  ;;  %vm6124_vm8 = vcmp.eq.f32.partialorder %v6123_v40, 8.507059e+37 }
0x689c   :  { %v7865_v59 = vpop.eup %7864 }
0x689d   :  { %v6115_v38 = vmul.f32 %v7865_v59, %v6113_v48  ;;  %vm6120_vm2 = vweird.f32 %v7865_v59 }
0x689e   :  { %vm6121_vm7 = vmor %vm6119_vm6, %vm6120_vm2 }
0x689f   :  { %v6116_v25 = vsub.f32 1.0, %v6115_v38 }
0x68a1   :  { %v6117_v8 = vmul.f32 %v7865_v59, %v6116_v25 }
0x68a3   :  { %v6118_v24 = vadd.f32 %v7865_v59, %v6117_v8 }
0x68a5   :  { %v6122_v31 = vsel %vm6121_vm7, %v7865_v59, %v6118_v24 }
0x68a6   :  { %v6127_v56 = vsel %vm6124_vm8, %v6126_v44, %v6122_v31 }
0x68a7   :  { %v6130_v16 = vmul.f32 %v6127_v56, %v10543_v27 }
0x6904   :  { %v6133_v45 = vpop.permute.xlu1 %6132 }
0x6905   :  { %v6135_v52 = vmul.f32 %v6133_v45, %v6127_v56 }
0x6907   :  { %6137 = vrot.lane.b32.xlu0 %v6135_v52, %s8403_s3 }
0x6979   :  { %v6138_v43 = vpop.permute.xlu0 %6137 }
0x697a   :  { %v10668_v61 = vadd.f32 %v6138_v43, %v6130_v16 }
0x697c   :  { %7866 = vtanh.f32 %v10668_v61  ;;  %6173 = vrot.lane.b32.xlu1 %v10668_v61, %s8405_s20 }
0x6982   :  { %v7867_v1 = vpop.eup %7866 }
0x6983   :  { %6143 = vrot.lane.b32.xlu2 %v7867_v1, %s8403_s3 }
0x69dd   :  { %v6144_v51 = vpop.permute.xlu2 %6143 }
0x69de   :  { %v6146_v12 = vmul.f32 %v6144_v51, %v6127_v56  ;;  %v10708_v56 = vld [vmem:[#allocation2] ss:$0 sm:$0xff] }
0x69e0   :  { %6148 = vrot.lane.b32.xlu0 %v6146_v12, %s8404_s7 }
0x69ee   :  { %v6174_v2 = vpop.permute.xlu1 %6173 }
0x69ef   :  { %7248 = vmatmul.msk.f32.vlgmr.msra.gmra.mxu2 %vm348_vm9, %v6174_v2 }
0x69f0   :  { %7266 = vmatpush.msk.msra.mxu2 %vm2561_vm15, %v10445_v36 }
0x6a52   :  { %v6149_v27 = vpop.permute.xlu0 %6148 }
0x6a53   :  { %7246 = vmatmul.msk.f32.vlgmr.msrb.gmra.mxu1 %vm348_vm9, %v6149_v27  ;;  %7258 = vmatmul.msk.f32.vlgmr.msrb.gmra.mxu2 %vm348_vm9, %v6149_v27 }
0x6a54   :  { %7264 = vmatpush.msk.msrb.mxu1 %vm352_vm0, %v10397_v9  ;;  %7276 = vmatpush.msk.msrb.mxu2 %vm352_vm0, %v10451_v6 }
0x6a56   :  { %6575 = vmatpush.msrb.mxu1 %v10404_v5  ;;  %6871 = vmatpush.msrb.mxu2 %v10457_v22 }
0x6a58   :  { %6576 = vmatpush.msrb.mxu1 %v10410_v7  ;;  %6872 = vmatpush.msrb.mxu2 %v10461_v28 }
0x6a5b   :  { %7254 = vmatmul.msk.f32.vlgmr.msra.gmra.mxu1 %vm348_vm9, %v6086_v58 }
0x6a5c   :  { %7274 = vmatpush.msk.msra.mxu1 %vm352_vm0, %v10564_v53 }
0x6a5e   :  { %6842 = vmatpush.msra.mxu1 %v10568_v10 }
0x6a60   :  { %6843 = vmatpush.msra.mxu1 %v10571_v37 }
0x6a72   :  { %v6194_v9 = vpop.f32.mrf.mxu2 }
0x6ad0   :  { %v6169_v36 = vpop.f32.mrf.mxu1 }
0x6ad1   :  { %v6197_v6 = vadd.f32 %v6194_v9, %v6169_v36 }
0x6ad3   :  { %v6200_v5 = vadd.f32 %v6197_v6, %v8979_v23  ;;  %v6199_v22 = vadd.f32 %v6197_v6, %v8910_v11  ;;  %v6198_v7 = vadd.f32 %v6197_v6, %v8841_v50  ;;  %v6203_v28 = vadd.f32 %v6197_v6, %v9270_v4 }
0x6ad4   :  { %v6202_v58 = vadd.f32 %v6197_v6, %v9186_v30  ;;  %v6201_v53 = vadd.f32 %v6197_v6, %v9105_v26  ;;  %v6205_v25 = vadd.f32 %v6197_v6, %v9379_v18  ;;  %v6204_v19 = vadd.f32 %v6197_v6, %v9317_v14 }
0x6ad5   :  { %7868 = vtanh.f32 %v6200_v5 }
0x6ad6   :  { %7870 = vtanh.f32 %v6199_v22 }
0x6ad7   :  { %7872 = vtanh.f32 %v6198_v7 }
0x6ad8   :  { %7874 = vtanh.f32 %v6203_v28 }
0x6ad9   :  { %7876 = vtanh.f32 %v6202_v58 }
0x6ada   :  { %7878 = vtanh.f32 %v6201_v53 }
0x6adb   :  { %v7869_v10 = vpop.eup %7868  ;;  %7880 = vtanh.f32 %v6205_v25 }
0x6adc   :  { %v7871_v37 = vpop.eup %7870  ;;  %v6216_v15 = vmul.f32 %v10424_v47, %v7869_v10  ;;  %7882 = vtanh.f32 %v6204_v19 }
0x6add   :  { %v7873_v0 = vpop.eup %7872  ;;  %v6215_v48 = vmul.f32 %v10424_v47, %v7871_v37 }
0x6ade   :  { %v6228_v59 = vsel %vm2638_vm14, %v6216_v15, 0.0  ;;  %v6214_v38 = vmul.f32 %v10424_v47, %v7873_v0  ;;  %v7875_v8 = vpop.eup %7874 }
0x6adf   :  { %6229 = vadd.xlane.f32.xlu0 %v6228_v59  ;;  %v6225_v24 = vsel %vm2638_vm14, %v6215_v48, 0.0  ;;  %v7877_v40 = vpop.eup %7876  ;;  %v6219_v45 = vmul.f32 %v10424_v47, %v7875_v8 }
0x6ae0   :  { %6226 = vadd.xlane.f32.xlu1 %v6225_v24  ;;  %v6222_v31 = vsel %vm2638_vm14, %v6214_v38, 0.0  ;;  %v7879_v44 = vpop.eup %7878  ;;  %v6218_v52 = vmul.f32 %v10708_v56, %v7877_v40 }
0x6ae1   :  { %6223 = vadd.xlane.f32.xlu2 %v6222_v31  ;;  %v6217_v16 = vmul.f32 %v10708_v56, %v7879_v44  ;;  %v6237_v43 = vsel %vm2638_vm14, %v6219_v45, 0.0  ;;  %v7881_v51 = vpop.eup %7880 }
0x6ae2   :  { %v6234_v1 = vsel %vm2638_vm14, %v6218_v52, 0.0  ;;  %v7883_v2 = vpop.eup %7882  ;;  %v6221_v47 = vmul.f32 %v10708_v56, %v7881_v51 }
0x6ae3   :  { %v6231_v12 = vsel %vm2638_vm14, %v6217_v16, 0.0  ;;  %v6220_v27 = vmul.f32 %v10708_v56, %v7883_v2 }
0x6ae4   :  { %v6243_v9 = vsel %vm2638_vm14, %v6221_v47, 0.0 }
0x6ae5   :  { %v6240_v6 = vsel %vm2638_vm14, %v6220_v27, 0.0 }
0x6ae7   :  { %6238 = vadd.xlane.f32.xlu0 %v6237_v43 }
0x6ae8   :  { %6235 = vadd.xlane.f32.xlu1 %v6234_v1 }
0x6ae9   :  { %6232 = vadd.xlane.f32.xlu2 %v6231_v12 }
0x6af0   :  { %6244 = vadd.xlane.f32.xlu1 %v6243_v9 }
0x6af1   :  { %6241 = vadd.xlane.f32.xlu2 %v6240_v6 }
0x6afb   :  { %6270 = vrot.lane.b32.xlu0 %v6169_v36, %s8405_s20 }
0x6b52   :  { %v6230_v22 = vpop.xlane.xlu0 %6229 }
0x6b53   :  { %v6227_v5 = vpop.xlane.xlu1 %6226  ;;  %v6248_v37 = vmul.f32 %v6230_v22, %v8937_v54 }
0x6b54   :  { %v6247_v7 = vmul.f32 %v6227_v5, %v8875_v29  ;;  %v6224_v28 = vpop.xlane.xlu2 %6223 }
0x6b55   :  { %v6246_v58 = vmul.f32 %v6224_v28, %v8801_v63  ;;  %v6257_v59 = vsel %vm2671_vm5, %v6248_v37, 0.0  ;;  %v6350_v28 = vpop.f32.mrf.mxu1 }
0x6b56   :  { %v6255_v53 = vsel %vm2671_vm5, %v6247_v7, 0.0  ;;  %v6355_v37 = vrot.slane %v6350_v28, 7 }
0x6b57   :  { %v6254_v10 = vsel %vm2671_vm5, %v6246_v58, 0.0 }
0x6b58   :  { %v6256_v15 = vadd.f32 %v6255_v53, %v6254_v10  ;;  %v6354_v10 = vrot.slane %v6350_v28, 6 }
0x6b5a   :  { %v6239_v25 = vpop.xlane.xlu0 %6238  ;;  %v6258_v8 = vadd.f32 %v6257_v59, %v6256_v15 }
0x6b5b   :  { %v6236_v0 = vpop.xlane.xlu1 %6235  ;;  %v6251_v40 = vmul.f32 %v6239_v25, %v9235_v55 }
0x6b5c   :  { %v6233_v48 = vpop.xlane.xlu2 %6232  ;;  %v6250_v36 = vmul.f32 %v6236_v0, %v9138_v33 }
0x6b5d   :  { %v6249_v38 = vmul.f32 %v6233_v48, %v9006_v42  ;;  %v6263_v16 = vsel %vm2671_vm5, %v6251_v40, 0.0 }
0x6b5e   :  { %v6261_v31 = vsel %vm2671_vm5, %v6250_v36, 0.0 }
0x6b5f   :  { %v6259_v24 = vsel %vm2671_vm5, %v6249_v38, 0.0 }
0x6b60   :  { %v6260_v19 = vadd.f32 %v6259_v24, %v6258_v8 }
0x6b62   :  { %v6262_v44 = vadd.f32 %v6261_v31, %v6260_v19 }
0x6b63   :  { %v6245_v45 = vpop.xlane.xlu1 %6244 }
0x6b64   :  { %v6242_v52 = vpop.xlane.xlu2 %6241  ;;  %v6253_v43 = vmul.f32 %v6245_v45, %v9362_v21  ;;  %v6264_v51 = vadd.f32 %v6263_v16, %v6262_v44 }
0x6b65   :  { %v6252_v1 = vmul.f32 %v6242_v52, %v9295_v3 }
0x6b66   :  { %v6267_v47 = vsel %vm2671_vm5, %v6253_v43, 0.0 }
0x6b67   :  { %v6265_v12 = vsel %vm2671_vm5, %v6252_v1, 0.0 }
0x6b68   :  { %v6266_v2 = vadd.f32 %v6265_v12, %v6264_v51 }
0x6b6a   :  { %v6268_v27 = vadd.f32 %v6267_v47, %v6266_v2 }
0x6b6c   :  { %6302 = vrot.lane.b32.xlu2 %v6268_v27, %s8404_s7 }
0x6b6d   :  { %v6271_v9 = vpop.permute.xlu0 %6270 }
0x6b6e   :  { %6949 = vst.msk [vmem:[%s10903_s27 + $0x2] sm:$0x3] %vm6947_vm4, %v6271_v9  ;;  %7250 = vmatmul.msk.f32.vlgmr.msra.gmra.mxu3 %vm2558_vm1, %v6271_v9 }
0x6b6f   :  { %7268 = vmatpush.msk.msra.mxu3 %vm352_vm0, %v10483_v62 }
0x6b71   :  { %6704 = vmatpush.msra.mxu3 %v10487_v49 }
0x6b73   :  { %6705 = vmatpush.msra.mxu3 %v10490_v60 }
0x6bc6   :  { %v6303_v6 = vpop.permute.xlu2 %6302 }
0x6bc7   :  { %7252 = vmatmul.msk.f32.vlgmr.msrb.gmra.mxu0 %vm348_vm9, %v6303_v6 }
0x6bc8   :  { %7270 = vmatpush.msk.msrb.mxu0 %vm352_vm0, %v10497_v20  ;;  %v6360_v20 = vrot.slane %v10632_v17, 6 }
0x6bca   :  { %6731 = vmatpush.msrb.mxu0 %v10504_v34 }
0x6bcc   :  { %6732 = vmatpush.msrb.mxu0 %v10510_v46 }
0x6bf1   :  { %v6291_v5 = vpop.f32.mrf.mxu3 }
0x6bf2   :  { %v6295_v22 = vrot.slane %v6291_v5, 6  ;;  %v6296_v7 = vrot.slane %v6291_v5, 7 }
0x6bf4   :  { %v6299_v62 = vadd.f32 %v6295_v22, %v9447_v13  ;;  %v6300_v49 = vadd.f32 %v6296_v7, %v10514_v35 }
0x6c44   :  { %v6323_v58 = vpop.f32.mrf.mxu0 }
0x6c45   :  { %v6327_v60 = vrot.slane %v6323_v58, 6  ;;  %v6328_v53 = vrot.slane %v6323_v58, 7 }
0x6c47   :  { %v6331_v15 = vadd.f32 %v6327_v60, %v6299_v62  ;;  %v6332_v0 = vadd.f32 %v6328_v53, %v6300_v49 }
0x6c49   :  { %v6358_v34 = vadd.f32 %v6354_v10, %v6331_v15  ;;  %v6359_v48 = vadd.f32 %v6355_v37, %v6332_v0  ;;  %v6406_v37 = vrot.slane %v10648_v32, 7 }
0x6c4b   :  { %v6362_v46 = vadd.f32 %v6360_v20, %v6358_v34  ;;  %v6363_v59 = vadd.f32 %v6359_v48, %v5976_v39 }
0x6c4d   :  { %7884 = vtanh.f32 %v6362_v46  ;;  %v7255_v25 = vmul.f32 -1.442695, %v6362_v46  ;;  %v7256_v8 = vmul.f32 -1.442695, %v6363_v59  ;;  %v6407_v46 = vrot.slane %v10643_v41, 7 }
0x6c4e   :  { %7886 = vtanh.f32 %v6363_v59 }
0x6c4f   :  { %7888 = vpow2.f32 %v7255_v25 }
0x6c50   :  { %7890 = vpow2.f32 %v7256_v8 }
0x6c53   :  { %v7885_v36 = vpop.eup %7884 }
0x6c54   :  { %v7887_v38 = vpop.eup %7886  ;;  %6414 = vrot.lane.b32.xlu1 %v7885_v36, %s8402_s12 }
0x6c55   :  { %6416 = vrot.lane.b32.xlu0 %v7887_v38, %s8402_s12  ;;  %v7889_v24 = vpop.eup %7888 }
0x6c56   :  { %v7891_v19 = vpop.eup %7890  ;;  %v6370_v40 = vadd.f32 1.0, %v7889_v24 }
0x6c57   :  { %v6371_v31 = vadd.f32 1.0, %v7891_v19 }
0x6c58   :  { %7892 = vrcp.f32 %v6370_v40  ;;  %v6383_v47 = vand.u32 2147483648, %v6370_v40  ;;  %vm6377_vm11 = vweird.f32 %v6370_v40  ;;  %v6381_v9 = vand.u32 2147483647, %v6370_v40 }
0x6c59   :  { %7894 = vrcp.f32 %v6371_v31  ;;  %v6398_v27 = vand.u32 2147483648, %v6371_v31  ;;  %vm6392_vm12 = vweird.f32 %v6371_v31  ;;  %v6396_v6 = vand.u32 2147483647, %v6371_v31 }
0x6c5a   :  { %v6384_v7 = vor.u32 1.1754944e-38, %v6383_v47  ;;  %vm6382_vm6 = vcmp.eq.f32.partialorder %v6381_v9, 8.507059e+37 }
0x6c5b   :  { %v6399_v28 = vor.u32 1.1754944e-38, %v6398_v27  ;;  %vm6397_vm7 = vcmp.eq.f32.partialorder %v6396_v6, 8.507059e+37 }
0x6c5e   :  { %v7893_v44 = vpop.eup %7892 }
0x6c5f   :  { %v7895_v39 = vpop.eup %7894  ;;  %v6373_v45 = vmul.f32 %v7893_v44, %v6370_v40  ;;  %vm6378_vm15 = vweird.f32 %v7893_v44 }
0x6c60   :  { %v6388_v52 = vmul.f32 %v7895_v39, %v6371_v31  ;;  %vm6393_vm10 = vweird.f32 %v7895_v39  ;;  %vm6379_vm13 = vmor %vm6377_vm11, %vm6378_vm15 }
0x6c61   :  { %v6374_v16 = vsub.f32 1.0, %v6373_v45  ;;  %vm6394_vm2 = vmor %vm6392_vm12, %vm6393_vm10  ;;  %v8031_v45 = vld [vmem:[%s10937_s28 + $0x8] sm:$0xff] }
0x6c62   :  { %v6389_v43 = vsub.f32 1.0, %v6388_v52  ;;  %v8032_v52 = vld [vmem:[%s10937_s28] sm:$0xff] }
0x6c63   :  { %v6375_v1 = vmul.f32 %v7893_v44, %v6374_v16  ;;  %v6461_v16 = vpop.f32.mrf.mxu2 }
0x6c64   :  { %v6390_v51 = vmul.f32 %v7895_v39, %v6389_v43 }
0x6c65   :  { %v6376_v12 = vadd.f32 %v7893_v44, %v6375_v1 }
0x6c66   :  { %v6391_v2 = vadd.f32 %v7895_v39, %v6390_v51 }
0x6c67   :  { %v6380_v5 = vsel %vm6379_vm13, %v7893_v44, %v6376_v12 }
0x6c68   :  { %v6395_v22 = vsel %vm6394_vm2, %v7895_v39, %v6391_v2  ;;  %v6385_v62 = vsel %vm6382_vm6, %v6384_v7, %v6380_v5  ;;  %v8030_v39 = vld [vmem:[%s10937_s28 + $0x10] sm:$0xf] }
0x6c69   :  { %v6400_v60 = vsel %vm6397_vm7, %v6399_v28, %v6395_v22  ;;  %v6410_v15 = vmul.f32 %v6406_v37, %v6385_v62 }
0x6c6a   :  { %v6411_v59 = vmul.f32 %v6407_v46, %v6400_v60 }
0x6cc6   :  { %v6415_v58 = vpop.permute.xlu1 %6414 }
0x6cc7   :  { %v6417_v49 = vpop.permute.xlu0 %6416  ;;  %v6420_v53 = vmul.f32 %v6415_v58, %v6385_v62 }
0x6cc8   :  { %v6421_v10 = vmul.f32 %v6417_v49, %v6400_v60 }
0x6cc9   :  { %6424 = vrot.lane.b32.xlu2 %v6420_v53, %s8403_s3 }
0x6cca   :  { %6426 = vrot.lane.b32.xlu0 %v6421_v10, %s8403_s3 }
0x6d23   :  { %v6425_v0 = vpop.permute.xlu2 %6424 }
0x6d24   :  { %v10763_v34 = vadd.f32 %v6425_v0, %v6410_v15 }
0x6d26   :  { %7896 = vtanh.f32 %v10763_v34 }
0x6d2c   :  { %v7897_v48 = vpop.eup %7896 }
0x6d2d   :  { %6436 = vrot.lane.b32.xlu1 %v7897_v48, %s8403_s3 }
0x6d3c   :  { %v6427_v36 = vpop.permute.xlu0 %6426 }
0x6d3d   :  { %v10768_v38 = vadd.f32 %v6427_v36, %v6411_v59 }
0x6d3f   :  { %7898 = vtanh.f32 %v10768_v38 }
0x6d45   :  { %v7899_v25 = vpop.eup %7898 }
0x6d46   :  { %6438 = vrot.lane.b32.xlu2 %v7899_v25, %s8403_s3 }
0x6d9f   :  { %v6437_v32 = vpop.permute.xlu1 %6436 }
0x6da0   :  { %v6439_v8 = vpop.permute.xlu2 %6438  ;;  %v6442_v24 = vmul.f32 %v6437_v32, %v6385_v62 }
0x6da1   :  { %v6443_v19 = vmul.f32 %v6439_v8, %v6400_v60 }
0x6da2   :  { %v6466_v40 = vperm.slane %v6442_v24, 2 }
0x6da3   :  { %v6467_v31 = vperm.slane %v6443_v19, 2 }
0x6da5   :  { %v6468_v44 = vsel %vm457_vm3, %v6467_v31, %v6466_v40 }
0x6da6   :  { %6469 = vrot.lane.b32.xlu0 %v6468_v44, %s8404_s7 }
0x6e18   :  { %v6470_v41 = vpop.permute.xlu0 %6469 }
0x6e19   :  { %7260 = vmatmul.msk.f32.vlgmr.msrb.gmra.mxu3 %vm348_vm9, %v6470_v41 }
0x6e1a   :  { %7279 = vmatpush.msk.msrb.mxu3 %vm352_vm0, %v8030_v39 }
0x6e1c   :  { %6934 = vmatpush.msrb.mxu3 %v8031_v45 }
0x6e1e   :  { %6935 = vmatpush.msrb.mxu3 %v8032_v52 }
0x6e9c   :  { %v6490_v43 = vpop.f32.mrf.mxu3 }
0x6e9d   :  { %v6491_v1 = vadd.f32 %v6490_v43, %v6461_v16 }
0x6e9f   :  { %v6493_v51 = vadd.f32 %v10662_v57, %v6491_v1 }
0x6ea1   :  { %7900 = vtanh.f32 %v6493_v51  ;;  %v7261_v2 = vmul.f32 -1.442695, %v6493_v51 }
0x6ea3   :  { %7902 = vpow2.f32 %v7261_v2 }
0x6ea7   :  { %v7901_v12 = vpop.eup %7900 }
0x6ea8   :  { %6516 = vrot.lane.b32.xlu1 %v7901_v12, %s8402_s12 }
0x6ea9   :  { %v7903_v47 = vpop.eup %7902 }
0x6eaa   :  { %v6497_v27 = vadd.f32 1.0, %v7903_v47 }
0x6eac   :  { %7904 = vrcp.f32 %v6497_v27  ;;  %v6509_v28 = vand.u32 2147483648, %v6497_v27  ;;  %vm6503_vm8 = vweird.f32 %v6497_v27  ;;  %v6507_v58 = vand.u32 2147483647, %v6497_v27 }
0x6eae   :  { %v6510_v49 = vor.u32 1.1754944e-38, %v6509_v28  ;;  %vm6508_vm10 = vcmp.eq.f32.partialorder %v6507_v58, 8.507059e+37 }
0x6eb2   :  { %v7905_v9 = vpop.eup %7904 }
0x6eb3   :  { %v6499_v6 = vmul.f32 %v7905_v9, %v6497_v27  ;;  %vm6504_vm0 = vweird.f32 %v7905_v9 }
0x6eb4   :  { %vm6505_vm15 = vmor %vm6503_vm8, %vm6504_vm0 }
0x6eb5   :  { %v6500_v5 = vsub.f32 1.0, %v6499_v6 }
0x6eb7   :  { %v6501_v22 = vmul.f32 %v7905_v9, %v6500_v5 }
0x6eb9   :  { %v6502_v7 = vadd.f32 %v7905_v9, %v6501_v22 }
0x6ebb   :  { %v6506_v62 = vsel %vm6505_vm15, %v7905_v9, %v6502_v7 }
0x6ebc   :  { %v6511_v53 = vsel %vm6508_vm10, %v6510_v49, %v6506_v62 }
0x6ebd   :  { %v6514_v37 = vmul.f32 %v6511_v53, %v10668_v61 }
0x6f1a   :  { %v6517_v60 = vpop.permute.xlu1 %6516 }
0x6f1b   :  { %v6519_v10 = vmul.f32 %v6517_v60, %v6511_v53 }
0x6f1d   :  { %6521 = vrot.lane.b32.xlu2 %v6519_v10, %s8403_s3 }
0x6f77   :  { %v6522_v15 = vpop.permute.xlu2 %6521 }
0x6f78   :  { %v10789_v0 = vadd.f32 %v6522_v15, %v6514_v37 }
0x6f7a   :  { %7906 = vtanh.f32 %v10789_v0  ;;  %6557 = vrot.lane.b32.xlu2 %v10789_v0, %s8405_s20 }
0x6f80   :  { %v7907_v48 = vpop.eup %7906 }
0x6f81   :  { %6527 = vrot.lane.b32.xlu0 %v7907_v48, %s8403_s3 }
0x6fd4   :  { %v6558_v46 = vpop.permute.xlu2 %6557 }
0x6fd5   :  { %7265 = vmatmul.msk.f32.vlgmr.msrb.gmra.mxu1 %vm348_vm9, %v6558_v46 }
0x6ff3   :  { %v6528_v59 = vpop.permute.xlu0 %6527 }
0x6ff4   :  { %v6530_v36 = vmul.f32 %v6528_v59, %v6511_v53 }
0x6ff6   :  { %6532 = vrot.lane.b32.xlu1 %v6530_v36, %s8404_s7 }
0x7052   :  { %v6578_v61 = vpop.f32.mrf.mxu1 }
0x7068   :  { %v6533_v25 = vpop.permute.xlu1 %6532 }
0x7069   :  { %7263 = vmatmul.msk.f32.vlgmr.msra.gmra.mxu0 %vm348_vm9, %v6533_v25  ;;  %7275 = vmatmul.msk.f32.vlgmr.msra.gmra.mxu1 %vm348_vm9, %v6533_v25 }
0x7071   :  { %7271 = vmatmul.msk.f32.vlgmr.msrb.gmra.mxu0 %vm348_vm9, %v6470_v41 }
0x70e6   :  { %v6553_v32 = vpop.f32.mrf.mxu0 }
0x70e7   :  { %v6581_v8 = vadd.f32 %v6578_v61, %v6553_v32 }
0x70e9   :  { %v6584_v24 = vadd.f32 %v6581_v8, %v8979_v23  ;;  %v6583_v19 = vadd.f32 %v6581_v8, %v8910_v11  ;;  %v6582_v40 = vadd.f32 %v6581_v8, %v8841_v50  ;;  %v6587_v31 = vadd.f32 %v6581_v8, %v9270_v4 }
0x70ea   :  { %v6586_v44 = vadd.f32 %v6581_v8, %v9186_v30  ;;  %v6585_v39 = vadd.f32 %v6581_v8, %v9105_v26  ;;  %v6589_v16 = vadd.f32 %v6581_v8, %v9379_v18  ;;  %v6588_v43 = vadd.f32 %v6581_v8, %v9317_v14 }
0x70eb   :  { %7908 = vtanh.f32 %v6584_v24 }
0x70ec   :  { %7910 = vtanh.f32 %v6583_v19 }
0x70ed   :  { %7912 = vtanh.f32 %v6582_v40 }
0x70ee   :  { %7914 = vtanh.f32 %v6587_v31 }
0x70ef   :  { %7916 = vtanh.f32 %v6586_v44 }
0x70f0   :  { %7918 = vtanh.f32 %v6585_v39 }
0x70f1   :  { %v7909_v41 = vpop.eup %7908  ;;  %7920 = vtanh.f32 %v6589_v16 }
0x70f2   :  { %v7911_v45 = vpop.eup %7910  ;;  %v6600_v23 = vmul.f32 %v10708_v56, %v7909_v41  ;;  %7922 = vtanh.f32 %v6588_v43 }
0x70f3   :  { %v7913_v52 = vpop.eup %7912  ;;  %v6599_v11 = vmul.f32 %v10708_v56, %v7911_v45 }
0x70f4   :  { %v6612_v50 = vsel %vm2638_vm14, %v6600_v23, 0.0  ;;  %v6598_v4 = vmul.f32 %v10708_v56, %v7913_v52  ;;  %v7915_v30 = vpop.eup %7914 }
0x70f5   :  { %6613 = vadd.xlane.f32.xlu2 %v6612_v50  ;;  %v6609_v26 = vsel %vm2638_vm14, %v6599_v11, 0.0  ;;  %v7917_v1 = vpop.eup %7916  ;;  %v6603_v2 = vmul.f32 %v10708_v56, %v7915_v30  ;;  %v6734_v30 = vpop.f32.mrf.mxu0 }
0x70f6   :  { %6610 = vadd.xlane.f32.xlu1 %v6609_v26  ;;  %v6606_v51 = vsel %vm2638_vm14, %v6598_v4, 0.0  ;;  %v7919_v12 = vpop.eup %7918  ;;  %v6602_v47 = vmul.f32 %v10708_v56, %v7917_v1 }
0x70f7   :  { %6607 = vadd.xlane.f32.xlu0 %v6606_v51  ;;  %v6601_v18 = vmul.f32 %v10708_v56, %v7919_v12  ;;  %v6621_v27 = vsel %vm2638_vm14, %v6603_v2, 0.0  ;;  %v7921_v14 = vpop.eup %7920  ;;  %v6738_v51 = vrot.slane %v6734_v30, 5  ;;  %v6739_v12 = vrot.slane %v6734_v30, 6 }
0x70f8   :  { %v6618_v9 = vsel %vm2638_vm14, %v6602_v47, 0.0  ;;  %v7923_v5 = vpop.eup %7922  ;;  %v6605_v22 = vmul.f32 %v10708_v56, %v7921_v14 }
0x70f9   :  { %v6615_v6 = vsel %vm2638_vm14, %v6601_v18, 0.0  ;;  %v6604_v7 = vmul.f32 %v10708_v56, %v7923_v5  ;;  %v6744_v18 = vrot.slane %v10632_v17, 5 }
0x70fa   :  { %v6627_v28 = vsel %vm2638_vm14, %v6605_v22, 0.0 }
0x70fb   :  { %v6624_v58 = vsel %vm2638_vm14, %v6604_v7, 0.0 }
0x70fd   :  { %6622 = vadd.xlane.f32.xlu2 %v6621_v27 }
0x70fe   :  { %6619 = vadd.xlane.f32.xlu1 %v6618_v9 }
0x70ff   :  { %6616 = vadd.xlane.f32.xlu0 %v6615_v6 }
0x7106   :  { %6628 = vadd.xlane.f32.xlu1 %v6627_v28 }
0x7107   :  { %6625 = vadd.xlane.f32.xlu0 %v6624_v58 }
0x7115   :  { %6654 = vrot.lane.b32.xlu2 %v6553_v32, %s8405_s20 }
0x7168   :  { %v6614_v62 = vpop.xlane.xlu2 %6613 }
0x7169   :  { %v6611_v49 = vpop.xlane.xlu1 %6610  ;;  %v6632_v56 = vmul.f32 %v6614_v62, %v8937_v54 }
0x716a   :  { %v6631_v60 = vmul.f32 %v6611_v49, %v8875_v29  ;;  %v6608_v53 = vpop.xlane.xlu0 %6607 }
0x716b   :  { %v6630_v10 = vmul.f32 %v6608_v53, %v8801_v63  ;;  %v6641_v25 = vsel %vm2671_vm5, %v6632_v56, 0.0 }
0x716c   :  { %v6639_v37 = vsel %vm2671_vm5, %v6631_v60, 0.0 }
0x716d   :  { %v6638_v15 = vsel %vm2671_vm5, %v6630_v10, 0.0 }
0x716e   :  { %v6640_v48 = vadd.f32 %v6639_v37, %v6638_v15 }
0x7170   :  { %v6623_v46 = vpop.xlane.xlu2 %6622  ;;  %v6642_v29 = vadd.f32 %v6641_v25, %v6640_v48 }
0x7171   :  { %v6620_v59 = vpop.xlane.xlu1 %6619  ;;  %v6635_v24 = vmul.f32 %v6623_v46, %v9235_v55 }
0x7172   :  { %v6617_v36 = vpop.xlane.xlu0 %6616  ;;  %v6634_v61 = vmul.f32 %v6620_v59, %v9138_v33 }
0x7173   :  { %v6633_v32 = vmul.f32 %v6617_v36, %v9006_v42  ;;  %v6647_v42 = vsel %vm2671_vm5, %v6635_v24, 0.0 }
0x7174   :  { %v6645_v19 = vsel %vm2671_vm5, %v6634_v61, 0.0 }
0x7175   :  { %v6643_v8 = vsel %vm2671_vm5, %v6633_v32, 0.0 }
0x7176   :  { %v6644_v63 = vadd.f32 %v6643_v8, %v6642_v29 }
0x7178   :  { %v6646_v40 = vadd.f32 %v6645_v19, %v6644_v63  ;;  %v6655_v54 = vpop.permute.xlu2 %6654 }
0x7179   :  { %6950 = vst.msk [vmem:[%s10903_s27 + $0x4] sm:$0x3] %vm6947_vm4, %v6655_v54  ;;  %v6629_v31 = vpop.xlane.xlu1 %6628  ;;  %7267 = vmatmul.msk.f32.vlgmr.msra.gmra.mxu2 %vm2558_vm1, %v6655_v54 }
0x717a   :  { %v6626_v33 = vpop.xlane.xlu0 %6625  ;;  %v6637_v44 = vmul.f32 %v6629_v31, %v9362_v21  ;;  %v6648_v55 = vadd.f32 %v6647_v42, %v6646_v40 }
0x717b   :  { %v6636_v39 = vmul.f32 %v6626_v33, %v9295_v3  ;;  %v6790_v33 = vrot.slane %v10763_v34, 7 }
0x717c   :  { %v6651_v23 = vsel %vm2671_vm5, %v6637_v44, 0.0 }
0x717d   :  { %v6649_v41 = vsel %vm2671_vm5, %v6636_v39, 0.0 }
0x717e   :  { %v6650_v45 = vadd.f32 %v6649_v41, %v6648_v55  ;;  %v6791_v41 = vrot.slane %v10768_v38, 7  ;;  %v6845_v38 = vpop.f32.mrf.mxu1 }
0x7180   :  { %v6652_v52 = vadd.f32 %v6651_v23, %v6650_v45 }
0x7182   :  { %6686 = vrot.lane.b32.xlu0 %v6652_v52, %s8404_s7 }
0x71f4   :  { %v6687_v11 = vpop.permute.xlu0 %6686 }
0x71f5   :  { %7269 = vmatmul.msk.f32.vlgmr.msra.gmra.mxu3 %vm348_vm9, %v6687_v11 }
0x71fc   :  { %v6675_v50 = vpop.f32.mrf.mxu2 }
0x71fd   :  { %v6679_v4 = vrot.slane %v6675_v50, 5  ;;  %v6680_v16 = vrot.slane %v6675_v50, 6 }
0x71ff   :  { %v6683_v21 = vadd.f32 %v6679_v4, %v9447_v13  ;;  %v6684_v3 = vadd.f32 %v6680_v16, %v10514_v35 }
0x7278   :  { %v6707_v26 = vpop.f32.mrf.mxu3 }
0x7279   :  { %v6711_v43 = vrot.slane %v6707_v26, 5  ;;  %v6712_v1 = vrot.slane %v6707_v26, 6 }
0x727b   :  { %v6715_v2 = vadd.f32 %v6711_v43, %v6683_v21  ;;  %v6716_v47 = vadd.f32 %v6712_v1, %v6684_v3 }
0x727d   :  { %v6742_v27 = vadd.f32 %v6738_v51, %v6715_v2  ;;  %v6743_v9 = vadd.f32 %v6739_v12, %v6716_v47 }
0x727f   :  { %v6746_v14 = vadd.f32 %v6744_v18, %v6742_v27  ;;  %v6747_v6 = vadd.f32 %v6743_v9, %v6360_v20 }
0x7281   :  { %7924 = vtanh.f32 %v6746_v14  ;;  %v7272_v35 = vmul.f32 -1.442695, %v6746_v14  ;;  %v7273_v22 = vmul.f32 -1.442695, %v6747_v6 }
0x7282   :  { %7926 = vtanh.f32 %v6747_v6 }
0x7283   :  { %7928 = vpow2.f32 %v7272_v35 }
0x7284   :  { %7930 = vpow2.f32 %v7273_v22 }
0x7287   :  { %v7925_v5 = vpop.eup %7924 }
0x7288   :  { %v7927_v13 = vpop.eup %7926  ;;  %6798 = vrot.lane.b32.xlu1 %v7925_v5, %s8402_s12 }
0x7289   :  { %6800 = vrot.lane.b32.xlu0 %v7927_v13, %s8402_s12  ;;  %v7929_v7 = vpop.eup %7928 }
0x728a   :  { %v7931_v28 = vpop.eup %7930  ;;  %v6754_v58 = vadd.f32 1.0, %v7929_v7 }
0x728b   :  { %v6755_v62 = vadd.f32 1.0, %v7931_v28 }
0x728c   :  { %7932 = vrcp.f32 %v6754_v58  ;;  %v6767_v46 = vand.u32 2147483648, %v6754_v58  ;;  %vm6761_vm5 = vweird.f32 %v6754_v58  ;;  %v6765_v36 = vand.u32 2147483647, %v6754_v58 }
0x728d   :  { %7934 = vrcp.f32 %v6755_v62  ;;  %v6782_v59 = vand.u32 2147483648, %v6755_v62  ;;  %vm6776_vm11 = vweird.f32 %v6755_v62  ;;  %v6780_v25 = vand.u32 2147483647, %v6755_v62 }
0x728e   :  { %v6768_v29 = vor.u32 1.1754944e-38, %v6767_v46  ;;  %vm6766_vm2 = vcmp.eq.f32.partialorder %v6765_v36, 8.507059e+37 }
0x728f   :  { %v6783_v8 = vor.u32 1.1754944e-38, %v6782_v59  ;;  %vm6781_vm6 = vcmp.eq.f32.partialorder %v6780_v25, 8.507059e+37 }
0x7292   :  { %v7933_v17 = vpop.eup %7932 }
0x7293   :  { %v7935_v20 = vpop.eup %7934  ;;  %v6757_v49 = vmul.f32 %v7933_v17, %v6754_v58  ;;  %vm6762_vm14 = vweird.f32 %v7933_v17 }
0x7294   :  { %v6772_v60 = vmul.f32 %v7935_v20, %v6755_v62  ;;  %vm6777_vm1 = vweird.f32 %v7935_v20  ;;  %vm6763_vm12 = vmor %vm6761_vm5, %vm6762_vm14 }
0x7295   :  { %v6758_v53 = vsub.f32 1.0, %v6757_v49  ;;  %vm6778_vm13 = vmor %vm6776_vm11, %vm6777_vm1 }
0x7296   :  { %v6773_v10 = vsub.f32 1.0, %v6772_v60 }
0x7297   :  { %v6759_v37 = vmul.f32 %v7933_v17, %v6758_v53 }
0x7298   :  { %v6774_v15 = vmul.f32 %v7935_v20, %v6773_v10 }
0x7299   :  { %v6760_v56 = vadd.f32 %v7933_v17, %v6759_v37 }
0x729a   :  { %v6775_v48 = vadd.f32 %v7935_v20, %v6774_v15 }
0x729b   :  { %v6764_v61 = vsel %vm6763_vm12, %v7933_v17, %v6760_v56 }
0x729c   :  { %v6779_v32 = vsel %vm6778_vm13, %v7935_v20, %v6775_v48  ;;  %v6769_v24 = vsel %vm6766_vm2, %v6768_v29, %v6764_v61 }
0x729d   :  { %v6784_v40 = vsel %vm6781_vm6, %v6783_v8, %v6779_v32  ;;  %v6794_v42 = vmul.f32 %v6790_v33, %v6769_v24 }
0x729e   :  { %v6795_v45 = vmul.f32 %v6791_v41, %v6784_v40 }
0x72fa   :  { %v6799_v63 = vpop.permute.xlu1 %6798 }
0x72fb   :  { %v6801_v19 = vpop.permute.xlu0 %6800  ;;  %v6804_v54 = vmul.f32 %v6799_v63, %v6769_v24 }
0x72fc   :  { %v6805_v31 = vmul.f32 %v6801_v19, %v6784_v40 }
0x72fd   :  { %6808 = vrot.lane.b32.xlu2 %v6804_v54, %s8403_s3 }
0x72fe   :  { %6810 = vrot.lane.b32.xlu0 %v6805_v31, %s8403_s3 }
0x7357   :  { %v6809_v44 = vpop.permute.xlu2 %6808 }
0x7358   :  { %v6814_v39 = vadd.f32 %v6809_v44, %v6794_v42 }
0x735a   :  { %7936 = vtanh.f32 %v6814_v39 }
0x7360   :  { %v7937_v55 = vpop.eup %7936 }
0x7361   :  { %6820 = vrot.lane.b32.xlu1 %v7937_v55, %s8403_s3 }
0x7370   :  { %v6811_v23 = vpop.permute.xlu0 %6810 }
0x7371   :  { %v6815_v52 = vadd.f32 %v6811_v23, %v6795_v45 }
0x7373   :  { %7938 = vtanh.f32 %v6815_v52 }
0x7379   :  { %v7939_v11 = vpop.eup %7938 }
0x737a   :  { %6822 = vrot.lane.b32.xlu2 %v7939_v11, %s8403_s3 }
0x73d3   :  { %v6821_v50 = vpop.permute.xlu1 %6820 }
0x73d4   :  { %v6823_v4 = vpop.permute.xlu2 %6822  ;;  %v6826_v16 = vmul.f32 %v6821_v50, %v6769_v24 }
0x73d5   :  { %v6827_v34 = vmul.f32 %v6823_v4, %v6784_v40 }
0x73d6   :  { %v6850_v30 = vperm.slane %v6826_v16, 3 }
0x73d7   :  { %v6851_v26 = vperm.slane %v6827_v34, 3 }
0x73d9   :  { %v6852_v21 = vsel %vm457_vm3, %v6851_v26, %v6850_v30 }
0x73da   :  { %6853 = vrot.lane.b32.xlu0 %v6852_v21, %s8404_s7 }
0x744c   :  { %v6854_v3 = vpop.permute.xlu0 %6853 }
0x744d   :  { %7277 = vmatmul.msk.f32.vlgmr.msrb.gmra.mxu2 %vm348_vm9, %v6854_v3 }
0x74d0   :  { %v6874_v43 = vpop.f32.mrf.mxu2 }
0x74d1   :  { %v6875_v1 = vadd.f32 %v6874_v43, %v6845_v38 }
0x74d3   :  { %v6877_v51 = vadd.f32 %v10662_v57, %v6875_v1 }
0x74d5   :  { %7940 = vtanh.f32 %v6877_v51  ;;  %v7278_v2 = vmul.f32 -1.442695, %v6877_v51 }
0x74d7   :  { %7942 = vpow2.f32 %v7278_v2 }
0x74db   :  { %v7941_v12 = vpop.eup %7940 }
0x74dc   :  { %6900 = vrot.lane.b32.xlu1 %v7941_v12, %s8402_s12 }
0x74dd   :  { %v7943_v47 = vpop.eup %7942 }
0x74de   :  { %v6881_v18 = vadd.f32 1.0, %v7943_v47 }
0x74e0   :  { %7944 = vrcp.f32 %v6881_v18  ;;  %v6893_v13 = vand.u32 2147483648, %v6881_v18  ;;  %vm6887_vm7 = vweird.f32 %v6881_v18  ;;  %v6891_v35 = vand.u32 2147483647, %v6881_v18 }
0x74e2   :  { %v6894_v22 = vor.u32 1.1754944e-38, %v6893_v13  ;;  %vm6892_vm8 = vcmp.eq.f32.partialorder %v6891_v35, 8.507059e+37 }
0x74e6   :  { %v7945_v27 = vpop.eup %7944 }
0x74e7   :  { %v6883_v9 = vmul.f32 %v7945_v27, %v6881_v18  ;;  %vm6888_vm3 = vweird.f32 %v7945_v27 }
0x74e8   :  { %vm6889_vm0 = vmor %vm6887_vm7, %vm6888_vm3 }
0x74e9   :  { %v6884_v14 = vsub.f32 1.0, %v6883_v9 }
0x74eb   :  { %v6885_v6 = vmul.f32 %v7945_v27, %v6884_v14 }
0x74ed   :  { %v6886_v5 = vadd.f32 %v7945_v27, %v6885_v6 }
0x74ef   :  { %v6890_v57 = vsel %vm6889_vm0, %v7945_v27, %v6886_v5 }
0x74f0   :  { %v6895_v28 = vsel %vm6892_vm8, %v6894_v22, %v6890_v57 }
0x74f1   :  { %v6898_v62 = vmul.f32 %v6895_v28, %v10789_v0 }
0x754e   :  { %v6901_v7 = vpop.permute.xlu1 %6900 }
0x754f   :  { %v6903_v58 = vmul.f32 %v6901_v7, %v6895_v28 }
0x7551   :  { %6905 = vrot.lane.b32.xlu2 %v6903_v58, %s8403_s3 }
0x75ab   :  { %v6906_v17 = vpop.permute.xlu2 %6905 }
0x75ac   :  { %v6908_v20 = vadd.f32 %v6906_v17, %v6898_v62 }
0x75ae   :  { %7946 = vtanh.f32 %v6908_v20 }
0x75b4   :  { %v7947_v49 = vpop.eup %7946 }
0x75b5   :  { %6911 = vrot.lane.b32.xlu0 %v7947_v49, %s8403_s3 }
0x7627   :  { %v6912_v60 = vpop.permute.xlu0 %6911 }
0x7628   :  { %v6914_v53 = vmul.f32 %v6912_v60, %v6895_v28 }
0x762a   :  { %6916 = vrot.lane.b32.xlu1 %v6914_v53, %s8404_s7 }
0x769c   :  { %v6917_v10 = vpop.permute.xlu1 %6916 }
0x769d   :  { %7280 = vmatmul.msk.f32.vlgmr.msrb.gmra.mxu3 %vm348_vm9, %v6917_v10 }
0x7720   :  { %v6937_v37 = vpop.f32.mrf.mxu3 }
0x7721   :  { %6941 = vrot.lane.b32.xlu2 %v6937_v37, %s8405_s20 }
0x777b   :  { %v6942_v15 = vpop.permute.xlu2 %6941 }
0x777c   :  { %6951 = vst.msk [vmem:[%s10903_s27 + $0x6] sm:$0x3] %vm6947_vm4, %v6942_v15 }
0x777d   :  { %6956 = vsyncpa [#allocation3], 1 }
0x777e   :  { %6957 = vsyncpa [#allocation5], 1 }
0x777f   :  { %6958 = vsyncpa [#allocation8], 1 }
0x7780   :  { %6959 = vsyncpa [#allocation11], 1 }
0x7781   :  { %6960 = vsyncpa [#allocation14], 1 }
0x7782   :  { %6961 = vsyncpa [#allocation17], 1 }
0x7783   :  { %6962 = vsyncpa [#allocation20], 1 }
0x7784   :  { %6963 = vsyncpa [#allocation23], 1 }

</bundles_post_ra>
